<compile_context>
chip_gen: v7x
topology: tpu7x:2x2x1
jax: 0.10.0
libtpu: 0.0.40
codegen_flags: <defaults>
</compile_context>

<pallas_src>
import functools

import numpy as np
import jax
import jax.numpy as jnp
from jax.experimental import pallas as pl
from jax.experimental.pallas import tpu as pltpu

# ----------------------------- config ---------------------------------------
NZ = 32
NGF = 2
RATIO = 25
IMG_CHANNELS = 1
NOISE_RATIO = int(NZ * RATIO / 100)  # 8
BN_EPS = 1e-5
ACT_DTYPE = jnp.bfloat16  # intermediate activations + conv weight matrices


def _vmem_specs(n):
    return [pl.BlockSpec(memory_space=pltpu.MemorySpace.VMEM) for _ in range(n)]


# --------------------------- Pallas kernels ----------------------------------
def _head_kernel(noise_ref, label_ref, wz_ref, bz_ref, wy_ref, by_ref,
                 w1z_ref, w1y_ref, f_ref, ft_ref, g_ref, b_ref, o_ref,
                 *, inv_count):
    """Linear(nz->24)+ReLU, Linear(15->8)+ReLU, concat, ConvT(nz,64,4,1,0)
    (a pure matmul on the 1x1 input), fused training-mode BN + ReLU.
    Output lanes are ordered (oh, ow, co) with oh,ow in [0,4)."""
    z = jnp.maximum(
        jnp.dot(noise_ref[...], wz_ref[...], preferred_element_type=jnp.float32)
        + bz_ref[...], 0.0)
    y = jnp.maximum(
        jnp.dot(label_ref[...], wy_ref[...], preferred_element_type=jnp.float32)
        + by_ref[...], 0.0)
    # concat([z, y]) @ W1 realized as a split matmul (avoids a lane concat)
    p = (jnp.dot(z, w1z_ref[...], preferred_element_type=jnp.float32)
         + jnp.dot(y, w1y_ref[...], preferred_element_type=jnp.float32))

    # fused BatchNorm (batch stats) + ReLU; channel = lane % Cout via fold mats
    colsum = jnp.sum(p, axis=0, keepdims=True)
    colsq = jnp.sum(p * p, axis=0, keepdims=True)
    chs = jnp.dot(colsum, f_ref[...], preferred_element_type=jnp.float32)
    chq = jnp.dot(colsq, f_ref[...], preferred_element_type=jnp.float32)
    mean = chs * inv_count
    var = jnp.maximum(chq * inv_count - mean * mean, 0.0)
    scale = g_ref[...] * jax.lax.rsqrt(var + BN_EPS)
    shift = b_ref[...] - mean * scale
    scale_l = jnp.dot(scale, ft_ref[...], preferred_element_type=jnp.float32)
    shift_l = jnp.dot(shift, ft_ref[...], preferred_element_type=jnp.float32)
    o_ref[...] = jnp.maximum(p * scale_l + shift_l, 0.0).astype(o_ref.dtype)


def _row_taps(x, ih):
    """x: (B*ih, W).  Return x shifted down/up by one input row (per image,
    zeros shifted in at image boundaries)."""
    m, w = x.shape
    zero_row = jnp.zeros((1, w), x.dtype)
    x_up = jnp.concatenate([zero_row, x[:-1, :]], axis=0)   # row r -> x[r-1]
    x_dn = jnp.concatenate([x[1:, :], zero_row], axis=0)    # row r -> x[r+1]
    row = jax.lax.broadcasted_iota(jnp.int32, (m, 1), 0)
    x_up = jnp.where(row % ih == 0, jnp.zeros_like(x_up), x_up)
    x_dn = jnp.where(row % ih == ih - 1, jnp.zeros_like(x_dn), x_dn)
    return x_up, x_dn


def _upconv_phases(x_ref, w_ref, ih):
    """Sub-pixel ConvTranspose(4,2,1): p0 = even output rows, p1 = odd output
    rows, each (B*ih, OW*Cout), via four lane-dense MXU matmuls."""
    x = x_ref[...]
    x_up, x_dn = _row_taps(x, ih)
    a_kh1, a_kh3, a_kh0, a_kh2 = w_ref[0], w_ref[1], w_ref[2], w_ref[3]
    p0 = (jnp.dot(x, a_kh1, preferred_element_type=jnp.float32)
          + jnp.dot(x_up, a_kh3, preferred_element_type=jnp.float32))
    p1 = (jnp.dot(x_dn, a_kh0, preferred_element_type=jnp.float32)
          + jnp.dot(x, a_kh2, preferred_element_type=jnp.float32))
    return p0, p1


def _upconv_bn_relu_kernel(x_ref, w_ref, f_ref, ft_ref, g_ref, b_ref, o_ref,
                           *, ih, inv_count):
    p0, p1 = _upconv_phases(x_ref, w_ref, ih)
    # fused training-mode BN stats over both row phases
    colsum = jnp.sum(p0, axis=0, keepdims=True) + jnp.sum(p1, axis=0, keepdims=True)
    colsq = (jnp.sum(p0 * p0, axis=0, keepdims=True)
             + jnp.sum(p1 * p1, axis=0, keepdims=True))
    chs = jnp.dot(colsum, f_ref[...], preferred_element_type=jnp.float32)
    chq = jnp.dot(colsq, f_ref[...], preferred_element_type=jnp.float32)
    mean = chs * inv_count
    var = jnp.maximum(chq * inv_count - mean * mean, 0.0)   # clamp (review note)
    scale = g_ref[...] * jax.lax.rsqrt(var + BN_EPS)
    shift = b_ref[...] - mean * scale
    scale_l = jnp.dot(scale, ft_ref[...], preferred_element_type=jnp.float32)
    shift_l = jnp.dot(shift, ft_ref[...], preferred_element_type=jnp.float32)
    w_out = p0.shape[1]
    o_ref[:, 0:w_out] = jnp.maximum(p0 * scale_l + shift_l, 0.0).astype(o_ref.dtype)
    o_ref[:, w_out:2 * w_out] = jnp.maximum(p1 * scale_l + shift_l, 0.0).astype(o_ref.dtype)


def _upconv_tanh_kernel(x_ref, w_ref, o_ref, *, ih):
    p0, p1 = _upconv_phases(x_ref, w_ref, ih)
    w_out = p0.shape[1]
    o_ref[:, 0:w_out] = jnp.tanh(p0).astype(o_ref.dtype)
    o_ref[:, w_out:2 * w_out] = jnp.tanh(p1).astype(o_ref.dtype)


# ------------------------------ wrappers --------------------------------------
def head_forward(prep, noise, label):
    batch = noise.shape[0]
    lanes = prep["w1z"].shape[1]
    c1 = prep["g1"].shape[1]
    count = batch * (lanes // c1)  # B * OH * OW = B * 16
    kernel = functools.partial(_head_kernel, inv_count=1.0 / count)
    return pl.pallas_call(
        kernel,
        out_shape=jax.ShapeDtypeStruct((batch, lanes), ACT_DTYPE),
        in_specs=_vmem_specs(12),
        out_specs=pl.BlockSpec(memory_space=pltpu.MemorySpace.VMEM),
    )(noise, label, prep["yz_w"], prep["yz_b"], prep["yl_w"], prep["yl_b"],
      prep["w1z"], prep["w1y"], prep["F1"], prep["FT1"], prep["g1"], prep["b1"])


def upconv_bn_relu(x, wstack, fmat, ftmat, gamma, beta, ih, batch):
    m = x.shape[0]
    w_out = wstack.shape[2]
    cout = fmat.shape[1]
    ow = w_out // cout
    count = batch * (2 * ih) * ow  # B * OH * OW
    kernel = functools.partial(_upconv_bn_relu_kernel, ih=ih, inv_count=1.0 / count)
    return pl.pallas_call(
        kernel,
        out_shape=jax.ShapeDtypeStruct((m, 2 * w_out), ACT_DTYPE),
        in_specs=_vmem_specs(6),
        out_specs=pl.BlockSpec(memory_space=pltpu.MemorySpace.VMEM),
    )(x, wstack, fmat, ftmat, gamma, beta)


def upconv_tanh(x, wstack, ih):
    m = x.shape[0]
    w_out = wstack.shape[2]
    kernel = functools.partial(_upconv_tanh_kernel, ih=ih)
    return pl.pallas_call(
        kernel,
        out_shape=jax.ShapeDtypeStruct((m, 2 * w_out), jnp.float32),
        in_specs=_vmem_specs(2),
        out_specs=pl.BlockSpec(memory_space=pltpu.MemorySpace.VMEM),
    )(x, wstack)


# ------------------------------ parameters -----------------------------------
def init_params(key):
    ks = jax.random.split(key, 12)

    def nrm(k, shape, std=0.02):
        return std * jax.random.normal(k, shape, jnp.float32)

    p = {}
    p["yz_w"] = nrm(ks[0], (NZ, NZ - NOISE_RATIO))
    p["yz_b"] = jnp.zeros((1, NZ - NOISE_RATIO), jnp.float32)
    p["yl_w"] = nrm(ks[1], (15, NOISE_RATIO))
    p["yl_b"] = jnp.zeros((1, NOISE_RATIO), jnp.float32)
    chans = [NZ, NGF * 32, NGF * 16, NGF * 8, NGF * 4, NGF * 2, NGF, IMG_CHANNELS]
    for i in range(1, 8):
        p[f"w{i}"] = nrm(ks[1 + i], (chans[i - 1], chans[i], 4, 4))  # torch ConvT layout
        if i < 7:  # BatchNorm affine (PyTorch default: gamma=1, beta=0)
            p[f"g{i}"] = jnp.ones((chans[i],), jnp.float32)
            p[f"b{i}"] = jnp.zeros((chans[i],), jnp.float32)
    return p


def _width_matrix(w, kh, iw):
    """ConvT weight (Cin,Cout,4,4) -> (IW*Cin, OW*Cout) dense matrix for the
    width-direction transposed conv at a fixed kernel row kh (stride 2, pad 1)."""
    cin, cout = w.shape[0], w.shape[1]
    ow_total = 2 * iw
    a = jnp.zeros((iw, cin, ow_total, cout), jnp.float32)
    for kw in range(4):
        iw_idx = np.arange(iw)
        ow_idx = 2 * iw_idx - 1 + kw
        valid = (ow_idx >= 0) & (ow_idx < ow_total)
        a = a.at[iw_idx[valid], :, ow_idx[valid], :].set(w[:, :, kh, kw])
    return a.reshape(iw * cin, ow_total * cout)


def _fold_matrices(lanes, cout):
    """F[l,c]=1 iff l % cout == c (fold lanes -> channels) and its transpose."""
    f = (np.arange(lanes)[:, None] % cout == np.arange(cout)[None, :]).astype(np.float32)
    return jnp.asarray(f), jnp.asarray(f.T)


def preprocess_params(p):
    """One-time repack of the PyTorch-layout parameters into the matrices the
    Pallas kernels consume (done outside the jitted forward)."""
    prep = {"yz_w": p["yz_w"], "yz_b": p["yz_b"],
            "yl_w": p["yl_w"], "yl_b": p["yl_b"]}
    # layer 1: ConvT(nz, ngf*32, 4, 1, 0) on a 1x1 input == matmul, lane order (oh,ow,co)
    c1 = p["w1"].shape[1]
    w1r = p["w1"].transpose(0, 2, 3, 1).reshape(NZ, 4 * 4 * c1)
    prep["w1z"] = w1r[:NZ - NOISE_RATIO, :]
    prep["w1y"] = w1r[NZ - NOISE_RATIO:, :]
    prep["F1"], prep["FT1"] = _fold_matrices(4 * 4 * c1, c1)
    prep["g1"] = p["g1"].reshape(1, c1)
    prep["b1"] = p["b1"].reshape(1, c1)
    # layers 2..7: ConvT(4,2,1) -> 4 phase matrices (kh = 1,3,0,2), bf16
    ih = 4
    for i in range(2, 8):
        w = p[f"w{i}"]
        cout = w.shape[1]
        mats = [_width_matrix(w, kh, ih) for kh in (1, 3, 0, 2)]
        prep[f"w{i}"] = jnp.stack(mats, axis=0).astype(ACT_DTYPE)
        if i < 7:
            prep[f"F{i}"], prep[f"FT{i}"] = _fold_matrices(2 * ih * cout, cout)
            prep[f"g{i}"] = p[f"g{i}"].reshape(1, cout)
            prep[f"b{i}"] = p[f"b{i}"].reshape(1, cout)
        ih *= 2
    return prep


# ------------------------------- forward -------------------------------------
def generator_forward(prep, noise, label):
    batch = noise.shape[0]
    c1 = NGF * 32

    # embedding + layer 1 (conv + BN + ReLU) fused into one kernel -> (B, 1024)
    h = head_forward(prep, noise, label)
    # rows = (b, oh), lanes = (ow, co): the canonical lane-dense layout
    x = h.reshape(batch * 4, 4 * c1)

    # layers 2..6: fused ConvT(4,2,1) + BN + ReLU, one pallas_call each
    for i in range(2, 7):
        ih = x.shape[0] // batch
        out = upconv_bn_relu(x, prep[f"w{i}"], prep[f"F{i}"], prep[f"FT{i}"],
                             prep[f"g{i}"], prep[f"b{i}"], ih, batch)
        # even/odd output-row interleave is a free row-major reshape
        x = out.reshape(x.shape[0] * 2, out.shape[1] // 2)

    # layer 7: fused ConvT(ngf, 1, 4, 2, 1) + Tanh
    ih = x.shape[0] // batch
    out = upconv_tanh(x, prep["w7"], ih)                     # (B*ih, 2*OW*Cout) f32
    oh = 2 * ih
    ow_c = out.shape[1] // 2
    cout = ow_c // oh
    img = out.reshape(batch, oh, oh, cout).transpose(0, 3, 1, 2)  # NCHW
    return img


# --------------------------------- main ---------------------------------------
if __name__ == "__main__":
    key = jax.random.PRNGKey(0)
    kp, kn, kl = jax.random.split(key, 3)
    params = init_params(kp)
    prep = preprocess_params(params)  # one-time weight repack (outside jit)

    batch = 2
    noise = jax.random.normal(kn, (batch, NZ), jnp.float32)   # matches nz
    label = jax.random.normal(kl, (batch, 15), jnp.float32)   # Linear(15, ...)

    fwd = jax.jit(generator_forward)
    out = jax.block_until_ready(fwd(prep, noise, label))

    assert out.shape == (batch, IMG_CHANNELS, 256, 256), out.shape
    assert bool(jnp.all(jnp.isfinite(out)))
    assert bool(jnp.all(jnp.abs(out) <= 1.0 + 1e-6))  # tanh range
    print("KERNEL_OK")
</pallas_src>

<mosaic_0001>
module attributes {stable_mosaic.version = 11 : i64} {
  func.func @_head_kernel(%arg0: memref<2x32xf32, #tpu.memory_space<vmem>>, %arg1: memref<2x15xf32, #tpu.memory_space<vmem>>, %arg2: memref<32x24xf32, #tpu.memory_space<vmem>>, %arg3: memref<1x24xf32, #tpu.memory_space<vmem>>, %arg4: memref<15x8xf32, #tpu.memory_space<vmem>>, %arg5: memref<1x8xf32, #tpu.memory_space<vmem>>, %arg6: memref<24x1024xf32, #tpu.memory_space<vmem>>, %arg7: memref<8x1024xf32, #tpu.memory_space<vmem>>, %arg8: memref<1024x64xf32, #tpu.memory_space<vmem>>, %arg9: memref<64x1024xf32, #tpu.memory_space<vmem>>, %arg10: memref<1x64xf32, #tpu.memory_space<vmem>>, %arg11: memref<1x64xf32, #tpu.memory_space<vmem>>, %arg12: memref<2x1024xbf16, #tpu.memory_space<vmem>>) attributes {dimension_semantics = [], scalar_prefetch = 0 : i64, scratch_operands = 0 : i64, tpu.core_type = #tpu.core_type<tc>} {
    %c0 = arith.constant 0 : index
    %c0_0 = arith.constant 0 : index
    %0 = vector.load %arg0[%c0, %c0_0] : memref<2x32xf32, #tpu.memory_space<vmem>>, vector<2x32xf32>
    %c0_1 = arith.constant 0 : index
    %c0_2 = arith.constant 0 : index
    %1 = vector.load %arg2[%c0_1, %c0_2] : memref<32x24xf32, #tpu.memory_space<vmem>>, vector<32x24xf32>
    %cst = arith.constant dense<0.000000e+00> : vector<2x24xf32>
    %2 = tpu.matmul %0, %1, %cst {dimension_numbers = #tpu.dot_dimension_numbers<[1], [0], [0], [1], [0, 0, 1, 1], [], []>} : vector<2x32xf32>, vector<32x24xf32>, vector<2x24xf32> -> vector<2x24xf32>
    %c0_3 = arith.constant 0 : index
    %c0_4 = arith.constant 0 : index
    %3 = vector.load %arg3[%c0_3, %c0_4] : memref<1x24xf32, #tpu.memory_space<vmem>>, vector<1x24xf32>
    %4 = vector.broadcast %3 : vector<1x24xf32> to vector<2x24xf32>
    %5 = arith.addf %2, %4 : vector<2x24xf32>
    %cst_5 = arith.constant 0.000000e+00 : f32
    %6 = vector.broadcast %cst_5 : f32 to vector<2x24xf32>
    %7 = arith.maximumf %5, %6 : vector<2x24xf32>
    %c0_6 = arith.constant 0 : index
    %c0_7 = arith.constant 0 : index
    %8 = vector.load %arg1[%c0_6, %c0_7] : memref<2x15xf32, #tpu.memory_space<vmem>>, vector<2x15xf32>
    %c0_8 = arith.constant 0 : index
    %c0_9 = arith.constant 0 : index
    %9 = vector.load %arg4[%c0_8, %c0_9] : memref<15x8xf32, #tpu.memory_space<vmem>>, vector<15x8xf32>
    %cst_10 = arith.constant dense<0.000000e+00> : vector<2x8xf32>
    %10 = tpu.matmul %8, %9, %cst_10 {dimension_numbers = #tpu.dot_dimension_numbers<[1], [0], [0], [1], [0, 0, 1, 1], [], []>} : vector<2x15xf32>, vector<15x8xf32>, vector<2x8xf32> -> vector<2x8xf32>
    %c0_11 = arith.constant 0 : index
    %c0_12 = arith.constant 0 : index
    %11 = vector.load %arg5[%c0_11, %c0_12] : memref<1x8xf32, #tpu.memory_space<vmem>>, vector<1x8xf32>
    %12 = vector.broadcast %11 : vector<1x8xf32> to vector<2x8xf32>
    %13 = arith.addf %10, %12 : vector<2x8xf32>
    %cst_13 = arith.constant 0.000000e+00 : f32
    %14 = vector.broadcast %cst_13 : f32 to vector<2x8xf32>
    %15 = arith.maximumf %13, %14 : vector<2x8xf32>
    %c0_14 = arith.constant 0 : index
    %c0_15 = arith.constant 0 : index
    %16 = vector.load %arg6[%c0_14, %c0_15] : memref<24x1024xf32, #tpu.memory_space<vmem>>, vector<24x1024xf32>
    %cst_16 = arith.constant dense<0.000000e+00> : vector<2x1024xf32>
    %17 = tpu.matmul %7, %16, %cst_16 {dimension_numbers = #tpu.dot_dimension_numbers<[1], [0], [0], [1], [0, 0, 1, 1], [], []>} : vector<2x24xf32>, vector<24x1024xf32>, vector<2x1024xf32> -> vector<2x1024xf32>
    %c0_17 = arith.constant 0 : index
    %c0_18 = arith.constant 0 : index
    %18 = vector.load %arg7[%c0_17, %c0_18] : memref<8x1024xf32, #tpu.memory_space<vmem>>, vector<8x1024xf32>
    %cst_19 = arith.constant dense<0.000000e+00> : vector<2x1024xf32>
    %19 = tpu.matmul %15, %18, %cst_19 {dimension_numbers = #tpu.dot_dimension_numbers<[1], [0], [0], [1], [0, 0, 1, 1], [], []>} : vector<2x8xf32>, vector<8x1024xf32>, vector<2x1024xf32> -> vector<2x1024xf32>
    %20 = arith.addf %17, %19 : vector<2x1024xf32>
    %cst_20 = arith.constant dense<0.000000e+00> : vector<1024xf32>
    %21 = vector.multi_reduction <add>, %20, %cst_20 [0] : vector<2x1024xf32> to vector<1024xf32>
    %22 = vector.shape_cast %21 : vector<1024xf32> to vector<1x1024xf32>
    %23 = arith.mulf %20, %20 : vector<2x1024xf32>
    %cst_21 = arith.constant dense<0.000000e+00> : vector<1024xf32>
    %24 = vector.multi_reduction <add>, %23, %cst_21 [0] : vector<2x1024xf32> to vector<1024xf32>
    %25 = vector.shape_cast %24 : vector<1024xf32> to vector<1x1024xf32>
    %c0_22 = arith.constant 0 : index
    %c0_23 = arith.constant 0 : index
    %26 = vector.load %arg8[%c0_22, %c0_23] : memref<1024x64xf32, #tpu.memory_space<vmem>>, vector<1024x64xf32>
    %cst_24 = arith.constant dense<0.000000e+00> : vector<1x64xf32>
    %27 = tpu.matmul %22, %26, %cst_24 {dimension_numbers = #tpu.dot_dimension_numbers<[1], [0], [0], [1], [0, 0, 1, 1], [], []>} : vector<1x1024xf32>, vector<1024x64xf32>, vector<1x64xf32> -> vector<1x64xf32>
    %c0_25 = arith.constant 0 : index
    %c0_26 = arith.constant 0 : index
    %28 = vector.load %arg8[%c0_25, %c0_26] : memref<1024x64xf32, #tpu.memory_space<vmem>>, vector<1024x64xf32>
    %cst_27 = arith.constant dense<0.000000e+00> : vector<1x64xf32>
    %29 = tpu.matmul %25, %28, %cst_27 {dimension_numbers = #tpu.dot_dimension_numbers<[1], [0], [0], [1], [0, 0, 1, 1], [], []>} : vector<1x1024xf32>, vector<1024x64xf32>, vector<1x64xf32> -> vector<1x64xf32>
    %cst_28 = arith.constant 3.125000e-02 : f32
    %30 = vector.broadcast %cst_28 : f32 to vector<1x64xf32>
    %31 = arith.mulf %27, %30 : vector<1x64xf32>
    %cst_29 = arith.constant 3.125000e-02 : f32
    %32 = vector.broadcast %cst_29 : f32 to vector<1x64xf32>
    %33 = arith.mulf %29, %32 : vector<1x64xf32>
    %34 = arith.mulf %31, %31 : vector<1x64xf32>
    %35 = arith.subf %33, %34 : vector<1x64xf32>
    %cst_30 = arith.constant 0.000000e+00 : f32
    %36 = vector.broadcast %cst_30 : f32 to vector<1x64xf32>
    %37 = arith.maximumf %35, %36 : vector<1x64xf32>
    %c0_31 = arith.constant 0 : index
    %c0_32 = arith.constant 0 : index
    %38 = vector.load %arg10[%c0_31, %c0_32] : memref<1x64xf32, #tpu.memory_space<vmem>>, vector<1x64xf32>
    %cst_33 = arith.constant 9.99999974E-6 : f32
    %39 = vector.broadcast %cst_33 : f32 to vector<1x64xf32>
    %40 = arith.addf %37, %39 : vector<1x64xf32>
    %41 = math.rsqrt %40 : vector<1x64xf32>
    %42 = arith.mulf %38, %41 : vector<1x64xf32>
    %c0_34 = arith.constant 0 : index
    %c0_35 = arith.constant 0 : index
    %43 = vector.load %arg11[%c0_34, %c0_35] : memref<1x64xf32, #tpu.memory_space<vmem>>, vector<1x64xf32>
    %44 = arith.mulf %31, %42 : vector<1x64xf32>
    %45 = arith.subf %43, %44 : vector<1x64xf32>
    %c0_36 = arith.constant 0 : index
    %c0_37 = arith.constant 0 : index
    %46 = vector.load %arg9[%c0_36, %c0_37] : memref<64x1024xf32, #tpu.memory_space<vmem>>, vector<64x1024xf32>
    %cst_38 = arith.constant dense<0.000000e+00> : vector<1x1024xf32>
    %47 = tpu.matmul %42, %46, %cst_38 {dimension_numbers = #tpu.dot_dimension_numbers<[1], [0], [0], [1], [0, 0, 1, 1], [], []>} : vector<1x64xf32>, vector<64x1024xf32>, vector<1x1024xf32> -> vector<1x1024xf32>
    %c0_39 = arith.constant 0 : index
    %c0_40 = arith.constant 0 : index
    %48 = vector.load %arg9[%c0_39, %c0_40] : memref<64x1024xf32, #tpu.memory_space<vmem>>, vector<64x1024xf32>
    %cst_41 = arith.constant dense<0.000000e+00> : vector<1x1024xf32>
    %49 = tpu.matmul %45, %48, %cst_41 {dimension_numbers = #tpu.dot_dimension_numbers<[1], [0], [0], [1], [0, 0, 1, 1], [], []>} : vector<1x64xf32>, vector<64x1024xf32>, vector<1x1024xf32> -> vector<1x1024xf32>
    %50 = vector.broadcast %47 : vector<1x1024xf32> to vector<2x1024xf32>
    %51 = arith.mulf %20, %50 : vector<2x1024xf32>
    %52 = vector.broadcast %49 : vector<1x1024xf32> to vector<2x1024xf32>
    %53 = arith.addf %51, %52 : vector<2x1024xf32>
    %cst_42 = arith.constant 0.000000e+00 : f32
    %54 = vector.broadcast %cst_42 : f32 to vector<2x1024xf32>
    %55 = arith.maximumf %53, %54 : vector<2x1024xf32>
    %56 = arith.truncf %55 : vector<2x1024xf32> to vector<2x1024xbf16>
    %c0_43 = arith.constant 0 : index
    %c0_44 = arith.constant 0 : index
    %57 = vector.load %arg12[%c0_43, %c0_44] : memref<2x1024xbf16, #tpu.memory_space<vmem>>, vector<2x1024xbf16>
    tpu.vector_store %arg12[%c0_43, %c0_44], %56 {strides = array<i32>} : memref<2x1024xbf16, #tpu.memory_space<vmem>>, vector<2x1024xbf16>,
    return
  }
}

module attributes {stable_mosaic.version = 11 : i64} {
  func.func @_upconv_bn_relu_kernel(%arg0: memref<8x256xbf16, #tpu.memory_space<vmem>>, %arg1: memref<4x256x256xbf16, #tpu.memory_space<vmem>>, %arg2: memref<256x32xf32, #tpu.memory_space<vmem>>, %arg3: memref<32x256xf32, #tpu.memory_space<vmem>>, %arg4: memref<1x32xf32, #tpu.memory_space<vmem>>, %arg5: memref<1x32xf32, #tpu.memory_space<vmem>>, %arg6: memref<8x512xbf16, #tpu.memory_space<vmem>>) attributes {dimension_semantics = [], scalar_prefetch = 0 : i64, scratch_operands = 0 : i64, tpu.core_type = #tpu.core_type<tc>} {
    %c0 = arith.constant 0 : index
    %c0_0 = arith.constant 0 : index
    %0 = vector.load %arg0[%c0, %c0_0] : memref<8x256xbf16, #tpu.memory_space<vmem>>, vector<8x256xbf16>
    %cst = arith.constant 0.000000e+00 : bf16
    %1 = vector.broadcast %cst : bf16 to vector<1x256xbf16>
    %2 = vector.extract_strided_slice %0 {offsets = [0, 0], sizes = [7, 256], strides = [1, 1]} : vector<8x256xbf16> to vector<7x256xbf16>
    %3 = tpu.concatenate %1, %2 in 0 : vector<1x256xbf16>, vector<7x256xbf16> -> vector<8x256xbf16>
    %4 = vector.extract_strided_slice %0 {offsets = [1, 0], sizes = [7, 256], strides = [1, 1]} : vector<8x256xbf16> to vector<7x256xbf16>
    %5 = tpu.concatenate %4, %1 in 0 : vector<7x256xbf16>, vector<1x256xbf16> -> vector<8x256xbf16>
    %6 = tpu.iota {dimensions = array<i32: 0>} : vector<8x1xi32>
    %c4_i32 = arith.constant 4 : i32
    %c0_i32 = arith.constant 0 : i32
    %7 = arith.cmpi eq, %c4_i32, %c0_i32 : i32
    %c1_i32 = arith.constant 1 : i32
    %8 = arith.select %7, %c1_i32, %c4_i32 : i32
    %9 = vector.broadcast %8 : i32 to vector<8x1xi32>
    %10 = arith.remsi %6, %9 : vector<8x1xi32>
    %c0_i32_1 = arith.constant 0 : i32
    %11 = vector.broadcast %c0_i32_1 : i32 to vector<8x1xi32>
    %12 = arith.cmpi ne, %10, %11 : vector<8x1xi32>
    %c0_i32_2 = arith.constant 0 : i32
    %13 = vector.broadcast %c0_i32_2 : i32 to vector<8x1xi32>
    %14 = arith.cmpi slt, %10, %13 : vector<8x1xi32>
    %c0_i32_3 = arith.constant 0 : i32
    %15 = arith.cmpi slt, %8, %c0_i32_3 : i32
    %16 = vector.broadcast %15 : i1 to vector<8x1xi1>
    %17 = vector.broadcast %16 : vector<8x1xi1> to vector<8x1xi1>
    %18 = arith.xori %14, %17 : vector<8x1xi1>
    %19 = arith.andi %18, %12 : vector<8x1xi1>
    %20 = vector.broadcast %8 : i32 to vector<8x1xi32>
    %21 = arith.addi %10, %20 : vector<8x1xi32>
    %22 = arith.select %19, %21, %10 : vector<8x1xi1>, vector<8x1xi32>
    %c0_i32_4 = arith.constant 0 : i32
    %23 = vector.broadcast %c0_i32_4 : i32 to vector<8x1xi32>
    %24 = arith.cmpi eq, %22, %23 : vector<8x1xi32>
    %cst_5 = arith.constant 0.000000e+00 : bf16
    %25 = vector.broadcast %cst_5 : bf16 to vector<8x256xbf16>
    %26 = vector.shape_cast %24 : vector<8x1xi1> to vector<8x1xi1>
    %27 = vector.broadcast %26 : vector<8x1xi1> to vector<8x256xi1>
    %28 = arith.select %27, %25, %3 : vector<8x256xi1>, vector<8x256xbf16>
    %c4_i32_6 = arith.constant 4 : i32
    %c0_i32_7 = arith.constant 0 : i32
    %29 = arith.cmpi eq, %c4_i32_6, %c0_i32_7 : i32
    %c1_i32_8 = arith.constant 1 : i32
    %30 = arith.select %29, %c1_i32_8, %c4_i32_6 : i32
    %31 = vector.broadcast %30 : i32 to vector<8x1xi32>
    %32 = arith.remsi %6, %31 : vector<8x1xi32>
    %c0_i32_9 = arith.constant 0 : i32
    %33 = vector.broadcast %c0_i32_9 : i32 to vector<8x1xi32>
    %34 = arith.cmpi ne, %32, %33 : vector<8x1xi32>
    %c0_i32_10 = arith.constant 0 : i32
    %35 = vector.broadcast %c0_i32_10 : i32 to vector<8x1xi32>
    %36 = arith.cmpi slt, %32, %35 : vector<8x1xi32>
    %c0_i32_11 = arith.constant 0 : i32
    %37 = arith.cmpi slt, %30, %c0_i32_11 : i32
    %38 = vector.broadcast %37 : i1 to vector<8x1xi1>
    %39 = vector.broadcast %38 : vector<8x1xi1> to vector<8x1xi1>
    %40 = arith.xori %36, %39 : vector<8x1xi1>
    %41 = arith.andi %40, %34 : vector<8x1xi1>
    %42 = vector.broadcast %30 : i32 to vector<8x1xi32>
    %43 = arith.addi %32, %42 : vector<8x1xi32>
    %44 = arith.select %41, %43, %32 : vector<8x1xi1>, vector<8x1xi32>
    %c3_i32 = arith.constant 3 : i32
    %45 = vector.broadcast %c3_i32 : i32 to vector<8x1xi32>
    %46 = arith.cmpi eq, %44, %45 : vector<8x1xi32>
    %cst_12 = arith.constant 0.000000e+00 : bf16
    %47 = vector.broadcast %cst_12 : bf16 to vector<8x256xbf16>
    %48 = vector.shape_cast %46 : vector<8x1xi1> to vector<8x1xi1>
    %49 = vector.broadcast %48 : vector<8x1xi1> to vector<8x256xi1>
    %50 = arith.select %49, %47, %5 : vector<8x256xi1>, vector<8x256xbf16>
    %c0_13 = arith.constant 0 : index
    %c0_14 = arith.constant 0 : index
    %c0_15 = arith.constant 0 : index
    %51 = vector.load %arg1[%c0_13, %c0_14, %c0_15] : memref<4x256x256xbf16, #tpu.memory_space<vmem>>, vector<1x256x256xbf16>
    %52 = vector.shape_cast %51 : vector<1x256x256xbf16> to vector<256x256xbf16>
    %c1 = arith.constant 1 : index
    %c0_16 = arith.constant 0 : index
    %c0_17 = arith.constant 0 : index
    %53 = vector.load %arg1[%c1, %c0_16, %c0_17] : memref<4x256x256xbf16, #tpu.memory_space<vmem>>, vector<1x256x256xbf16>
    %54 = vector.shape_cast %53 : vector<1x256x256xbf16> to vector<256x256xbf16>
    %c2 = arith.constant 2 : index
    %c0_18 = arith.constant 0 : index
    %c0_19 = arith.constant 0 : index
    %55 = vector.load %arg1[%c2, %c0_18, %c0_19] : memref<4x256x256xbf16, #tpu.memory_space<vmem>>, vector<1x256x256xbf16>
    %56 = vector.shape_cast %55 : vector<1x256x256xbf16> to vector<256x256xbf16>
    %c3 = arith.constant 3 : index
    %c0_20 = arith.constant 0 : index
    %c0_21 = arith.constant 0 : index
    %57 = vector.load %arg1[%c3, %c0_20, %c0_21] : memref<4x256x256xbf16, #tpu.memory_space<vmem>>, vector<1x256x256xbf16>
    %58 = vector.shape_cast %57 : vector<1x256x256xbf16> to vector<256x256xbf16>
    %cst_22 = arith.constant dense<0.000000e+00> : vector<8x256xf32>
    %59 = tpu.matmul %0, %52, %cst_22 {dimension_numbers = #tpu.dot_dimension_numbers<[1], [0], [0], [1], [0, 0, 1, 1], [], []>} : vector<8x256xbf16>, vector<256x256xbf16>, vector<8x256xf32> -> vector<8x256xf32>
    %cst_23 = arith.constant dense<0.000000e+00> : vector<8x256xf32>
    %60 = tpu.matmul %28, %54, %cst_23 {dimension_numbers = #tpu.dot_dimension_numbers<[1], [0], [0], [1], [0, 0, 1, 1], [], []>} : vector<8x256xbf16>, vector<256x256xbf16>, vector<8x256xf32> -> vector<8x256xf32>
    %61 = arith.addf %59, %60 : vector<8x256xf32>
    %cst_24 = arith.constant dense<0.000000e+00> : vector<8x256xf32>
    %62 = tpu.matmul %50, %56, %cst_24 {dimension_numbers = #tpu.dot_dimension_numbers<[1], [0], [0], [1], [0, 0, 1, 1], [], []>} : vector<8x256xbf16>, vector<256x256xbf16>, vector<8x256xf32> -> vector<8x256xf32>
    %cst_25 = arith.constant dense<0.000000e+00> : vector<8x256xf32>
    %63 = tpu.matmul %0, %58, %cst_25 {dimension_numbers = #tpu.dot_dimension_numbers<[1], [0], [0], [1], [0, 0, 1, 1], [], []>} : vector<8x256xbf16>, vector<256x256xbf16>, vector<8x256xf32> -> vector<8x256xf32>
    %64 = arith.addf %62, %63 : vector<8x256xf32>
    %cst_26 = arith.constant dense<0.000000e+00> : vector<256xf32>
    %65 = vector.multi_reduction <add>, %61, %cst_26 [0] : vector<8x256xf32> to vector<256xf32>
    %66 = vector.shape_cast %65 : vector<256xf32> to vector<1x256xf32>
    %cst_27 = arith.constant dense<0.000000e+00> : vector<256xf32>
    %67 = vector.multi_reduction <add>, %64, %cst_27 [0] : vector<8x256xf32> to vector<256xf32>
    %68 = vector.shape_cast %67 : vector<256xf32> to vector<1x256xf32>
    %69 = arith.addf %66, %68 : vector<1x256xf32>
    %70 = arith.mulf %61, %61 : vector<8x256xf32>
    %cst_28 = arith.constant dense<0.000000e+00> : vector<256xf32>
    %71 = vector.multi_reduction <add>, %70, %cst_28 [0] : vector<8x256xf32> to vector<256xf32>
    %72 = vector.shape_cast %71 : vector<256xf32> to vector<1x256xf32>
    %73 = arith.mulf %64, %64 : vector<8x256xf32>
    %cst_29 = arith.constant dense<0.000000e+00> : vector<256xf32>
    %74 = vector.multi_reduction <add>, %73, %cst_29 [0] : vector<8x256xf32> to vector<256xf32>
    %75 = vector.shape_cast %74 : vector<256xf32> to vector<1x256xf32>
    %76 = arith.addf %72, %75 : vector<1x256xf32>
    %c0_30 = arith.constant 0 : index
    %c0_31 = arith.constant 0 : index
    %77 = vector.load %arg2[%c0_30, %c0_31] : memref<256x32xf32, #tpu.memory_space<vmem>>, vector<256x32xf32>
    %cst_32 = arith.constant dense<0.000000e+00> : vector<1x32xf32>
    %78 = tpu.matmul %69, %77, %cst_32 {dimension_numbers = #tpu.dot_dimension_numbers<[1], [0], [0], [1], [0, 0, 1, 1], [], []>} : vector<1x256xf32>, vector<256x32xf32>, vector<1x32xf32> -> vector<1x32xf32>
    %c0_33 = arith.constant 0 : index
    %c0_34 = arith.constant 0 : index
    %79 = vector.load %arg2[%c0_33, %c0_34] : memref<256x32xf32, #tpu.memory_space<vmem>>, vector<256x32xf32>
    %cst_35 = arith.constant dense<0.000000e+00> : vector<1x32xf32>
    %80 = tpu.matmul %76, %79, %cst_35 {dimension_numbers = #tpu.dot_dimension_numbers<[1], [0], [0], [1], [0, 0, 1, 1], [], []>} : vector<1x256xf32>, vector<256x32xf32>, vector<1x32xf32> -> vector<1x32xf32>
    %cst_36 = arith.constant 7.812500e-03 : f32
    %81 = vector.broadcast %cst_36 : f32 to vector<1x32xf32>
    %82 = arith.mulf %78, %81 : vector<1x32xf32>
    %cst_37 = arith.constant 7.812500e-03 : f32
    %83 = vector.broadcast %cst_37 : f32 to vector<1x32xf32>
    %84 = arith.mulf %80, %83 : vector<1x32xf32>
    %85 = arith.mulf %82, %82 : vector<1x32xf32>
    %86 = arith.subf %84, %85 : vector<1x32xf32>
    %cst_38 = arith.constant 0.000000e+00 : f32
    %87 = vector.broadcast %cst_38 : f32 to vector<1x32xf32>
    %88 = arith.maximumf %86, %87 : vector<1x32xf32>
    %c0_39 = arith.constant 0 : index
    %c0_40 = arith.constant 0 : index
    %89 = vector.load %arg4[%c0_39, %c0_40] : memref<1x32xf32, #tpu.memory_space<vmem>>, vector<1x32xf32>
    %cst_41 = arith.constant 9.99999974E-6 : f32
    %90 = vector.broadcast %cst_41 : f32 to vector<1x32xf32>
    %91 = arith.addf %88, %90 : vector<1x32xf32>
    %92 = math.rsqrt %91 : vector<1x32xf32>
    %93 = arith.mulf %89, %92 : vector<1x32xf32>
    %c0_42 = arith.constant 0 : index
    %c0_43 = arith.constant 0 : index
    %94 = vector.load %arg5[%c0_42, %c0_43] : memref<1x32xf32, #tpu.memory_space<vmem>>, vector<1x32xf32>
    %95 = arith.mulf %82, %93 : vector<1x32xf32>
    %96 = arith.subf %94, %95 : vector<1x32xf32>
    %c0_44 = arith.constant 0 : index
    %c0_45 = arith.constant 0 : index
    %97 = vector.load %arg3[%c0_44, %c0_45] : memref<32x256xf32, #tpu.memory_space<vmem>>, vector<32x256xf32>
    %cst_46 = arith.constant dense<0.000000e+00> : vector<1x256xf32>
    %98 = tpu.matmul %93, %97, %cst_46 {dimension_numbers = #tpu.dot_dimension_numbers<[1], [0], [0], [1], [0, 0, 1, 1], [], []>} : vector<1x32xf32>, vector<32x256xf32>, vector<1x256xf32> -> vector<1x256xf32>
    %c0_47 = arith.constant 0 : index
    %c0_48 = arith.constant 0 : index
    %99 = vector.load %arg3[%c0_47, %c0_48] : memref<32x256xf32, #tpu.memory_space<vmem>>, vector<32x256xf32>
    %cst_49 = arith.constant dense<0.000000e+00> : vector<1x256xf32>
    %100 = tpu.matmul %96, %99, %cst_49 {dimension_numbers = #tpu.dot_dimension_numbers<[1], [0], [0], [1], [0, 0, 1, 1], [], []>} : vector<1x32xf32>, vector<32x256xf32>, vector<1x256xf32> -> vector<1x256xf32>
    %101 = vector.broadcast %98 : vector<1x256xf32> to vector<8x256xf32>
    %102 = arith.mulf %61, %101 : vector<8x256xf32>
    %103 = vector.broadcast %100 : vector<1x256xf32> to vector<8x256xf32>
    %104 = arith.addf %102, %103 : vector<8x256xf32>
    %cst_50 = arith.constant 0.000000e+00 : f32
    %105 = vector.broadcast %cst_50 : f32 to vector<8x256xf32>
    %106 = arith.maximumf %104, %105 : vector<8x256xf32>
    %107 = arith.truncf %106 : vector<8x256xf32> to vector<8x256xbf16>
    %c0_51 = arith.constant 0 : index
    %c0_52 = arith.constant 0 : index
    %108 = vector.load %arg6[%c0_51, %c0_52] : memref<8x512xbf16, #tpu.memory_space<vmem>>, vector<8x256xbf16>
    tpu.vector_store %arg6[%c0_51, %c0_52], %107 {strides = array<i32>} : memref<8x512xbf16, #tpu.memory_space<vmem>>, vector<8x256xbf16>,
    %109 = vector.broadcast %98 : vector<1x256xf32> to vector<8x256xf32>
    %110 = arith.mulf %64, %109 : vector<8x256xf32>
    %111 = vector.broadcast %100 : vector<1x256xf32> to vector<8x256xf32>
    %112 = arith.addf %110, %111 : vector<8x256xf32>
    %cst_53 = arith.constant 0.000000e+00 : f32
    %113 = vector.broadcast %cst_53 : f32 to vector<8x256xf32>
    %114 = arith.maximumf %112, %113 : vector<8x256xf32>
    %115 = arith.truncf %114 : vector<8x256xf32> to vector<8x256xbf16>
    %c0_54 = arith.constant 0 : index
    %c256 = arith.constant 256 : index
    %116 = vector.load %arg6[%c0_54, %c256] : memref<8x512xbf16, #tpu.memory_space<vmem>>, vector<8x256xbf16>
    tpu.vector_store %arg6[%c0_54, %c256], %115 {strides = array<i32>} : memref<8x512xbf16, #tpu.memory_space<vmem>>, vector<8x256xbf16>,
    return
  }
}

module attributes {stable_mosaic.version = 11 : i64} {
  func.func @_upconv_bn_relu_kernel(%arg0: memref<16x256xbf16, #tpu.memory_space<vmem>>, %arg1: memref<4x256x256xbf16, #tpu.memory_space<vmem>>, %arg2: memref<256x16xf32, #tpu.memory_space<vmem>>, %arg3: memref<16x256xf32, #tpu.memory_space<vmem>>, %arg4: memref<1x16xf32, #tpu.memory_space<vmem>>, %arg5: memref<1x16xf32, #tpu.memory_space<vmem>>, %arg6: memref<16x512xbf16, #tpu.memory_space<vmem>>) attributes {dimension_semantics = [], scalar_prefetch = 0 : i64, scratch_operands = 0 : i64, tpu.core_type = #tpu.core_type<tc>} {
    %c0 = arith.constant 0 : index
    %c0_0 = arith.constant 0 : index
    %0 = vector.load %arg0[%c0, %c0_0] : memref<16x256xbf16, #tpu.memory_space<vmem>>, vector<16x256xbf16>
    %cst = arith.constant 0.000000e+00 : bf16
    %1 = vector.broadcast %cst : bf16 to vector<1x256xbf16>
    %2 = vector.extract_strided_slice %0 {offsets = [0, 0], sizes = [15, 256], strides = [1, 1]} : vector<16x256xbf16> to vector<15x256xbf16>
    %3 = tpu.concatenate %1, %2 in 0 : vector<1x256xbf16>, vector<15x256xbf16> -> vector<16x256xbf16>
    %4 = vector.extract_strided_slice %0 {offsets = [1, 0], sizes = [15, 256], strides = [1, 1]} : vector<16x256xbf16> to vector<15x256xbf16>
    %5 = tpu.concatenate %4, %1 in 0 : vector<15x256xbf16>, vector<1x256xbf16> -> vector<16x256xbf16>
    %6 = tpu.iota {dimensions = array<i32: 0>} : vector<16x1xi32>
    %c8_i32 = arith.constant 8 : i32
    %c0_i32 = arith.constant 0 : i32
    %7 = arith.cmpi eq, %c8_i32, %c0_i32 : i32
    %c1_i32 = arith.constant 1 : i32
    %8 = arith.select %7, %c1_i32, %c8_i32 : i32
    %9 = vector.broadcast %8 : i32 to vector<16x1xi32>
    %10 = arith.remsi %6, %9 : vector<16x1xi32>
    %c0_i32_1 = arith.constant 0 : i32
    %11 = vector.broadcast %c0_i32_1 : i32 to vector<16x1xi32>
    %12 = arith.cmpi ne, %10, %11 : vector<16x1xi32>
    %c0_i32_2 = arith.constant 0 : i32
    %13 = vector.broadcast %c0_i32_2 : i32 to vector<16x1xi32>
    %14 = arith.cmpi slt, %10, %13 : vector<16x1xi32>
    %c0_i32_3 = arith.constant 0 : i32
    %15 = arith.cmpi slt, %8, %c0_i32_3 : i32
    %16 = vector.broadcast %15 : i1 to vector<16x1xi1>
    %17 = vector.broadcast %16 : vector<16x1xi1> to vector<16x1xi1>
    %18 = arith.xori %14, %17 : vector<16x1xi1>
    %19 = arith.andi %18, %12 : vector<16x1xi1>
    %20 = vector.broadcast %8 : i32 to vector<16x1xi32>
    %21 = arith.addi %10, %20 : vector<16x1xi32>
    %22 = arith.select %19, %21, %10 : vector<16x1xi1>, vector<16x1xi32>
    %c0_i32_4 = arith.constant 0 : i32
    %23 = vector.broadcast %c0_i32_4 : i32 to vector<16x1xi32>
    %24 = arith.cmpi eq, %22, %23 : vector<16x1xi32>
    %cst_5 = arith.constant 0.000000e+00 : bf16
    %25 = vector.broadcast %cst_5 : bf16 to vector<16x256xbf16>
    %26 = vector.shape_cast %24 : vector<16x1xi1> to vector<16x1xi1>
    %27 = vector.broadcast %26 : vector<16x1xi1> to vector<16x256xi1>
    %28 = arith.select %27, %25, %3 : vector<16x256xi1>, vector<16x256xbf16>
    %c8_i32_6 = arith.constant 8 : i32
    %c0_i32_7 = arith.constant 0 : i32
    %29 = arith.cmpi eq, %c8_i32_6, %c0_i32_7 : i32
    %c1_i32_8 = arith.constant 1 : i32
    %30 = arith.select %29, %c1_i32_8, %c8_i32_6 : i32
    %31 = vector.broadcast %30 : i32 to vector<16x1xi32>
    %32 = arith.remsi %6, %31 : vector<16x1xi32>
    %c0_i32_9 = arith.constant 0 : i32
    %33 = vector.broadcast %c0_i32_9 : i32 to vector<16x1xi32>
    %34 = arith.cmpi ne, %32, %33 : vector<16x1xi32>
    %c0_i32_10 = arith.constant 0 : i32
    %35 = vector.broadcast %c0_i32_10 : i32 to vector<16x1xi32>
    %36 = arith.cmpi slt, %32, %35 : vector<16x1xi32>
    %c0_i32_11 = arith.constant 0 : i32
    %37 = arith.cmpi slt, %30, %c0_i32_11 : i32
    %38 = vector.broadcast %37 : i1 to vector<16x1xi1>
    %39 = vector.broadcast %38 : vector<16x1xi1> to vector<16x1xi1>
    %40 = arith.xori %36, %39 : vector<16x1xi1>
    %41 = arith.andi %40, %34 : vector<16x1xi1>
    %42 = vector.broadcast %30 : i32 to vector<16x1xi32>
    %43 = arith.addi %32, %42 : vector<16x1xi32>
    %44 = arith.select %41, %43, %32 : vector<16x1xi1>, vector<16x1xi32>
    %c7_i32 = arith.constant 7 : i32
    %45 = vector.broadcast %c7_i32 : i32 to vector<16x1xi32>
    %46 = arith.cmpi eq, %44, %45 : vector<16x1xi32>
    %cst_12 = arith.constant 0.000000e+00 : bf16
    %47 = vector.broadcast %cst_12 : bf16 to vector<16x256xbf16>
    %48 = vector.shape_cast %46 : vector<16x1xi1> to vector<16x1xi1>
    %49 = vector.broadcast %48 : vector<16x1xi1> to vector<16x256xi1>
    %50 = arith.select %49, %47, %5 : vector<16x256xi1>, vector<16x256xbf16>
    %c0_13 = arith.constant 0 : index
    %c0_14 = arith.constant 0 : index
    %c0_15 = arith.constant 0 : index
    %51 = vector.load %arg1[%c0_13, %c0_14, %c0_15] : memref<4x256x256xbf16, #tpu.memory_space<vmem>>, vector<1x256x256xbf16>
    %52 = vector.shape_cast %51 : vector<1x256x256xbf16> to vector<256x256xbf16>
    %c1 = arith.constant 1 : index
    %c0_16 = arith.constant 0 : index
    %c0_17 = arith.constant 0 : index
    %53 = vector.load %arg1[%c1, %c0_16, %c0_17] : memref<4x256x256xbf16, #tpu.memory_space<vmem>>, vector<1x256x256xbf16>
    %54 = vector.shape_cast %53 : vector<1x256x256xbf16> to vector<256x256xbf16>
    %c2 = arith.constant 2 : index
    %c0_18 = arith.constant 0 : index
    %c0_19 = arith.constant 0 : index
    %55 = vector.load %arg1[%c2, %c0_18, %c0_19] : memref<4x256x256xbf16, #tpu.memory_space<vmem>>, vector<1x256x256xbf16>
    %56 = vector.shape_cast %55 : vector<1x256x256xbf16> to vector<256x256xbf16>
    %c3 = arith.constant 3 : index
    %c0_20 = arith.constant 0 : index
    %c0_21 = arith.constant 0 : index
    %57 = vector.load %arg1[%c3, %c0_20, %c0_21] : memref<4x256x256xbf16, #tpu.memory_space<vmem>>, vector<1x256x256xbf16>
    %58 = vector.shape_cast %57 : vector<1x256x256xbf16> to vector<256x256xbf16>
    %cst_22 = arith.constant dense<0.000000e+00> : vector<16x256xf32>
    %59 = tpu.matmul %0, %52, %cst_22 {dimension_numbers = #tpu.dot_dimension_numbers<[1], [0], [0], [1], [0, 0, 1, 1], [], []>} : vector<16x256xbf16>, vector<256x256xbf16>, vector<16x256xf32> -> vector<16x256xf32>
    %cst_23 = arith.constant dense<0.000000e+00> : vector<16x256xf32>
    %60 = tpu.matmul %28, %54, %cst_23 {dimension_numbers = #tpu.dot_dimension_numbers<[1], [0], [0], [1], [0, 0, 1, 1], [], []>} : vector<16x256xbf16>, vector<256x256xbf16>, vector<16x256xf32> -> vector<16x256xf32>
    %61 = arith.addf %59, %60 : vector<16x256xf32>
    %cst_24 = arith.constant dense<0.000000e+00> : vector<16x256xf32>
    %62 = tpu.matmul %50, %56, %cst_24 {dimension_numbers = #tpu.dot_dimension_numbers<[1], [0], [0], [1], [0, 0, 1, 1], [], []>} : vector<16x256xbf16>, vector<256x256xbf16>, vector<16x256xf32> -> vector<16x256xf32>
    %cst_25 = arith.constant dense<0.000000e+00> : vector<16x256xf32>
    %63 = tpu.matmul %0, %58, %cst_25 {dimension_numbers = #tpu.dot_dimension_numbers<[1], [0], [0], [1], [0, 0, 1, 1], [], []>} : vector<16x256xbf16>, vector<256x256xbf16>, vector<16x256xf32> -> vector<16x256xf32>
    %64 = arith.addf %62, %63 : vector<16x256xf32>
    %cst_26 = arith.constant dense<0.000000e+00> : vector<256xf32>
    %65 = vector.multi_reduction <add>, %61, %cst_26 [0] : vector<16x256xf32> to vector<256xf32>
    %66 = vector.shape_cast %65 : vector<256xf32> to vector<1x256xf32>
    %cst_27 = arith.constant dense<0.000000e+00> : vector<256xf32>
    %67 = vector.multi_reduction <add>, %64, %cst_27 [0] : vector<16x256xf32> to vector<256xf32>
    %68 = vector.shape_cast %67 : vector<256xf32> to vector<1x256xf32>
    %69 = arith.addf %66, %68 : vector<1x256xf32>
    %70 = arith.mulf %61, %61 : vector<16x256xf32>
    %cst_28 = arith.constant dense<0.000000e+00> : vector<256xf32>
    %71 = vector.multi_reduction <add>, %70, %cst_28 [0] : vector<16x256xf32> to vector<256xf32>
    %72 = vector.shape_cast %71 : vector<256xf32> to vector<1x256xf32>
    %73 = arith.mulf %64, %64 : vector<16x256xf32>
    %cst_29 = arith.constant dense<0.000000e+00> : vector<256xf32>
    %74 = vector.multi_reduction <add>, %73, %cst_29 [0] : vector<16x256xf32> to vector<256xf32>
    %75 = vector.shape_cast %74 : vector<256xf32> to vector<1x256xf32>
    %76 = arith.addf %72, %75 : vector<1x256xf32>
    %c0_30 = arith.constant 0 : index
    %c0_31 = arith.constant 0 : index
    %77 = vector.load %arg2[%c0_30, %c0_31] : memref<256x16xf32, #tpu.memory_space<vmem>>, vector<256x16xf32>
    %cst_32 = arith.constant dense<0.000000e+00> : vector<1x16xf32>
    %78 = tpu.matmul %69, %77, %cst_32 {dimension_numbers = #tpu.dot_dimension_numbers<[1], [0], [0], [1], [0, 0, 1, 1], [], []>} : vector<1x256xf32>, vector<256x16xf32>, vector<1x16xf32> -> vector<1x16xf32>
    %c0_33 = arith.constant 0 : index
    %c0_34 = arith.constant 0 : index
    %79 = vector.load %arg2[%c0_33, %c0_34] : memref<256x16xf32, #tpu.memory_space<vmem>>, vector<256x16xf32>
    %cst_35 = arith.constant dense<0.000000e+00> : vector<1x16xf32>
    %80 = tpu.matmul %76, %79, %cst_35 {dimension_numbers = #tpu.dot_dimension_numbers<[1], [0], [0], [1], [0, 0, 1, 1], [], []>} : vector<1x256xf32>, vector<256x16xf32>, vector<1x16xf32> -> vector<1x16xf32>
    %cst_36 = arith.constant 0.001953125 : f32
    %81 = vector.broadcast %cst_36 : f32 to vector<1x16xf32>
    %82 = arith.mulf %78, %81 : vector<1x16xf32>
    %cst_37 = arith.constant 0.001953125 : f32
    %83 = vector.broadcast %cst_37 : f32 to vector<1x16xf32>
    %84 = arith.mulf %80, %83 : vector<1x16xf32>
    %85 = arith.mulf %82, %82 : vector<1x16xf32>
    %86 = arith.subf %84, %85 : vector<1x16xf32>
    %cst_38 = arith.constant 0.000000e+00 : f32
    %87 = vector.broadcast %cst_38 : f32 to vector<1x16xf32>
    %88 = arith.maximumf %86, %87 : vector<1x16xf32>
    %c0_39 = arith.constant 0 : index
    %c0_40 = arith.constant 0 : index
    %89 = vector.load %arg4[%c0_39, %c0_40] : memref<1x16xf32, #tpu.memory_space<vmem>>, vector<1x16xf32>
    %cst_41 = arith.constant 9.99999974E-6 : f32
    %90 = vector.broadcast %cst_41 : f32 to vector<1x16xf32>
    %91 = arith.addf %88, %90 : vector<1x16xf32>
    %92 = math.rsqrt %91 : vector<1x16xf32>
    %93 = arith.mulf %89, %92 : vector<1x16xf32>
    %c0_42 = arith.constant 0 : index
    %c0_43 = arith.constant 0 : index
    %94 = vector.load %arg5[%c0_42, %c0_43] : memref<1x16xf32, #tpu.memory_space<vmem>>, vector<1x16xf32>
    %95 = arith.mulf %82, %93 : vector<1x16xf32>
    %96 = arith.subf %94, %95 : vector<1x16xf32>
    %c0_44 = arith.constant 0 : index
    %c0_45 = arith.constant 0 : index
    %97 = vector.load %arg3[%c0_44, %c0_45] : memref<16x256xf32, #tpu.memory_space<vmem>>, vector<16x256xf32>
    %cst_46 = arith.constant dense<0.000000e+00> : vector<1x256xf32>
    %98 = tpu.matmul %93, %97, %cst_46 {dimension_numbers = #tpu.dot_dimension_numbers<[1], [0], [0], [1], [0, 0, 1, 1], [], []>} : vector<1x16xf32>, vector<16x256xf32>, vector<1x256xf32> -> vector<1x256xf32>
    %c0_47 = arith.constant 0 : index
    %c0_48 = arith.constant 0 : index
    %99 = vector.load %arg3[%c0_47, %c0_48] : memref<16x256xf32, #tpu.memory_space<vmem>>, vector<16x256xf32>
    %cst_49 = arith.constant dense<0.000000e+00> : vector<1x256xf32>
    %100 = tpu.matmul %96, %99, %cst_49 {dimension_numbers = #tpu.dot_dimension_numbers<[1], [0], [0], [1], [0, 0, 1, 1], [], []>} : vector<1x16xf32>, vector<16x256xf32>, vector<1x256xf32> -> vector<1x256xf32>
    %101 = vector.broadcast %98 : vector<1x256xf32> to vector<16x256xf32>
    %102 = arith.mulf %61, %101 : vector<16x256xf32>
    %103 = vector.broadcast %100 : vector<1x256xf32> to vector<16x256xf32>
    %104 = arith.addf %102, %103 : vector<16x256xf32>
    %cst_50 = arith.constant 0.000000e+00 : f32
    %105 = vector.broadcast %cst_50 : f32 to vector<16x256xf32>
    %106 = arith.maximumf %104, %105 : vector<16x256xf32>
    %107 = arith.truncf %106 : vector<16x256xf32> to vector<16x256xbf16>
    %c0_51 = arith.constant 0 : index
    %c0_52 = arith.constant 0 : index
    %108 = vector.load %arg6[%c0_51, %c0_52] : memref<16x512xbf16, #tpu.memory_space<vmem>>, vector<16x256xbf16>
    tpu.vector_store %arg6[%c0_51, %c0_52], %107 {strides = array<i32>} : memref<16x512xbf16, #tpu.memory_space<vmem>>, vector<16x256xbf16>,
    %109 = vector.broadcast %98 : vector<1x256xf32> to vector<16x256xf32>
    %110 = arith.mulf %64, %109 : vector<16x256xf32>
    %111 = vector.broadcast %100 : vector<1x256xf32> to vector<16x256xf32>
    %112 = arith.addf %110, %111 : vector<16x256xf32>
    %cst_53 = arith.constant 0.000000e+00 : f32
    %113 = vector.broadcast %cst_53 : f32 to vector<16x256xf32>
    %114 = arith.maximumf %112, %113 : vector<16x256xf32>
    %115 = arith.truncf %114 : vector<16x256xf32> to vector<16x256xbf16>
    %c0_54 = arith.constant 0 : index
    %c256 = arith.constant 256 : index
    %116 = vector.load %arg6[%c0_54, %c256] : memref<16x512xbf16, #tpu.memory_space<vmem>>, vector<16x256xbf16>
    tpu.vector_store %arg6[%c0_54, %c256], %115 {strides = array<i32>} : memref<16x512xbf16, #tpu.memory_space<vmem>>, vector<16x256xbf16>,
    return
  }
}

module attributes {stable_mosaic.version = 11 : i64} {
  func.func @_upconv_bn_relu_kernel(%arg0: memref<32x256xbf16, #tpu.memory_space<vmem>>, %arg1: memref<4x256x256xbf16, #tpu.memory_space<vmem>>, %arg2: memref<256x8xf32, #tpu.memory_space<vmem>>, %arg3: memref<8x256xf32, #tpu.memory_space<vmem>>, %arg4: memref<1x8xf32, #tpu.memory_space<vmem>>, %arg5: memref<1x8xf32, #tpu.memory_space<vmem>>, %arg6: memref<32x512xbf16, #tpu.memory_space<vmem>>) attributes {dimension_semantics = [], scalar_prefetch = 0 : i64, scratch_operands = 0 : i64, tpu.core_type = #tpu.core_type<tc>} {
    %c0 = arith.constant 0 : index
    %c0_0 = arith.constant 0 : index
    %0 = vector.load %arg0[%c0, %c0_0] : memref<32x256xbf16, #tpu.memory_space<vmem>>, vector<32x256xbf16>
    %cst = arith.constant 0.000000e+00 : bf16
    %1 = vector.broadcast %cst : bf16 to vector<1x256xbf16>
    %2 = vector.extract_strided_slice %0 {offsets = [0, 0], sizes = [31, 256], strides = [1, 1]} : vector<32x256xbf16> to vector<31x256xbf16>
    %3 = tpu.concatenate %1, %2 in 0 : vector<1x256xbf16>, vector<31x256xbf16> -> vector<32x256xbf16>
    %4 = vector.extract_strided_slice %0 {offsets = [1, 0], sizes = [31, 256], strides = [1, 1]} : vector<32x256xbf16> to vector<31x256xbf16>
    %5 = tpu.concatenate %4, %1 in 0 : vector<31x256xbf16>, vector<1x256xbf16> -> vector<32x256xbf16>
    %6 = tpu.iota {dimensions = array<i32: 0>} : vector<32x1xi32>
    %c16_i32 = arith.constant 16 : i32
    %c0_i32 = arith.constant 0 : i32
    %7 = arith.cmpi eq, %c16_i32, %c0_i32 : i32
    %c1_i32 = arith.constant 1 : i32
    %8 = arith.select %7, %c1_i32, %c16_i32 : i32
    %9 = vector.broadcast %8 : i32 to vector<32x1xi32>
    %10 = arith.remsi %6, %9 : vector<32x1xi32>
    %c0_i32_1 = arith.constant 0 : i32
    %11 = vector.broadcast %c0_i32_1 : i32 to vector<32x1xi32>
    %12 = arith.cmpi ne, %10, %11 : vector<32x1xi32>
    %c0_i32_2 = arith.constant 0 : i32
    %13 = vector.broadcast %c0_i32_2 : i32 to vector<32x1xi32>
    %14 = arith.cmpi slt, %10, %13 : vector<32x1xi32>
    %c0_i32_3 = arith.constant 0 : i32
    %15 = arith.cmpi slt, %8, %c0_i32_3 : i32
    %16 = vector.broadcast %15 : i1 to vector<32x1xi1>
    %17 = vector.broadcast %16 : vector<32x1xi1> to vector<32x1xi1>
    %18 = arith.xori %14, %17 : vector<32x1xi1>
    %19 = arith.andi %18, %12 : vector<32x1xi1>
    %20 = vector.broadcast %8 : i32 to vector<32x1xi32>
    %21 = arith.addi %10, %20 : vector<32x1xi32>
    %22 = arith.select %19, %21, %10 : vector<32x1xi1>, vector<32x1xi32>
    %c0_i32_4 = arith.constant 0 : i32
    %23 = vector.broadcast %c0_i32_4 : i32 to vector<32x1xi32>
    %24 = arith.cmpi eq, %22, %23 : vector<32x1xi32>
    %cst_5 = arith.constant 0.000000e+00 : bf16
    %25 = vector.broadcast %cst_5 : bf16 to vector<32x256xbf16>
    %26 = vector.shape_cast %24 : vector<32x1xi1> to vector<32x1xi1>
    %27 = vector.broadcast %26 : vector<32x1xi1> to vector<32x256xi1>
    %28 = arith.select %27, %25, %3 : vector<32x256xi1>, vector<32x256xbf16>
    %c16_i32_6 = arith.constant 16 : i32
    %c0_i32_7 = arith.constant 0 : i32
    %29 = arith.cmpi eq, %c16_i32_6, %c0_i32_7 : i32
    %c1_i32_8 = arith.constant 1 : i32
    %30 = arith.select %29, %c1_i32_8, %c16_i32_6 : i32
    %31 = vector.broadcast %30 : i32 to vector<32x1xi32>
    %32 = arith.remsi %6, %31 : vector<32x1xi32>
    %c0_i32_9 = arith.constant 0 : i32
    %33 = vector.broadcast %c0_i32_9 : i32 to vector<32x1xi32>
    %34 = arith.cmpi ne, %32, %33 : vector<32x1xi32>
    %c0_i32_10 = arith.constant 0 : i32
    %35 = vector.broadcast %c0_i32_10 : i32 to vector<32x1xi32>
    %36 = arith.cmpi slt, %32, %35 : vector<32x1xi32>
    %c0_i32_11 = arith.constant 0 : i32
    %37 = arith.cmpi slt, %30, %c0_i32_11 : i32
    %38 = vector.broadcast %37 : i1 to vector<32x1xi1>
    %39 = vector.broadcast %38 : vector<32x1xi1> to vector<32x1xi1>
    %40 = arith.xori %36, %39 : vector<32x1xi1>
    %41 = arith.andi %40, %34 : vector<32x1xi1>
    %42 = vector.broadcast %30 : i32 to vector<32x1xi32>
    %43 = arith.addi %32, %42 : vector<32x1xi32>
    %44 = arith.select %41, %43, %32 : vector<32x1xi1>, vector<32x1xi32>
    %c15_i32 = arith.constant 15 : i32
    %45 = vector.broadcast %c15_i32 : i32 to vector<32x1xi32>
    %46 = arith.cmpi eq, %44, %45 : vector<32x1xi32>
    %cst_12 = arith.constant 0.000000e+00 : bf16
    %47 = vector.broadcast %cst_12 : bf16 to vector<32x256xbf16>
    %48 = vector.shape_cast %46 : vector<32x1xi1> to vector<32x1xi1>
    %49 = vector.broadcast %48 : vector<32x1xi1> to vector<32x256xi1>
    %50 = arith.select %49, %47, %5 : vector<32x256xi1>, vector<32x256xbf16>
    %c0_13 = arith.constant 0 : index
    %c0_14 = arith.constant 0 : index
    %c0_15 = arith.constant 0 : index
    %51 = vector.load %arg1[%c0_13, %c0_14, %c0_15] : memref<4x256x256xbf16, #tpu.memory_space<vmem>>, vector<1x256x256xbf16>
    %52 = vector.shape_cast %51 : vector<1x256x256xbf16> to vector<256x256xbf16>
    %c1 = arith.constant 1 : index
    %c0_16 = arith.constant 0 : index
    %c0_17 = arith.constant 0 : index
    %53 = vector.load %arg1[%c1, %c0_16, %c0_17] : memref<4x256x256xbf16, #tpu.memory_space<vmem>>, vector<1x256x256xbf16>
    %54 = vector.shape_cast %53 : vector<1x256x256xbf16> to vector<256x256xbf16>
    %c2 = arith.constant 2 : index
    %c0_18 = arith.constant 0 : index
    %c0_19 = arith.constant 0 : index
    %55 = vector.load %arg1[%c2, %c0_18, %c0_19] : memref<4x256x256xbf16, #tpu.memory_space<vmem>>, vector<1x256x256xbf16>
    %56 = vector.shape_cast %55 : vector<1x256x256xbf16> to vector<256x256xbf16>
    %c3 = arith.constant 3 : index
    %c0_20 = arith.constant 0 : index
    %c0_21 = arith.constant 0 : index
    %57 = vector.load %arg1[%c3, %c0_20, %c0_21] : memref<4x256x256xbf16, #tpu.memory_space<vmem>>, vector<1x256x256xbf16>
    %58 = vector.shape_cast %57 : vector<1x256x256xbf16> to vector<256x256xbf16>
    %cst_22 = arith.constant dense<0.000000e+00> : vector<32x256xf32>
    %59 = tpu.matmul %0, %52, %cst_22 {dimension_numbers = #tpu.dot_dimension_numbers<[1], [0], [0], [1], [0, 0, 1, 1], [], []>} : vector<32x256xbf16>, vector<256x256xbf16>, vector<32x256xf32> -> vector<32x256xf32>
    %cst_23 = arith.constant dense<0.000000e+00> : vector<32x256xf32>
    %60 = tpu.matmul %28, %54, %cst_23 {dimension_numbers = #tpu.dot_dimension_numbers<[1], [0], [0], [1], [0, 0, 1, 1], [], []>} : vector<32x256xbf16>, vector<256x256xbf16>, vector<32x256xf32> -> vector<32x256xf32>
    %61 = arith.addf %59, %60 : vector<32x256xf32>
    %cst_24 = arith.constant dense<0.000000e+00> : vector<32x256xf32>
    %62 = tpu.matmul %50, %56, %cst_24 {dimension_numbers = #tpu.dot_dimension_numbers<[1], [0], [0], [1], [0, 0, 1, 1], [], []>} : vector<32x256xbf16>, vector<256x256xbf16>, vector<32x256xf32> -> vector<32x256xf32>
    %cst_25 = arith.constant dense<0.000000e+00> : vector<32x256xf32>
    %63 = tpu.matmul %0, %58, %cst_25 {dimension_numbers = #tpu.dot_dimension_numbers<[1], [0], [0], [1], [0, 0, 1, 1], [], []>} : vector<32x256xbf16>, vector<256x256xbf16>, vector<32x256xf32> -> vector<32x256xf32>
    %64 = arith.addf %62, %63 : vector<32x256xf32>
    %cst_26 = arith.constant dense<0.000000e+00> : vector<256xf32>
    %65 = vector.multi_reduction <add>, %61, %cst_26 [0] : vector<32x256xf32> to vector<256xf32>
    %66 = vector.shape_cast %65 : vector<256xf32> to vector<1x256xf32>
    %cst_27 = arith.constant dense<0.000000e+00> : vector<256xf32>
    %67 = vector.multi_reduction <add>, %64, %cst_27 [0] : vector<32x256xf32> to vector<256xf32>
    %68 = vector.shape_cast %67 : vector<256xf32> to vector<1x256xf32>
    %69 = arith.addf %66, %68 : vector<1x256xf32>
    %70 = arith.mulf %61, %61 : vector<32x256xf32>
    %cst_28 = arith.constant dense<0.000000e+00> : vector<256xf32>
    %71 = vector.multi_reduction <add>, %70, %cst_28 [0] : vector<32x256xf32> to vector<256xf32>
    %72 = vector.shape_cast %71 : vector<256xf32> to vector<1x256xf32>
    %73 = arith.mulf %64, %64 : vector<32x256xf32>
    %cst_29 = arith.constant dense<0.000000e+00> : vector<256xf32>
    %74 = vector.multi_reduction <add>, %73, %cst_29 [0] : vector<32x256xf32> to vector<256xf32>
    %75 = vector.shape_cast %74 : vector<256xf32> to vector<1x256xf32>
    %76 = arith.addf %72, %75 : vector<1x256xf32>
    %c0_30 = arith.constant 0 : index
    %c0_31 = arith.constant 0 : index
    %77 = vector.load %arg2[%c0_30, %c0_31] : memref<256x8xf32, #tpu.memory_space<vmem>>, vector<256x8xf32>
    %cst_32 = arith.constant dense<0.000000e+00> : vector<1x8xf32>
    %78 = tpu.matmul %69, %77, %cst_32 {dimension_numbers = #tpu.dot_dimension_numbers<[1], [0], [0], [1], [0, 0, 1, 1], [], []>} : vector<1x256xf32>, vector<256x8xf32>, vector<1x8xf32> -> vector<1x8xf32>
    %c0_33 = arith.constant 0 : index
    %c0_34 = arith.constant 0 : index
    %79 = vector.load %arg2[%c0_33, %c0_34] : memref<256x8xf32, #tpu.memory_space<vmem>>, vector<256x8xf32>
    %cst_35 = arith.constant dense<0.000000e+00> : vector<1x8xf32>
    %80 = tpu.matmul %76, %79, %cst_35 {dimension_numbers = #tpu.dot_dimension_numbers<[1], [0], [0], [1], [0, 0, 1, 1], [], []>} : vector<1x256xf32>, vector<256x8xf32>, vector<1x8xf32> -> vector<1x8xf32>
    %cst_36 = arith.constant 4.8828125E-4 : f32
    %81 = vector.broadcast %cst_36 : f32 to vector<1x8xf32>
    %82 = arith.mulf %78, %81 : vector<1x8xf32>
    %cst_37 = arith.constant 4.8828125E-4 : f32
    %83 = vector.broadcast %cst_37 : f32 to vector<1x8xf32>
    %84 = arith.mulf %80, %83 : vector<1x8xf32>
    %85 = arith.mulf %82, %82 : vector<1x8xf32>
    %86 = arith.subf %84, %85 : vector<1x8xf32>
    %cst_38 = arith.constant 0.000000e+00 : f32
    %87 = vector.broadcast %cst_38 : f32 to vector<1x8xf32>
    %88 = arith.maximumf %86, %87 : vector<1x8xf32>
    %c0_39 = arith.constant 0 : index
    %c0_40 = arith.constant 0 : index
    %89 = vector.load %arg4[%c0_39, %c0_40] : memref<1x8xf32, #tpu.memory_space<vmem>>, vector<1x8xf32>
    %cst_41 = arith.constant 9.99999974E-6 : f32
    %90 = vector.broadcast %cst_41 : f32 to vector<1x8xf32>
    %91 = arith.addf %88, %90 : vector<1x8xf32>
    %92 = math.rsqrt %91 : vector<1x8xf32>
    %93 = arith.mulf %89, %92 : vector<1x8xf32>
    %c0_42 = arith.constant 0 : index
    %c0_43 = arith.constant 0 : index
    %94 = vector.load %arg5[%c0_42, %c0_43] : memref<1x8xf32, #tpu.memory_space<vmem>>, vector<1x8xf32>
    %95 = arith.mulf %82, %93 : vector<1x8xf32>
    %96 = arith.subf %94, %95 : vector<1x8xf32>
    %c0_44 = arith.constant 0 : index
    %c0_45 = arith.constant 0 : index
    %97 = vector.load %arg3[%c0_44, %c0_45] : memref<8x256xf32, #tpu.memory_space<vmem>>, vector<8x256xf32>
    %cst_46 = arith.constant dense<0.000000e+00> : vector<1x256xf32>
    %98 = tpu.matmul %93, %97, %cst_46 {dimension_numbers = #tpu.dot_dimension_numbers<[1], [0], [0], [1], [0, 0, 1, 1], [], []>} : vector<1x8xf32>, vector<8x256xf32>, vector<1x256xf32> -> vector<1x256xf32>
    %c0_47 = arith.constant 0 : index
    %c0_48 = arith.constant 0 : index
    %99 = vector.load %arg3[%c0_47, %c0_48] : memref<8x256xf32, #tpu.memory_space<vmem>>, vector<8x256xf32>
    %cst_49 = arith.constant dense<0.000000e+00> : vector<1x256xf32>
    %100 = tpu.matmul %96, %99, %cst_49 {dimension_numbers = #tpu.dot_dimension_numbers<[1], [0], [0], [1], [0, 0, 1, 1], [], []>} : vector<1x8xf32>, vector<8x256xf32>, vector<1x256xf32> -> vector<1x256xf32>
    %101 = vector.broadcast %98 : vector<1x256xf32> to vector<32x256xf32>
    %102 = arith.mulf %61, %101 : vector<32x256xf32>
    %103 = vector.broadcast %100 : vector<1x256xf32> to vector<32x256xf32>
    %104 = arith.addf %102, %103 : vector<32x256xf32>
    %cst_50 = arith.constant 0.000000e+00 : f32
    %105 = vector.broadcast %cst_50 : f32 to vector<32x256xf32>
    %106 = arith.maximumf %104, %105 : vector<32x256xf32>
    %107 = arith.truncf %106 : vector<32x256xf32> to vector<32x256xbf16>
    %c0_51 = arith.constant 0 : index
    %c0_52 = arith.constant 0 : index
    %108 = vector.load %arg6[%c0_51, %c0_52] : memref<32x512xbf16, #tpu.memory_space<vmem>>, vector<32x256xbf16>
    tpu.vector_store %arg6[%c0_51, %c0_52], %107 {strides = array<i32>} : memref<32x512xbf16, #tpu.memory_space<vmem>>, vector<32x256xbf16>,
    %109 = vector.broadcast %98 : vector<1x256xf32> to vector<32x256xf32>
    %110 = arith.mulf %64, %109 : vector<32x256xf32>
    %111 = vector.broadcast %100 : vector<1x256xf32> to vector<32x256xf32>
    %112 = arith.addf %110, %111 : vector<32x256xf32>
    %cst_53 = arith.constant 0.000000e+00 : f32
    %113 = vector.broadcast %cst_53 : f32 to vector<32x256xf32>
    %114 = arith.maximumf %112, %113 : vector<32x256xf32>
    %115 = arith.truncf %114 : vector<32x256xf32> to vector<32x256xbf16>
    %c0_54 = arith.constant 0 : index
    %c256 = arith.constant 256 : index
    %116 = vector.load %arg6[%c0_54, %c256] : memref<32x512xbf16, #tpu.memory_space<vmem>>, vector<32x256xbf16>
    tpu.vector_store %arg6[%c0_54, %c256], %115 {strides = array<i32>} : memref<32x512xbf16, #tpu.memory_space<vmem>>, vector<32x256xbf16>,
    return
  }
}

module attributes {stable_mosaic.version = 11 : i64} {
  func.func @_upconv_bn_relu_kernel(%arg0: memref<64x256xbf16, #tpu.memory_space<vmem>>, %arg1: memref<4x256x256xbf16, #tpu.memory_space<vmem>>, %arg2: memref<256x4xf32, #tpu.memory_space<vmem>>, %arg3: memref<4x256xf32, #tpu.memory_space<vmem>>, %arg4: memref<1x4xf32, #tpu.memory_space<vmem>>, %arg5: memref<1x4xf32, #tpu.memory_space<vmem>>, %arg6: memref<64x512xbf16, #tpu.memory_space<vmem>>) attributes {dimension_semantics = [], scalar_prefetch = 0 : i64, scratch_operands = 0 : i64, tpu.core_type = #tpu.core_type<tc>} {
    %c0 = arith.constant 0 : index
    %c0_0 = arith.constant 0 : index
    %0 = vector.load %arg0[%c0, %c0_0] : memref<64x256xbf16, #tpu.memory_space<vmem>>, vector<64x256xbf16>
    %cst = arith.constant 0.000000e+00 : bf16
    %1 = vector.broadcast %cst : bf16 to vector<1x256xbf16>
    %2 = vector.extract_strided_slice %0 {offsets = [0, 0], sizes = [63, 256], strides = [1, 1]} : vector<64x256xbf16> to vector<63x256xbf16>
    %3 = tpu.concatenate %1, %2 in 0 : vector<1x256xbf16>, vector<63x256xbf16> -> vector<64x256xbf16>
    %4 = vector.extract_strided_slice %0 {offsets = [1, 0], sizes = [63, 256], strides = [1, 1]} : vector<64x256xbf16> to vector<63x256xbf16>
    %5 = tpu.concatenate %4, %1 in 0 : vector<63x256xbf16>, vector<1x256xbf16> -> vector<64x256xbf16>
    %6 = tpu.iota {dimensions = array<i32: 0>} : vector<64x1xi32>
    %c32_i32 = arith.constant 32 : i32
    %c0_i32 = arith.constant 0 : i32
    %7 = arith.cmpi eq, %c32_i32, %c0_i32 : i32
    %c1_i32 = arith.constant 1 : i32
    %8 = arith.select %7, %c1_i32, %c32_i32 : i32
    %9 = vector.broadcast %8 : i32 to vector<64x1xi32>
    %10 = arith.remsi %6, %9 : vector<64x1xi32>
    %c0_i32_1 = arith.constant 0 : i32
    %11 = vector.broadcast %c0_i32_1 : i32 to vector<64x1xi32>
    %12 = arith.cmpi ne, %10, %11 : vector<64x1xi32>
    %c0_i32_2 = arith.constant 0 : i32
    %13 = vector.broadcast %c0_i32_2 : i32 to vector<64x1xi32>
    %14 = arith.cmpi slt, %10, %13 : vector<64x1xi32>
    %c0_i32_3 = arith.constant 0 : i32
    %15 = arith.cmpi slt, %8, %c0_i32_3 : i32
    %16 = vector.broadcast %15 : i1 to vector<64x1xi1>
    %17 = vector.broadcast %16 : vector<64x1xi1> to vector<64x1xi1>
    %18 = arith.xori %14, %17 : vector<64x1xi1>
    %19 = arith.andi %18, %12 : vector<64x1xi1>
    %20 = vector.broadcast %8 : i32 to vector<64x1xi32>
    %21 = arith.addi %10, %20 : vector<64x1xi32>
    %22 = arith.select %19, %21, %10 : vector<64x1xi1>, vector<64x1xi32>
    %c0_i32_4 = arith.constant 0 : i32
    %23 = vector.broadcast %c0_i32_4 : i32 to vector<64x1xi32>
    %24 = arith.cmpi eq, %22, %23 : vector<64x1xi32>
    %cst_5 = arith.constant 0.000000e+00 : bf16
    %25 = vector.broadcast %cst_5 : bf16 to vector<64x256xbf16>
    %26 = vector.shape_cast %24 : vector<64x1xi1> to vector<64x1xi1>
    %27 = vector.broadcast %26 : vector<64x1xi1> to vector<64x256xi1>
    %28 = arith.select %27, %25, %3 : vector<64x256xi1>, vector<64x256xbf16>
    %c32_i32_6 = arith.constant 32 : i32
    %c0_i32_7 = arith.constant 0 : i32
    %29 = arith.cmpi eq, %c32_i32_6, %c0_i32_7 : i32
    %c1_i32_8 = arith.constant 1 : i32
    %30 = arith.select %29, %c1_i32_8, %c32_i32_6 : i32
    %31 = vector.broadcast %30 : i32 to vector<64x1xi32>
    %32 = arith.remsi %6, %31 : vector<64x1xi32>
    %c0_i32_9 = arith.constant 0 : i32
    %33 = vector.broadcast %c0_i32_9 : i32 to vector<64x1xi32>
    %34 = arith.cmpi ne, %32, %33 : vector<64x1xi32>
    %c0_i32_10 = arith.constant 0 : i32
    %35 = vector.broadcast %c0_i32_10 : i32 to vector<64x1xi32>
    %36 = arith.cmpi slt, %32, %35 : vector<64x1xi32>
    %c0_i32_11 = arith.constant 0 : i32
    %37 = arith.cmpi slt, %30, %c0_i32_11 : i32
    %38 = vector.broadcast %37 : i1 to vector<64x1xi1>
    %39 = vector.broadcast %38 : vector<64x1xi1> to vector<64x1xi1>
    %40 = arith.xori %36, %39 : vector<64x1xi1>
    %41 = arith.andi %40, %34 : vector<64x1xi1>
    %42 = vector.broadcast %30 : i32 to vector<64x1xi32>
    %43 = arith.addi %32, %42 : vector<64x1xi32>
    %44 = arith.select %41, %43, %32 : vector<64x1xi1>, vector<64x1xi32>
    %c31_i32 = arith.constant 31 : i32
    %45 = vector.broadcast %c31_i32 : i32 to vector<64x1xi32>
    %46 = arith.cmpi eq, %44, %45 : vector<64x1xi32>
    %cst_12 = arith.constant 0.000000e+00 : bf16
    %47 = vector.broadcast %cst_12 : bf16 to vector<64x256xbf16>
    %48 = vector.shape_cast %46 : vector<64x1xi1> to vector<64x1xi1>
    %49 = vector.broadcast %48 : vector<64x1xi1> to vector<64x256xi1>
    %50 = arith.select %49, %47, %5 : vector<64x256xi1>, vector<64x256xbf16>
    %c0_13 = arith.constant 0 : index
    %c0_14 = arith.constant 0 : index
    %c0_15 = arith.constant 0 : index
    %51 = vector.load %arg1[%c0_13, %c0_14, %c0_15] : memref<4x256x256xbf16, #tpu.memory_space<vmem>>, vector<1x256x256xbf16>
    %52 = vector.shape_cast %51 : vector<1x256x256xbf16> to vector<256x256xbf16>
    %c1 = arith.constant 1 : index
    %c0_16 = arith.constant 0 : index
    %c0_17 = arith.constant 0 : index
    %53 = vector.load %arg1[%c1, %c0_16, %c0_17] : memref<4x256x256xbf16, #tpu.memory_space<vmem>>, vector<1x256x256xbf16>
    %54 = vector.shape_cast %53 : vector<1x256x256xbf16> to vector<256x256xbf16>
    %c2 = arith.constant 2 : index
    %c0_18 = arith.constant 0 : index
    %c0_19 = arith.constant 0 : index
    %55 = vector.load %arg1[%c2, %c0_18, %c0_19] : memref<4x256x256xbf16, #tpu.memory_space<vmem>>, vector<1x256x256xbf16>
    %56 = vector.shape_cast %55 : vector<1x256x256xbf16> to vector<256x256xbf16>
    %c3 = arith.constant 3 : index
    %c0_20 = arith.constant 0 : index
    %c0_21 = arith.constant 0 : index
    %57 = vector.load %arg1[%c3, %c0_20, %c0_21] : memref<4x256x256xbf16, #tpu.memory_space<vmem>>, vector<1x256x256xbf16>
    %58 = vector.shape_cast %57 : vector<1x256x256xbf16> to vector<256x256xbf16>
    %cst_22 = arith.constant dense<0.000000e+00> : vector<64x256xf32>
    %59 = tpu.matmul %0, %52, %cst_22 {dimension_numbers = #tpu.dot_dimension_numbers<[1], [0], [0], [1], [0, 0, 1, 1], [], []>} : vector<64x256xbf16>, vector<256x256xbf16>, vector<64x256xf32> -> vector<64x256xf32>
    %cst_23 = arith.constant dense<0.000000e+00> : vector<64x256xf32>
    %60 = tpu.matmul %28, %54, %cst_23 {dimension_numbers = #tpu.dot_dimension_numbers<[1], [0], [0], [1], [0, 0, 1, 1], [], []>} : vector<64x256xbf16>, vector<256x256xbf16>, vector<64x256xf32> -> vector<64x256xf32>
    %61 = arith.addf %59, %60 : vector<64x256xf32>
    %cst_24 = arith.constant dense<0.000000e+00> : vector<64x256xf32>
    %62 = tpu.matmul %50, %56, %cst_24 {dimension_numbers = #tpu.dot_dimension_numbers<[1], [0], [0], [1], [0, 0, 1, 1], [], []>} : vector<64x256xbf16>, vector<256x256xbf16>, vector<64x256xf32> -> vector<64x256xf32>
    %cst_25 = arith.constant dense<0.000000e+00> : vector<64x256xf32>
    %63 = tpu.matmul %0, %58, %cst_25 {dimension_numbers = #tpu.dot_dimension_numbers<[1], [0], [0], [1], [0, 0, 1, 1], [], []>} : vector<64x256xbf16>, vector<256x256xbf16>, vector<64x256xf32> -> vector<64x256xf32>
    %64 = arith.addf %62, %63 : vector<64x256xf32>
    %cst_26 = arith.constant dense<0.000000e+00> : vector<256xf32>
    %65 = vector.multi_reduction <add>, %61, %cst_26 [0] : vector<64x256xf32> to vector<256xf32>
    %66 = vector.shape_cast %65 : vector<256xf32> to vector<1x256xf32>
    %cst_27 = arith.constant dense<0.000000e+00> : vector<256xf32>
    %67 = vector.multi_reduction <add>, %64, %cst_27 [0] : vector<64x256xf32> to vector<256xf32>
    %68 = vector.shape_cast %67 : vector<256xf32> to vector<1x256xf32>
    %69 = arith.addf %66, %68 : vector<1x256xf32>
    %70 = arith.mulf %61, %61 : vector<64x256xf32>
    %cst_28 = arith.constant dense<0.000000e+00> : vector<256xf32>
    %71 = vector.multi_reduction <add>, %70, %cst_28 [0] : vector<64x256xf32> to vector<256xf32>
    %72 = vector.shape_cast %71 : vector<256xf32> to vector<1x256xf32>
    %73 = arith.mulf %64, %64 : vector<64x256xf32>
    %cst_29 = arith.constant dense<0.000000e+00> : vector<256xf32>
    %74 = vector.multi_reduction <add>, %73, %cst_29 [0] : vector<64x256xf32> to vector<256xf32>
    %75 = vector.shape_cast %74 : vector<256xf32> to vector<1x256xf32>
    %76 = arith.addf %72, %75 : vector<1x256xf32>
    %c0_30 = arith.constant 0 : index
    %c0_31 = arith.constant 0 : index
    %77 = vector.load %arg2[%c0_30, %c0_31] : memref<256x4xf32, #tpu.memory_space<vmem>>, vector<256x4xf32>
    %cst_32 = arith.constant dense<0.000000e+00> : vector<1x4xf32>
    %78 = tpu.matmul %69, %77, %cst_32 {dimension_numbers = #tpu.dot_dimension_numbers<[1], [0], [0], [1], [0, 0, 1, 1], [], []>} : vector<1x256xf32>, vector<256x4xf32>, vector<1x4xf32> -> vector<1x4xf32>
    %c0_33 = arith.constant 0 : index
    %c0_34 = arith.constant 0 : index
    %79 = vector.load %arg2[%c0_33, %c0_34] : memref<256x4xf32, #tpu.memory_space<vmem>>, vector<256x4xf32>
    %cst_35 = arith.constant dense<0.000000e+00> : vector<1x4xf32>
    %80 = tpu.matmul %76, %79, %cst_35 {dimension_numbers = #tpu.dot_dimension_numbers<[1], [0], [0], [1], [0, 0, 1, 1], [], []>} : vector<1x256xf32>, vector<256x4xf32>, vector<1x4xf32> -> vector<1x4xf32>
    %cst_36 = arith.constant 1.22070313E-4 : f32
    %81 = vector.broadcast %cst_36 : f32 to vector<1x4xf32>
    %82 = arith.mulf %78, %81 : vector<1x4xf32>
    %cst_37 = arith.constant 1.22070313E-4 : f32
    %83 = vector.broadcast %cst_37 : f32 to vector<1x4xf32>
    %84 = arith.mulf %80, %83 : vector<1x4xf32>
    %85 = arith.mulf %82, %82 : vector<1x4xf32>
    %86 = arith.subf %84, %85 : vector<1x4xf32>
    %cst_38 = arith.constant 0.000000e+00 : f32
    %87 = vector.broadcast %cst_38 : f32 to vector<1x4xf32>
    %88 = arith.maximumf %86, %87 : vector<1x4xf32>
    %c0_39 = arith.constant 0 : index
    %c0_40 = arith.constant 0 : index
    %89 = vector.load %arg4[%c0_39, %c0_40] : memref<1x4xf32, #tpu.memory_space<vmem>>, vector<1x4xf32>
    %cst_41 = arith.constant 9.99999974E-6 : f32
    %90 = vector.broadcast %cst_41 : f32 to vector<1x4xf32>
    %91 = arith.addf %88, %90 : vector<1x4xf32>
    %92 = math.rsqrt %91 : vector<1x4xf32>
    %93 = arith.mulf %89, %92 : vector<1x4xf32>
    %c0_42 = arith.constant 0 : index
    %c0_43 = arith.constant 0 : index
    %94 = vector.load %arg5[%c0_42, %c0_43] : memref<1x4xf32, #tpu.memory_space<vmem>>, vector<1x4xf32>
    %95 = arith.mulf %82, %93 : vector<1x4xf32>
    %96 = arith.subf %94, %95 : vector<1x4xf32>
    %c0_44 = arith.constant 0 : index
    %c0_45 = arith.constant 0 : index
    %97 = vector.load %arg3[%c0_44, %c0_45] : memref<4x256xf32, #tpu.memory_space<vmem>>, vector<4x256xf32>
    %cst_46 = arith.constant dense<0.000000e+00> : vector<1x256xf32>
    %98 = tpu.matmul %93, %97, %cst_46 {dimension_numbers = #tpu.dot_dimension_numbers<[1], [0], [0], [1], [0, 0, 1, 1], [], []>} : vector<1x4xf32>, vector<4x256xf32>, vector<1x256xf32> -> vector<1x256xf32>
    %c0_47 = arith.constant 0 : index
    %c0_48 = arith.constant 0 : index
    %99 = vector.load %arg3[%c0_47, %c0_48] : memref<4x256xf32, #tpu.memory_space<vmem>>, vector<4x256xf32>
    %cst_49 = arith.constant dense<0.000000e+00> : vector<1x256xf32>
    %100 = tpu.matmul %96, %99, %cst_49 {dimension_numbers = #tpu.dot_dimension_numbers<[1], [0], [0], [1], [0, 0, 1, 1], [], []>} : vector<1x4xf32>, vector<4x256xf32>, vector<1x256xf32> -> vector<1x256xf32>
    %101 = vector.broadcast %98 : vector<1x256xf32> to vector<64x256xf32>
    %102 = arith.mulf %61, %101 : vector<64x256xf32>
    %103 = vector.broadcast %100 : vector<1x256xf32> to vector<64x256xf32>
    %104 = arith.addf %102, %103 : vector<64x256xf32>
    %cst_50 = arith.constant 0.000000e+00 : f32
    %105 = vector.broadcast %cst_50 : f32 to vector<64x256xf32>
    %106 = arith.maximumf %104, %105 : vector<64x256xf32>
    %107 = arith.truncf %106 : vector<64x256xf32> to vector<64x256xbf16>
    %c0_51 = arith.constant 0 : index
    %c0_52 = arith.constant 0 : index
    %108 = vector.load %arg6[%c0_51, %c0_52] : memref<64x512xbf16, #tpu.memory_space<vmem>>, vector<64x256xbf16>
    tpu.vector_store %arg6[%c0_51, %c0_52], %107 {strides = array<i32>} : memref<64x512xbf16, #tpu.memory_space<vmem>>, vector<64x256xbf16>,
    %109 = vector.broadcast %98 : vector<1x256xf32> to vector<64x256xf32>
    %110 = arith.mulf %64, %109 : vector<64x256xf32>
    %111 = vector.broadcast %100 : vector<1x256xf32> to vector<64x256xf32>
    %112 = arith.addf %110, %111 : vector<64x256xf32>
    %cst_53 = arith.constant 0.000000e+00 : f32
    %113 = vector.broadcast %cst_53 : f32 to vector<64x256xf32>
    %114 = arith.maximumf %112, %113 : vector<64x256xf32>
    %115 = arith.truncf %114 : vector<64x256xf32> to vector<64x256xbf16>
    %c0_54 = arith.constant 0 : index
    %c256 = arith.constant 256 : index
    %116 = vector.load %arg6[%c0_54, %c256] : memref<64x512xbf16, #tpu.memory_space<vmem>>, vector<64x256xbf16>
    tpu.vector_store %arg6[%c0_54, %c256], %115 {strides = array<i32>} : memref<64x512xbf16, #tpu.memory_space<vmem>>, vector<64x256xbf16>,
    return
  }
}

module attributes {stable_mosaic.version = 11 : i64} {
  func.func @_upconv_bn_relu_kernel(%arg0: memref<128x256xbf16, #tpu.memory_space<vmem>>, %arg1: memref<4x256x256xbf16, #tpu.memory_space<vmem>>, %arg2: memref<256x2xf32, #tpu.memory_space<vmem>>, %arg3: memref<2x256xf32, #tpu.memory_space<vmem>>, %arg4: memref<1x2xf32, #tpu.memory_space<vmem>>, %arg5: memref<1x2xf32, #tpu.memory_space<vmem>>, %arg6: memref<128x512xbf16, #tpu.memory_space<vmem>>) attributes {dimension_semantics = [], scalar_prefetch = 0 : i64, scratch_operands = 0 : i64, tpu.core_type = #tpu.core_type<tc>} {
    %c0 = arith.constant 0 : index
    %c0_0 = arith.constant 0 : index
    %0 = vector.load %arg0[%c0, %c0_0] : memref<128x256xbf16, #tpu.memory_space<vmem>>, vector<128x256xbf16>
    %cst = arith.constant 0.000000e+00 : bf16
    %1 = vector.broadcast %cst : bf16 to vector<1x256xbf16>
    %2 = vector.extract_strided_slice %0 {offsets = [0, 0], sizes = [127, 256], strides = [1, 1]} : vector<128x256xbf16> to vector<127x256xbf16>
    %3 = tpu.concatenate %1, %2 in 0 : vector<1x256xbf16>, vector<127x256xbf16> -> vector<128x256xbf16>
    %4 = vector.extract_strided_slice %0 {offsets = [1, 0], sizes = [127, 256], strides = [1, 1]} : vector<128x256xbf16> to vector<127x256xbf16>
    %5 = tpu.concatenate %4, %1 in 0 : vector<127x256xbf16>, vector<1x256xbf16> -> vector<128x256xbf16>
    %6 = tpu.iota {dimensions = array<i32: 0>} : vector<128x1xi32>
    %c64_i32 = arith.constant 64 : i32
    %c0_i32 = arith.constant 0 : i32
    %7 = arith.cmpi eq, %c64_i32, %c0_i32 : i32
    %c1_i32 = arith.constant 1 : i32
    %8 = arith.select %7, %c1_i32, %c64_i32 : i32
    %9 = vector.broadcast %8 : i32 to vector<128x1xi32>
    %10 = arith.remsi %6, %9 : vector<128x1xi32>
    %c0_i32_1 = arith.constant 0 : i32
    %11 = vector.broadcast %c0_i32_1 : i32 to vector<128x1xi32>
    %12 = arith.cmpi ne, %10, %11 : vector<128x1xi32>
    %c0_i32_2 = arith.constant 0 : i32
    %13 = vector.broadcast %c0_i32_2 : i32 to vector<128x1xi32>
    %14 = arith.cmpi slt, %10, %13 : vector<128x1xi32>
    %c0_i32_3 = arith.constant 0 : i32
    %15 = arith.cmpi slt, %8, %c0_i32_3 : i32
    %16 = vector.broadcast %15 : i1 to vector<128x1xi1>
    %17 = vector.broadcast %16 : vector<128x1xi1> to vector<128x1xi1>
    %18 = arith.xori %14, %17 : vector<128x1xi1>
    %19 = arith.andi %18, %12 : vector<128x1xi1>
    %20 = vector.broadcast %8 : i32 to vector<128x1xi32>
    %21 = arith.addi %10, %20 : vector<128x1xi32>
    %22 = arith.select %19, %21, %10 : vector<128x1xi1>, vector<128x1xi32>
    %c0_i32_4 = arith.constant 0 : i32
    %23 = vector.broadcast %c0_i32_4 : i32 to vector<128x1xi32>
    %24 = arith.cmpi eq, %22, %23 : vector<128x1xi32>
    %cst_5 = arith.constant 0.000000e+00 : bf16
    %25 = vector.broadcast %cst_5 : bf16 to vector<128x256xbf16>
    %26 = vector.shape_cast %24 : vector<128x1xi1> to vector<128x1xi1>
    %27 = vector.broadcast %26 : vector<128x1xi1> to vector<128x256xi1>
    %28 = arith.select %27, %25, %3 : vector<128x256xi1>, vector<128x256xbf16>
    %c64_i32_6 = arith.constant 64 : i32
    %c0_i32_7 = arith.constant 0 : i32
    %29 = arith.cmpi eq, %c64_i32_6, %c0_i32_7 : i32
    %c1_i32_8 = arith.constant 1 : i32
    %30 = arith.select %29, %c1_i32_8, %c64_i32_6 : i32
    %31 = vector.broadcast %30 : i32 to vector<128x1xi32>
    %32 = arith.remsi %6, %31 : vector<128x1xi32>
    %c0_i32_9 = arith.constant 0 : i32
    %33 = vector.broadcast %c0_i32_9 : i32 to vector<128x1xi32>
    %34 = arith.cmpi ne, %32, %33 : vector<128x1xi32>
    %c0_i32_10 = arith.constant 0 : i32
    %35 = vector.broadcast %c0_i32_10 : i32 to vector<128x1xi32>
    %36 = arith.cmpi slt, %32, %35 : vector<128x1xi32>
    %c0_i32_11 = arith.constant 0 : i32
    %37 = arith.cmpi slt, %30, %c0_i32_11 : i32
    %38 = vector.broadcast %37 : i1 to vector<128x1xi1>
    %39 = vector.broadcast %38 : vector<128x1xi1> to vector<128x1xi1>
    %40 = arith.xori %36, %39 : vector<128x1xi1>
    %41 = arith.andi %40, %34 : vector<128x1xi1>
    %42 = vector.broadcast %30 : i32 to vector<128x1xi32>
    %43 = arith.addi %32, %42 : vector<128x1xi32>
    %44 = arith.select %41, %43, %32 : vector<128x1xi1>, vector<128x1xi32>
    %c63_i32 = arith.constant 63 : i32
    %45 = vector.broadcast %c63_i32 : i32 to vector<128x1xi32>
    %46 = arith.cmpi eq, %44, %45 : vector<128x1xi32>
    %cst_12 = arith.constant 0.000000e+00 : bf16
    %47 = vector.broadcast %cst_12 : bf16 to vector<128x256xbf16>
    %48 = vector.shape_cast %46 : vector<128x1xi1> to vector<128x1xi1>
    %49 = vector.broadcast %48 : vector<128x1xi1> to vector<128x256xi1>
    %50 = arith.select %49, %47, %5 : vector<128x256xi1>, vector<128x256xbf16>
    %c0_13 = arith.constant 0 : index
    %c0_14 = arith.constant 0 : index
    %c0_15 = arith.constant 0 : index
    %51 = vector.load %arg1[%c0_13, %c0_14, %c0_15] : memref<4x256x256xbf16, #tpu.memory_space<vmem>>, vector<1x256x256xbf16>
    %52 = vector.shape_cast %51 : vector<1x256x256xbf16> to vector<256x256xbf16>
    %c1 = arith.constant 1 : index
    %c0_16 = arith.constant 0 : index
    %c0_17 = arith.constant 0 : index
    %53 = vector.load %arg1[%c1, %c0_16, %c0_17] : memref<4x256x256xbf16, #tpu.memory_space<vmem>>, vector<1x256x256xbf16>
    %54 = vector.shape_cast %53 : vector<1x256x256xbf16> to vector<256x256xbf16>
    %c2 = arith.constant 2 : index
    %c0_18 = arith.constant 0 : index
    %c0_19 = arith.constant 0 : index
    %55 = vector.load %arg1[%c2, %c0_18, %c0_19] : memref<4x256x256xbf16, #tpu.memory_space<vmem>>, vector<1x256x256xbf16>
    %56 = vector.shape_cast %55 : vector<1x256x256xbf16> to vector<256x256xbf16>
    %c3 = arith.constant 3 : index
    %c0_20 = arith.constant 0 : index
    %c0_21 = arith.constant 0 : index
    %57 = vector.load %arg1[%c3, %c0_20, %c0_21] : memref<4x256x256xbf16, #tpu.memory_space<vmem>>, vector<1x256x256xbf16>
    %58 = vector.shape_cast %57 : vector<1x256x256xbf16> to vector<256x256xbf16>
    %cst_22 = arith.constant dense<0.000000e+00> : vector<128x256xf32>
    %59 = tpu.matmul %0, %52, %cst_22 {dimension_numbers = #tpu.dot_dimension_numbers<[1], [0], [0], [1], [0, 0, 1, 1], [], []>} : vector<128x256xbf16>, vector<256x256xbf16>, vector<128x256xf32> -> vector<128x256xf32>
    %cst_23 = arith.constant dense<0.000000e+00> : vector<128x256xf32>
    %60 = tpu.matmul %28, %54, %cst_23 {dimension_numbers = #tpu.dot_dimension_numbers<[1], [0], [0], [1], [0, 0, 1, 1], [], []>} : vector<128x256xbf16>, vector<256x256xbf16>, vector<128x256xf32> -> vector<128x256xf32>
    %61 = arith.addf %59, %60 : vector<128x256xf32>
    %cst_24 = arith.constant dense<0.000000e+00> : vector<128x256xf32>
    %62 = tpu.matmul %50, %56, %cst_24 {dimension_numbers = #tpu.dot_dimension_numbers<[1], [0], [0], [1], [0, 0, 1, 1], [], []>} : vector<128x256xbf16>, vector<256x256xbf16>, vector<128x256xf32> -> vector<128x256xf32>
    %cst_25 = arith.constant dense<0.000000e+00> : vector<128x256xf32>
    %63 = tpu.matmul %0, %58, %cst_25 {dimension_numbers = #tpu.dot_dimension_numbers<[1], [0], [0], [1], [0, 0, 1, 1], [], []>} : vector<128x256xbf16>, vector<256x256xbf16>, vector<128x256xf32> -> vector<128x256xf32>
    %64 = arith.addf %62, %63 : vector<128x256xf32>
    %cst_26 = arith.constant dense<0.000000e+00> : vector<256xf32>
    %65 = vector.multi_reduction <add>, %61, %cst_26 [0] : vector<128x256xf32> to vector<256xf32>
    %66 = vector.shape_cast %65 : vector<256xf32> to vector<1x256xf32>
    %cst_27 = arith.constant dense<0.000000e+00> : vector<256xf32>
    %67 = vector.multi_reduction <add>, %64, %cst_27 [0] : vector<128x256xf32> to vector<256xf32>
    %68 = vector.shape_cast %67 : vector<256xf32> to vector<1x256xf32>
    %69 = arith.addf %66, %68 : vector<1x256xf32>
    %70 = arith.mulf %61, %61 : vector<128x256xf32>
    %cst_28 = arith.constant dense<0.000000e+00> : vector<256xf32>
    %71 = vector.multi_reduction <add>, %70, %cst_28 [0] : vector<128x256xf32> to vector<256xf32>
    %72 = vector.shape_cast %71 : vector<256xf32> to vector<1x256xf32>
    %73 = arith.mulf %64, %64 : vector<128x256xf32>
    %cst_29 = arith.constant dense<0.000000e+00> : vector<256xf32>
    %74 = vector.multi_reduction <add>, %73, %cst_29 [0] : vector<128x256xf32> to vector<256xf32>
    %75 = vector.shape_cast %74 : vector<256xf32> to vector<1x256xf32>
    %76 = arith.addf %72, %75 : vector<1x256xf32>
    %c0_30 = arith.constant 0 : index
    %c0_31 = arith.constant 0 : index
    %77 = vector.load %arg2[%c0_30, %c0_31] : memref<256x2xf32, #tpu.memory_space<vmem>>, vector<256x2xf32>
    %cst_32 = arith.constant dense<0.000000e+00> : vector<1x2xf32>
    %78 = tpu.matmul %69, %77, %cst_32 {dimension_numbers = #tpu.dot_dimension_numbers<[1], [0], [0], [1], [0, 0, 1, 1], [], []>} : vector<1x256xf32>, vector<256x2xf32>, vector<1x2xf32> -> vector<1x2xf32>
    %c0_33 = arith.constant 0 : index
    %c0_34 = arith.constant 0 : index
    %79 = vector.load %arg2[%c0_33, %c0_34] : memref<256x2xf32, #tpu.memory_space<vmem>>, vector<256x2xf32>
    %cst_35 = arith.constant dense<0.000000e+00> : vector<1x2xf32>
    %80 = tpu.matmul %76, %79, %cst_35 {dimension_numbers = #tpu.dot_dimension_numbers<[1], [0], [0], [1], [0, 0, 1, 1], [], []>} : vector<1x256xf32>, vector<256x2xf32>, vector<1x2xf32> -> vector<1x2xf32>
    %cst_36 = arith.constant 3.05175781E-5 : f32
    %81 = vector.broadcast %cst_36 : f32 to vector<1x2xf32>
    %82 = arith.mulf %78, %81 : vector<1x2xf32>
    %cst_37 = arith.constant 3.05175781E-5 : f32
    %83 = vector.broadcast %cst_37 : f32 to vector<1x2xf32>
    %84 = arith.mulf %80, %83 : vector<1x2xf32>
    %85 = arith.mulf %82, %82 : vector<1x2xf32>
    %86 = arith.subf %84, %85 : vector<1x2xf32>
    %cst_38 = arith.constant 0.000000e+00 : f32
    %87 = vector.broadcast %cst_38 : f32 to vector<1x2xf32>
    %88 = arith.maximumf %86, %87 : vector<1x2xf32>
    %c0_39 = arith.constant 0 : index
    %c0_40 = arith.constant 0 : index
    %89 = vector.load %arg4[%c0_39, %c0_40] : memref<1x2xf32, #tpu.memory_space<vmem>>, vector<1x2xf32>
    %cst_41 = arith.constant 9.99999974E-6 : f32
    %90 = vector.broadcast %cst_41 : f32 to vector<1x2xf32>
    %91 = arith.addf %88, %90 : vector<1x2xf32>
    %92 = math.rsqrt %91 : vector<1x2xf32>
    %93 = arith.mulf %89, %92 : vector<1x2xf32>
    %c0_42 = arith.constant 0 : index
    %c0_43 = arith.constant 0 : index
    %94 = vector.load %arg5[%c0_42, %c0_43] : memref<1x2xf32, #tpu.memory_space<vmem>>, vector<1x2xf32>
    %95 = arith.mulf %82, %93 : vector<1x2xf32>
    %96 = arith.subf %94, %95 : vector<1x2xf32>
    %c0_44 = arith.constant 0 : index
    %c0_45 = arith.constant 0 : index
    %97 = vector.load %arg3[%c0_44, %c0_45] : memref<2x256xf32, #tpu.memory_space<vmem>>, vector<2x256xf32>
    %cst_46 = arith.constant dense<0.000000e+00> : vector<1x256xf32>
    %98 = tpu.matmul %93, %97, %cst_46 {dimension_numbers = #tpu.dot_dimension_numbers<[1], [0], [0], [1], [0, 0, 1, 1], [], []>} : vector<1x2xf32>, vector<2x256xf32>, vector<1x256xf32> -> vector<1x256xf32>
    %c0_47 = arith.constant 0 : index
    %c0_48 = arith.constant 0 : index
    %99 = vector.load %arg3[%c0_47, %c0_48] : memref<2x256xf32, #tpu.memory_space<vmem>>, vector<2x256xf32>
    %cst_49 = arith.constant dense<0.000000e+00> : vector<1x256xf32>
    %100 = tpu.matmul %96, %99, %cst_49 {dimension_numbers = #tpu.dot_dimension_numbers<[1], [0], [0], [1], [0, 0, 1, 1], [], []>} : vector<1x2xf32>, vector<2x256xf32>, vector<1x256xf32> -> vector<1x256xf32>
    %101 = vector.broadcast %98 : vector<1x256xf32> to vector<128x256xf32>
    %102 = arith.mulf %61, %101 : vector<128x256xf32>
    %103 = vector.broadcast %100 : vector<1x256xf32> to vector<128x256xf32>
    %104 = arith.addf %102, %103 : vector<128x256xf32>
    %cst_50 = arith.constant 0.000000e+00 : f32
    %105 = vector.broadcast %cst_50 : f32 to vector<128x256xf32>
    %106 = arith.maximumf %104, %105 : vector<128x256xf32>
    %107 = arith.truncf %106 : vector<128x256xf32> to vector<128x256xbf16>
    %c0_51 = arith.constant 0 : index
    %c0_52 = arith.constant 0 : index
    %108 = vector.load %arg6[%c0_51, %c0_52] : memref<128x512xbf16, #tpu.memory_space<vmem>>, vector<128x256xbf16>
    tpu.vector_store %arg6[%c0_51, %c0_52], %107 {strides = array<i32>} : memref<128x512xbf16, #tpu.memory_space<vmem>>, vector<128x256xbf16>,
    %109 = vector.broadcast %98 : vector<1x256xf32> to vector<128x256xf32>
    %110 = arith.mulf %64, %109 : vector<128x256xf32>
    %111 = vector.broadcast %100 : vector<1x256xf32> to vector<128x256xf32>
    %112 = arith.addf %110, %111 : vector<128x256xf32>
    %cst_53 = arith.constant 0.000000e+00 : f32
    %113 = vector.broadcast %cst_53 : f32 to vector<128x256xf32>
    %114 = arith.maximumf %112, %113 : vector<128x256xf32>
    %115 = arith.truncf %114 : vector<128x256xf32> to vector<128x256xbf16>
    %c0_54 = arith.constant 0 : index
    %c256 = arith.constant 256 : index
    %116 = vector.load %arg6[%c0_54, %c256] : memref<128x512xbf16, #tpu.memory_space<vmem>>, vector<128x256xbf16>
    tpu.vector_store %arg6[%c0_54, %c256], %115 {strides = array<i32>} : memref<128x512xbf16, #tpu.memory_space<vmem>>, vector<128x256xbf16>,
    return
  }
}

module attributes {stable_mosaic.version = 11 : i64} {
  func.func @_upconv_tanh_kernel(%arg0: memref<256x256xbf16, #tpu.memory_space<vmem>>, %arg1: memref<4x256x256xbf16, #tpu.memory_space<vmem>>, %arg2: memref<256x512xf32, #tpu.memory_space<vmem>>) attributes {dimension_semantics = [], scalar_prefetch = 0 : i64, scratch_operands = 0 : i64, tpu.core_type = #tpu.core_type<tc>} {
    %c0 = arith.constant 0 : index
    %c0_0 = arith.constant 0 : index
    %0 = vector.load %arg0[%c0, %c0_0] : memref<256x256xbf16, #tpu.memory_space<vmem>>, vector<256x256xbf16>
    %cst = arith.constant 0.000000e+00 : bf16
    %1 = vector.broadcast %cst : bf16 to vector<1x256xbf16>
    %2 = vector.extract_strided_slice %0 {offsets = [0, 0], sizes = [255, 256], strides = [1, 1]} : vector<256x256xbf16> to vector<255x256xbf16>
    %3 = tpu.concatenate %1, %2 in 0 : vector<1x256xbf16>, vector<255x256xbf16> -> vector<256x256xbf16>
    %4 = vector.extract_strided_slice %0 {offsets = [1, 0], sizes = [255, 256], strides = [1, 1]} : vector<256x256xbf16> to vector<255x256xbf16>
    %5 = tpu.concatenate %4, %1 in 0 : vector<255x256xbf16>, vector<1x256xbf16> -> vector<256x256xbf16>
    %6 = tpu.iota {dimensions = array<i32: 0>} : vector<256x1xi32>
    %c128_i32 = arith.constant 128 : i32
    %c0_i32 = arith.constant 0 : i32
    %7 = arith.cmpi eq, %c128_i32, %c0_i32 : i32
    %c1_i32 = arith.constant 1 : i32
    %8 = arith.select %7, %c1_i32, %c128_i32 : i32
    %9 = vector.broadcast %8 : i32 to vector<256x1xi32>
    %10 = arith.remsi %6, %9 : vector<256x1xi32>
    %c0_i32_1 = arith.constant 0 : i32
    %11 = vector.broadcast %c0_i32_1 : i32 to vector<256x1xi32>
    %12 = arith.cmpi ne, %10, %11 : vector<256x1xi32>
    %c0_i32_2 = arith.constant 0 : i32
    %13 = vector.broadcast %c0_i32_2 : i32 to vector<256x1xi32>
    %14 = arith.cmpi slt, %10, %13 : vector<256x1xi32>
    %c0_i32_3 = arith.constant 0 : i32
    %15 = arith.cmpi slt, %8, %c0_i32_3 : i32
    %16 = vector.broadcast %15 : i1 to vector<256x1xi1>
    %17 = vector.broadcast %16 : vector<256x1xi1> to vector<256x1xi1>
    %18 = arith.xori %14, %17 : vector<256x1xi1>
    %19 = arith.andi %18, %12 : vector<256x1xi1>
    %20 = vector.broadcast %8 : i32 to vector<256x1xi32>
    %21 = arith.addi %10, %20 : vector<256x1xi32>
    %22 = arith.select %19, %21, %10 : vector<256x1xi1>, vector<256x1xi32>
    %c0_i32_4 = arith.constant 0 : i32
    %23 = vector.broadcast %c0_i32_4 : i32 to vector<256x1xi32>
    %24 = arith.cmpi eq, %22, %23 : vector<256x1xi32>
    %cst_5 = arith.constant 0.000000e+00 : bf16
    %25 = vector.broadcast %cst_5 : bf16 to vector<256x256xbf16>
    %26 = vector.shape_cast %24 : vector<256x1xi1> to vector<256x1xi1>
    %27 = vector.broadcast %26 : vector<256x1xi1> to vector<256x256xi1>
    %28 = arith.select %27, %25, %3 : vector<256x256xi1>, vector<256x256xbf16>
    %c128_i32_6 = arith.constant 128 : i32
    %c0_i32_7 = arith.constant 0 : i32
    %29 = arith.cmpi eq, %c128_i32_6, %c0_i32_7 : i32
    %c1_i32_8 = arith.constant 1 : i32
    %30 = arith.select %29, %c1_i32_8, %c128_i32_6 : i32
    %31 = vector.broadcast %30 : i32 to vector<256x1xi32>
    %32 = arith.remsi %6, %31 : vector<256x1xi32>
    %c0_i32_9 = arith.constant 0 : i32
    %33 = vector.broadcast %c0_i32_9 : i32 to vector<256x1xi32>
    %34 = arith.cmpi ne, %32, %33 : vector<256x1xi32>
    %c0_i32_10 = arith.constant 0 : i32
    %35 = vector.broadcast %c0_i32_10 : i32 to vector<256x1xi32>
    %36 = arith.cmpi slt, %32, %35 : vector<256x1xi32>
    %c0_i32_11 = arith.constant 0 : i32
    %37 = arith.cmpi slt, %30, %c0_i32_11 : i32
    %38 = vector.broadcast %37 : i1 to vector<256x1xi1>
    %39 = vector.broadcast %38 : vector<256x1xi1> to vector<256x1xi1>
    %40 = arith.xori %36, %39 : vector<256x1xi1>
    %41 = arith.andi %40, %34 : vector<256x1xi1>
    %42 = vector.broadcast %30 : i32 to vector<256x1xi32>
    %43 = arith.addi %32, %42 : vector<256x1xi32>
    %44 = arith.select %41, %43, %32 : vector<256x1xi1>, vector<256x1xi32>
    %c127_i32 = arith.constant 127 : i32
    %45 = vector.broadcast %c127_i32 : i32 to vector<256x1xi32>
    %46 = arith.cmpi eq, %44, %45 : vector<256x1xi32>
    %cst_12 = arith.constant 0.000000e+00 : bf16
    %47 = vector.broadcast %cst_12 : bf16 to vector<256x256xbf16>
    %48 = vector.shape_cast %46 : vector<256x1xi1> to vector<256x1xi1>
    %49 = vector.broadcast %48 : vector<256x1xi1> to vector<256x256xi1>
    %50 = arith.select %49, %47, %5 : vector<256x256xi1>, vector<256x256xbf16>
    %c0_13 = arith.constant 0 : index
    %c0_14 = arith.constant 0 : index
    %c0_15 = arith.constant 0 : index
    %51 = vector.load %arg1[%c0_13, %c0_14, %c0_15] : memref<4x256x256xbf16, #tpu.memory_space<vmem>>, vector<1x256x256xbf16>
    %52 = vector.shape_cast %51 : vector<1x256x256xbf16> to vector<256x256xbf16>
    %c1 = arith.constant 1 : index
    %c0_16 = arith.constant 0 : index
    %c0_17 = arith.constant 0 : index
    %53 = vector.load %arg1[%c1, %c0_16, %c0_17] : memref<4x256x256xbf16, #tpu.memory_space<vmem>>, vector<1x256x256xbf16>
    %54 = vector.shape_cast %53 : vector<1x256x256xbf16> to vector<256x256xbf16>
    %c2 = arith.constant 2 : index
    %c0_18 = arith.constant 0 : index
    %c0_19 = arith.constant 0 : index
    %55 = vector.load %arg1[%c2, %c0_18, %c0_19] : memref<4x256x256xbf16, #tpu.memory_space<vmem>>, vector<1x256x256xbf16>
    %56 = vector.shape_cast %55 : vector<1x256x256xbf16> to vector<256x256xbf16>
    %c3 = arith.constant 3 : index
    %c0_20 = arith.constant 0 : index
    %c0_21 = arith.constant 0 : index
    %57 = vector.load %arg1[%c3, %c0_20, %c0_21] : memref<4x256x256xbf16, #tpu.memory_space<vmem>>, vector<1x256x256xbf16>
    %58 = vector.shape_cast %57 : vector<1x256x256xbf16> to vector<256x256xbf16>
    %cst_22 = arith.constant dense<0.000000e+00> : vector<256x256xf32>
    %59 = tpu.matmul %0, %52, %cst_22 {dimension_numbers = #tpu.dot_dimension_numbers<[1], [0], [0], [1], [0, 0, 1, 1], [], []>} : vector<256x256xbf16>, vector<256x256xbf16>, vector<256x256xf32> -> vector<256x256xf32>
    %cst_23 = arith.constant dense<0.000000e+00> : vector<256x256xf32>
    %60 = tpu.matmul %28, %54, %cst_23 {dimension_numbers = #tpu.dot_dimension_numbers<[1], [0], [0], [1], [0, 0, 1, 1], [], []>} : vector<256x256xbf16>, vector<256x256xbf16>, vector<256x256xf32> -> vector<256x256xf32>
    %61 = arith.addf %59, %60 : vector<256x256xf32>
    %cst_24 = arith.constant dense<0.000000e+00> : vector<256x256xf32>
    %62 = tpu.matmul %50, %56, %cst_24 {dimension_numbers = #tpu.dot_dimension_numbers<[1], [0], [0], [1], [0, 0, 1, 1], [], []>} : vector<256x256xbf16>, vector<256x256xbf16>, vector<256x256xf32> -> vector<256x256xf32>
    %cst_25 = arith.constant dense<0.000000e+00> : vector<256x256xf32>
    %63 = tpu.matmul %0, %58, %cst_25 {dimension_numbers = #tpu.dot_dimension_numbers<[1], [0], [0], [1], [0, 0, 1, 1], [], []>} : vector<256x256xbf16>, vector<256x256xbf16>, vector<256x256xf32> -> vector<256x256xf32>
    %64 = arith.addf %62, %63 : vector<256x256xf32>
    %65 = math.tanh %61 : vector<256x256xf32>
    %c0_26 = arith.constant 0 : index
    %c0_27 = arith.constant 0 : index
    %66 = vector.load %arg2[%c0_26, %c0_27] : memref<256x512xf32, #tpu.memory_space<vmem>>, vector<256x256xf32>
    tpu.vector_store %arg2[%c0_26, %c0_27], %65 {strides = array<i32>} : memref<256x512xf32, #tpu.memory_space<vmem>>, vector<256x256xf32>,
    %67 = math.tanh %64 : vector<256x256xf32>
    %c0_28 = arith.constant 0 : index
    %c256 = arith.constant 256 : index
    %68 = vector.load %arg2[%c0_28, %c256] : memref<256x512xf32, #tpu.memory_space<vmem>>, vector<256x256xf32>
    tpu.vector_store %arg2[%c0_28, %c256], %67 {strides = array<i32>} : memref<256x512xf32, #tpu.memory_space<vmem>>, vector<256x256xf32>,
    return
  }
}

</mosaic_0001>

<bundles_post_ra>
// kernel: generator_forward.7
= control target key start
LH: loop header
LB: loop body
LE: loop exit
PB: predicated region body
PF: predicated region fallthrough
CT: control target
= control target key end

     0   :  { %vm142_vm0 = vcmask 1046528   ;;  %v3200_v0 = vmov 0.0|0.0   ;;  %vm3201_vm1 = vmmov 1   ;;  %vm3202_vm3 = vmmov 0   ;;  %s4463_s4 = inlined_call_operand.vmem [shape: f32[15,8], index: 4, kind: input, shape index: {}]   ;;  %s4464_s2 = inlined_call_operand.vmem [shape: f32[32,24], index: 2, kind: input, shape index: {}]   ;;  %s4465_s1 = inlined_call_operand.vmem [shape: f32[2,15], index: 1, kind: input, shape index: {}]   ;;  %s4466_s0 = inlined_call_operand.vmem [shape: f32[2,32], index: 0, kind: input, shape index: {}]   ;;  %s4467_s7 = inlined_call_operand.vmem [shape: f32[8,1024], index: 7, kind: input, shape index: {}]   ;;  %s4468_s5 = inlined_call_operand.vmem [shape: f32[1,8], index: 5, kind: input, shape index: {}]   ;;  %s4469_s6 = inlined_call_operand.vmem [shape: f32[24,1024], index: 6, kind: input, shape index: {}]   ;;  %s4470_s3 = inlined_call_operand.vmem [shape: f32[1,24], index: 3, kind: input, shape index: {}]   ;;  %s4471_s8 = inlined_call_operand.vmem [shape: f32[1024,64], index: 8, kind: input, shape index: {}]   ;;  %s4472_s9 = inlined_call_operand.vmem [shape: f32[64,1024], index: 9, kind: input, shape index: {}]   ;;  %s4473_s10 = inlined_call_operand.vmem [shape: f32[1,64], index: 10, kind: input, shape index: {}]   ;;  %s4474_s11 = inlined_call_operand.vmem [shape: f32[1,64], index: 11, kind: input, shape index: {}]   ;;  %s4475_s12 = inlined_call_operand.vmem [shape: bf16[2,1024], index: 12, kind: output, shape index: {}]  }
   0x1   :  { %2781 = vmatprep.subr.bf16.mxu1 %v3200_v0  ;;  %v129_v1 = vld [vmem:[%s4463_s4] sm:$0xff]  ;;  %v130_v2 = vld [vmem:[%s4463_s4 + $0x8] sm:$0x7f]  ;;  %vm2783_vm2 = vmpackc.low %vm142_vm0, %vm3201_vm1  ;;  %2775 = vmatprep.subr.bf16.mxu0 %v3200_v0  ;;  %v4476_v4 = vmov 0.0   ;;  %vm138_vm4 = vcmask 121856   ;;  %vm53_vm5 = vcmask 261120  }
   0x2   :  { %v2782_v3 = vpack.c.bf16 %v130_v2, %v129_v1  ;;  %2772 = vmatprep.mubr.msk.f32.mxu1 %vm3202_vm3, %v4476_v4  ;;  %v42_v5 = vld [vmem:[%s4464_s2] sm:$0xff]  ;;  %v43_v6 = vld [vmem:[%s4464_s2 + $0x8] sm:$0xff]  ;;  %2765 = vmatprep.mubr.msk.f32.mxu0 %vm3202_vm3, %v4476_v4  ;;  %v44_v8 = vld [vmem:[%s4464_s2 + $0x10] sm:$0xff]  ;;  %vm249_vm6 = vcmask 64512   ;;  %vm537_vm7 = vcmask 195584   ;;  %vm825_vm8 = vcmask 1041408  }
   0x3   :  { %v2776_v7 = vpack.c.bf16 %v43_v6, %v42_v5  ;;  %v45_v9 = vld [vmem:[%s4464_s2 + $0x18] sm:$0xff]  ;;  %v128_v10 = vld [vmem:[%s4465_s1] sm:$0x3]  ;;  %v242_v13 = vld [vmem:[%s4467_s7 + $0x8] sm:$0xff]  ;;  %vm1710_vm9 = vcmask 523264  }
   0x4   :  { %2784 = vmatpush3.bf16.msk.msra.mxu1 %vm2783_vm2, %v2782_v3  ;;  %v2779_v11 = vpack.c.bf16 %v45_v9, %v44_v8  ;;  %v41_v12 = vld [vmem:[%s4466_s0] sm:$0x3]  ;;  %v244_v14 = vld [vmem:[%s4467_s7 + $0x18] sm:$0xff]  ;;  %v243_v16 = vld [vmem:[%s4467_s7 + $0x10] sm:$0xff] }
   0x5   :  { %2777 = vmatpush3.bf16.msra.mxu0 %v2776_v7  ;;  %253 = vmatprep.subr.mxu1 %v242_v13  ;;  %v241_v15 = vld [vmem:[%s4467_s7] sm:$0xff]  ;;  %v246_v17 = vld [vmem:[%s4467_s7 + $0x28] sm:$0xff]  ;;  %v248_v18 = vld [vmem:[%s4467_s7 + $0x38] sm:$0xff] }
   0x6   :  { %2778 = vmatprep.subr.bf16.mxu0 %v3200_v0  ;;  %v2446_v19 = vld [vmem:[%s4468_s5] ss:$0 sm:$0xff]  ;;  %v218_v21 = vld [vmem:[%s4469_s6 + $0x8] sm:$0xff]  ;;  %v220_v25 = vld [vmem:[%s4469_s6 + $0x18] sm:$0xff] }
   0x7   :  { %2773 = vmatmul.mubr.msk.f32.vlgmr.msra.gmra.mrb[0].mxu1 %vm138_vm4, %v128_v10  ;;  %v226_v24 = vld [vmem:[%s4469_s6 + $0x48] sm:$0xff]  ;;  %v228_v26 = vld [vmem:[%s4469_s6 + $0x58] sm:$0xff]  ;;  %v245_v27 = vld [vmem:[%s4467_s7 + $0x20] sm:$0xff] }
   0x8   :  { %317 = vmatprep.mubr.f32.mxu1 %v4476_v4  ;;  %254 = vmatpush1.msra.mxu1 %v241_v15  ;;  %v247_v28 = vld [vmem:[%s4467_s7 + $0x30] sm:$0xff]  ;;  %v217_v29 = vld [vmem:[%s4469_s6] sm:$0xff]  ;;  %v2785_v34 = vpack.c.bf16 %v226_v24, %v218_v21  ;;  %v2789_v35 = vpack.c.bf16 %v228_v26, %v220_v25  ;;  %v234_v42 = vld [vmem:[%s4469_s6 + $0x88] sm:$0xff] }
   0x9   :  { %2780 = vmatpush3.bf16.msra.mxu0 %v2779_v11  ;;  %395 = vmatprep.subr.mxu1 %v246_v17  ;;  %v225_v31 = vld [vmem:[%s4469_s6 + $0x40] sm:$0xff]  ;;  %v219_v32 = vld [vmem:[%s4469_s6 + $0x10] sm:$0xff]  ;;  %v236_v43 = vld [vmem:[%s4469_s6 + $0x98] sm:$0xff] }
   0xa   :  { %324 = vmatprep.subr.mxu0 %v244_v14  ;;  %v227_v33 = vld [vmem:[%s4469_s6 + $0x50] sm:$0xff]  ;;  %v2444_v36 = vld [vmem:[%s4470_s3] ss:$0 sm:$0xff]  ;;  %v2787_v38 = vpack.c.bf16 %v225_v31, %v217_v29  ;;  %v222_v44 = vld [vmem:[%s4469_s6 + $0x28] sm:$0xff] }
   0xb   :  { %v2791_v39 = vpack.c.bf16 %v227_v33, %v219_v32  ;;  %v230_v45 = vld [vmem:[%s4469_s6 + $0x68] sm:$0xff]  ;;  %v224_v46 = vld [vmem:[%s4469_s6 + $0x38] sm:$0xff]  ;;  %v221_v48 = vld [vmem:[%s4469_s6 + $0x20] sm:$0xff] }
   0xc   :  { %2766 = vmatmul.mubr.msk.f32.vlgmr.msra.gmra.mrb[0].mxu0 %vm53_vm5, %v41_v12  ;;  %v232_v47 = vld [vmem:[%s4469_s6 + $0x78] sm:$0xff]  ;;  %v229_v49 = vld [vmem:[%s4469_s6 + $0x60] sm:$0xff]  ;;  %v223_v50 = vld [vmem:[%s4469_s6 + $0x30] sm:$0xff]  ;;  %v2793_v55 = vpack.c.bf16 %v230_v45, %v222_v44 }
   0xd   :  { %388 = vmatprep.mubr.f32.mxu0 %v4476_v4  ;;  %325 = vmatpush1.msra.mxu0 %v243_v16  ;;  %v231_v51 = vld [vmem:[%s4469_s6 + $0x70] sm:$0xff]  ;;  %v233_v53 = vld [vmem:[%s4469_s6 + $0x80] sm:$0xff]  ;;  %v2797_v56 = vpack.c.bf16 %v232_v47, %v224_v46  ;;  %v2795_v57 = vpack.c.bf16 %v229_v49, %v221_v48  ;;  %v238_v59 = vld [vmem:[%s4469_s6 + $0xa8] sm:$0xff] }
   0xe   :  { %466 = vmatprep.subr.mxu0 %v248_v18  ;;  %v235_v54 = vld [vmem:[%s4469_s6 + $0x90] sm:$0xff]  ;;  %v2799_v58 = vpack.c.bf16 %v231_v51, %v223_v50  ;;  %v240_v60 = vld [vmem:[%s4469_s6 + $0xb8] sm:$0xff]  ;;  %v962_v61 = vld [vmem:[%s4471_s8 + $0x80] sm:$0xff] }
   0xf   :  { %v963_v62 = vld [vmem:[%s4471_s8 + $0x88] sm:$0xff]  ;;  %v994_v63 = vld [vmem:[%s4471_s8 + $0x180] sm:$0xff]  ;;  %v239_v1 = vld [vmem:[%s4469_s6 + $0xb0] sm:$0xff] }
  0x10   :  { %v237_v0 = vld [vmem:[%s4469_s6 + $0xa0] sm:$0xff]  ;;  %v995_v2 = vld [vmem:[%s4471_s8 + $0x188] sm:$0xff]  ;;  %v964_v8 = vld [vmem:[%s4471_s8 + $0x90] sm:$0xff]  ;;  %v3448_v12 = vpack.c.bf16 %v963_v62, %v962_v61 }
  0x11   :  { %v946_v3 = vld [vmem:[%s4471_s8] sm:$0xff]  ;;  %v947_v5 = vld [vmem:[%s4471_s8 + $0x8] sm:$0xff]  ;;  %v965_v9 = vld [vmem:[%s4471_s8 + $0x98] sm:$0xff]  ;;  %v3450_v13 = vpack.c.bf16 %v995_v2, %v994_v63 }
  0x12   :  { %v978_v6 = vld [vmem:[%s4471_s8 + $0x100] sm:$0xff]  ;;  %v979_v7 = vld [vmem:[%s4471_s8 + $0x108] sm:$0xff]  ;;  %v996_v10 = vld [vmem:[%s4471_s8 + $0x190] sm:$0xff]  ;;  %v3452_v14 = vpack.c.bf16 %v947_v5, %v946_v3  ;;  %v3462_v18 = vpack.c.bf16 %v965_v9, %v964_v8 }
  0x13   :  { %v997_v11 = vld [vmem:[%s4471_s8 + $0x198] sm:$0xff]  ;;  %v3454_v15 = vpack.c.bf16 %v979_v7, %v978_v6  ;;  %v948_v16 = vld [vmem:[%s4471_s8 + $0x10] sm:$0xff]  ;;  %v998_v24 = vld [vmem:[%s4471_s8 + $0x1a0] sm:$0xff] }
  0x14   :  { %v949_v17 = vld [vmem:[%s4471_s8 + $0x18] sm:$0xff]  ;;  %v999_v25 = vld [vmem:[%s4471_s8 + $0x1a8] sm:$0xff]  ;;  %v982_v32 = vld [vmem:[%s4471_s8 + $0x120] sm:$0xff] }
  0x15   :  { %v981_v21 = vld [vmem:[%s4471_s8 + $0x118] sm:$0xff]  ;;  %v3490_v26 = vpack.c.bf16 %v949_v17, %v948_v16  ;;  %v951_v29 = vld [vmem:[%s4471_s8 + $0x28] sm:$0xff]  ;;  %v3504_v31 = vpack.c.bf16 %v999_v25, %v998_v24  ;;  %v984_v44 = vld [vmem:[%s4471_s8 + $0x130] sm:$0xff] }
  0x16   :  { %v983_v33 = vld [vmem:[%s4471_s8 + $0x128] sm:$0xff]  ;;  %v985_v45 = vld [vmem:[%s4471_s8 + $0x138] sm:$0xff]  ;;  %v970_v46 = vld [vmem:[%s4471_s8 + $0xc0] sm:$0xff] }
  0x17   :  { %v971_v47 = vld [vmem:[%s4471_s8 + $0xc8] sm:$0xff]  ;;  %v1002_v48 = vld [vmem:[%s4471_s8 + $0x1c0] sm:$0xff]  ;;  %v3564_v51 = vpack.c.bf16 %v985_v45, %v984_v44  ;;  %v973_v61 = vld [vmem:[%s4471_s8 + $0xd8] sm:$0xff] }
  0x18   :  { %v1003_v49 = vld [vmem:[%s4471_s8 + $0x1c8] sm:$0xff]  ;;  %v1004_v62 = vld [vmem:[%s4471_s8 + $0x1d0] sm:$0xff]  ;;  %v957_v2 = vld [vmem:[%s4471_s8 + $0x58] sm:$0xff] }
  0x19   :  { %v988_v6 = vld [vmem:[%s4471_s8 + $0x150] sm:$0xff]  ;;  %v989_v7 = vld [vmem:[%s4471_s8 + $0x158] sm:$0xff]  ;;  %v974_v9 = vld [vmem:[%s4471_s8 + $0xe0] sm:$0xff] }
  0x1a   :  { %v3625_v8 = vpack.c.bf16 %v989_v7, %v988_v6  ;;  %v1007_v17 = vld [vmem:[%s4471_s8 + $0x1e8] sm:$0xff]  ;;  %v990_v24 = vld [vmem:[%s4471_s8 + $0x160] sm:$0xff]  ;;  %v992_v44 = vld [vmem:[%s4471_s8 + $0x170] sm:$0xff] }
  0x1b   :  { %v991_v25 = vld [vmem:[%s4471_s8 + $0x168] sm:$0xff]  ;;  %v993_v45 = vld [vmem:[%s4471_s8 + $0x178] sm:$0xff] }
  0xda   :  { %v212_v20 = vpop.f32.mrb[0].mxu1 }
  0xdb   :  { %v213_v22 = vadd.f32 %v2446_v19, %v212_v20  ;;  %v2774_v23 = vpop.f32.mrb[1].mxu1  ;;  %v3464_v19 = vpack.c.bf16 %v997_v11, %v996_v10  ;;  %v980_v20 = vld [vmem:[%s4471_s8 + $0x110] sm:$0xff]  ;;  %v975_v10 = vld [vmem:[%s4471_s8 + $0xe8] sm:$0xff]  ;;  %v1006_v11 = vld [vmem:[%s4471_s8 + $0x1e0] sm:$0xff] }
  0xdc   :  { %v967_v23 = vld [vmem:[%s4471_s8 + $0xa8] sm:$0xff]  ;;  %v3639_v16 = vpack.c.bf16 %v975_v10, %v974_v9 }
  0xdd   :  { %v216_v30 = vmax.f32 %v213_v22, 0.0  ;;  %v966_v22 = vld [vmem:[%s4471_s8 + $0xa0] sm:$0xff] }
  0xdf   :  { %2449 = vmatmul.mubr.msk.f32.vlgmr.msra.gmra.mrb[2].mxu1 %vm249_vm6, %v216_v30  ;;  %2450 = vmatmul.mubr.msk.f32.vlgmr.msra.gmra.mrb[2].mxu0 %vm249_vm6, %v216_v30  ;;  %v123_v37 = vpop.f32.mrb[0].mxu0 }
  0xe0   :  { %396 = vmatpush1.msra.mxu1 %v245_v27  ;;  %467 = vmatpush1.msra.mxu0 %v247_v28  ;;  %v2767_v40 = vpop.f32.mrb[1].mxu0  ;;  %v124_v41 = vadd.f32 %v2444_v36, %v123_v37  ;;  %v3492_v27 = vpack.c.bf16 %v981_v21, %v980_v20  ;;  %v950_v28 = vld [vmem:[%s4471_s8 + $0x20] sm:$0xff]  ;;  %v1000_v36 = vld [vmem:[%s4471_s8 + $0x1b0] sm:$0xff]  ;;  %v1001_v37 = vld [vmem:[%s4471_s8 + $0x1b8] sm:$0xff] }
  0xe1   :  { %459 = vmatprep.mubr.f32.mxu1 %v4476_v4  ;;  %530 = vmatprep.mubr.f32.mxu0 %v4476_v4  ;;  %v952_v40 = vld [vmem:[%s4471_s8 + $0x30] sm:$0xff]  ;;  %v958_v20 = vld [vmem:[%s4471_s8 + $0x60] sm:$0xff]  ;;  %v959_v21 = vld [vmem:[%s4471_s8 + $0x68] sm:$0xff] }
  0xe2   :  { %2786 = vmatprep.subr.bf16.mxu1 %v2785_v34  ;;  %2790 = vmatprep.subr.bf16.mxu0 %v2789_v35  ;;  %v127_v52 = vmax.f32 %v124_v41, 0.0  ;;  %v968_v34 = vld [vmem:[%s4471_s8 + $0xb0] sm:$0xff]  ;;  %v969_v35 = vld [vmem:[%s4471_s8 + $0xb8] sm:$0xff] }
  0xe3   :  { %2451 = vmatmul.mubr.msk.f32.vlgmr.msra.gmra.mrb[4].mxu1 %vm249_vm6, %v216_v30  ;;  %2452 = vmatmul.mubr.msk.f32.vlgmr.msra.gmra.mrb[4].mxu0 %vm249_vm6, %v216_v30  ;;  %v3502_v30 = vpack.c.bf16 %v967_v23, %v966_v22  ;;  %v953_v41 = vld [vmem:[%s4471_s8 + $0x38] sm:$0xff]  ;;  %v3650_v22 = vpack.c.bf16 %v1007_v17, %v1006_v11  ;;  %v3652_v23 = vpack.c.bf16 %v959_v21, %v958_v20 }
  0xe4   :  { %2788 = vmatpush1.bf16.msra.mxu1 %v2787_v38  ;;  %2792 = vmatpush1.bf16.msra.mxu0 %v2791_v39  ;;  %v3526_v38 = vpack.c.bf16 %v951_v29, %v950_v28  ;;  %v3528_v39 = vpack.c.bf16 %v983_v33, %v982_v32  ;;  %v3562_v50 = vpack.c.bf16 %v953_v41, %v952_v40  ;;  %v976_v29 = vld [vmem:[%s4471_s8 + $0xf0] sm:$0xff]  ;;  %v977_v32 = vld [vmem:[%s4471_s8 + $0xf8] sm:$0xff] }
  0xe5   :  { %545 = vmatprep.subr.mxu1 %v234_v42  ;;  %616 = vmatprep.subr.mxu0 %v236_v43  ;;  %v3538_v42 = vpack.c.bf16 %v969_v35, %v968_v34  ;;  %v3540_v43 = vpack.c.bf16 %v1001_v37, %v1000_v36  ;;  %4508 = vst [vmem:[#allocation2_spill] sm:$0xff] %v3652_v23  ;;  %v1008_v33 = vld [vmem:[%s4471_s8 + $0x1f0] sm:$0xff]  ;;  %v1009_v35 = vld [vmem:[%s4471_s8 + $0x1f8] sm:$0xff] }
  0xe6   :  { %605 = vmatprep.mubr.f32.mxu1 %v4476_v4  ;;  %676 = vmatprep.mubr.f32.mxu0 %v4476_v4  ;;  %v3661_v28 = vpack.c.bf16 %v991_v25, %v990_v24  ;;  %v3675_v34 = vpack.c.bf16 %v977_v32, %v976_v29  ;;  %v960_v36 = vld [vmem:[%s4471_s8 + $0x70] sm:$0xff]  ;;  %v961_v37 = vld [vmem:[%s4471_s8 + $0x78] sm:$0xff]  ;;  %v3686_v40 = vpack.c.bf16 %v1009_v35, %v1008_v33 }
  0xe7   :  { %v3688_v41 = vpack.c.bf16 %v961_v37, %v960_v36 }
  0xe8   :  { %546 = vmatpush1.msra.mxu1 %v233_v53  ;;  %617 = vmatpush1.msra.mxu0 %v235_v54  ;;  %v3570_v53 = vpack.c.bf16 %v1003_v49, %v1002_v48  ;;  %v954_v54 = vld [vmem:[%s4471_s8 + $0x40] sm:$0xff]  ;;  %4509 = vst [vmem:[#allocation3_spill] sm:$0xff] %v3661_v28  ;;  %4510 = vst [vmem:[#allocation4_spill] sm:$0xff] %v3675_v34  ;;  %v1027_v48 = vld [vmem:[%s4471_s8 + $0x288] sm:$0xff] }
  0xe9   :  { %2453 = vmatmul.mubr.msk.f32.vlgmr.msra.gmra.mrb[2].mxu1 %vm537_vm7, %v127_v52  ;;  %2454 = vmatmul.mubr.msk.f32.vlgmr.msra.gmra.mrb[2].mxu0 %vm537_vm7, %v127_v52  ;;  %4511 = vst [vmem:[#allocation5_spill] sm:$0xff] %v3686_v40  ;;  %4512 = vst [vmem:[#allocation6_spill] sm:$0xff] %v3688_v41  ;;  %v1058_v49 = vld [vmem:[%s4471_s8 + $0x380] sm:$0xff] }
  0xea   :  { %2794 = vmatprep.subr.bf16.mxu1 %v2793_v55  ;;  %2798 = vmatprep.subr.bf16.mxu0 %v2797_v56  ;;  %v955_v55 = vld [vmem:[%s4471_s8 + $0x48] sm:$0xff]  ;;  %v986_v56 = vld [vmem:[%s4471_s8 + $0x140] sm:$0xff] }
  0xeb   :  { %2796 = vmatpush1.bf16.msra.mxu1 %v2795_v57  ;;  %2800 = vmatpush1.bf16.msra.mxu0 %v2799_v58  ;;  %v3585_v57 = vpack.c.bf16 %v955_v55, %v954_v54  ;;  %v987_v58 = vld [vmem:[%s4471_s8 + $0x148] sm:$0xff] }
  0xec   :  { %687 = vmatprep.subr.mxu1 %v238_v59  ;;  %758 = vmatprep.subr.mxu0 %v240_v60  ;;  %v3590_v59 = vpack.c.bf16 %v987_v58, %v986_v56  ;;  %v972_v60 = vld [vmem:[%s4471_s8 + $0xd0] sm:$0xff]  ;;  %v1059_v55 = vld [vmem:[%s4471_s8 + $0x388] sm:$0xff] }
  0xed   :  { %747 = vmatprep.mubr.f32.mxu1 %v4476_v4  ;;  %818 = vmatprep.mubr.f32.mxu0 %v4476_v4  ;;  %v3603_v63 = vpack.c.bf16 %v973_v61, %v972_v60  ;;  %v3716_v56 = vpack.c.bf16 %v1059_v55, %v1058_v49 }
  0xef   :  { %688 = vmatpush1.msra.mxu1 %v237_v0  ;;  %759 = vmatpush1.msra.mxu0 %v239_v1  ;;  %v1005_v0 = vld [vmem:[%s4471_s8 + $0x1d8] sm:$0xff]  ;;  %v956_v1 = vld [vmem:[%s4471_s8 + $0x50] sm:$0xff]  ;;  %4515 = vst [vmem:[#allocation9_spill] sm:$0xff] %v3716_v56 }
  0xf0   :  { %2455 = vmatmul.mubr.msk.f32.vlgmr.msra.gmra.mrb[4].mxu1 %vm537_vm7, %v127_v52  ;;  %2456 = vmatmul.mubr.msk.f32.vlgmr.msra.gmra.mrb[4].mxu0 %vm537_vm7, %v127_v52  ;;  %v3568_v52 = vpack.c.bf16 %v971_v47, %v970_v46  ;;  %v3614_v3 = vpack.c.bf16 %v1005_v0, %v1004_v62  ;;  %v3616_v5 = vpack.c.bf16 %v957_v2, %v956_v1  ;;  %v1026_v47 = vld [vmem:[%s4471_s8 + $0x280] sm:$0xff] }
  0xf1   :  { %2802 = vmatprep.subr.bf16.mxu1 %v3448_v12  ;;  %2834 = vmatprep.subr.bf16.mxu0 %v3450_v13  ;;  %v3697_v46 = vpack.c.bf16 %v993_v45, %v992_v44  ;;  %v3711_v54 = vpack.c.bf16 %v1027_v48, %v1026_v47 }
  0xf2   :  { %2804 = vmatpush3.bf16.msra.mxu1 %v3452_v14  ;;  %2836 = vmatpush3.bf16.msra.mxu0 %v3454_v15 }
  0xf3   :  { %2806 = vmatprep.subr.bf16.mxu1 %v3462_v18  ;;  %2838 = vmatprep.subr.bf16.mxu0 %v3464_v19  ;;  %4513 = vst [vmem:[#allocation7_spill] sm:$0xff] %v3697_v46  ;;  %4514 = vst [vmem:[#allocation8_spill] sm:$0xff] %v3711_v54 }
  0xf6   :  { %2808 = vmatpush3.bf16.msra.mxu1 %v3490_v26  ;;  %2840 = vmatpush3.bf16.msra.mxu0 %v3492_v27 }
  0xf7   :  { %2810 = vmatprep.subr.bf16.mxu1 %v3502_v30  ;;  %2842 = vmatprep.subr.bf16.mxu0 %v3504_v31 }
  0xfa   :  { %2812 = vmatpush3.bf16.msra.mxu1 %v3526_v38  ;;  %2844 = vmatpush3.bf16.msra.mxu0 %v3528_v39 }
  0xfb   :  { %2814 = vmatprep.subr.bf16.mxu1 %v3538_v42  ;;  %2846 = vmatprep.subr.bf16.mxu0 %v3540_v43 }
  0xfe   :  { %2816 = vmatpush3.bf16.msra.mxu1 %v3562_v50  ;;  %2848 = vmatpush3.bf16.msra.mxu0 %v3564_v51 }
  0xff   :  { %2818 = vmatprep.subr.bf16.mxu1 %v3568_v52  ;;  %2850 = vmatprep.subr.bf16.mxu0 %v3570_v53 }
 0x102   :  { %2820 = vmatpush3.bf16.msra.mxu1 %v3585_v57  ;;  %2852 = vmatpush3.bf16.msra.mxu0 %v3590_v59 }
 0x103   :  { %2822 = vmatprep.subr.bf16.mxu1 %v3603_v63  ;;  %2854 = vmatprep.subr.bf16.mxu0 %v3614_v3 }
 0x106   :  { %2824 = vmatpush3.bf16.msra.mxu1 %v3616_v5  ;;  %2856 = vmatpush3.bf16.msra.mxu0 %v3625_v8 }
 0x107   :  { %2826 = vmatprep.subr.bf16.mxu1 %v3639_v16  ;;  %2858 = vmatprep.subr.bf16.mxu0 %v3650_v22 }
 0x10a   :  { %2828 = vmatpush3.bf16.msra.mxu1 %v3652_v23  ;;  %2860 = vmatpush3.bf16.msra.mxu0 %v3661_v28  ;;  %v1012_v28 = vld [vmem:[%s4471_s8 + $0x210] sm:$0xff]  ;;  %v1013_v23 = vld [vmem:[%s4471_s8 + $0x218] sm:$0xff] }
 0x10b   :  { %2830 = vmatprep.subr.bf16.mxu1 %v3675_v34  ;;  %2862 = vmatprep.subr.bf16.mxu0 %v3686_v40 }
 0x10e   :  { %2832 = vmatpush3.bf16.msra.mxu1 %v3688_v41  ;;  %2864 = vmatpush3.bf16.msra.mxu0 %v3697_v46 }
 0x10f   :  { %2866 = vmatprep.subr.bf16.mxu1 %v3711_v54  ;;  %2898 = vmatprep.subr.bf16.mxu0 %v3716_v56 }
 0x1bc   :  { %v3720_v58 = vpop.f32.mrb[2].mxu1  ;;  %v3722_v60 = vpop.f32.mrb[2].mxu0 }
 0x1bd   :  { %4516 = vst [vmem:[#allocation10_spill] sm:$0xff] %v3720_v58  ;;  %4517 = vst [vmem:[#allocation11_spill] sm:$0xff] %v3722_v60  ;;  %v826_v61 = vsel %vm825_vm8, %v3720_v58, 0.0  ;;  %v882_v62 = vmul.f32 %v3720_v58, %v3720_v58  ;;  %v884_v0 = vmul.f32 %v3722_v60, %v3722_v60  ;;  %v3730_v1 = vpop.f32.mrb[3].mxu1  ;;  %v3732_v2 = vpop.f32.mrb[3].mxu0  ;;  %v840_v6 = vsel %vm825_vm8, %v3722_v60, 0.0 }
 0x1be   :  { %4518 = vst [vmem:[#allocation12_spill] sm:$0xff] %v3730_v1  ;;  %4519 = vst [vmem:[#allocation13_spill] sm:$0xff] %v3732_v2  ;;  %v827_v7 = vrot.slane %v826_v61, 4  ;;  %v833_v11 = vsel %vm825_vm8, %v3730_v1, 0.0  ;;  %v841_v17 = vrot.slane %v840_v6, 4  ;;  %v847_v20 = vsel %vm825_vm8, %v3732_v2, 0.0 }
 0x1bf   :  { %v3737_v9 = vsel %vm825_vm8, %v882_v62, 0.0  ;;  %v3740_v10 = vsel %vm825_vm8, %v884_v0, 0.0  ;;  %v834_v24 = vrot.slane %v833_v11, 4  ;;  %v848_v32 = vrot.slane %v847_v20, 4 }
 0x1c0   :  { %v828_v21 = vadd.f32 %v827_v7, %v826_v61  ;;  %v842_v36 = vadd.f32 %v841_v17, %v840_v6 }
 0x1c1   :  { %v835_v44 = vadd.f32 %v834_v24, %v833_v11  ;;  %v849_v47 = vadd.f32 %v848_v32, %v847_v20 }
 0x1c2   :  { %v829_v37 = vrot.slane %v828_v21, 2  ;;  %v843_v61 = vrot.slane %v842_v36, 2 }
 0x1c3   :  { %v3746_v25 = vpop.f32.mrb[4].mxu1  ;;  %v3748_v29 = vpop.f32.mrb[4].mxu0  ;;  %v836_v17 = vrot.slane %v835_v44, 2  ;;  %v850_v32 = vrot.slane %v849_v47, 2 }
 0x1c4   :  { %4520 = vst [vmem:[#allocation14_spill] sm:$0xff] %v3746_v25  ;;  %4521 = vst [vmem:[#allocation15_spill] sm:$0xff] %v3748_v29  ;;  %v3750_v33 = vpop.f32.mrb[5].mxu1  ;;  %v3752_v35 = vpop.f32.mrb[5].mxu0  ;;  %v886_v45 = vmul.f32 %v3746_v25, %v3746_v25  ;;  %v888_v48 = vmul.f32 %v3748_v29, %v3748_v29  ;;  %v830_v24 = vadd.f32 %v829_v37, %v828_v21  ;;  %v1011_v21 = vld [vmem:[%s4471_s8 + $0x208] sm:$0xff]  ;;  %v1042_v37 = vld [vmem:[%s4471_s8 + $0x300] sm:$0xff] }
 0x1c5   :  { %4522 = vst [vmem:[#allocation16_spill] sm:$0xff] %v3750_v33  ;;  %4523 = vst [vmem:[#allocation17_spill] sm:$0xff] %v3752_v35  ;;  %v861_v49 = vsel %vm825_vm8, %v3750_v33, 0.0  ;;  %v887_v55 = vmul.f32 %v3750_v33, %v3750_v33  ;;  %v875_v6 = vsel %vm825_vm8, %v3752_v35, 0.0  ;;  %v889_v33 = vmul.f32 %v3752_v35, %v3752_v35 }
 0x1c6   :  { %v3763_v62 = vsel %vm825_vm8, %v886_v45, 0.0  ;;  %v862_v0 = vrot.slane %v861_v49, 4  ;;  %v3768_v7 = vsel %vm825_vm8, %v888_v48, 0.0  ;;  %v876_v4 = vrot.slane %v875_v6, 4  ;;  %v1010_v48 = vld [vmem:[%s4471_s8 + $0x200] sm:$0xff] }
 0x1c7   :  { %4524 = vst [vmem:[#allocation18_spill] sm:$0xff] %v3763_v62  ;;  %4525 = vst [vmem:[#allocation19_spill] sm:$0xff] %v3768_v7  ;;  %v3771_v11 = vsel %vm825_vm8, %v887_v55, 0.0  ;;  %v844_v45 = vadd.f32 %v843_v61, %v842_v36  ;;  %v3776_v62 = vsel %vm825_vm8, %v889_v33, 0.0  ;;  %v837_v56 = vadd.f32 %v836_v17, %v835_v44  ;;  %v1028_v33 = vld [vmem:[%s4471_s8 + $0x290] sm:$0xff]  ;;  %v1029_v44 = vld [vmem:[%s4471_s8 + $0x298] sm:$0xff] }
 0x1c8   :  { %v863_v20 = vadd.f32 %v862_v0, %v861_v49  ;;  %v877_v58 = vadd.f32 %v876_v4, %v875_v6  ;;  %v831_v49 = vrot.slane %v830_v24, 1  ;;  %v851_v55 = vadd.f32 %v850_v32, %v849_v47  ;;  %v1043_v4 = vld [vmem:[%s4471_s8 + $0x308] sm:$0xff]  ;;  %v1060_v17 = vld [vmem:[%s4471_s8 + $0x390] sm:$0xff]  ;;  %v1061_v47 = vld [vmem:[%s4471_s8 + $0x398] sm:$0xff] }
 0x1c9   :  { %v845_v61 = vrot.slane %v844_v45, 1  ;;  %v838_v0 = vrot.slane %v837_v56, 1  ;;  %v3802_v54 = vpack.c.bf16 %v1011_v21, %v1010_v48  ;;  %v3804_v46 = vpack.c.bf16 %v1043_v4, %v1042_v37  ;;  %v1030_v21 = vld [vmem:[%s4471_s8 + $0x2a0] sm:$0xff]  ;;  %v1031_v37 = vld [vmem:[%s4471_s8 + $0x2a8] sm:$0xff] }
 0x1ca   :  { %v864_v60 = vrot.slane %v863_v20, 2  ;;  %v878_v36 = vrot.slane %v877_v58, 2  ;;  %v852_v6 = vrot.slane %v851_v55, 1  ;;  %v3806_v41 = vpack.c.bf16 %v1029_v44, %v1028_v33  ;;  %v1015_v4 = vld [vmem:[%s4471_s8 + $0x228] sm:$0xff]  ;;  %v1032_v44 = vld [vmem:[%s4471_s8 + $0x2b0] sm:$0xff] }
 0x1cb   :  { %v839_v7 = vadd.f32 %v838_v0, %v837_v56  ;;  %v832_v34 = vadd.f32 %v831_v49, %v830_v24  ;;  %v1044_v56 = vld [vmem:[%s4471_s8 + $0x310] sm:$0xff]  ;;  %v3817_v48 = vpack.c.bf16 %v1061_v47, %v1060_v17  ;;  %v1045_v24 = vld [vmem:[%s4471_s8 + $0x318] sm:$0xff]  ;;  %v1047_v33 = vld [vmem:[%s4471_s8 + $0x328] sm:$0xff]  ;;  %v883_v17 = vmul.f32 %v3730_v1, %v3730_v1 }
 0x1cc   :  { %v865_v32 = vadd.f32 %v864_v60, %v863_v20  ;;  %v879_v35 = vadd.f32 %v878_v36, %v877_v58  ;;  %v853_v40 = vadd.f32 %v852_v6, %v851_v55  ;;  %v846_v20 = vadd.f32 %v845_v61, %v844_v45  ;;  %v1063_v45 = vld [vmem:[%s4471_s8 + $0x3a8] sm:$0xff]  ;;  %v1033_v61 = vld [vmem:[%s4471_s8 + $0x2b8] sm:$0xff]  ;;  %v1064_v0 = vld [vmem:[%s4471_s8 + $0x3b0] sm:$0xff] }
 0x1cd   :  { %1138 = vmatprep.mubr.f32.mxu1 %v839_v7  ;;  %v1062_v7 = vld [vmem:[%s4471_s8 + $0x3a0] sm:$0xff]  ;;  %v3835_v55 = vpack.c.bf16 %v1013_v23, %v1012_v28  ;;  %v1065_v6 = vld [vmem:[%s4471_s8 + $0x3b8] sm:$0xff] }
 0x1ce   :  { %v866_v58 = vrot.slane %v865_v32, 1  ;;  %v880_v60 = vrot.slane %v879_v35, 1  ;;  %1208 = vmatprep.mubr.f32.mxu0 %v853_v40  ;;  %1139 = vmatmul.mubr.f32.vlgmr.msra.gmra.mrb[6].mxu1 %v832_v34  ;;  %v3839_v34 = vpack.c.bf16 %v1045_v24, %v1044_v56  ;;  %v3841_v40 = vpack.c.bf16 %v1031_v37, %v1030_v21  ;;  %v1046_v23 = vld [vmem:[%s4471_s8 + $0x320] sm:$0xff]  ;;  %v1048_v24 = vld [vmem:[%s4471_s8 + $0x330] sm:$0xff] }
 0x1cf   :  { %1209 = vmatmul.mubr.f32.vlgmr.msra.gmra.mrb[6].mxu0 %v846_v20  ;;  %2868 = vmatpush3.bf16.msra.mxu1 %v3802_v54  ;;  %v3853_v28 = vpack.c.bf16 %v1063_v45, %v1062_v7  ;;  %v3879_v56 = vpack.c.bf16 %v1047_v33, %v1046_v23  ;;  %v1017_v20 = vld [vmem:[%s4471_s8 + $0x238] sm:$0xff]  ;;  %v854_v21 = vsel %vm825_vm8, %v3746_v25, 0.0  ;;  %v3895_v37 = vpack.c.bf16 %v1065_v6, %v1064_v0  ;;  %v1035_v7 = vld [vmem:[%s4471_s8 + $0x2c8] sm:$0xff]  ;;  %v1068_v25 = vld [vmem:[%s4471_s8 + $0x3d0] sm:$0xff] }
 0x1d0   :  { %v867_v49 = vadd.f32 %v866_v58, %v865_v32  ;;  %v881_v36 = vadd.f32 %v880_v60, %v879_v35  ;;  %2900 = vmatpush3.bf16.msra.mxu0 %v3804_v46  ;;  %2870 = vmatprep.subr.bf16.mxu1 %v3806_v41  ;;  %v1014_v35 = vld [vmem:[%s4471_s8 + $0x220] sm:$0xff]  ;;  %v885_v32 = vmul.f32 %v3732_v2, %v3732_v2  ;;  %v1016_v60 = vld [vmem:[%s4471_s8 + $0x230] sm:$0xff]  ;;  %v868_v45 = vsel %vm825_vm8, %v3748_v29, 0.0 }
 0x1d1   :  { %2902 = vmatprep.subr.bf16.mxu0 %v3817_v48  ;;  %v3873_v47 = vpack.c.bf16 %v1015_v4, %v1014_v35  ;;  %4527 = vst [vmem:[#allocation21_spill] sm:$0xff] %v3879_v56  ;;  %v3881_v58 = vpack.c.bf16 %v1033_v61, %v1032_v44  ;;  %4529 = vst [vmem:[#allocation23_spill] sm:$0xff] %v3895_v37  ;;  %v1066_v35 = vld [vmem:[%s4471_s8 + $0x3c0] sm:$0xff]  ;;  %v1067_v4 = vld [vmem:[%s4471_s8 + $0x3c8] sm:$0xff]  ;;  %v897_v23 = vsel %vm825_vm8, %v883_v17, 0.0  ;;  %v855_v61 = vrot.slane %v854_v21, 4 }
 0x1d2   :  { %1278 = vmatprep.mubr.f32.mxu1 %v867_v49  ;;  %1348 = vmatprep.mubr.f32.mxu0 %v881_v36  ;;  %v1049_v49 = vld [vmem:[%s4471_s8 + $0x338] sm:$0xff]  ;;  %v1034_v36 = vld [vmem:[%s4471_s8 + $0x2c0] sm:$0xff]  ;;  %v3916_v33 = vpack.c.bf16 %v1017_v20, %v1016_v60  ;;  %v911_v44 = vsel %vm825_vm8, %v885_v32, 0.0  ;;  %v1019_v17 = vld [vmem:[%s4471_s8 + $0x248] sm:$0xff]  ;;  %v869_v60 = vrot.slane %v868_v45, 4  ;;  %v3935_v20 = vpack.c.bf16 %v1067_v4, %v1066_v35 }
 0x1d3   :  { %2872 = vmatpush3.bf16.msra.mxu1 %v3835_v55  ;;  %4526 = vst [vmem:[#allocation20_spill] sm:$0xff] %v3873_v47  ;;  %4528 = vst [vmem:[#allocation22_spill] sm:$0xff] %v3881_v58  ;;  %v3921_v0 = vpack.c.bf16 %v1049_v49, %v1048_v24  ;;  %v3923_v6 = vpack.c.bf16 %v1035_v7, %v1034_v36  ;;  %v1018_v29 = vld [vmem:[%s4471_s8 + $0x240] sm:$0xff]  ;;  %v1051_v24 = vld [vmem:[%s4471_s8 + $0x348] sm:$0xff]  ;;  %v898_v7 = vrot.slane %v897_v23, 4  ;;  %v912_v4 = vrot.slane %v911_v44, 4 }
 0x1d4   :  { %2904 = vmatpush3.bf16.msra.mxu0 %v3839_v34  ;;  %2874 = vmatprep.subr.bf16.mxu1 %v3841_v40  ;;  %v1050_v32 = vld [vmem:[%s4471_s8 + $0x340] sm:$0xff]  ;;  %4532 = vst [vmem:[#allocation26_spill] sm:$0xff] %v3935_v20  ;;  %v1036_v49 = vld [vmem:[%s4471_s8 + $0x2d0] sm:$0xff]  ;;  %v1037_v36 = vld [vmem:[%s4471_s8 + $0x2d8] sm:$0xff]  ;;  %v3953_v2 = vpack.c.bf16 %v1019_v17, %v1018_v29  ;;  %v856_v1 = vadd.f32 %v855_v61, %v854_v21 }
 0x1d5   :  { %2906 = vmatprep.subr.bf16.mxu0 %v3853_v28  ;;  %4530 = vst [vmem:[#allocation24_spill] sm:$0xff] %v3921_v0  ;;  %4531 = vst [vmem:[#allocation25_spill] sm:$0xff] %v3923_v6  ;;  %v1069_v35 = vld [vmem:[%s4471_s8 + $0x3d8] sm:$0xff]  ;;  %v1052_v29 = vld [vmem:[%s4471_s8 + $0x350] sm:$0xff]  ;;  %v870_v21 = vadd.f32 %v869_v60, %v868_v45  ;;  %v913_v60 = vadd.f32 %v912_v4, %v911_v44 }
 0x1d6   :  { %4533 = vst [vmem:[#allocation27_spill] sm:$0xff] %v3953_v2  ;;  %v3971_v61 = vpack.c.bf16 %v1069_v35, %v1068_v25  ;;  %v1053_v17 = vld [vmem:[%s4471_s8 + $0x358] sm:$0xff]  ;;  %v1070_v45 = vld [vmem:[%s4471_s8 + $0x3e0] sm:$0xff]  ;;  %v1071_v25 = vld [vmem:[%s4471_s8 + $0x3e8] sm:$0xff]  ;;  %v857_v35 = vrot.slane %v856_v1, 2 }
 0x1d7   :  { %2876 = vmatpush3.bf16.msra.mxu1 %v3873_v47  ;;  %v1021_v47 = vld [vmem:[%s4471_s8 + $0x258] sm:$0xff]  ;;  %v1023_v44 = vld [vmem:[%s4471_s8 + $0x268] sm:$0xff]  ;;  %v4007_v4 = vpack.c.bf16 %v1071_v25, %v1070_v45 }
 0x1d8   :  { %2908 = vmatpush3.bf16.msra.mxu0 %v3879_v56  ;;  %2878 = vmatprep.subr.bf16.mxu1 %v3881_v58  ;;  %v3959_v58 = vpack.c.bf16 %v1037_v36, %v1036_v49  ;;  %v1020_v56 = vld [vmem:[%s4471_s8 + $0x250] sm:$0xff]  ;;  %4536 = vst [vmem:[#allocation30_spill] sm:$0xff] %v3971_v61  ;;  %v899_v49 = vadd.f32 %v898_v7, %v897_v23  ;;  %v1022_v7 = vld [vmem:[%s4471_s8 + $0x260] sm:$0xff]  ;;  %v1073_v45 = vld [vmem:[%s4471_s8 + $0x3f8] sm:$0xff] }
 0x1d9   :  { %2910 = vmatprep.subr.bf16.mxu0 %v3895_v37  ;;  %v3957_v37 = vpack.c.bf16 %v1051_v24, %v1050_v32  ;;  %v1038_v32 = vld [vmem:[%s4471_s8 + $0x2e0] sm:$0xff]  ;;  %v1039_v24 = vld [vmem:[%s4471_s8 + $0x2e8] sm:$0xff]  ;;  %v3989_v36 = vpack.c.bf16 %v1021_v47, %v1020_v56  ;;  %v871_v56 = vrot.slane %v870_v21, 2 }
 0x1da   :  { %4535 = vst [vmem:[#allocation29_spill] sm:$0xff] %v3959_v58  ;;  %v3995_v23 = vpack.c.bf16 %v1039_v24, %v1038_v32  ;;  %v1054_v47 = vld [vmem:[%s4471_s8 + $0x360] sm:$0xff]  ;;  %v1041_v32 = vld [vmem:[%s4471_s8 + $0x2f8] sm:$0xff]  ;;  %v1072_v24 = vld [vmem:[%s4471_s8 + $0x3f0] sm:$0xff]  ;;  %v900_v25 = vrot.slane %v899_v49, 2 }
 0x1db   :  { %2880 = vmatpush3.bf16.msra.mxu1 %v3916_v33  ;;  %4534 = vst [vmem:[#allocation28_spill] sm:$0xff] %v3957_v37  ;;  %4537 = vst [vmem:[#allocation31_spill] sm:$0xff] %v3989_v36 }
 0x1dc   :  { %2912 = vmatpush3.bf16.msra.mxu0 %v3921_v0  ;;  %2882 = vmatprep.subr.bf16.mxu1 %v3923_v6  ;;  %v1024_v0 = vld [vmem:[%s4471_s8 + $0x270] sm:$0xff] }
 0x1dd   :  { %2914 = vmatprep.subr.bf16.mxu0 %v3935_v20  ;;  %v3993_v20 = vpack.c.bf16 %v1053_v17, %v1052_v29  ;;  %v1055_v29 = vld [vmem:[%s4471_s8 + $0x368] sm:$0xff]  ;;  %v1040_v17 = vld [vmem:[%s4471_s8 + $0x2f0] sm:$0xff] }
 0x1de   :  { %v4031_v6 = vpack.c.bf16 %v1041_v32, %v1040_v17 }
 0x1df   :  { %2884 = vmatpush3.bf16.msra.mxu1 %v3953_v2  ;;  %v4029_v2 = vpack.c.bf16 %v1055_v29, %v1054_v47  ;;  %v901_v47 = vadd.f32 %v900_v25, %v899_v49  ;;  %v4546_v25 = vld [vmem:[#allocation20_spill] sm:$0xff] }
 0x1e0   :  { %2916 = vmatpush3.bf16.msra.mxu0 %v3957_v37  ;;  %2886 = vmatprep.subr.bf16.mxu1 %v3959_v58  ;;  %v914_v58 = vrot.slane %v913_v60, 2  ;;  %v858_v37 = vadd.f32 %v857_v35, %v856_v1  ;;  %v4040_v1 = vpack.c.bf16 %v1073_v45, %v1072_v24  ;;  %v1056_v35 = vld [vmem:[%s4471_s8 + $0x370] sm:$0xff] }
 0x1e1   :  { %2918 = vmatprep.subr.bf16.mxu0 %v3971_v61  ;;  %v4025_v61 = vpack.c.bf16 %v1023_v44, %v1022_v7  ;;  %v872_v7 = vadd.f32 %v871_v56, %v870_v21  ;;  %v1057_v44 = vld [vmem:[%s4471_s8 + $0x378] sm:$0xff]  ;;  %v902_v24 = vrot.slane %v901_v47, 1 }
 0x1e2   :  { %v915_v17 = vadd.f32 %v914_v58, %v913_v60  ;;  %v859_v32 = vrot.slane %v858_v37, 1  ;;  %v4053_v21 = vpack.c.bf16 %v1057_v44, %v1056_v35  ;;  %v4548_v35 = vld [vmem:[#allocation21_spill] sm:$0xff]  ;;  %v4550_v44 = vld [vmem:[#allocation19_spill] sm:$0xff] }
 0x1e3   :  { %2888 = vmatpush3.bf16.msra.mxu1 %v3989_v36  ;;  %v1025_v36 = vld [vmem:[%s4471_s8 + $0x278] sm:$0xff]  ;;  %v873_v56 = vrot.slane %v872_v7, 1 }
 0x1e4   :  { %2920 = vmatpush3.bf16.msra.mxu0 %v3993_v20  ;;  %2890 = vmatprep.subr.bf16.mxu1 %v3995_v23  ;;  %v4049_v29 = vpack.c.bf16 %v1025_v36, %v1024_v0  ;;  %v916_v45 = vrot.slane %v915_v17, 1  ;;  %v860_v49 = vadd.f32 %v859_v32, %v858_v37  ;;  %v903_v0 = vadd.f32 %v902_v24, %v901_v47  ;;  %v4551_v47 = vld [vmem:[#allocation23_spill] sm:$0xff]  ;;  %v4557_v24 = vld [vmem:[#allocation29_spill] sm:$0xff] }
 0x1e5   :  { %2922 = vmatprep.subr.bf16.mxu0 %v4007_v4  ;;  %v874_v58 = vadd.f32 %v873_v56, %v872_v7  ;;  %v4556_v56 = vld [vmem:[#allocation28_spill] sm:$0xff] }
 0x1e6   :  { %v917_v60 = vadd.f32 %v916_v45, %v915_v17  ;;  %v4555_v17 = vld [vmem:[#allocation27_spill] sm:$0xff] }
 0x1e7   :  { %2892 = vmatpush3.bf16.msra.mxu1 %v4025_v61 }
 0x1e8   :  { %2924 = vmatpush3.bf16.msra.mxu0 %v4029_v2  ;;  %2894 = vmatprep.subr.bf16.mxu1 %v4031_v6 }
 0x1e9   :  { %2926 = vmatprep.subr.bf16.mxu0 %v4040_v1 }
 0x1eb   :  { %2896 = vmatpush3.bf16.msra.mxu1 %v4049_v29 }
 0x1ec   :  { %2928 = vmatpush3.bf16.msra.mxu0 %v4053_v21  ;;  %2930 = vmatprep.subr.bf16.mxu1 %v3448_v12  ;;  %v891_v12 = vrot.slane %v3737_v9, 4 }
 0x1ed   :  { %2962 = vmatprep.subr.bf16.mxu0 %v3450_v13  ;;  %v905_v13 = vrot.slane %v3740_v10, 4 }
 0x1ee   :  { %1279 = vmatmul.mubr.f32.vlgmr.msra.gmra.mrb[8].mxu1 %v860_v49  ;;  %v4558_v49 = vld [vmem:[#allocation30_spill] sm:$0xff] }
 0x1ef   :  { %1349 = vmatmul.mubr.f32.vlgmr.msra.gmra.mrb[8].mxu0 %v874_v58  ;;  %2932 = vmatpush3.bf16.msra.mxu1 %v3452_v14  ;;  %v926_v14 = vrot.slane %v3771_v11, 4 }
 0x1f0   :  { %1418 = vmatprep.mubr.f32.mxu1 %v903_v0  ;;  %2964 = vmatpush3.bf16.msra.mxu0 %v3454_v15  ;;  %v940_v15 = vrot.slane %v3776_v62, 4 }
 0x1f1   :  { %1488 = vmatprep.mubr.f32.mxu0 %v917_v60  ;;  %2934 = vmatprep.subr.bf16.mxu1 %v3462_v18  ;;  %v892_v18 = vadd.f32 %v891_v12, %v3737_v9  ;;  %v4542_v9 = vld [vmem:[#allocation6_spill] sm:$0xff] }
 0x1f2   :  { %2966 = vmatprep.subr.bf16.mxu0 %v3464_v19  ;;  %v906_v19 = vadd.f32 %v905_v13, %v3740_v10 }
 0x1f3   :  { %2936 = vmatpush3.bf16.msra.mxu1 %v3490_v26  ;;  %v927_v26 = vadd.f32 %v926_v14, %v3771_v11  ;;  %v4545_v11 = vld [vmem:[#allocation9_spill] sm:$0xff] }
 0x1f4   :  { %2968 = vmatpush3.bf16.msra.mxu0 %v3492_v27  ;;  %2938 = vmatprep.subr.bf16.mxu1 %v3502_v30  ;;  %v941_v27 = vadd.f32 %v940_v15, %v3776_v62  ;;  %v893_v30 = vrot.slane %v892_v18, 2 }
 0x1f5   :  { %2970 = vmatprep.subr.bf16.mxu0 %v3504_v31  ;;  %v907_v31 = vrot.slane %v906_v19, 2 }
 0x1f7   :  { %2940 = vmatpush3.bf16.msra.mxu1 %v3526_v38  ;;  %v928_v38 = vrot.slane %v927_v26, 2 }
 0x1f8   :  { %2972 = vmatpush3.bf16.msra.mxu0 %v3528_v39  ;;  %2942 = vmatprep.subr.bf16.mxu1 %v3538_v42  ;;  %v942_v39 = vrot.slane %v941_v27, 2  ;;  %v894_v42 = vadd.f32 %v893_v30, %v892_v18  ;;  %v1648_v18 = vld [vmem:[%s4472_s9 + $0x10] sm:$0xff]  ;;  %v1671_v30 = vld [vmem:[%s4472_s9 + $0xc8] sm:$0xff] }
 0x1f9   :  { %2974 = vmatprep.subr.bf16.mxu0 %v3540_v43  ;;  %v908_v43 = vadd.f32 %v907_v31, %v906_v19  ;;  %v1656_v19 = vld [vmem:[%s4472_s9 + $0x50] sm:$0xff]  ;;  %v1665_v31 = vld [vmem:[%s4472_s9 + $0x98] sm:$0xff] }
 0x1fb   :  { %2944 = vmatpush3.bf16.msra.mxu1 %v3562_v50  ;;  %v929_v50 = vadd.f32 %v928_v38, %v927_v26  ;;  %v4167_v26 = vpack.c.bf16 %v1656_v19, %v1648_v18 }
 0x1fc   :  { %2976 = vmatpush3.bf16.msra.mxu0 %v3564_v51  ;;  %2946 = vmatprep.subr.bf16.mxu1 %v3568_v52  ;;  %v4538_v51 = vld [vmem:[#allocation2_spill] sm:$0xff]  ;;  %v943_v52 = vadd.f32 %v942_v39, %v941_v27  ;;  %v1663_v27 = vld [vmem:[%s4472_s9 + $0x88] sm:$0xff]  ;;  %v1673_v39 = vld [vmem:[%s4472_s9 + $0xd8] sm:$0xff] }
 0x1fd   :  { %2978 = vmatprep.subr.bf16.mxu0 %v3570_v53  ;;  %v4539_v53 = vld [vmem:[#allocation3_spill] sm:$0xff]  ;;  %v4180_v38 = vpack.c.bf16 %v1671_v30, %v1663_v27 }
 0x1ff   :  { %2948 = vmatpush3.bf16.msra.mxu1 %v3585_v57  ;;  %v4540_v57 = vld [vmem:[#allocation4_spill] sm:$0xff] }
 0x200   :  { %2980 = vmatpush3.bf16.msra.mxu0 %v3590_v59  ;;  %2950 = vmatprep.subr.bf16.mxu1 %v3603_v63  ;;  %v895_v59 = vrot.slane %v894_v42, 1  ;;  %v4541_v63 = vld [vmem:[#allocation5_spill] sm:$0xff] }
 0x201   :  { %2982 = vmatprep.subr.bf16.mxu0 %v3614_v3  ;;  %v909_v3 = vrot.slane %v908_v43, 1 }
 0x202   :  { %v896_v10 = vadd.f32 %v895_v59, %v894_v42  ;;  %v1662_v42 = vld [vmem:[%s4472_s9 + $0x80] sm:$0xff] }
 0x203   :  { %2952 = vmatpush3.bf16.msra.mxu1 %v3616_v5  ;;  %v930_v5 = vrot.slane %v929_v50, 1  ;;  %v910_v62 = vadd.f32 %v909_v3, %v908_v43  ;;  %v1670_v43 = vld [vmem:[%s4472_s9 + $0xc0] sm:$0xff]  ;;  %v1681_v3 = vld [vmem:[%s4472_s9 + $0x118] sm:$0xff] }
 0x204   :  { %2984 = vmatpush3.bf16.msra.mxu0 %v3625_v8  ;;  %2954 = vmatprep.subr.bf16.mxu1 %v3639_v16  ;;  %v944_v8 = vrot.slane %v943_v52, 1  ;;  %v4543_v16 = vld [vmem:[#allocation7_spill] sm:$0xff] }
 0x205   :  { %2986 = vmatprep.subr.bf16.mxu0 %v3650_v22  ;;  %v4544_v22 = vld [vmem:[#allocation8_spill] sm:$0xff]  ;;  %v931_v37 = vadd.f32 %v930_v5, %v929_v50  ;;  %v4192_v50 = vpack.c.bf16 %v1673_v39, %v1665_v31  ;;  %v1689_v5 = vld [vmem:[%s4472_s9 + $0x158] sm:$0xff] }
 0x206   :  { %v945_v36 = vadd.f32 %v944_v8, %v943_v52  ;;  %v1664_v52 = vld [vmem:[%s4472_s9 + $0x90] sm:$0xff]  ;;  %v4220_v8 = vpack.c.bf16 %v1689_v5, %v1681_v3 }
 0x207   :  { %2956 = vmatpush3.bf16.msra.mxu1 %v4538_v51  ;;  %v4194_v51 = vpack.c.bf16 %v1670_v43, %v1662_v42 }
 0x208   :  { %2988 = vmatpush3.bf16.msra.mxu0 %v4539_v53  ;;  %2958 = vmatprep.subr.bf16.mxu1 %v4540_v57  ;;  %v1672_v53 = vld [vmem:[%s4472_s9 + $0xd0] sm:$0xff]  ;;  %v1679_v57 = vld [vmem:[%s4472_s9 + $0x108] sm:$0xff] }
 0x209   :  { %2990 = vmatprep.subr.bf16.mxu0 %v4541_v63  ;;  %v4206_v59 = vpack.c.bf16 %v1672_v53, %v1664_v52  ;;  %v1687_v63 = vld [vmem:[%s4472_s9 + $0x148] sm:$0xff] }
 0x20b   :  { %2960 = vmatpush3.bf16.msra.mxu1 %v4542_v9  ;;  %v4218_v9 = vpack.c.bf16 %v1687_v63, %v1679_v57 }
 0x20c   :  { %2992 = vmatpush3.bf16.msra.mxu0 %v4543_v16  ;;  %2994 = vmatprep.subr.bf16.mxu1 %v4544_v22  ;;  %v1678_v16 = vld [vmem:[%s4472_s9 + $0x100] sm:$0xff]  ;;  %v1680_v22 = vld [vmem:[%s4472_s9 + $0x110] sm:$0xff] }
 0x20d   :  { %3026 = vmatprep.subr.bf16.mxu0 %v4545_v11  ;;  %v1688_v11 = vld [vmem:[%s4472_s9 + $0x150] sm:$0xff] }
 0x20e   :  { %1419 = vmatmul.mubr.f32.vlgmr.msra.gmra.mrb[10].mxu1 %v896_v10  ;;  %v1686_v10 = vld [vmem:[%s4472_s9 + $0x140] sm:$0xff] }
 0x20f   :  { %1489 = vmatmul.mubr.f32.vlgmr.msra.gmra.mrb[10].mxu0 %v910_v62  ;;  %2996 = vmatpush3.bf16.msra.mxu1 %v3802_v54  ;;  %v4547_v54 = vld [vmem:[#allocation18_spill] sm:$0xff]  ;;  %v4232_v62 = vpack.c.bf16 %v1686_v10, %v1678_v16 }
 0x210   :  { %1558 = vmatprep.mubr.f32.mxu1 %v931_v37  ;;  %3028 = vmatpush3.bf16.msra.mxu0 %v3804_v46  ;;  %v919_v7 = vrot.slane %v4547_v54, 4  ;;  %v4549_v46 = vld [vmem:[#allocation22_spill] sm:$0xff]  ;;  %v1695_v37 = vld [vmem:[%s4472_s9 + $0x188] sm:$0xff] }
 0x211   :  { %1628 = vmatprep.mubr.f32.mxu0 %v945_v36  ;;  %2998 = vmatprep.subr.bf16.mxu1 %v3806_v41  ;;  %v933_v41 = vrot.slane %v4550_v44, 4  ;;  %v1703_v36 = vld [vmem:[%s4472_s9 + $0x1c8] sm:$0xff] }
 0x212   :  { %3030 = vmatprep.subr.bf16.mxu0 %v3817_v48  ;;  %v920_v48 = vadd.f32 %v919_v7, %v4547_v54  ;;  %v4247_v54 = vpack.c.bf16 %v1703_v36, %v1695_v37  ;;  %v1697_v7 = vld [vmem:[%s4472_s9 + $0x198] sm:$0xff] }
 0x213   :  { %3000 = vmatpush3.bf16.msra.mxu1 %v3835_v55  ;;  %v4552_v55 = vld [vmem:[#allocation24_spill] sm:$0xff] }
 0x214   :  { %3032 = vmatpush3.bf16.msra.mxu0 %v3839_v34  ;;  %3002 = vmatprep.subr.bf16.mxu1 %v3841_v40  ;;  %v4553_v34 = vld [vmem:[#allocation25_spill] sm:$0xff]  ;;  %v934_v40 = vadd.f32 %v933_v41, %v4550_v44  ;;  %v921_v32 = vrot.slane %v920_v48, 2  ;;  %v1702_v41 = vld [vmem:[%s4472_s9 + $0x1c0] sm:$0xff] }
 0x215   :  { %3034 = vmatprep.subr.bf16.mxu0 %v3853_v28  ;;  %v4554_v28 = vld [vmem:[#allocation26_spill] sm:$0xff] }
 0x216   :  { %v935_v45 = vrot.slane %v934_v40, 2  ;;  %v922_v58 = vadd.f32 %v921_v32, %v920_v48  ;;  %v1704_v48 = vld [vmem:[%s4472_s9 + $0x1d0] sm:$0xff] }
 0x217   :  { %3004 = vmatpush3.bf16.msra.mxu1 %v4546_v25  ;;  %v4245_v25 = vpack.c.bf16 %v1688_v11, %v1680_v22 }
 0x218   :  { %3036 = vmatpush3.bf16.msra.mxu0 %v4548_v35  ;;  %3006 = vmatprep.subr.bf16.mxu1 %v4549_v46  ;;  %v936_v0 = vadd.f32 %v935_v45, %v934_v40  ;;  %v923_v60 = vrot.slane %v922_v58, 1  ;;  %v1705_v35 = vld [vmem:[%s4472_s9 + $0x1d8] sm:$0xff]  ;;  %v1694_v46 = vld [vmem:[%s4472_s9 + $0x180] sm:$0xff] }
 0x219   :  { %3038 = vmatprep.subr.bf16.mxu0 %v4551_v47  ;;  %v4259_v44 = vpack.c.bf16 %v1705_v35, %v1697_v7  ;;  %v1696_v47 = vld [vmem:[%s4472_s9 + $0x190] sm:$0xff]  ;;  %v1653_v40 = vld [vmem:[%s4472_s9 + $0x38] sm:$0xff]  ;;  %v1639_v35 = vld [vmem:[%s4473_s10] sm:$0x1] }
 0x21a   :  { %v937_v12 = vrot.slane %v936_v0, 1  ;;  %v4287_v32 = vpack.c.bf16 %v1704_v48, %v1696_v47  ;;  %v1652_v47 = vld [vmem:[%s4472_s9 + $0x30] sm:$0xff] }
 0x21b   :  { %3008 = vmatpush3.bf16.msra.mxu1 %v3916_v33  ;;  %v4559_v33 = vld [vmem:[#allocation31_spill] sm:$0xff]  ;;  %v1660_v48 = vld [vmem:[%s4472_s9 + $0x70] sm:$0xff] }
 0x21c   :  { %3040 = vmatpush3.bf16.msra.mxu0 %v4552_v55  ;;  %3010 = vmatprep.subr.bf16.mxu1 %v4553_v34  ;;  %v938_v13 = vadd.f32 %v937_v12, %v936_v0  ;;  %v1651_v55 = vld [vmem:[%s4472_s9 + $0x28] sm:$0xff] }
 0x21d   :  { %3042 = vmatprep.subr.bf16.mxu0 %v4554_v28  ;;  %v1659_v34 = vld [vmem:[%s4472_s9 + $0x68] sm:$0xff]  ;;  %v4280_v28 = vpack.c.bf16 %v1702_v41, %v1694_v46  ;;  %v1650_v46 = vld [vmem:[%s4472_s9 + $0x20] sm:$0xff] }
 0x21e   :  { %v1658_v41 = vld [vmem:[%s4472_s9 + $0x60] sm:$0xff] }
 0x21f   :  { %3012 = vmatpush3.bf16.msra.mxu1 %v4555_v17  ;;  %v1661_v17 = vld [vmem:[%s4472_s9 + $0x78] sm:$0xff] }
 0x220   :  { %3044 = vmatpush3.bf16.msra.mxu0 %v4556_v56  ;;  %3014 = vmatprep.subr.bf16.mxu1 %v4557_v24  ;;  %v4289_v56 = vpack.c.bf16 %v1659_v34, %v1651_v55  ;;  %v4292_v24 = vpack.c.bf16 %v1661_v17, %v1653_v40  ;;  %v1667_v55 = vld [vmem:[%s4472_s9 + $0xa8] sm:$0xff]  ;;  %v1669_v40 = vld [vmem:[%s4472_s9 + $0xb8] sm:$0xff] }
 0x221   :  { %3046 = vmatprep.subr.bf16.mxu0 %v4558_v49  ;;  %v1675_v34 = vld [vmem:[%s4472_s9 + $0xe8] sm:$0xff]  ;;  %v1677_v17 = vld [vmem:[%s4472_s9 + $0xf8] sm:$0xff] }
 0x223   :  { %3016 = vmatpush3.bf16.msra.mxu1 %v4559_v33 }
 0x224   :  { %3048 = vmatpush3.bf16.msra.mxu0 %v3993_v20  ;;  %3018 = vmatprep.subr.bf16.mxu1 %v3995_v23  ;;  %v924_v20 = vadd.f32 %v923_v60, %v922_v58  ;;  %v4560_v23 = vmov 0.0  }
 0x225   :  { %3050 = vmatprep.subr.bf16.mxu0 %v4007_v4 }
 0x227   :  { %3020 = vmatpush3.bf16.msra.mxu1 %v4025_v61  ;;  %v1649_v61 = vld [vmem:[%s4472_s9 + $0x18] sm:$0xff] }
 0x228   :  { %3052 = vmatpush3.bf16.msra.mxu0 %v4029_v2  ;;  %3022 = vmatprep.subr.bf16.mxu1 %v4031_v6  ;;  %v1647_v2 = vld [vmem:[%s4472_s9 + $0x8] sm:$0xff] }
 0x229   :  { %3054 = vmatprep.subr.bf16.mxu0 %v4040_v1  ;;  %v1655_v6 = vld [vmem:[%s4472_s9 + $0x48] sm:$0xff]  ;;  %v1657_v1 = vld [vmem:[%s4472_s9 + $0x58] sm:$0xff] }
 0x22a   :  { %v4145_v4 = vpack.c.bf16 %v1655_v6, %v1647_v2  ;;  %v4156_v14 = vpack.c.bf16 %v1657_v1, %v1649_v61 }
 0x22b   :  { %3024 = vmatpush3.bf16.msra.mxu1 %v4049_v29  ;;  %v1646_v29 = vld [vmem:[%s4472_s9] sm:$0xff] }
 0x22c   :  { %3056 = vmatpush3.bf16.msra.mxu0 %v4053_v21  ;;  %v1654_v21 = vld [vmem:[%s4472_s9 + $0x40] sm:$0xff]  ;;  %3058 = vmatprep.subr.bf16.mxu1 %v4145_v4 }
 0x22d   :  { %v4158_v15 = vpack.c.bf16 %v1654_v21, %v1646_v29  ;;  %3074 = vmatprep.subr.bf16.mxu0 %v4156_v14 }
 0x22e   :  { %1559 = vmatmul.mubr.f32.vlgmr.msra.gmra.mrb[12].mxu1 %v924_v20 }
 0x22f   :  { %1629 = vmatmul.mubr.f32.vlgmr.msra.gmra.mrb[12].mxu0 %v938_v13  ;;  %1778 = vmatprep.mubr.f32.mxu1 %v4560_v23 }
 0x230   :  { %1849 = vmatprep.mubr.f32.mxu0 %v4560_v23  ;;  %3060 = vmatpush1.bf16.msra.mxu1 %v4158_v15 }
 0x231   :  { %3076 = vmatpush1.bf16.msra.mxu0 %v4167_v26  ;;  %3062 = vmatprep.subr.bf16.mxu1 %v4180_v38 }
 0x232   :  { %3078 = vmatprep.subr.bf16.mxu0 %v4192_v50 }
 0x234   :  { %3064 = vmatpush1.bf16.msra.mxu1 %v4194_v51 }
 0x235   :  { %3080 = vmatpush1.bf16.msra.mxu0 %v4206_v59  ;;  %3066 = vmatprep.subr.bf16.mxu1 %v4218_v9 }
 0x236   :  { %3082 = vmatprep.subr.bf16.mxu0 %v4220_v8 }
 0x238   :  { %3068 = vmatpush1.bf16.msra.mxu1 %v4232_v62 }
 0x239   :  { %3084 = vmatpush1.bf16.msra.mxu0 %v4245_v25  ;;  %3070 = vmatprep.subr.bf16.mxu1 %v4247_v54 }
 0x23a   :  { %3086 = vmatprep.subr.bf16.mxu0 %v4259_v44 }
 0x23c   :  { %3072 = vmatpush1.bf16.msra.mxu1 %v4280_v28 }
 0x23d   :  { %3088 = vmatpush1.bf16.msra.mxu0 %v4287_v32  ;;  %3090 = vmatprep.subr.bf16.mxu1 %v4289_v56 }
 0x23e   :  { %3106 = vmatprep.subr.bf16.mxu0 %v4292_v24 }
 0x2a1   :  { %v2509_v45 = vpop.f32.mrb[6].mxu1 }
 0x2a2   :  { %v2544_v49 = vpop.f32.mrb[6].mxu0  ;;  %v2510_v33 = vpop.f32.mrb[7].mxu1 }
 0x2a3   :  { %v2511_v58 = vadd.f32 %v2510_v33, %v2509_v45  ;;  %v2545_v0 = vpop.f32.mrb[7].mxu0  ;;  %v4327_v33 = vpack.c.bf16 %v1660_v48, %v1652_v47 }
 0x2a4   :  { %v2546_v60 = vadd.f32 %v2545_v0, %v2544_v49  ;;  %v4325_v49 = vpack.c.bf16 %v1658_v41, %v1650_v46  ;;  %v1674_v0 = vld [vmem:[%s4472_s9 + $0xe0] sm:$0xff]  ;;  %v4564_v46 = vld [vmem:[#allocation13_spill] sm:$0xff] }
 0x2a6   :  { %v1211_v12 = vadd.f32 %v2546_v60, %v2511_v58  ;;  %v1666_v58 = vld [vmem:[%s4472_s9 + $0xa0] sm:$0xff] }
 0x2c1   :  { %v2579_v20 = vpop.f32.mrb[8].mxu1 }
 0x2c2   :  { %v2614_v13 = vpop.f32.mrb[8].mxu0  ;;  %v2580_v2 = vpop.f32.mrb[9].mxu1 }
 0x2c3   :  { %v2581_v6 = vadd.f32 %v2580_v2, %v2579_v20  ;;  %v2615_v61 = vpop.f32.mrb[9].mxu0  ;;  %v4337_v20 = vpack.c.bf16 %v1677_v17, %v1669_v40  ;;  %v1676_v2 = vld [vmem:[%s4472_s9 + $0xf0] sm:$0xff] }
 0x2c4   :  { %v2616_v1 = vadd.f32 %v2615_v61, %v2614_v13  ;;  %v1668_v13 = vld [vmem:[%s4472_s9 + $0xb0] sm:$0xff]  ;;  %v1691_v61 = vld [vmem:[%s4472_s9 + $0x168] sm:$0xff] }
 0x2c5   :  { %v1281_v29 = vadd.f32 %v2581_v6, %v1211_v12  ;;  %v4335_v12 = vpack.c.bf16 %v1675_v34, %v1667_v55  ;;  %v1683_v6 = vld [vmem:[%s4472_s9 + $0x128] sm:$0xff] }
 0x2c7   :  { %v1351_v21 = vadd.f32 %v2616_v1, %v1281_v29  ;;  %v1685_v1 = vld [vmem:[%s4472_s9 + $0x138] sm:$0xff] }
 0x2c8   :  { %v1693_v29 = vld [vmem:[%s4472_s9 + $0x178] sm:$0xff] }
 0x2c9   :  { %v1634_v5 = vmul.f32 0.03125, %v1351_v21 }
 0x2cb   :  { %v1636_v22 = vmul.f32 %v1634_v5, %v1634_v5 }
 0x2e1   :  { %v2649_v18 = vpop.f32.mrb[10].mxu1 }
 0x2e2   :  { %v2684_v19 = vpop.f32.mrb[10].mxu0  ;;  %v2650_v27 = vpop.f32.mrb[11].mxu1 }
 0x2e3   :  { %v2651_v30 = vadd.f32 %v2650_v27, %v2649_v18  ;;  %v2685_v31 = vpop.f32.mrb[11].mxu0  ;;  %v4361_v18 = vpack.c.bf16 %v1674_v0, %v1666_v58  ;;  %v1682_v27 = vld [vmem:[%s4472_s9 + $0x120] sm:$0xff]  ;;  %v4566_v0 = vld [vmem:[#allocation15_spill] sm:$0xff] }
 0x2e4   :  { %v2686_v39 = vadd.f32 %v2685_v31, %v2684_v19  ;;  %v4363_v19 = vpack.c.bf16 %v1676_v2, %v1668_v13  ;;  %v4373_v31 = vpack.c.bf16 %v1691_v61, %v1683_v6  ;;  %v4568_v13 = vld [vmem:[#allocation17_spill] sm:$0xff]  ;;  %v3204_v6 = vmov 1966171168  }
 0x2e5   :  { %v2394_v61 = vunpack.c.l.s4 %v3204_v6 }
 0x2e6   :  { %v1491_v42 = vadd.f32 %v2686_v39, %v2651_v30  ;;  %v1690_v30 = vld [vmem:[%s4472_s9 + $0x160] sm:$0xff]  ;;  %v4375_v39 = vpack.c.bf16 %v1693_v29, %v1685_v1 }
 0x301   :  { %v2719_v43 = vpop.f32.mrb[12].mxu1 }
 0x302   :  { %v2754_v52 = vpop.f32.mrb[12].mxu0  ;;  %v2720_v53 = vpop.f32.mrb[13].mxu1 }
 0x303   :  { %v2721_v57 = vadd.f32 %v2720_v53, %v2719_v43  ;;  %v2755_v63 = vpop.f32.mrb[13].mxu0  ;;  %v1692_v43 = vld [vmem:[%s4472_s9 + $0x170] sm:$0xff]  ;;  %v1707_v53 = vld [vmem:[%s4472_s9 + $0x1e8] sm:$0xff] }
 0x304   :  { %v2756_v3 = vadd.f32 %v2755_v63, %v2754_v52  ;;  %v1699_v52 = vld [vmem:[%s4472_s9 + $0x1a8] sm:$0xff]  ;;  %v1709_v63 = vld [vmem:[%s4472_s9 + $0x1f8] sm:$0xff] }
 0x305   :  { %v1561_v16 = vadd.f32 %v2721_v57, %v1491_v42  ;;  %v1684_v42 = vld [vmem:[%s4472_s9 + $0x130] sm:$0xff]  ;;  %v1701_v57 = vld [vmem:[%s4472_s9 + $0x1b8] sm:$0xff] }
 0x307   :  { %v1631_v10 = vadd.f32 %v2756_v3, %v1561_v16  ;;  %v3099_v3 = vpack.c.bf16 %v1690_v30, %v1682_v27  ;;  %v1698_v16 = vld [vmem:[%s4472_s9 + $0x1a0] sm:$0xff] }
 0x309   :  { %v1635_v11 = vmul.f32 0.03125, %v1631_v10  ;;  %v3101_v10 = vpack.c.bf16 %v1707_v53, %v1699_v52 }
 0x30b   :  { %v1637_v37 = vsub.f32 %v1635_v11, %v1636_v22  ;;  %v3117_v22 = vpack.c.bf16 %v1709_v63, %v1701_v57  ;;  %v1706_v11 = vld [vmem:[%s4472_s9 + $0x1e0] sm:$0xff] }
 0x30d   :  { %v1638_v36 = vmax.f32 %v1637_v37, 0.0  ;;  %v1700_v37 = vld [vmem:[%s4472_s9 + $0x1b0] sm:$0xff] }
 0x30f   :  { %v1640_v7 = vadd.f32 1e-05, %v1638_v36  ;;  %v1708_v36 = vld [vmem:[%s4472_s9 + $0x1f0] sm:$0xff] }
 0x311   :  { %3198 = vrsqrt.f32 %v1640_v7  ;;  %v3103_v7 = vpack.c.bf16 %v1706_v11, %v1698_v16 }
 0x31b   :  { %v3199_v45 = vpop.eup %3198 }
 0x31c   :  { %v1642_v60 = vmul.f32 %v3199_v45, %v1639_v35  ;;  %v3119_v35 = vpack.c.bf16 %v1708_v36, %v1700_v37 }
 0x31e   :  { %2457 = vmatmul.mubr.msk.f32.vlgmr.msra.gmra.mrb[14].mxu1 %vm1710_vm9, %v1642_v60  ;;  %2458 = vmatmul.mubr.msk.f32.vlgmr.msra.gmra.mrb[14].mxu0 %vm1710_vm9, %v1642_v60  ;;  %v1644_v21 = vmul.f32 %v1642_v60, %v1634_v5  ;;  %v3115_v5 = vpack.c.bf16 %v1692_v43, %v1684_v42 }
 0x31f   :  { %3092 = vmatpush1.bf16.msra.mxu1 %v4325_v49  ;;  %3108 = vmatpush1.bf16.msra.mxu0 %v4327_v33 }
 0x320   :  { %3094 = vmatprep.subr.bf16.mxu1 %v4335_v12  ;;  %3110 = vmatprep.subr.bf16.mxu0 %v4337_v20 }
 0x321   :  { %1920 = vmatprep.mubr.f32.mxu1 %v4560_v23  ;;  %1991 = vmatprep.mubr.f32.mxu0 %v4560_v23 }
 0x323   :  { %3096 = vmatpush1.bf16.msra.mxu1 %v4361_v18  ;;  %3112 = vmatpush1.bf16.msra.mxu0 %v4363_v19 }
 0x324   :  { %3098 = vmatprep.subr.bf16.mxu1 %v4373_v31  ;;  %3114 = vmatprep.subr.bf16.mxu0 %v4375_v39 }
 0x327   :  { %3100 = vmatpush1.bf16.msra.mxu1 %v3099_v3  ;;  %3116 = vmatpush1.bf16.msra.mxu0 %v3115_v5 }
 0x328   :  { %3102 = vmatprep.subr.bf16.mxu1 %v3101_v10  ;;  %3118 = vmatprep.subr.bf16.mxu0 %v3117_v22 }
 0x32b   :  { %3104 = vmatpush1.bf16.msra.mxu1 %v3103_v7  ;;  %3120 = vmatpush1.bf16.msra.mxu0 %v3119_v35 }
 0x32c   :  { %3122 = vmatprep.subr.bf16.mxu1 %v4145_v4  ;;  %3138 = vmatprep.subr.bf16.mxu0 %v4156_v14  ;;  %v1643_v4 = vld [vmem:[%s4474_s11] sm:$0x1] }
 0x32d   :  { %v1645_v14 = vsub.f32 %v1643_v4, %v1644_v21 }
 0x32e   :  { %2459 = vmatmul.mubr.msk.f32.vlgmr.msra.gmra.mrb[16].mxu1 %vm1710_vm9, %v1642_v60  ;;  %2460 = vmatmul.mubr.msk.f32.vlgmr.msra.gmra.mrb[16].mxu0 %vm1710_vm9, %v1642_v60 }
 0x32f   :  { %3124 = vmatpush1.bf16.msra.mxu1 %v4158_v15  ;;  %3140 = vmatpush1.bf16.msra.mxu0 %v4167_v26  ;;  %v2285_v15 = vlaneseq }
 0x330   :  { %3126 = vmatprep.subr.bf16.mxu1 %v4180_v38  ;;  %3142 = vmatprep.subr.bf16.mxu0 %v4192_v50 }
 0x331   :  { %2065 = vmatprep.mubr.f32.mxu1 %v4560_v23  ;;  %2136 = vmatprep.mubr.f32.mxu0 %v4560_v23 }
 0x333   :  { %3128 = vmatpush1.bf16.msra.mxu1 %v4194_v51  ;;  %3144 = vmatpush1.bf16.msra.mxu0 %v4206_v59 }
 0x334   :  { %3130 = vmatprep.subr.bf16.mxu1 %v4218_v9  ;;  %3146 = vmatprep.subr.bf16.mxu0 %v4220_v8 }
 0x337   :  { %3132 = vmatpush1.bf16.msra.mxu1 %v4232_v62  ;;  %3148 = vmatpush1.bf16.msra.mxu0 %v4245_v25 }
 0x338   :  { %3134 = vmatprep.subr.bf16.mxu1 %v4247_v54  ;;  %3150 = vmatprep.subr.bf16.mxu0 %v4259_v44  ;;  %v4561_v54 = vld [vmem:[#allocation10_spill] sm:$0xff] }
 0x33b   :  { %3136 = vmatpush1.bf16.msra.mxu1 %v4280_v28  ;;  %3152 = vmatpush1.bf16.msra.mxu0 %v4287_v32  ;;  %v4562_v28 = vld [vmem:[#allocation11_spill] sm:$0xff] }
 0x33c   :  { %3154 = vmatprep.subr.bf16.mxu1 %v4289_v56  ;;  %3170 = vmatprep.subr.bf16.mxu0 %v4292_v24  ;;  %v4563_v56 = vld [vmem:[#allocation12_spill] sm:$0xff] }
 0x33e   :  { %2461 = vmatmul.mubr.msk.f32.vlgmr.msra.gmra.mrb[18].mxu1 %vm1710_vm9, %v1645_v14  ;;  %2462 = vmatmul.mubr.msk.f32.vlgmr.msra.gmra.mrb[18].mxu0 %vm1710_vm9, %v1645_v14 }
 0x33f   :  { %3156 = vmatpush1.bf16.msra.mxu1 %v4325_v49  ;;  %3172 = vmatpush1.bf16.msra.mxu0 %v4327_v33  ;;  %v4565_v33 = vld [vmem:[#allocation14_spill] sm:$0xff] }
 0x340   :  { %3158 = vmatprep.subr.bf16.mxu1 %v4335_v12  ;;  %3174 = vmatprep.subr.bf16.mxu0 %v4337_v20  ;;  %v4567_v12 = vld [vmem:[#allocation16_spill] sm:$0xff] }
 0x341   :  { %2207 = vmatprep.mubr.f32.mxu1 %v4560_v23  ;;  %2278 = vmatprep.mubr.f32.mxu0 %v4560_v23  ;;  %v2286_v23 = vshrl.u32 %v2285_v15, 7 }
 0x343   :  { %3160 = vmatpush1.bf16.msra.mxu1 %v4361_v18  ;;  %3176 = vmatpush1.bf16.msra.mxu0 %v4363_v19  ;;  %v2287_v26 = vsub.s32 0, %v2286_v23 }
 0x344   :  { %3162 = vmatprep.subr.bf16.mxu1 %v4373_v31  ;;  %3178 = vmatprep.subr.bf16.mxu0 %v4375_v39  ;;  %v2395_v31 = vunpack.c.0.s8 %v2394_v61 }
 0x347   :  { %3164 = vmatpush1.bf16.msra.mxu1 %v3099_v3  ;;  %3180 = vmatpush1.bf16.msra.mxu0 %v3115_v5  ;;  %v2398_v5 = vsub.s32 %v2395_v31, %v2286_v23 }
 0x348   :  { %3166 = vmatprep.subr.bf16.mxu1 %v3101_v10  ;;  %3182 = vmatprep.subr.bf16.mxu0 %v3117_v22 }
 0x34b   :  { %3168 = vmatpush1.bf16.msra.mxu1 %v3103_v7  ;;  %3184 = vmatpush1.bf16.msra.mxu0 %v3119_v35 }
 0x34e   :  { %2463 = vmatmul.mubr.msk.f32.vlgmr.msra.gmra.mrb[20].mxu1 %vm1710_vm9, %v1645_v14  ;;  %2464 = vmatmul.mubr.msk.f32.vlgmr.msra.gmra.mrb[20].mxu0 %vm1710_vm9, %v1645_v14 }
 0x3f1   :  { %v1780_v38 = vpop.f32.mrb[14].mxu1  ;;  %v1851_v50 = vpop.f32.mrb[14].mxu0 }
 0x3f2   :  { %v2288_v51 = vrot.slane %v1780_v38, %v2287_v26  ;;  %v2296_v59 = vrot.slane %v1851_v50, %v2287_v26  ;;  %v1782_v9 = vpop.f32.mrb[15].mxu1  ;;  %v1853_v8 = vpop.f32.mrb[15].mxu0 }
 0x3f3   :  { %v2292_v62 = vrot.slane %v1782_v9, %v2287_v26  ;;  %v2300_v25 = vrot.slane %v1853_v8, %v2287_v26 }
 0x3f4   :  { %v2317_v44 = vmul.f32 %v2288_v51, %v4561_v54  ;;  %v2319_v32 = vmul.f32 %v2296_v59, %v4562_v28 }
 0x3f5   :  { %v2318_v24 = vmul.f32 %v2292_v62, %v4563_v56  ;;  %v2320_v41 = vmul.f32 %v2300_v25, %v4564_v46 }
 0x401   :  { %v1922_v47 = vpop.f32.mrb[16].mxu1  ;;  %v1993_v48 = vpop.f32.mrb[16].mxu0 }
 0x402   :  { %v2304_v55 = vrot.slane %v1922_v47, %v2287_v26  ;;  %v2312_v34 = vrot.slane %v1993_v48, %v2287_v26  ;;  %v1924_v40 = vpop.f32.mrb[17].mxu1  ;;  %v1995_v17 = vpop.f32.mrb[17].mxu0 }
 0x403   :  { %v2308_v45 = vrot.slane %v1924_v40, %v2287_v26  ;;  %v2316_v49 = vrot.slane %v1995_v17, %v2287_v26 }
 0x404   :  { %v2321_v58 = vmul.f32 %v2304_v55, %v4565_v33  ;;  %v2323_v60 = vmul.f32 %v2312_v34, %v4566_v0 }
 0x405   :  { %v2322_v20 = vmul.f32 %v2308_v45, %v4567_v12  ;;  %v2324_v2 = vmul.f32 %v2316_v49, %v4568_v13 }
 0x411   :  { %v2067_v1 = vpop.f32.mrb[18].mxu1  ;;  %v2138_v29 = vpop.f32.mrb[18].mxu0 }
 0x412   :  { %v2328_v21 = vrot.slane %v2067_v1, %v2287_v26  ;;  %v2336_v18 = vrot.slane %v2138_v29, %v2287_v26  ;;  %v2069_v19 = vpop.f32.mrb[19].mxu1  ;;  %v2140_v27 = vpop.f32.mrb[19].mxu0 }
 0x413   :  { %v2332_v30 = vrot.slane %v2069_v19, %v2287_v26  ;;  %v2340_v39 = vrot.slane %v2140_v27, %v2287_v26 }
 0x414   :  { %v2357_v42 = vadd.f32 %v2328_v21, %v2317_v44  ;;  %v2359_v43 = vadd.f32 %v2336_v18, %v2319_v32 }
 0x415   :  { %v2358_v52 = vadd.f32 %v2332_v30, %v2318_v24  ;;  %v2360_v53 = vadd.f32 %v2340_v39, %v2320_v41 }
 0x416   :  { %v2365_v57 = vmax.f32 %v2357_v42, 0.0  ;;  %v2367_v63 = vmax.f32 %v2359_v43, 0.0 }
 0x417   :  { %v2366_v3 = vmax.f32 %v2358_v52, 0.0  ;;  %v2368_v16 = vmax.f32 %v2360_v53, 0.0 }
 0x419   :  { %v2465_v10 = vpack.c.bf16 %v2366_v3, %v2365_v57  ;;  %v2466_v22 = vpack.c.bf16 %v2368_v16, %v2367_v63 }
 0x41b   :  { %v2399_v11 = vrot.slane %v2465_v10, %v2398_v5  ;;  %v2406_v37 = vrot.slane %v2466_v22, %v2398_v5 }
 0x41d   :  { %v2421_v36 = vcombine.low %v2399_v11, %v2406_v37 }
 0x41f   :  { %v2429_v41 = vrot.slane %v2421_v36, %v2398_v5 }
 0x421   :  { %v2209_v7 = vpop.f32.mrb[20].mxu1  ;;  %v2280_v35 = vpop.f32.mrb[20].mxu0 }
 0x422   :  { %v2344_v4 = vrot.slane %v2209_v7, %v2287_v26  ;;  %v2352_v14 = vrot.slane %v2280_v35, %v2287_v26  ;;  %v2211_v15 = vpop.f32.mrb[21].mxu1  ;;  %v2282_v38 = vpop.f32.mrb[21].mxu0 }
 0x423   :  { %v2348_v50 = vrot.slane %v2211_v15, %v2287_v26  ;;  %v2356_v51 = vrot.slane %v2282_v38, %v2287_v26 }
 0x424   :  { %v2361_v59 = vadd.f32 %v2344_v4, %v2321_v58  ;;  %v2363_v9 = vadd.f32 %v2352_v14, %v2323_v60 }
 0x425   :  { %v2362_v8 = vadd.f32 %v2348_v50, %v2322_v20  ;;  %v2364_v62 = vadd.f32 %v2356_v51, %v2324_v2 }
 0x426   :  { %v2369_v25 = vmax.f32 %v2361_v59, 0.0  ;;  %v2371_v23 = vmax.f32 %v2363_v9, 0.0 }
 0x427   :  { %v2370_v54 = vmax.f32 %v2362_v8, 0.0  ;;  %v2372_v44 = vmax.f32 %v2364_v62, 0.0 }
 0x429   :  { %v2467_v28 = vpack.c.bf16 %v2370_v54, %v2369_v25  ;;  %v2468_v32 = vpack.c.bf16 %v2372_v44, %v2371_v23 }
 0x42b   :  { %v2413_v56 = vrot.slane %v2467_v28, %v2398_v5  ;;  %v2420_v24 = vrot.slane %v2468_v32, %v2398_v5 }
 0x42d   :  { %v2422_v46 = vcombine.low %v2413_v56, %v2420_v24 }
 0x42f   :  { %v2436_v47 = vrot.slane %v2422_v46, %v2398_v5 }
 0x431   :  { %v2437_v48 = vcombine.low %v2429_v41, %v2436_v47 }
 0x433   :  { %2439 = vst [vmem:[%s4475_s12] sm:$0xff] %v2437_v48 }

// kernel: generator_forward.8
= control target key start
LH: loop header
LB: loop body
LE: loop exit
PB: predicated region body
PF: predicated region fallthrough
CT: control target
= control target key end

     0   :  { %v64_v34 = vlaneseq  ;;  %vm48_vm1 = vcmask 1040384   ;;  %vm49_vm2 = vsmask.f32 256  ;;  %v2082_v58 = vmov 0   ;;  %s2739_s1 = inlined_call_operand.vmem [shape: bf16[4,256,256], index: 1, kind: input, shape index: {}]   ;;  %s2740_s0 = inlined_call_operand.vmem [shape: bf16[8,256], index: 0, kind: input, shape index: {}]   ;;  %s2741_s2 = inlined_call_operand.vmem [shape: f32[256,32], index: 2, kind: input, shape index: {}]   ;;  %s2742_s3 = inlined_call_operand.vmem [shape: f32[32,256], index: 3, kind: input, shape index: {}]   ;;  %s2743_s4 = inlined_call_operand.vmem [shape: f32[1,32], index: 4, kind: input, shape index: {}]   ;;  %s2744_s5 = inlined_call_operand.vmem [shape: f32[1,32], index: 5, kind: input, shape index: {}]   ;;  %s2745_s6 = inlined_call_operand.vmem [shape: bf16[8,512], index: 6, kind: output, shape index: {}]  }
   0x1   :  { %v1886_v0 = vld [vmem:[%s2739_s1 + $0x104] ss:$8 sps:$4 sm:$0xff]   ;;  %v1890_v2 = vld [vmem:[%s2739_s1 + $0x100] ss:$8 sps:$4 sm:$0xff]   ;;  %v1892_v4 = vld [vmem:[%s2739_s1 + $0x114] ss:$8 sps:$4 sm:$0xff]  }
   0x2   :  { %v1888_v1 = vld [vmem:[%s2739_s1 + $0x304] ss:$8 sps:$4 sm:$0xff]   ;;  %389 = vmatprep.subr.bf16.mxu0 %v1886_v0  ;;  %v1891_v3 = vld [vmem:[%s2739_s1 + $0x300] ss:$8 sps:$4 sm:$0xff]   ;;  %v1894_v5 = vld [vmem:[%s2739_s1 + $0x314] ss:$8 sps:$4 sm:$0xff]  }
   0x3   :  { %793 = vmatprep.subr.bf16.mxu1 %v1888_v1  ;;  %390 = vmatpush1.bf16.msra.mxu0 %v1890_v2  ;;  %v1896_v6 = vld [vmem:[%s2739_s1 + $0x110] ss:$8 sps:$4 sm:$0xff]   ;;  %v1898_v8 = vld [vmem:[%s2739_s1 + $0x124] ss:$8 sps:$4 sm:$0xff]   ;;  %v1902_v10 = vld [vmem:[%s2739_s1 + $0x120] ss:$8 sps:$4 sm:$0xff]  }
   0x4   :  { %794 = vmatpush1.bf16.msra.mxu1 %v1891_v3  ;;  %391 = vmatprep.subr.bf16.mxu0 %v1892_v4  ;;  %v1897_v7 = vld [vmem:[%s2739_s1 + $0x310] ss:$8 sps:$4 sm:$0xff]   ;;  %v1900_v9 = vld [vmem:[%s2739_s1 + $0x324] ss:$8 sps:$4 sm:$0xff]   ;;  %v1903_v11 = vld [vmem:[%s2739_s1 + $0x320] ss:$8 sps:$4 sm:$0xff]  }
   0x5   :  { %795 = vmatprep.subr.bf16.mxu1 %v1894_v5  ;;  %v1904_v12 = vld [vmem:[%s2739_s1 + $0x134] ss:$8 sps:$4 sm:$0xff]   ;;  %v1908_v14 = vld [vmem:[%s2739_s1 + $0x130] ss:$8 sps:$4 sm:$0xff]   ;;  %v1910_v16 = vld [vmem:[%s2739_s1 + $0x144] ss:$8 sps:$4 sm:$0xff]  }
   0x6   :  { %v1906_v13 = vld [vmem:[%s2739_s1 + $0x334] ss:$8 sps:$4 sm:$0xff]   ;;  %v1909_v15 = vld [vmem:[%s2739_s1 + $0x330] ss:$8 sps:$4 sm:$0xff]   ;;  %v1912_v17 = vld [vmem:[%s2739_s1 + $0x344] ss:$8 sps:$4 sm:$0xff]  }
   0x7   :  { %392 = vmatpush1.bf16.msra.mxu0 %v1896_v6  ;;  %v1914_v18 = vld [vmem:[%s2739_s1 + $0x140] ss:$8 sps:$4 sm:$0xff]   ;;  %v1916_v20 = vld [vmem:[%s2739_s1 + $0x154] ss:$8 sps:$4 sm:$0xff]   ;;  %v1920_v22 = vld [vmem:[%s2739_s1 + $0x150] ss:$8 sps:$4 sm:$0xff]  }
   0x8   :  { %796 = vmatpush1.bf16.msra.mxu1 %v1897_v7  ;;  %393 = vmatprep.subr.bf16.mxu0 %v1898_v8  ;;  %v1915_v19 = vld [vmem:[%s2739_s1 + $0x340] ss:$8 sps:$4 sm:$0xff]   ;;  %v1918_v21 = vld [vmem:[%s2739_s1 + $0x354] ss:$8 sps:$4 sm:$0xff]   ;;  %v1921_v23 = vld [vmem:[%s2739_s1 + $0x350] ss:$8 sps:$4 sm:$0xff]  }
   0x9   :  { %797 = vmatprep.subr.bf16.mxu1 %v1900_v9  ;;  %v1922_v24 = vld [vmem:[%s2739_s1 + $0x164] ss:$8 sps:$4 sm:$0xff]   ;;  %v1926_v26 = vld [vmem:[%s2739_s1 + $0x160] ss:$8 sps:$4 sm:$0xff]   ;;  %v1928_v28 = vld [vmem:[%s2739_s1 + $0x174] ss:$8 sps:$4 sm:$0xff]  }
   0xa   :  { %v1924_v25 = vld [vmem:[%s2739_s1 + $0x364] ss:$8 sps:$4 sm:$0xff]   ;;  %v1927_v27 = vld [vmem:[%s2739_s1 + $0x360] ss:$8 sps:$4 sm:$0xff]   ;;  %v1930_v29 = vld [vmem:[%s2739_s1 + $0x374] ss:$8 sps:$4 sm:$0xff]  }
   0xb   :  { %394 = vmatpush1.bf16.msra.mxu0 %v1902_v10  ;;  %v1932_v30 = vld [vmem:[%s2739_s1 + $0x170] ss:$8 sps:$4 sm:$0xff]   ;;  %v1934_v32 = vld [vmem:[%s2739_s1 + $0x184] ss:$8 sps:$4 sm:$0xff]   ;;  %v1938_v35 = vld [vmem:[%s2739_s1 + $0x180] ss:$8 sps:$4 sm:$0xff]  }
   0xc   :  { %798 = vmatpush1.bf16.msra.mxu1 %v1903_v11  ;;  %395 = vmatprep.subr.bf16.mxu0 %v1904_v12  ;;  %v1933_v31 = vld [vmem:[%s2739_s1 + $0x370] ss:$8 sps:$4 sm:$0xff]   ;;  %v1936_v33 = vld [vmem:[%s2739_s1 + $0x384] ss:$8 sps:$4 sm:$0xff]   ;;  %v1939_v36 = vld [vmem:[%s2739_s1 + $0x380] ss:$8 sps:$4 sm:$0xff]  }
   0xd   :  { %799 = vmatprep.subr.bf16.mxu1 %v1906_v13  ;;  %v1940_v37 = vld [vmem:[%s2739_s1 + $0x194] ss:$8 sps:$4 sm:$0xff]   ;;  %v2233_v39 = vshrl.u32 %v64_v34, 7  ;;  %v1944_v40 = vld [vmem:[%s2739_s1 + $0x190] ss:$8 sps:$4 sm:$0xff]   ;;  %v26_v50 = vld [vmem:[%s2740_s0] sm:$0xff] }
   0xe   :  { %v1942_v38 = vld [vmem:[%s2739_s1 + $0x394] ss:$8 sps:$4 sm:$0xff]   ;;  %v1945_v41 = vld [vmem:[%s2739_s1 + $0x390] ss:$8 sps:$4 sm:$0xff]   ;;  %v1946_v42 = vld [vmem:[%s2739_s1 + $0x1a4] ss:$8 sps:$4 sm:$0xff]   ;;  %v2270_v52 = vcombine.high %v26_v50, %v26_v50  ;;  %v2293_v63 = vcombine.low %v26_v50, %v26_v50 }
   0xf   :  { %396 = vmatpush1.bf16.msra.mxu0 %v1908_v14  ;;  %v1948_v43 = vld [vmem:[%s2739_s1 + $0x3a4] ss:$8 sps:$4 sm:$0xff]   ;;  %v70_v44 = vand.u32 3, %v2233_v39  ;;  %v1950_v45 = vld [vmem:[%s2739_s1 + $0x1a0] ss:$8 sps:$4 sm:$0xff]   ;;  %vm2297_vm4 = vmand %vm48_vm1, %vm49_vm2  ;;  %vm59_vm9 = vcmask 1043456  }
  0x10   :  { %800 = vmatpush1.bf16.msra.mxu1 %v1909_v15  ;;  %397 = vmatprep.subr.bf16.mxu0 %v1910_v16  ;;  %v1951_v46 = vld [vmem:[%s2739_s1 + $0x3a0] ss:$8 sps:$4 sm:$0xff]   ;;  %v1952_v47 = vld [vmem:[%s2739_s1 + $0x1b4] ss:$8 sps:$4 sm:$0xff]   ;;  %v1956_v51 = vld [vmem:[%s2739_s1 + $0x1b0] ss:$8 sps:$4 sm:$0xff]  }
  0x11   :  { %801 = vmatprep.subr.bf16.mxu1 %v1912_v17  ;;  %v1954_v48 = vld [vmem:[%s2739_s1 + $0x3b4] ss:$8 sps:$4 sm:$0xff]   ;;  %vm2260_vm0 = vcmp.eq.s32.totalorder %v70_v44, 0  ;;  %v1957_v53 = vld [vmem:[%s2739_s1 + $0x3b0] ss:$8 sps:$4 sm:$0xff]   ;;  %v40_v56 = vshrl.u32 %v2270_v52, 16  ;;  %825 = vmatprep.mubr.bf16.mxu1 %v2270_v52 }
  0x12   :  { %v1958_v54 = vld [vmem:[%s2739_s1 + $0x1c4] ss:$8 sps:$4 sm:$0xff]   ;;  %vm81_vm3 = vmpackc.low %vm2260_vm0, %vm2260_vm0  ;;  %v43_v57 = vshll.u32 %v2270_v52, 16  ;;  %v1962_v60 = vld [vmem:[%s2739_s1 + $0x1c0] ss:$8 sps:$4 sm:$0xff]   ;;  %v33_v9 = vshrl.u32 %v2293_v63, 16 }
  0x13   :  { %398 = vmatpush1.bf16.msra.mxu0 %v1914_v18  ;;  %v1960_v55 = vld [vmem:[%s2739_s1 + $0x3c4] ss:$8 sps:$4 sm:$0xff]   ;;  %v82_v59 = vsel %vm81_vm3, 65537, %v2082_v58  ;;  %v42_v61 = vrot.slane %v40_v56, 7  ;;  %v1963_v62 = vld [vmem:[%s2739_s1 + $0x3c0] ss:$8 sps:$4 sm:$0xff]  }
  0x14   :  { %802 = vmatpush1.bf16.msra.mxu1 %v1915_v19  ;;  %399 = vmatprep.subr.bf16.mxu0 %v1916_v20  ;;  %v1484_v1 = vcombine.low %v82_v59, %v82_v59  ;;  %v1964_v2 = vld [vmem:[%s2739_s1 + $0x1d4] ss:$8 sps:$4 sm:$0xff]   ;;  %v1968_v7 = vld [vmem:[%s2739_s1 + $0x1d0] ss:$8 sps:$4 sm:$0xff]   ;;  %v1970_v10 = vld [vmem:[%s2739_s1 + $0x1e4] ss:$8 sps:$4 sm:$0xff]  }
  0x15   :  { %803 = vmatprep.subr.bf16.mxu1 %v1918_v21  ;;  %v1966_v3 = vld [vmem:[%s2739_s1 + $0x3d4] ss:$8 sps:$4 sm:$0xff]   ;;  %v45_v4 = vor.u32 %v43_v57, %v42_v61  ;;  %v1969_v8 = vld [vmem:[%s2739_s1 + $0x3d0] ss:$8 sps:$4 sm:$0xff]   ;;  %v1972_v11 = vld [vmem:[%s2739_s1 + $0x3e4] ss:$8 sps:$4 sm:$0xff]  }
  0x16   :  { %vm2309_vm5 = vcmp.eq.s16.totalorder %v1484_v1, 0  ;;  %v1974_v12 = vld [vmem:[%s2739_s1 + $0x1e0] ss:$8 sps:$4 sm:$0xff]   ;;  %vm2329_vm6 = vcmp.eq.s32.totalorder %v70_v44, 3  ;;  %v1976_v15 = vld [vmem:[%s2739_s1 + $0x1f4] ss:$8 sps:$4 sm:$0xff]  }
  0x17   :  { %400 = vmatpush1.bf16.msra.mxu0 %v1920_v22  ;;  %v52_v5 = vsel %vm2297_vm4, 0, %v45_v4  ;;  %v1975_v14 = vld [vmem:[%s2739_s1 + $0x3e0] ss:$8 sps:$4 sm:$0xff]   ;;  %v35_v16 = vrot.slane %v33_v9, 7  ;;  %v36_v17 = vshll.u32 %v2293_v63, 16  ;;  %vm91_vm7 = vmpackc.low %vm2329_vm6, %vm2329_vm6  ;;  %v55_v19 = vrot.slane %v43_v57, 1 }
  0x18   :  { %804 = vmatpush1.bf16.msra.mxu1 %v1921_v23  ;;  %401 = vmatprep.subr.bf16.mxu0 %v1922_v24  ;;  %v1978_v18 = vld [vmem:[%s2739_s1 + $0x3f4] ss:$8 sps:$4 sm:$0xff]   ;;  %vm60_vm8 = vsmask.f32 3328  ;;  %v1980_v20 = vld [vmem:[%s2739_s1 + $0x1f0] ss:$8 sps:$4 sm:$0xff]  }
  0x19   :  { %805 = vmatprep.subr.bf16.mxu1 %v1924_v25  ;;  %1615 = vmatprep.mubr.msk.bf16.mxu0 %vm2309_vm5, %v52_v5  ;;  %v1981_v21 = vld [vmem:[%s2739_s1 + $0x3f0] ss:$8 sps:$4 sm:$0xff]   ;;  %v38_v22 = vor.u32 %v36_v17, %v35_v16  ;;  %v92_v23 = vsel %vm91_vm7, 65537, %v2082_v58  ;;  %v1986_v24 = vld [vmem:[%s2739_s1 + $0x4] ss:$8 sps:$4 sm:$0xff]   ;;  %vm2373_vm10 = vmand %vm59_vm9, %vm60_vm8  ;;  %vm1283_vm12 = vcmask 261120  }
  0x1a   :  { %v1989_v25 = vld [vmem:[%s2739_s1 + $0x204] ss:$8 sps:$4 sm:$0xff]   ;;  %v2007_v44 = vld [vmem:[%s2739_s1 + $0x234] ss:$8 sps:$4 sm:$0xff]   ;;  %v2008_v49 = vld [vmem:[%s2739_s1 + $0x40] ss:$8 sps:$4 sm:$0xff]  }
  0x1b   :  { %402 = vmatpush1.bf16.msra.mxu0 %v1926_v26  ;;  %v1485_v26 = vcombine.low %v92_v23, %v92_v23  ;;  %v2011_v50 = vld [vmem:[%s2739_s1 + $0x240] ss:$8 sps:$4 sm:$0xff]   ;;  %v2028_v59 = vld [vmem:[%s2739_s1 + $0x74] ss:$8 sps:$4 sm:$0xff]   ;;  %v2026_v61 = vld [vmem:[%s2739_s1 + $0x70] ss:$8 sps:$4 sm:$0xff]  }
  0x1c   :  { %806 = vmatpush1.bf16.msra.mxu1 %v1927_v27  ;;  %403 = vmatprep.subr.bf16.mxu0 %v1928_v28  ;;  %v1984_v27 = vld [vmem:[%s2739_s1] ss:$8 sps:$4 sm:$0xff]   ;;  %v56_v28 = vor.u32 %v55_v19, %v40_v56  ;;  %v2025_v56 = vld [vmem:[%s2739_s1 + $0x264] ss:$8 sps:$4 sm:$0xff]   ;;  %v2040_v4 = vld [vmem:[%s2739_s1 + $0x94] ss:$8 sps:$4 sm:$0xff]  }
  0x1d   :  { %807 = vmatprep.subr.bf16.mxu1 %v1930_v29  ;;  %v51_v29 = vsel %vm2297_vm4, 0, %v38_v22  ;;  %vm2388_vm11 = vcmp.eq.s16.totalorder %v1485_v26, 0  ;;  %v2020_v57 = vld [vmem:[%s2739_s1 + $0x60] ss:$8 sps:$4 sm:$0xff]   ;;  %v2034_v0 = vld [vmem:[%s2739_s1 + $0x84] ss:$8 sps:$4 sm:$0xff]  }
  0x1e   :  { %v63_v34 = vsel %vm2373_vm10, %v56_v28, 0  ;;  %v2023_v58 = vld [vmem:[%s2739_s1 + $0x260] ss:$8 sps:$4 sm:$0xff]   ;;  %v2037_v1 = vld [vmem:[%s2739_s1 + $0x284] ss:$8 sps:$4 sm:$0xff]   ;;  %v53_v28 = vrot.slane %v36_v17, 1 }
  0x1f   :  { %404 = vmatpush1.bf16.msra.mxu0 %v1932_v30  ;;  %v1987_v30 = vld [vmem:[%s2739_s1 + $0x200] ss:$8 sps:$4 sm:$0xff]   ;;  %v2043_v5 = vld [vmem:[%s2739_s1 + $0x294] ss:$8 sps:$4 sm:$0xff]   ;;  %v2038_v6 = vld [vmem:[%s2739_s1 + $0x90] ss:$8 sps:$4 sm:$0xff]  }
  0x20   :  { %808 = vmatpush1.bf16.msra.mxu1 %v1933_v31  ;;  %405 = vmatprep.subr.bf16.mxu0 %v1934_v32  ;;  %v1992_v32 = vld [vmem:[%s2739_s1 + $0x14] ss:$8 sps:$4 sm:$0xff]   ;;  %v2053_v16 = vld [vmem:[%s2739_s1 + $0x2b0] ss:$8 sps:$4 sm:$0xff]   ;;  %v2061_v19 = vld [vmem:[%s2739_s1 + $0x2c4] ss:$8 sps:$4 sm:$0xff]  }
  0x21   :  { %809 = vmatprep.subr.bf16.mxu1 %v1936_v33  ;;  %v1995_v33 = vld [vmem:[%s2739_s1 + $0x214] ss:$8 sps:$4 sm:$0xff]   ;;  %v2070_v26 = vld [vmem:[%s2739_s1 + $0xe4] ss:$8 sps:$4 sm:$0xff]  }
  0x22   :  { %v2052_v13 = vld [vmem:[%s2739_s1 + $0xb4] ss:$8 sps:$4 sm:$0xff]   ;;  %v1112_v31 = vld [vmem:[%s2741_s2 + $0xa8] sm:$0xff] }
  0x23   :  { %406 = vmatpush1.bf16.msra.mxu0 %v1938_v35  ;;  %v2064_v22 = vld [vmem:[%s2739_s1 + $0xd4] ss:$8 sps:$4 sm:$0xff]  }
  0x24   :  { %810 = vmatpush1.bf16.msra.mxu1 %v1939_v36  ;;  %407 = vmatprep.subr.bf16.mxu0 %v1940_v37  ;;  %v1990_v36 = vld [vmem:[%s2739_s1 + $0x10] ss:$8 sps:$4 sm:$0xff]   ;;  %v2067_v23 = vld [vmem:[%s2739_s1 + $0x2d4] ss:$8 sps:$4 sm:$0xff]  }
  0x25   :  { %811 = vmatprep.subr.bf16.mxu1 %v1942_v38  ;;  %v1993_v37 = vld [vmem:[%s2739_s1 + $0x210] ss:$8 sps:$4 sm:$0xff]   ;;  %v1998_v38 = vld [vmem:[%s2739_s1 + $0x24] ss:$8 sps:$4 sm:$0xff]   ;;  %v2079_v17 = vld [vmem:[%s2739_s1 + $0x2f4] ss:$8 sps:$4 sm:$0xff]  }
  0x26   :  { %v1114_v35 = vld [vmem:[%s2741_s2 + $0xb8] sm:$0xff] }
  0x27   :  { %408 = vmatpush1.bf16.msra.mxu0 %v1944_v40  ;;  %v2001_v40 = vld [vmem:[%s2739_s1 + $0x224] ss:$8 sps:$4 sm:$0xff]  }
  0x28   :  { %812 = vmatpush1.bf16.msra.mxu1 %v1945_v41  ;;  %409 = vmatprep.subr.bf16.mxu0 %v1946_v42  ;;  %v1996_v41 = vld [vmem:[%s2739_s1 + $0x20] ss:$8 sps:$4 sm:$0xff]  }
  0x29   :  { %813 = vmatprep.subr.bf16.mxu1 %v1948_v43  ;;  %v1999_v42 = vld [vmem:[%s2739_s1 + $0x220] ss:$8 sps:$4 sm:$0xff]   ;;  %v2004_v43 = vld [vmem:[%s2739_s1 + $0x34] ss:$8 sps:$4 sm:$0xff]  }
  0x2b   :  { %410 = vmatpush1.bf16.msra.mxu0 %v1950_v45  ;;  %v2002_v45 = vld [vmem:[%s2739_s1 + $0x30] ss:$8 sps:$4 sm:$0xff]  }
  0x2c   :  { %814 = vmatpush1.bf16.msra.mxu1 %v1951_v46  ;;  %411 = vmatprep.subr.bf16.mxu0 %v1952_v47  ;;  %v2005_v46 = vld [vmem:[%s2739_s1 + $0x230] ss:$8 sps:$4 sm:$0xff]   ;;  %v2010_v47 = vld [vmem:[%s2739_s1 + $0x44] ss:$8 sps:$4 sm:$0xff]  }
  0x2d   :  { %815 = vmatprep.subr.bf16.mxu1 %v1954_v48  ;;  %v2013_v48 = vld [vmem:[%s2739_s1 + $0x244] ss:$8 sps:$4 sm:$0xff]  }
  0x2f   :  { %412 = vmatpush1.bf16.msra.mxu0 %v1956_v51  ;;  %v2016_v51 = vld [vmem:[%s2739_s1 + $0x54] ss:$8 sps:$4 sm:$0xff]  }
  0x30   :  { %816 = vmatpush1.bf16.msra.mxu1 %v1957_v53  ;;  %413 = vmatprep.subr.bf16.mxu0 %v1958_v54  ;;  %v2014_v53 = vld [vmem:[%s2739_s1 + $0x50] ss:$8 sps:$4 sm:$0xff]  }
  0x31   :  { %817 = vmatprep.subr.bf16.mxu1 %v1960_v55  ;;  %v2017_v54 = vld [vmem:[%s2739_s1 + $0x250] ss:$8 sps:$4 sm:$0xff]   ;;  %v2022_v55 = vld [vmem:[%s2739_s1 + $0x64] ss:$8 sps:$4 sm:$0xff]  }
  0x33   :  { %414 = vmatpush1.bf16.msra.mxu0 %v1962_v60  ;;  %v2031_v60 = vld [vmem:[%s2739_s1 + $0x274] ss:$8 sps:$4 sm:$0xff]  }
  0x34   :  { %818 = vmatpush1.bf16.msra.mxu1 %v1963_v62  ;;  %415 = vmatprep.subr.bf16.mxu0 %v1964_v2  ;;  %v2029_v62 = vld [vmem:[%s2739_s1 + $0x270] ss:$8 sps:$4 sm:$0xff]   ;;  %v2032_v2 = vld [vmem:[%s2739_s1 + $0x80] ss:$8 sps:$4 sm:$0xff]  }
  0x35   :  { %819 = vmatprep.subr.bf16.mxu1 %v1966_v3  ;;  %v2035_v3 = vld [vmem:[%s2739_s1 + $0x280] ss:$8 sps:$4 sm:$0xff]  }
  0x37   :  { %416 = vmatpush1.bf16.msra.mxu0 %v1968_v7  ;;  %v2041_v7 = vld [vmem:[%s2739_s1 + $0x290] ss:$8 sps:$4 sm:$0xff]  }
  0x38   :  { %820 = vmatpush1.bf16.msra.mxu1 %v1969_v8  ;;  %417 = vmatprep.subr.bf16.mxu0 %v1970_v10  ;;  %v2046_v8 = vld [vmem:[%s2739_s1 + $0xa4] ss:$8 sps:$4 sm:$0xff]  }
  0x39   :  { %821 = vmatprep.subr.bf16.mxu1 %v1972_v11  ;;  %v2049_v10 = vld [vmem:[%s2739_s1 + $0x2a4] ss:$8 sps:$4 sm:$0xff]   ;;  %v2044_v11 = vld [vmem:[%s2739_s1 + $0xa0] ss:$8 sps:$4 sm:$0xff]  }
  0x3b   :  { %418 = vmatpush1.bf16.msra.mxu0 %v1974_v12  ;;  %v2047_v12 = vld [vmem:[%s2739_s1 + $0x2a0] ss:$8 sps:$4 sm:$0xff]  }
  0x3c   :  { %822 = vmatpush1.bf16.msra.mxu1 %v1975_v14  ;;  %419 = vmatprep.subr.bf16.mxu0 %v1976_v15  ;;  %v2055_v14 = vld [vmem:[%s2739_s1 + $0x2b4] ss:$8 sps:$4 sm:$0xff]   ;;  %v2050_v15 = vld [vmem:[%s2739_s1 + $0xb0] ss:$8 sps:$4 sm:$0xff]  }
  0x3d   :  { %823 = vmatprep.subr.bf16.mxu1 %v1978_v18  ;;  %v2058_v18 = vld [vmem:[%s2739_s1 + $0xc4] ss:$8 sps:$4 sm:$0xff]  }
  0x3f   :  { %420 = vmatpush1.bf16.msra.mxu0 %v1980_v20  ;;  %v2056_v20 = vld [vmem:[%s2739_s1 + $0xc0] ss:$8 sps:$4 sm:$0xff]  }
  0x40   :  { %824 = vmatpush1.bf16.msra.mxu1 %v1981_v21  ;;  %592 = vmatprep.subr.bf16.mxu0 %v1986_v24  ;;  %v2059_v21 = vld [vmem:[%s2739_s1 + $0x2c0] ss:$8 sps:$4 sm:$0xff]   ;;  %v2062_v24 = vld [vmem:[%s2739_s1 + $0xd0] ss:$8 sps:$4 sm:$0xff]  }
  0x41   :  { %994 = vmatprep.subr.bf16.mxu1 %v1989_v25  ;;  %v2065_v25 = vld [vmem:[%s2739_s1 + $0x2d0] ss:$8 sps:$4 sm:$0xff]  }
  0x42   :  { %1617 = vmatmul.mubr.msk.bf16.vlgmr.msra.gmra.mrb[0].mxu0 %vm2309_vm5, %v51_v29  ;;  %v2068_v29 = vld [vmem:[%s2739_s1 + $0xe0] ss:$8 sps:$4 sm:$0xff]  }
  0x43   :  { %826 = vmatmul.mubr.bf16.vlgmr.msra.gmra.mrb[0].mxu1 %v2293_v63  ;;  %593 = vmatpush1.bf16.msra.mxu0 %v1984_v27  ;;  %v2073_v27 = vld [vmem:[%s2739_s1 + $0x2e4] ss:$8 sps:$4 sm:$0xff]  }
  0x44   :  { %995 = vmatpush1.bf16.msra.mxu1 %v1987_v30  ;;  %594 = vmatprep.subr.bf16.mxu0 %v1992_v32  ;;  %v2071_v30 = vld [vmem:[%s2739_s1 + $0x2e0] ss:$8 sps:$4 sm:$0xff]   ;;  %v2076_v32 = vld [vmem:[%s2739_s1 + $0xf4] ss:$8 sps:$4 sm:$0xff]  }
  0x45   :  { %996 = vmatprep.subr.bf16.mxu1 %v1995_v33  ;;  %624 = vmatprep.mubr.bf16.mxu0 %v2270_v52  ;;  %v2019_v52 = vld [vmem:[%s2739_s1 + $0x254] ss:$8 sps:$4 sm:$0xff]   ;;  %v1107_v33 = vld [vmem:[%s2741_s2 + $0x80] sm:$0xff] }
  0x46   :  { %1715 = vmatprep.mubr.msk.bf16.mxu1 %vm2388_vm11, %v63_v34  ;;  %v1108_v34 = vld [vmem:[%s2741_s2 + $0x88] sm:$0xff] }
  0x47   :  { %595 = vmatpush1.bf16.msra.mxu0 %v1990_v36  ;;  %v2074_v36 = vld [vmem:[%s2739_s1 + $0xf0] ss:$8 sps:$4 sm:$0xff]  }
  0x48   :  { %997 = vmatpush1.bf16.msra.mxu1 %v1993_v37  ;;  %596 = vmatprep.subr.bf16.mxu0 %v1998_v38  ;;  %v2077_v37 = vld [vmem:[%s2739_s1 + $0x2f0] ss:$8 sps:$4 sm:$0xff]   ;;  %v54_v38 = vor.u32 %v53_v28, %v33_v9 }
  0x49   :  { %998 = vmatprep.subr.bf16.mxu1 %v2001_v40  ;;  %v1796_v40 = vpack.c.bf16 %v1108_v34, %v1107_v33 }
  0x4a   :  { %v62_v9 = vsel %vm2373_vm10, %v54_v38, 0 }
  0x4b   :  { %597 = vmatpush1.bf16.msra.mxu0 %v1996_v41  ;;  %v1091_v41 = vld [vmem:[%s2741_s2] sm:$0xff] }
  0x4c   :  { %999 = vmatpush1.bf16.msra.mxu1 %v1999_v42  ;;  %598 = vmatprep.subr.bf16.mxu0 %v2004_v43  ;;  %v1092_v42 = vld [vmem:[%s2741_s2 + $0x8] sm:$0xff]  ;;  %v1109_v43 = vld [vmem:[%s2741_s2 + $0x90] sm:$0xff] }
  0x4d   :  { %1000 = vmatprep.subr.bf16.mxu1 %v2007_v44  ;;  %v1110_v44 = vld [vmem:[%s2741_s2 + $0x98] sm:$0xff] }
  0x4f   :  { %599 = vmatpush1.bf16.msra.mxu0 %v2002_v45  ;;  %v1798_v45 = vpack.c.bf16 %v1092_v42, %v1091_v41 }
  0x50   :  { %1001 = vmatpush1.bf16.msra.mxu1 %v2005_v46  ;;  %600 = vmatprep.subr.bf16.mxu0 %v2010_v47  ;;  %v1800_v46 = vpack.c.bf16 %v1110_v44, %v1109_v43  ;;  %v1093_v47 = vld [vmem:[%s2741_s2 + $0x10] sm:$0xff] }
  0x51   :  { %1002 = vmatprep.subr.bf16.mxu1 %v2013_v48  ;;  %v1094_v48 = vld [vmem:[%s2741_s2 + $0x18] sm:$0xff] }
  0x53   :  { %601 = vmatpush1.bf16.msra.mxu0 %v2008_v49  ;;  %v1111_v49 = vld [vmem:[%s2741_s2 + $0xa0] sm:$0xff] }
  0x54   :  { %1003 = vmatpush1.bf16.msra.mxu1 %v2011_v50  ;;  %602 = vmatprep.subr.bf16.mxu0 %v2016_v51  ;;  %v1802_v50 = vpack.c.bf16 %v1094_v48, %v1093_v47  ;;  %v1804_v51 = vpack.c.bf16 %v1112_v31, %v1111_v49 }
  0x55   :  { %1004 = vmatprep.subr.bf16.mxu1 %v2019_v52  ;;  %v1095_v52 = vld [vmem:[%s2741_s2 + $0x20] sm:$0xff] }
  0x57   :  { %603 = vmatpush1.bf16.msra.mxu0 %v2014_v53  ;;  %v1096_v53 = vld [vmem:[%s2741_s2 + $0x28] sm:$0xff] }
  0x58   :  { %1005 = vmatpush1.bf16.msra.mxu1 %v2017_v54  ;;  %604 = vmatprep.subr.bf16.mxu0 %v2022_v55  ;;  %v1806_v54 = vpack.c.bf16 %v1096_v53, %v1095_v52 }
  0x59   :  { %1006 = vmatprep.subr.bf16.mxu1 %v2025_v56  ;;  %v1097_v56 = vld [vmem:[%s2741_s2 + $0x30] sm:$0xff] }
  0x5b   :  { %605 = vmatpush1.bf16.msra.mxu0 %v2020_v57  ;;  %v1098_v57 = vld [vmem:[%s2741_s2 + $0x38] sm:$0xff] }
  0x5c   :  { %1007 = vmatpush1.bf16.msra.mxu1 %v2023_v58  ;;  %606 = vmatprep.subr.bf16.mxu0 %v2028_v59  ;;  %v1810_v58 = vpack.c.bf16 %v1098_v57, %v1097_v56  ;;  %v1115_v59 = vld [vmem:[%s2741_s2 + $0xc0] sm:$0xff] }
  0x5d   :  { %1008 = vmatprep.subr.bf16.mxu1 %v2031_v60  ;;  %v1116_v60 = vld [vmem:[%s2741_s2 + $0xc8] sm:$0xff] }
  0x5f   :  { %607 = vmatpush1.bf16.msra.mxu0 %v2026_v61  ;;  %v1812_v61 = vpack.c.bf16 %v1116_v60, %v1115_v59 }
  0x60   :  { %1009 = vmatpush1.bf16.msra.mxu1 %v2029_v62  ;;  %608 = vmatprep.subr.bf16.mxu0 %v2034_v0  ;;  %v1099_v62 = vld [vmem:[%s2741_s2 + $0x40] sm:$0xff]  ;;  %v1100_v0 = vld [vmem:[%s2741_s2 + $0x48] sm:$0xff] }
  0x61   :  { %1010 = vmatprep.subr.bf16.mxu1 %v2037_v1  ;;  %v1814_v1 = vpack.c.bf16 %v1100_v0, %v1099_v62 }
  0x63   :  { %609 = vmatpush1.bf16.msra.mxu0 %v2032_v2  ;;  %v1117_v2 = vld [vmem:[%s2741_s2 + $0xd0] sm:$0xff] }
  0x64   :  { %1011 = vmatpush1.bf16.msra.mxu1 %v2035_v3  ;;  %610 = vmatprep.subr.bf16.mxu0 %v2040_v4  ;;  %v1118_v3 = vld [vmem:[%s2741_s2 + $0xd8] sm:$0xff] }
  0x65   :  { %1012 = vmatprep.subr.bf16.mxu1 %v2043_v5  ;;  %v1816_v4 = vpack.c.bf16 %v1118_v3, %v1117_v2  ;;  %v1101_v5 = vld [vmem:[%s2741_s2 + $0x50] sm:$0xff] }
  0x67   :  { %611 = vmatpush1.bf16.msra.mxu0 %v2038_v6  ;;  %v1102_v6 = vld [vmem:[%s2741_s2 + $0x58] sm:$0xff] }
  0x68   :  { %1013 = vmatpush1.bf16.msra.mxu1 %v2041_v7  ;;  %612 = vmatprep.subr.bf16.mxu0 %v2046_v8  ;;  %v1818_v7 = vpack.c.bf16 %v1102_v6, %v1101_v5  ;;  %v1119_v8 = vld [vmem:[%s2741_s2 + $0xe0] sm:$0xff] }
  0x69   :  { %1014 = vmatprep.subr.bf16.mxu1 %v2049_v10  ;;  %v1120_v10 = vld [vmem:[%s2741_s2 + $0xe8] sm:$0xff] }
  0x6b   :  { %613 = vmatpush1.bf16.msra.mxu0 %v2044_v11  ;;  %v1820_v11 = vpack.c.bf16 %v1120_v10, %v1119_v8 }
  0x6c   :  { %1015 = vmatpush1.bf16.msra.mxu1 %v2047_v12  ;;  %614 = vmatprep.subr.bf16.mxu0 %v2052_v13  ;;  %v1103_v12 = vld [vmem:[%s2741_s2 + $0x60] sm:$0xff]  ;;  %v1104_v13 = vld [vmem:[%s2741_s2 + $0x68] sm:$0xff] }
  0x6d   :  { %1016 = vmatprep.subr.bf16.mxu1 %v2055_v14  ;;  %v1822_v14 = vpack.c.bf16 %v1104_v13, %v1103_v12 }
  0x6f   :  { %615 = vmatpush1.bf16.msra.mxu0 %v2050_v15  ;;  %v1121_v15 = vld [vmem:[%s2741_s2 + $0xf0] sm:$0xff] }
  0x70   :  { %1017 = vmatpush1.bf16.msra.mxu1 %v2053_v16  ;;  %616 = vmatprep.subr.bf16.mxu0 %v2058_v18  ;;  %v1122_v16 = vld [vmem:[%s2741_s2 + $0xf8] sm:$0xff]  ;;  %v1105_v18 = vld [vmem:[%s2741_s2 + $0x70] sm:$0xff] }
  0x71   :  { %1018 = vmatprep.subr.bf16.mxu1 %v2061_v19  ;;  %v1824_v19 = vpack.c.bf16 %v1122_v16, %v1121_v15 }
  0x73   :  { %617 = vmatpush1.bf16.msra.mxu0 %v2056_v20  ;;  %v1106_v20 = vld [vmem:[%s2741_s2 + $0x78] sm:$0xff] }
  0x74   :  { %1019 = vmatpush1.bf16.msra.mxu1 %v2059_v21  ;;  %618 = vmatprep.subr.bf16.mxu0 %v2064_v22  ;;  %v1826_v21 = vpack.c.bf16 %v1106_v20, %v1105_v18 }
  0x75   :  { %1020 = vmatprep.subr.bf16.mxu1 %v2067_v23 }
  0x77   :  { %619 = vmatpush1.bf16.msra.mxu0 %v2062_v24 }
  0x78   :  { %1021 = vmatpush1.bf16.msra.mxu1 %v2065_v25  ;;  %620 = vmatprep.subr.bf16.mxu0 %v2070_v26 }
  0x79   :  { %1022 = vmatprep.subr.bf16.mxu1 %v2073_v27 }
  0x7b   :  { %621 = vmatpush1.bf16.msra.mxu0 %v2068_v29 }
  0x7c   :  { %1023 = vmatpush1.bf16.msra.mxu1 %v2071_v30  ;;  %622 = vmatprep.subr.bf16.mxu0 %v2076_v32 }
  0x7d   :  { %1024 = vmatprep.subr.bf16.mxu1 %v2079_v17 }
  0x7f   :  { %623 = vmatpush1.bf16.msra.mxu0 %v2074_v36 }
  0x80   :  { %1025 = vmatpush1.bf16.msra.mxu1 %v2077_v37  ;;  %1797 = vmatprep.subr.bf16.mxu0 %v1796_v40 }
  0x81   :  { %1829 = vmatprep.subr.bf16.mxu1 %v1796_v40 }
  0x82   :  { %625 = vmatmul.mubr.bf16.vlgmr.msra.gmra.mrb[0].mxu0 %v2293_v63  ;;  %v1113_v63 = vld [vmem:[%s2741_s2 + $0xb0] sm:$0xff] }
  0x83   :  { %1717 = vmatmul.mubr.msk.bf16.vlgmr.msra.gmra.mrb[0].mxu1 %vm2388_vm11, %v62_v9  ;;  %1799 = vmatpush3.bf16.msra.mxu0 %v1798_v45  ;;  %v1808_v55 = vpack.c.bf16 %v1114_v35, %v1113_v63 }
  0x84   :  { %1831 = vmatpush3.bf16.msra.mxu1 %v1798_v45  ;;  %1801 = vmatprep.subr.bf16.mxu0 %v1800_v46 }
  0x85   :  { %1833 = vmatprep.subr.bf16.mxu1 %v1800_v46 }
  0x87   :  { %1803 = vmatpush3.bf16.msra.mxu0 %v1802_v50 }
  0x88   :  { %1835 = vmatpush3.bf16.msra.mxu1 %v1802_v50  ;;  %1805 = vmatprep.subr.bf16.mxu0 %v1804_v51 }
  0x89   :  { %1837 = vmatprep.subr.bf16.mxu1 %v1804_v51 }
  0x8b   :  { %1807 = vmatpush3.bf16.msra.mxu0 %v1806_v54 }
  0x8c   :  { %1839 = vmatpush3.bf16.msra.mxu1 %v1806_v54  ;;  %1809 = vmatprep.subr.bf16.mxu0 %v1808_v55 }
  0x8d   :  { %1841 = vmatprep.subr.bf16.mxu1 %v1808_v55 }
  0x8f   :  { %1811 = vmatpush3.bf16.msra.mxu0 %v1810_v58 }
  0x90   :  { %1843 = vmatpush3.bf16.msra.mxu1 %v1810_v58  ;;  %1813 = vmatprep.subr.bf16.mxu0 %v1812_v61 }
  0x91   :  { %1845 = vmatprep.subr.bf16.mxu1 %v1812_v61 }
  0x93   :  { %1815 = vmatpush3.bf16.msra.mxu0 %v1814_v1 }
  0x94   :  { %1847 = vmatpush3.bf16.msra.mxu1 %v1814_v1  ;;  %1817 = vmatprep.subr.bf16.mxu0 %v1816_v4 }
  0x95   :  { %1849 = vmatprep.subr.bf16.mxu1 %v1816_v4 }
  0x97   :  { %1819 = vmatpush3.bf16.msra.mxu0 %v1818_v7 }
  0x98   :  { %1851 = vmatpush3.bf16.msra.mxu1 %v1818_v7  ;;  %1821 = vmatprep.subr.bf16.mxu0 %v1820_v11 }
  0x99   :  { %1853 = vmatprep.subr.bf16.mxu1 %v1820_v11 }
  0x9b   :  { %1823 = vmatpush3.bf16.msra.mxu0 %v1822_v14 }
  0x9c   :  { %1855 = vmatpush3.bf16.msra.mxu1 %v1822_v14  ;;  %1825 = vmatprep.subr.bf16.mxu0 %v1824_v19 }
  0x9d   :  { %1857 = vmatprep.subr.bf16.mxu1 %v1824_v19 }
  0x9f   :  { %1827 = vmatpush3.bf16.msra.mxu0 %v1826_v21 }
  0xa0   :  { %1859 = vmatpush3.bf16.msra.mxu1 %v1826_v21 }
 0x155   :  { %v2674_v22 = vpop.f32.mrb[0].mxu0 }
 0x156   :  { %v2676_v23 = vpop.f32.mrb[0].mxu1  ;;  %v1035_v24 = vrot.slane %v2674_v22, 4  ;;  %v1061_v25 = vmul.f32 %v2674_v22, %v2674_v22  ;;  %v2684_v28 = vpop.f32.mrb[1].mxu0 }
 0x157   :  { %v1047_v26 = vrot.slane %v2676_v23, 4  ;;  %v1075_v27 = vmul.f32 %v2676_v23, %v2676_v23  ;;  %v2686_v29 = vpop.f32.mrb[1].mxu1  ;;  %v1041_v30 = vrot.slane %v2684_v28, 4  ;;  %v1062_v32 = vmul.f32 %v2684_v28, %v2684_v28  ;;  %v630_v34 = vpop.f32.mrb[2].mxu0 }
 0x158   :  { %v1053_v17 = vrot.slane %v2686_v29, 4  ;;  %v1076_v33 = vmul.f32 %v2686_v29, %v2686_v29  ;;  %v1032_v36 = vpop.f32.mrb[2].mxu1  ;;  %v1036_v37 = vadd.f32 %v1035_v24, %v2674_v22  ;;  %v1063_v38 = vrot.slane %v1061_v25, 4  ;;  %v631_v42 = vpop.f32.mrb[3].mxu0  ;;  %v1282_v34 = vld [vmem:[%s2742_s3 + $0x38] sm:$0xff] }
 0x159   :  { %v1048_v40 = vadd.f32 %v1047_v26, %v2676_v23  ;;  %v1077_v41 = vrot.slane %v1075_v27, 4  ;;  %v1033_v43 = vpop.f32.mrb[3].mxu1  ;;  %v1042_v44 = vadd.f32 %v1041_v30, %v2684_v28  ;;  %v1069_v9 = vrot.slane %v1062_v32, 4  ;;  %v1278_v26 = vld [vmem:[%s2742_s3 + $0x18] sm:$0xff] }
 0x15a   :  { %v1054_v45 = vadd.f32 %v1053_v17, %v2686_v29  ;;  %v1083_v46 = vrot.slane %v1076_v33, 4  ;;  %v1037_v47 = vrot.slane %v1036_v37, 2  ;;  %v1064_v48 = vadd.f32 %v1063_v38, %v1061_v25  ;;  %v1276_v25 = vld [vmem:[%s2742_s3 + $0x8] sm:$0xff]  ;;  %v1277_v17 = vld [vmem:[%s2742_s3 + $0x10] sm:$0xff]  ;;  %v1279_v38 = vld [vmem:[%s2742_s3 + $0x20] sm:$0xff] }
 0x15b   :  { %v1049_v49 = vrot.slane %v1048_v40, 2  ;;  %v1078_v31 = vadd.f32 %v1077_v41, %v1075_v27  ;;  %v1043_v50 = vrot.slane %v1042_v44, 2  ;;  %v1070_v51 = vadd.f32 %v1069_v9, %v1062_v32  ;;  %v1275_v27 = vld [vmem:[%s2742_s3] sm:$0xff] }
 0x15c   :  { %v1055_v52 = vrot.slane %v1054_v45, 2  ;;  %v1084_v53 = vadd.f32 %v1083_v46, %v1076_v33  ;;  %v1038_v63 = vadd.f32 %v1037_v47, %v1036_v37  ;;  %v1065_v35 = vrot.slane %v1064_v48, 2  ;;  %v1280_v33 = vld [vmem:[%s2742_s3 + $0x28] sm:$0xff] }
 0x15d   :  { %v1050_v54 = vadd.f32 %v1049_v49, %v1048_v40  ;;  %v1079_v55 = vrot.slane %v1078_v31, 2  ;;  %v1044_v56 = vadd.f32 %v1043_v50, %v1042_v44  ;;  %v1071_v57 = vrot.slane %v1070_v51, 2  ;;  %v1281_v40 = vld [vmem:[%s2742_s3 + $0x30] sm:$0xff] }
 0x15e   :  { %v1056_v58 = vadd.f32 %v1055_v52, %v1054_v45  ;;  %v1085_v59 = vrot.slane %v1084_v53, 2  ;;  %v1039_v60 = vrot.slane %v1038_v63, 1  ;;  %v1066_v61 = vadd.f32 %v1065_v35, %v1064_v48  ;;  %v1268_v52 = vld [vmem:[%s2743_s4] sm:$0x1] }
 0x15f   :  { %v1051_v62 = vrot.slane %v1050_v54, 1  ;;  %v1080_v0 = vadd.f32 %v1079_v55, %v1078_v31  ;;  %v1045_v1 = vrot.slane %v1044_v56, 1  ;;  %v1072_v3 = vadd.f32 %v1071_v57, %v1070_v51  ;;  %v1272_v35 = vld [vmem:[%s2744_s5] sm:$0x1] }
 0x160   :  { %v1057_v2 = vrot.slane %v1056_v58, 1  ;;  %v1086_v4 = vadd.f32 %v1085_v59, %v1084_v53  ;;  %v1040_v5 = vadd.f32 %v1039_v60, %v1038_v63  ;;  %v1067_v7 = vrot.slane %v1066_v61, 1 }
 0x161   :  { %v1052_v6 = vadd.f32 %v1051_v62, %v1050_v54  ;;  %v1081_v8 = vrot.slane %v1080_v0, 1  ;;  %v1046_v10 = vadd.f32 %v1045_v1, %v1044_v56  ;;  %v1073_v12 = vrot.slane %v1072_v3, 1 }
 0x162   :  { %v1058_v11 = vadd.f32 %v1057_v2, %v1056_v58  ;;  %v1087_v13 = vrot.slane %v1086_v4, 1  ;;  %v1068_v15 = vadd.f32 %v1067_v7, %v1066_v61  ;;  %v2083_v30 = vmov 0.0  }
 0x163   :  { %v1059_v14 = vadd.f32 %v1052_v6, %v1040_v5  ;;  %v1082_v16 = vadd.f32 %v1081_v8, %v1080_v0  ;;  %v1074_v19 = vadd.f32 %v1073_v12, %v1072_v3  ;;  %v1860_v32 = vpack.c.bf16 %v1278_v26, %v1276_v25 }
 0x164   :  { %v1060_v18 = vadd.f32 %v1058_v11, %v1046_v10  ;;  %v1088_v20 = vadd.f32 %v1087_v13, %v1086_v4  ;;  %v1862_v36 = vpack.c.bf16 %v1277_v17, %v1275_v27  ;;  %v1864_v37 = vpack.c.bf16 %v1282_v34, %v1280_v33 }
 0x165   :  { %v1089_v21 = vadd.f32 %v1082_v16, %v1068_v15  ;;  %1861 = vmatprep.subr.bf16.mxu0 %v1860_v32  ;;  %1869 = vmatprep.subr.bf16.mxu1 %v1860_v32  ;;  %v1866_v41 = vpack.c.bf16 %v1281_v40, %v1279_v38  ;;  %v1434_v56 = vsub.s32 0, %v2233_v39 }
 0x166   :  { %1187 = vmatprep.mubr.f32.mxu0 %v1060_v18  ;;  %v1090_v24 = vadd.f32 %v1088_v20, %v1074_v19 }
 0x167   :  { %1188 = vmatmul.mubr.f32.vlgmr.msra.gmra.mrb[4].mxu0 %v1059_v14 }
 0x168   :  { %1257 = vmatprep.mubr.f32.mxu1 %v1090_v24  ;;  %1351 = vmatprep.mubr.f32.mxu0 %v2083_v30 }
 0x169   :  { %1258 = vmatmul.mubr.f32.vlgmr.msra.gmra.mrb[4].mxu1 %v1089_v21  ;;  %1863 = vmatpush1.bf16.msra.mxu0 %v1862_v36 }
 0x16a   :  { %1425 = vmatprep.mubr.f32.mxu1 %v2083_v30  ;;  %1871 = vmatpush1.bf16.msra.mxu1 %v1862_v36 }
 0x16b   :  { %1865 = vmatprep.subr.bf16.mxu0 %v1864_v37  ;;  %1873 = vmatprep.subr.bf16.mxu1 %v1864_v37 }
 0x16d   :  { %1867 = vmatpush1.bf16.msra.mxu0 %v1866_v41 }
 0x16e   :  { %1875 = vmatpush1.bf16.msra.mxu1 %v1866_v41 }
 0x23a   :  { %v1758_v42 = vpop.f32.mrb[4].mxu0 }
 0x23b   :  { %v1759_v43 = vpop.f32.mrb[5].mxu0 }
 0x23c   :  { %v1760_v44 = vadd.f32 %v1759_v43, %v1758_v42  ;;  %v1793_v9 = vpop.f32.mrb[4].mxu1 }
 0x23d   :  { %v1794_v45 = vpop.f32.mrb[5].mxu1 }
 0x23e   :  { %v1263_v46 = vmul.f32 0.0078125, %v1760_v44  ;;  %v1795_v47 = vadd.f32 %v1794_v45, %v1793_v9 }
 0x240   :  { %v1265_v48 = vmul.f32 %v1263_v46, %v1263_v46  ;;  %v1264_v49 = vmul.f32 0.0078125, %v1795_v47 }
 0x242   :  { %v1266_v31 = vsub.f32 %v1264_v49, %v1265_v48 }
 0x244   :  { %v1267_v50 = vmax.f32 %v1266_v31, 0.0 }
 0x246   :  { %v1269_v51 = vadd.f32 1e-05, %v1267_v50 }
 0x248   :  { %2080 = vrsqrt.f32 %v1269_v51 }
 0x252   :  { %v2081_v53 = vpop.eup %2080 }
 0x253   :  { %v1271_v63 = vmul.f32 %v2081_v53, %v1268_v52 }
 0x255   :  { %1718 = vmatmul.mubr.msk.f32.vlgmr.msra.gmra.mrb[6].mxu0 %vm1283_vm12, %v1271_v63  ;;  %v1273_v54 = vmul.f32 %v1271_v63, %v1263_v46 }
 0x257   :  { %v1274_v55 = vsub.f32 %v1272_v35, %v1273_v54 }
 0x259   :  { %1719 = vmatmul.mubr.msk.f32.vlgmr.msra.gmra.mrb[6].mxu1 %vm1283_vm12, %v1274_v55 }
 0x328   :  { %v1353_v57 = vpop.f32.mrb[6].mxu0 }
 0x329   :  { %v1435_v58 = vrot.slane %v1353_v57, %v1434_v56  ;;  %v1355_v59 = vpop.f32.mrb[7].mxu0 }
 0x32a   :  { %v1439_v60 = vrot.slane %v1355_v59, %v1434_v56 }
 0x32b   :  { %v1440_v61 = vmul.f32 %v1435_v58, %v2674_v22  ;;  %v1463_v62 = vmul.f32 %v1435_v58, %v2676_v23 }
 0x32c   :  { %v1441_v0 = vmul.f32 %v1439_v60, %v2684_v28  ;;  %v1464_v1 = vmul.f32 %v1439_v60, %v2686_v29  ;;  %v1427_v2 = vpop.f32.mrb[6].mxu1 }
 0x32d   :  { %v1445_v3 = vrot.slane %v1427_v2, %v1434_v56  ;;  %v1429_v4 = vpop.f32.mrb[7].mxu1 }
 0x32e   :  { %v1449_v5 = vrot.slane %v1429_v4, %v1434_v56 }
 0x32f   :  { %v1450_v6 = vadd.f32 %v1445_v3, %v1440_v61  ;;  %v1465_v7 = vadd.f32 %v1463_v62, %v1445_v3 }
 0x330   :  { %v1451_v8 = vadd.f32 %v1449_v5, %v1441_v0  ;;  %v1466_v39 = vadd.f32 %v1464_v1, %v1449_v5 }
 0x331   :  { %v1452_v10 = vmax.f32 %v1450_v6, 0.0  ;;  %v1467_v11 = vmax.f32 %v1465_v7, 0.0 }
 0x332   :  { %v1453_v12 = vmax.f32 %v1451_v8, 0.0  ;;  %v1468_v13 = vmax.f32 %v1466_v39, 0.0 }
 0x334   :  { %v1722_v14 = vpack.c.bf16 %v1453_v12, %v1452_v10  ;;  %v1723_v22 = vpack.c.bf16 %v1468_v13, %v1467_v11 }
 0x336   :  { %1462 = vst [vmem:[%s2745_s6] sm:$0xff] %v1722_v14  ;;  %1477 = vst [vmem:[%s2745_s6 + $0x8] sm:$0xff] %v1723_v22 }

// kernel: generator_forward.9
= control target key start
LH: loop header
LB: loop body
LE: loop exit
PB: predicated region body
PF: predicated region fallthrough
CT: control target
= control target key end

     0   :  { %v68_v31 = vlaneseq  ;;  %vm52_vm0 = vcmask 1040384   ;;  %vm53_vm3 = vsmask.f32 256  ;;  %v2146_v61 = vmov 0   ;;  %s2843_s1 = inlined_call_operand.vmem [shape: bf16[4,256,256], index: 1, kind: input, shape index: {}]   ;;  %s2844_s0 = inlined_call_operand.vmem [shape: bf16[16,256], index: 0, kind: input, shape index: {}]   ;;  %s2845_s2 = inlined_call_operand.vmem [shape: f32[256,16], index: 2, kind: input, shape index: {}]   ;;  %s2846_s3 = inlined_call_operand.vmem [shape: f32[16,256], index: 3, kind: input, shape index: {}]   ;;  %s2847_s4 = inlined_call_operand.vmem [shape: f32[1,16], index: 4, kind: input, shape index: {}]   ;;  %s2848_s5 = inlined_call_operand.vmem [shape: f32[1,16], index: 5, kind: input, shape index: {}]   ;;  %s2849_s6 = inlined_call_operand.vmem [shape: bf16[16,512], index: 6, kind: output, shape index: {}]  }
   0x1   :  { %v1949_v0 = vld [vmem:[%s2843_s1 + $0x104] ss:$8 sps:$4 sm:$0xff]   ;;  %v1953_v2 = vld [vmem:[%s2843_s1 + $0x100] ss:$8 sps:$4 sm:$0xff]   ;;  %v1955_v4 = vld [vmem:[%s2843_s1 + $0x114] ss:$8 sps:$4 sm:$0xff]  }
   0x2   :  { %v1951_v1 = vld [vmem:[%s2843_s1 + $0x304] ss:$8 sps:$4 sm:$0xff]   ;;  %418 = vmatprep.subr.bf16.mxu0 %v1949_v0  ;;  %v1954_v3 = vld [vmem:[%s2843_s1 + $0x300] ss:$8 sps:$4 sm:$0xff]   ;;  %v1957_v5 = vld [vmem:[%s2843_s1 + $0x314] ss:$8 sps:$4 sm:$0xff]  }
   0x3   :  { %826 = vmatprep.subr.bf16.mxu1 %v1951_v1  ;;  %419 = vmatpush1.bf16.msra.mxu0 %v1953_v2  ;;  %v1959_v6 = vld [vmem:[%s2843_s1 + $0x110] ss:$8 sps:$4 sm:$0xff]   ;;  %v1961_v8 = vld [vmem:[%s2843_s1 + $0x124] ss:$8 sps:$4 sm:$0xff]   ;;  %v1965_v10 = vld [vmem:[%s2843_s1 + $0x120] ss:$8 sps:$4 sm:$0xff]  }
   0x4   :  { %827 = vmatpush1.bf16.msra.mxu1 %v1954_v3  ;;  %420 = vmatprep.subr.bf16.mxu0 %v1955_v4  ;;  %v1960_v7 = vld [vmem:[%s2843_s1 + $0x310] ss:$8 sps:$4 sm:$0xff]   ;;  %v1963_v9 = vld [vmem:[%s2843_s1 + $0x324] ss:$8 sps:$4 sm:$0xff]   ;;  %v1966_v11 = vld [vmem:[%s2843_s1 + $0x320] ss:$8 sps:$4 sm:$0xff]  }
   0x5   :  { %828 = vmatprep.subr.bf16.mxu1 %v1957_v5  ;;  %v1967_v12 = vld [vmem:[%s2843_s1 + $0x134] ss:$8 sps:$4 sm:$0xff]   ;;  %v1971_v14 = vld [vmem:[%s2843_s1 + $0x130] ss:$8 sps:$4 sm:$0xff]   ;;  %v1973_v16 = vld [vmem:[%s2843_s1 + $0x144] ss:$8 sps:$4 sm:$0xff]  }
   0x6   :  { %v1969_v13 = vld [vmem:[%s2843_s1 + $0x334] ss:$8 sps:$4 sm:$0xff]   ;;  %v1972_v15 = vld [vmem:[%s2843_s1 + $0x330] ss:$8 sps:$4 sm:$0xff]   ;;  %v1975_v17 = vld [vmem:[%s2843_s1 + $0x344] ss:$8 sps:$4 sm:$0xff]  }
   0x7   :  { %421 = vmatpush1.bf16.msra.mxu0 %v1959_v6  ;;  %v1977_v18 = vld [vmem:[%s2843_s1 + $0x140] ss:$8 sps:$4 sm:$0xff]   ;;  %v1979_v20 = vld [vmem:[%s2843_s1 + $0x154] ss:$8 sps:$4 sm:$0xff]   ;;  %v1983_v22 = vld [vmem:[%s2843_s1 + $0x150] ss:$8 sps:$4 sm:$0xff]  }
   0x8   :  { %829 = vmatpush1.bf16.msra.mxu1 %v1960_v7  ;;  %422 = vmatprep.subr.bf16.mxu0 %v1961_v8  ;;  %v1978_v19 = vld [vmem:[%s2843_s1 + $0x340] ss:$8 sps:$4 sm:$0xff]   ;;  %v1981_v21 = vld [vmem:[%s2843_s1 + $0x354] ss:$8 sps:$4 sm:$0xff]   ;;  %v1984_v23 = vld [vmem:[%s2843_s1 + $0x350] ss:$8 sps:$4 sm:$0xff]  }
   0x9   :  { %830 = vmatprep.subr.bf16.mxu1 %v1963_v9  ;;  %v1985_v24 = vld [vmem:[%s2843_s1 + $0x164] ss:$8 sps:$4 sm:$0xff]   ;;  %v1989_v26 = vld [vmem:[%s2843_s1 + $0x160] ss:$8 sps:$4 sm:$0xff]   ;;  %v1991_v28 = vld [vmem:[%s2843_s1 + $0x174] ss:$8 sps:$4 sm:$0xff]  }
   0xa   :  { %v1987_v25 = vld [vmem:[%s2843_s1 + $0x364] ss:$8 sps:$4 sm:$0xff]   ;;  %v1990_v27 = vld [vmem:[%s2843_s1 + $0x360] ss:$8 sps:$4 sm:$0xff]   ;;  %v1993_v29 = vld [vmem:[%s2843_s1 + $0x374] ss:$8 sps:$4 sm:$0xff]  }
   0xb   :  { %423 = vmatpush1.bf16.msra.mxu0 %v1965_v10  ;;  %v1995_v30 = vld [vmem:[%s2843_s1 + $0x170] ss:$8 sps:$4 sm:$0xff]   ;;  %v1997_v33 = vld [vmem:[%s2843_s1 + $0x184] ss:$8 sps:$4 sm:$0xff]   ;;  %v2001_v35 = vld [vmem:[%s2843_s1 + $0x180] ss:$8 sps:$4 sm:$0xff]  }
   0xc   :  { %831 = vmatpush1.bf16.msra.mxu1 %v1966_v11  ;;  %424 = vmatprep.subr.bf16.mxu0 %v1967_v12  ;;  %v1996_v32 = vld [vmem:[%s2843_s1 + $0x370] ss:$8 sps:$4 sm:$0xff]   ;;  %v1999_v34 = vld [vmem:[%s2843_s1 + $0x384] ss:$8 sps:$4 sm:$0xff]   ;;  %v2002_v36 = vld [vmem:[%s2843_s1 + $0x380] ss:$8 sps:$4 sm:$0xff]  }
   0xd   :  { %832 = vmatprep.subr.bf16.mxu1 %v1969_v13  ;;  %v2291_v37 = vshrl.u32 %v68_v31, 7  ;;  %v2003_v38 = vld [vmem:[%s2843_s1 + $0x194] ss:$8 sps:$4 sm:$0xff]   ;;  %v2007_v40 = vld [vmem:[%s2843_s1 + $0x190] ss:$8 sps:$4 sm:$0xff]   ;;  %vm2382_vm6 = vmand %vm52_vm0, %vm53_vm3  ;;  %vm63_vm8 = vcmask 1047552  }
   0xe   :  { %v2005_v39 = vld [vmem:[%s2843_s1 + $0x394] ss:$8 sps:$4 sm:$0xff]   ;;  %v2008_v42 = vld [vmem:[%s2843_s1 + $0x390] ss:$8 sps:$4 sm:$0xff]   ;;  %v2009_v43 = vld [vmem:[%s2843_s1 + $0x1a4] ss:$8 sps:$4 sm:$0xff]  }
   0xf   :  { %425 = vmatpush1.bf16.msra.mxu0 %v1971_v14  ;;  %v2303_v41 = vadd.s32 8, %v2291_v37  ;;  %v2011_v44 = vld [vmem:[%s2843_s1 + $0x3a4] ss:$8 sps:$4 sm:$0xff]   ;;  %v75_v45 = vand.u32 7, %v2291_v37  ;;  %v2013_v46 = vld [vmem:[%s2843_s1 + $0x1a0] ss:$8 sps:$4 sm:$0xff]  }
  0x10   :  { %833 = vmatpush1.bf16.msra.mxu1 %v1972_v15  ;;  %426 = vmatprep.subr.bf16.mxu0 %v1973_v16  ;;  %v2014_v47 = vld [vmem:[%s2843_s1 + $0x3a0] ss:$8 sps:$4 sm:$0xff]   ;;  %v2015_v49 = vld [vmem:[%s2843_s1 + $0x1b4] ss:$8 sps:$4 sm:$0xff]   ;;  %v2019_v52 = vld [vmem:[%s2843_s1 + $0x1b0] ss:$8 sps:$4 sm:$0xff]  }
  0x11   :  { %834 = vmatprep.subr.bf16.mxu1 %v1975_v17  ;;  %v82_v48 = vand.u32 7, %v2303_v41  ;;  %v2017_v50 = vld [vmem:[%s2843_s1 + $0x3b4] ss:$8 sps:$4 sm:$0xff]   ;;  %vm2330_vm1 = vcmp.eq.s32.totalorder %v75_v45, 0  ;;  %v2340_v53 = vld [vmem:[%s2844_s0 + $0x4] ss:$8 sps:$4 sm:$0xff]  }
  0x12   :  { %v2020_v55 = vld [vmem:[%s2843_s1 + $0x3b0] ss:$8 sps:$4 sm:$0xff]   ;;  %v2021_v56 = vld [vmem:[%s2843_s1 + $0x1c4] ss:$8 sps:$4 sm:$0xff]   ;;  %v44_v58 = vshrl.u32 %v2340_v53, 16  ;;  %v47_v59 = vshll.u32 %v2340_v53, 16  ;;  %vm101_vm4 = vmpackc.low %vm2330_vm1, %vm2330_vm1  ;;  %858 = vmatprep.mubr.bf16.mxu1 %v2340_v53 }
  0x13   :  { %427 = vmatpush1.bf16.msra.mxu0 %v1977_v18  ;;  %vm2344_vm2 = vcmp.eq.s32.totalorder %v82_v48, 0  ;;  %v2023_v57 = vld [vmem:[%s2843_s1 + $0x3c4] ss:$8 sps:$4 sm:$0xff]   ;;  %v2025_v60 = vld [vmem:[%s2843_s1 + $0x1c0] ss:$8 sps:$4 sm:$0xff]   ;;  %v103_v62 = vsel %vm101_vm4, 65537, %v2146_v61 }
  0x14   :  { %835 = vmatpush1.bf16.msra.mxu1 %v1978_v19  ;;  %428 = vmatprep.subr.bf16.mxu0 %v1979_v20  ;;  %vm102_vm5 = vmpackc.low %vm2344_vm2, %vm2344_vm2  ;;  %v2026_v63 = vld [vmem:[%s2843_s1 + $0x3c0] ss:$8 sps:$4 sm:$0xff]   ;;  %v46_v0 = vrot.slane %v44_v58, 7  ;;  %v2027_v4 = vld [vmem:[%s2843_s1 + $0x1d4] ss:$8 sps:$4 sm:$0xff]   ;;  %v59_v51 = vrot.slane %v47_v59, 1 }
  0x15   :  { %836 = vmatprep.subr.bf16.mxu1 %v1981_v21  ;;  %v2378_v1 = vld [vmem:[%s2844_s0] ss:$8 sps:$4 sm:$0xff]   ;;  %v104_v3 = vsel %vm102_vm5, 65537, %v2146_v61  ;;  %v2029_v5 = vld [vmem:[%s2843_s1 + $0x3d4] ss:$8 sps:$4 sm:$0xff]   ;;  %vm111_vm10 = vcmp.eq.s32.totalorder %v75_v45, 7 }
  0x16   :  { %v49_v6 = vor.u32 %v47_v59, %v46_v0  ;;  %v1551_v7 = vcombine.low %v103_v62, %v104_v3  ;;  %v2031_v10 = vld [vmem:[%s2843_s1 + $0x1d0] ss:$8 sps:$4 sm:$0xff]   ;;  %v37_v12 = vshrl.u32 %v2378_v1, 16  ;;  %v2033_v13 = vld [vmem:[%s2843_s1 + $0x1e4] ss:$8 sps:$4 sm:$0xff]   ;;  %v40_v18 = vshll.u32 %v2378_v1, 16  ;;  %vm117_vm13 = vmpackc.low %vm111_vm10, %vm111_vm10 }
  0x17   :  { %429 = vmatpush1.bf16.msra.mxu0 %v1983_v22  ;;  %v2032_v11 = vld [vmem:[%s2843_s1 + $0x3d0] ss:$8 sps:$4 sm:$0xff]   ;;  %v2035_v14 = vld [vmem:[%s2843_s1 + $0x3e4] ss:$8 sps:$4 sm:$0xff]   ;;  %v2037_v15 = vld [vmem:[%s2843_s1 + $0x1e0] ss:$8 sps:$4 sm:$0xff]  }
  0x18   :  { %837 = vmatpush1.bf16.msra.mxu1 %v1984_v23  ;;  %430 = vmatprep.subr.bf16.mxu0 %v1985_v24  ;;  %v56_v8 = vsel %vm2382_vm6, 0, %v49_v6  ;;  %vm2397_vm7 = vcmp.eq.s16.totalorder %v1551_v7, 0  ;;  %v2038_v16 = vld [vmem:[%s2843_s1 + $0x3e0] ss:$8 sps:$4 sm:$0xff]   ;;  %v39_v17 = vrot.slane %v37_v12, 7  ;;  %vm112_vm11 = vcmp.eq.s32.totalorder %v82_v48, 7 }
  0x19   :  { %838 = vmatprep.subr.bf16.mxu1 %v1987_v25  ;;  %1682 = vmatprep.mubr.msk.bf16.mxu0 %vm2397_vm7, %v56_v8  ;;  %v2039_v19 = vld [vmem:[%s2843_s1 + $0x1f4] ss:$8 sps:$4 sm:$0xff]   ;;  %v2043_v21 = vld [vmem:[%s2843_s1 + $0x1f0] ss:$8 sps:$4 sm:$0xff]   ;;  %v2050_v24 = vld [vmem:[%s2843_s1 + $0x4] ss:$8 sps:$4 sm:$0xff]  }
  0x1a   :  { %v2041_v20 = vld [vmem:[%s2843_s1 + $0x3f4] ss:$8 sps:$4 sm:$0xff]   ;;  %v2044_v22 = vld [vmem:[%s2843_s1 + $0x3f0] ss:$8 sps:$4 sm:$0xff]   ;;  %v42_v23 = vor.u32 %v40_v18, %v39_v17  ;;  %v2053_v25 = vld [vmem:[%s2843_s1 + $0x204] ss:$8 sps:$4 sm:$0xff]  }
  0x1b   :  { %431 = vmatpush1.bf16.msra.mxu0 %v1989_v26  ;;  %v2048_v26 = vld [vmem:[%s2843_s1] ss:$8 sps:$4 sm:$0xff]   ;;  %v2054_v31 = vld [vmem:[%s2843_s1 + $0x10] ss:$8 sps:$4 sm:$0xff]   ;;  %vm64_vm9 = vsmask.f32 7424  ;;  %vm118_vm14 = vmpackc.low %vm112_vm11, %vm112_vm11 }
  0x1c   :  { %839 = vmatpush1.bf16.msra.mxu1 %v1990_v27  ;;  %432 = vmatprep.subr.bf16.mxu0 %v1991_v28  ;;  %v55_v27 = vsel %vm2382_vm6, 0, %v42_v23  ;;  %v2051_v28 = vld [vmem:[%s2843_s1 + $0x200] ss:$8 sps:$4 sm:$0xff]   ;;  %v2081_v54 = vld [vmem:[%s2843_s1 + $0x250] ss:$8 sps:$4 sm:$0xff]   ;;  %vm2531_vm12 = vmand %vm63_vm8, %vm64_vm9  ;;  %vm1328_vm0 = vcmask 130048  }
  0x1d   :  { %840 = vmatprep.subr.bf16.mxu1 %v1993_v29  ;;  %v2056_v29 = vld [vmem:[%s2843_s1 + $0x14] ss:$8 sps:$4 sm:$0xff]   ;;  %v2087_v45 = vld [vmem:[%s2843_s1 + $0x260] ss:$8 sps:$4 sm:$0xff]   ;;  %v2090_v0 = vld [vmem:[%s2843_s1 + $0x70] ss:$8 sps:$4 sm:$0xff]  }
  0x1e   :  { %v2092_v41 = vld [vmem:[%s2843_s1 + $0x74] ss:$8 sps:$4 sm:$0xff]   ;;  %v2093_v2 = vld [vmem:[%s2843_s1 + $0x270] ss:$8 sps:$4 sm:$0xff]   ;;  %v2101_v3 = vld [vmem:[%s2843_s1 + $0x284] ss:$8 sps:$4 sm:$0xff]  }
  0x1f   :  { %433 = vmatpush1.bf16.msra.mxu0 %v1995_v30  ;;  %v2059_v30 = vld [vmem:[%s2843_s1 + $0x214] ss:$8 sps:$4 sm:$0xff]   ;;  %v2099_v6 = vld [vmem:[%s2843_s1 + $0x280] ss:$8 sps:$4 sm:$0xff]   ;;  %v2102_v9 = vld [vmem:[%s2843_s1 + $0x90] ss:$8 sps:$4 sm:$0xff]  }
  0x20   :  { %841 = vmatpush1.bf16.msra.mxu1 %v1996_v32  ;;  %434 = vmatprep.subr.bf16.mxu0 %v1997_v33  ;;  %v2057_v32 = vld [vmem:[%s2843_s1 + $0x210] ss:$8 sps:$4 sm:$0xff]   ;;  %v2062_v33 = vld [vmem:[%s2843_s1 + $0x24] ss:$8 sps:$4 sm:$0xff]   ;;  %v2095_v48 = vld [vmem:[%s2843_s1 + $0x274] ss:$8 sps:$4 sm:$0xff]  }
  0x21   :  { %842 = vmatprep.subr.bf16.mxu1 %v1999_v34  ;;  %v2065_v34 = vld [vmem:[%s2843_s1 + $0x224] ss:$8 sps:$4 sm:$0xff]   ;;  %v2104_v7 = vld [vmem:[%s2843_s1 + $0x94] ss:$8 sps:$4 sm:$0xff]   ;;  %v2120_v23 = vld [vmem:[%s2843_s1 + $0xc0] ss:$8 sps:$4 sm:$0xff]  }
  0x22   :  { %v2107_v8 = vld [vmem:[%s2843_s1 + $0x294] ss:$8 sps:$4 sm:$0xff]   ;;  %v1144_v59 = vld [vmem:[%s2845_s2 + $0x20] sm:$0xff] }
  0x23   :  { %435 = vmatpush1.bf16.msra.mxu0 %v2001_v35  ;;  %v2060_v35 = vld [vmem:[%s2843_s1 + $0x20] ss:$8 sps:$4 sm:$0xff]   ;;  %v2119_v17 = vld [vmem:[%s2843_s1 + $0x2b4] ss:$8 sps:$4 sm:$0xff]  }
  0x24   :  { %843 = vmatpush1.bf16.msra.mxu1 %v2002_v36  ;;  %436 = vmatprep.subr.bf16.mxu0 %v2003_v38  ;;  %v2063_v36 = vld [vmem:[%s2843_s1 + $0x220] ss:$8 sps:$4 sm:$0xff]   ;;  %v2068_v38 = vld [vmem:[%s2843_s1 + $0x34] ss:$8 sps:$4 sm:$0xff]  }
  0x25   :  { %844 = vmatprep.subr.bf16.mxu1 %v2005_v39  ;;  %v2071_v39 = vld [vmem:[%s2843_s1 + $0x234] ss:$8 sps:$4 sm:$0xff]  }
  0x27   :  { %437 = vmatpush1.bf16.msra.mxu0 %v2007_v40  ;;  %v2066_v40 = vld [vmem:[%s2843_s1 + $0x30] ss:$8 sps:$4 sm:$0xff]  }
  0x28   :  { %845 = vmatpush1.bf16.msra.mxu1 %v2008_v42  ;;  %438 = vmatprep.subr.bf16.mxu0 %v2009_v43  ;;  %v2069_v42 = vld [vmem:[%s2843_s1 + $0x230] ss:$8 sps:$4 sm:$0xff]   ;;  %v2074_v43 = vld [vmem:[%s2843_s1 + $0x44] ss:$8 sps:$4 sm:$0xff]  }
  0x29   :  { %846 = vmatprep.subr.bf16.mxu1 %v2011_v44  ;;  %v2077_v44 = vld [vmem:[%s2843_s1 + $0x244] ss:$8 sps:$4 sm:$0xff]  }
  0x2b   :  { %439 = vmatpush1.bf16.msra.mxu0 %v2013_v46  ;;  %v2072_v46 = vld [vmem:[%s2843_s1 + $0x40] ss:$8 sps:$4 sm:$0xff]  }
  0x2c   :  { %847 = vmatpush1.bf16.msra.mxu1 %v2014_v47  ;;  %440 = vmatprep.subr.bf16.mxu0 %v2015_v49  ;;  %v2075_v47 = vld [vmem:[%s2843_s1 + $0x240] ss:$8 sps:$4 sm:$0xff]   ;;  %v2080_v49 = vld [vmem:[%s2843_s1 + $0x54] ss:$8 sps:$4 sm:$0xff]  }
  0x2d   :  { %848 = vmatprep.subr.bf16.mxu1 %v2017_v50  ;;  %v2083_v50 = vld [vmem:[%s2843_s1 + $0x254] ss:$8 sps:$4 sm:$0xff]  }
  0x2f   :  { %441 = vmatpush1.bf16.msra.mxu0 %v2019_v52  ;;  %v2078_v52 = vld [vmem:[%s2843_s1 + $0x50] ss:$8 sps:$4 sm:$0xff]  }
  0x30   :  { %849 = vmatpush1.bf16.msra.mxu1 %v2020_v55  ;;  %442 = vmatprep.subr.bf16.mxu0 %v2021_v56  ;;  %v2086_v55 = vld [vmem:[%s2843_s1 + $0x64] ss:$8 sps:$4 sm:$0xff]  }
  0x31   :  { %850 = vmatprep.subr.bf16.mxu1 %v2023_v57  ;;  %v2089_v56 = vld [vmem:[%s2843_s1 + $0x264] ss:$8 sps:$4 sm:$0xff]   ;;  %v60_v57 = vor.u32 %v59_v51, %v44_v58  ;;  %v120_v58 = vsel %vm118_vm14, 65537, %v2146_v61  ;;  %v1142_v51 = vld [vmem:[%s2845_s2 + $0x10] sm:$0xff] }
  0x33   :  { %443 = vmatpush1.bf16.msra.mxu0 %v2025_v60  ;;  %v2084_v60 = vld [vmem:[%s2843_s1 + $0x60] ss:$8 sps:$4 sm:$0xff]   ;;  %v67_v62 = vsel %vm2531_vm12, %v60_v57, 0 }
  0x34   :  { %851 = vmatpush1.bf16.msra.mxu1 %v2026_v63  ;;  %444 = vmatprep.subr.bf16.mxu0 %v2027_v4 }
  0x35   :  { %852 = vmatprep.subr.bf16.mxu1 %v2029_v5  ;;  %v2096_v5 = vld [vmem:[%s2843_s1 + $0x80] ss:$8 sps:$4 sm:$0xff]  }
  0x37   :  { %445 = vmatpush1.bf16.msra.mxu0 %v2031_v10  ;;  %v2105_v10 = vld [vmem:[%s2843_s1 + $0x290] ss:$8 sps:$4 sm:$0xff]  }
  0x38   :  { %853 = vmatpush1.bf16.msra.mxu1 %v2032_v11  ;;  %446 = vmatprep.subr.bf16.mxu0 %v2033_v13  ;;  %v2110_v11 = vld [vmem:[%s2843_s1 + $0xa4] ss:$8 sps:$4 sm:$0xff]  }
  0x39   :  { %854 = vmatprep.subr.bf16.mxu1 %v2035_v14  ;;  %v2113_v13 = vld [vmem:[%s2843_s1 + $0x2a4] ss:$8 sps:$4 sm:$0xff]   ;;  %v2108_v14 = vld [vmem:[%s2843_s1 + $0xa0] ss:$8 sps:$4 sm:$0xff]  }
  0x3b   :  { %447 = vmatpush1.bf16.msra.mxu0 %v2037_v15  ;;  %v2111_v15 = vld [vmem:[%s2843_s1 + $0x2a0] ss:$8 sps:$4 sm:$0xff]  }
  0x3c   :  { %855 = vmatpush1.bf16.msra.mxu1 %v2038_v16  ;;  %448 = vmatprep.subr.bf16.mxu0 %v2039_v19  ;;  %v2116_v16 = vld [vmem:[%s2843_s1 + $0xb4] ss:$8 sps:$4 sm:$0xff]   ;;  %v2114_v19 = vld [vmem:[%s2843_s1 + $0xb0] ss:$8 sps:$4 sm:$0xff]  }
  0x3d   :  { %856 = vmatprep.subr.bf16.mxu1 %v2041_v20  ;;  %v2117_v20 = vld [vmem:[%s2843_s1 + $0x2b0] ss:$8 sps:$4 sm:$0xff]  }
  0x3f   :  { %449 = vmatpush1.bf16.msra.mxu0 %v2043_v21  ;;  %v2122_v21 = vld [vmem:[%s2843_s1 + $0xc4] ss:$8 sps:$4 sm:$0xff]  }
  0x40   :  { %857 = vmatpush1.bf16.msra.mxu1 %v2044_v22  ;;  %623 = vmatprep.subr.bf16.mxu0 %v2050_v24  ;;  %v2125_v22 = vld [vmem:[%s2843_s1 + $0x2c4] ss:$8 sps:$4 sm:$0xff]   ;;  %v2123_v24 = vld [vmem:[%s2843_s1 + $0x2c0] ss:$8 sps:$4 sm:$0xff]  }
  0x41   :  { %1029 = vmatprep.subr.bf16.mxu1 %v2053_v25  ;;  %v2128_v25 = vld [vmem:[%s2843_s1 + $0xd4] ss:$8 sps:$4 sm:$0xff]  }
  0x42   :  { %1684 = vmatmul.mubr.msk.bf16.vlgmr.msra.gmra.mrb[0].mxu0 %vm2397_vm7, %v55_v27  ;;  %v2126_v27 = vld [vmem:[%s2843_s1 + $0xd0] ss:$8 sps:$4 sm:$0xff]  }
  0x43   :  { %859 = vmatmul.mubr.bf16.vlgmr.msra.gmra.mrb[0].mxu1 %v2378_v1  ;;  %624 = vmatpush1.bf16.msra.mxu0 %v2048_v26  ;;  %v2131_v26 = vld [vmem:[%s2843_s1 + $0x2d4] ss:$8 sps:$4 sm:$0xff]  }
  0x44   :  { %1030 = vmatpush1.bf16.msra.mxu1 %v2051_v28  ;;  %625 = vmatprep.subr.bf16.mxu0 %v2056_v29  ;;  %v2129_v28 = vld [vmem:[%s2843_s1 + $0x2d0] ss:$8 sps:$4 sm:$0xff]   ;;  %v2134_v29 = vld [vmem:[%s2843_s1 + $0xe4] ss:$8 sps:$4 sm:$0xff]  }
  0x45   :  { %1031 = vmatprep.subr.bf16.mxu1 %v2059_v30  ;;  %655 = vmatprep.mubr.bf16.mxu0 %v2340_v53  ;;  %v119_v53 = vsel %vm117_vm13, 65537, %v2146_v61  ;;  %v2098_v61 = vld [vmem:[%s2843_s1 + $0x84] ss:$8 sps:$4 sm:$0xff]  }
  0x46   :  { %v1552_v63 = vcombine.low %v119_v53, %v120_v58  ;;  %v2137_v30 = vld [vmem:[%s2843_s1 + $0x2e4] ss:$8 sps:$4 sm:$0xff]   ;;  %v1146_v53 = vld [vmem:[%s2845_s2 + $0x30] sm:$0xff]  ;;  %v1147_v58 = vld [vmem:[%s2845_s2 + $0x38] sm:$0xff] }
  0x47   :  { %626 = vmatpush1.bf16.msra.mxu0 %v2054_v31  ;;  %v57_v31 = vrot.slane %v40_v18, 1  ;;  %v2143_v18 = vld [vmem:[%s2843_s1 + $0x2f4] ss:$8 sps:$4 sm:$0xff]  }
  0x48   :  { %1032 = vmatpush1.bf16.msra.mxu1 %v2057_v32  ;;  %627 = vmatprep.subr.bf16.mxu0 %v2062_v33  ;;  %vm2563_vm15 = vcmp.eq.s16.totalorder %v1552_v63, 0  ;;  %v2132_v32 = vld [vmem:[%s2843_s1 + $0xe0] ss:$8 sps:$4 sm:$0xff]  }
  0x49   :  { %1033 = vmatprep.subr.bf16.mxu1 %v2065_v34  ;;  %1782 = vmatprep.mubr.msk.bf16.mxu1 %vm2563_vm15, %v67_v62  ;;  %v2135_v33 = vld [vmem:[%s2843_s1 + $0x2e0] ss:$8 sps:$4 sm:$0xff]   ;;  %v2140_v34 = vld [vmem:[%s2843_s1 + $0xf4] ss:$8 sps:$4 sm:$0xff]   ;;  %v1881_v62 = vpack.c.bf16 %v1147_v58, %v1146_v53 }
  0x4a   :  { %v1164_v63 = vld [vmem:[%s2845_s2 + $0xc0] sm:$0xff] }
  0x4b   :  { %628 = vmatpush1.bf16.msra.mxu0 %v2060_v35  ;;  %v1156_v35 = vld [vmem:[%s2845_s2 + $0x80] sm:$0xff] }
  0x4c   :  { %1034 = vmatpush1.bf16.msra.mxu1 %v2063_v36  ;;  %629 = vmatprep.subr.bf16.mxu0 %v2068_v38  ;;  %v1157_v36 = vld [vmem:[%s2845_s2 + $0x88] sm:$0xff]  ;;  %v2138_v38 = vld [vmem:[%s2843_s1 + $0xf0] ss:$8 sps:$4 sm:$0xff]  }
  0x4d   :  { %1035 = vmatprep.subr.bf16.mxu1 %v2071_v39  ;;  %v2141_v39 = vld [vmem:[%s2843_s1 + $0x2f0] ss:$8 sps:$4 sm:$0xff]  }
  0x4f   :  { %630 = vmatpush1.bf16.msra.mxu0 %v2066_v40  ;;  %v58_v40 = vor.u32 %v57_v31, %v37_v12 }
  0x50   :  { %1036 = vmatpush1.bf16.msra.mxu1 %v2069_v42  ;;  %631 = vmatprep.subr.bf16.mxu0 %v2074_v43  ;;  %v1867_v42 = vpack.c.bf16 %v1157_v36, %v1156_v35  ;;  %v1140_v43 = vld [vmem:[%s2845_s2] sm:$0xff] }
  0x51   :  { %1037 = vmatprep.subr.bf16.mxu1 %v2077_v44  ;;  %v1141_v44 = vld [vmem:[%s2845_s2 + $0x8] sm:$0xff]  ;;  %v66_v12 = vsel %vm2531_vm12, %v58_v40, 0 }
  0x53   :  { %632 = vmatpush1.bf16.msra.mxu0 %v2072_v46  ;;  %v1158_v46 = vld [vmem:[%s2845_s2 + $0x90] sm:$0xff] }
  0x54   :  { %1038 = vmatpush1.bf16.msra.mxu1 %v2075_v47  ;;  %633 = vmatprep.subr.bf16.mxu0 %v2080_v49  ;;  %v1159_v47 = vld [vmem:[%s2845_s2 + $0x98] sm:$0xff]  ;;  %v1869_v49 = vpack.c.bf16 %v1141_v44, %v1140_v43 }
  0x55   :  { %1039 = vmatprep.subr.bf16.mxu1 %v2083_v50  ;;  %v1871_v50 = vpack.c.bf16 %v1159_v47, %v1158_v46 }
  0x57   :  { %634 = vmatpush1.bf16.msra.mxu0 %v2078_v52  ;;  %v1143_v52 = vld [vmem:[%s2845_s2 + $0x18] sm:$0xff] }
  0x58   :  { %1040 = vmatpush1.bf16.msra.mxu1 %v2081_v54  ;;  %635 = vmatprep.subr.bf16.mxu0 %v2086_v55  ;;  %v1160_v54 = vld [vmem:[%s2845_s2 + $0xa0] sm:$0xff]  ;;  %v1161_v55 = vld [vmem:[%s2845_s2 + $0xa8] sm:$0xff] }
  0x59   :  { %1041 = vmatprep.subr.bf16.mxu1 %v2089_v56  ;;  %v1873_v56 = vpack.c.bf16 %v1143_v52, %v1142_v51  ;;  %v1875_v57 = vpack.c.bf16 %v1161_v55, %v1160_v54 }
  0x5b   :  { %636 = vmatpush1.bf16.msra.mxu0 %v2084_v60  ;;  %v1145_v60 = vld [vmem:[%s2845_s2 + $0x28] sm:$0xff] }
  0x5c   :  { %1042 = vmatpush1.bf16.msra.mxu1 %v2087_v45  ;;  %637 = vmatprep.subr.bf16.mxu0 %v2092_v41  ;;  %v1162_v45 = vld [vmem:[%s2845_s2 + $0xb0] sm:$0xff]  ;;  %v1163_v41 = vld [vmem:[%s2845_s2 + $0xb8] sm:$0xff] }
  0x5d   :  { %1043 = vmatprep.subr.bf16.mxu1 %v2095_v48  ;;  %v1879_v48 = vpack.c.bf16 %v1163_v41, %v1162_v45 }
  0x5f   :  { %638 = vmatpush1.bf16.msra.mxu0 %v2090_v0  ;;  %v1165_v0 = vld [vmem:[%s2845_s2 + $0xc8] sm:$0xff] }
  0x60   :  { %1044 = vmatpush1.bf16.msra.mxu1 %v2093_v2  ;;  %639 = vmatprep.subr.bf16.mxu0 %v2098_v61  ;;  %v1883_v2 = vpack.c.bf16 %v1165_v0, %v1164_v63  ;;  %v1148_v61 = vld [vmem:[%s2845_s2 + $0x40] sm:$0xff] }
  0x61   :  { %1045 = vmatprep.subr.bf16.mxu1 %v2101_v3  ;;  %v1149_v3 = vld [vmem:[%s2845_s2 + $0x48] sm:$0xff] }
  0x62   :  { %v1885_v4 = vpack.c.bf16 %v1149_v3, %v1148_v61 }
  0x63   :  { %640 = vmatpush1.bf16.msra.mxu0 %v2096_v5  ;;  %v1166_v5 = vld [vmem:[%s2845_s2 + $0xd0] sm:$0xff] }
  0x64   :  { %1046 = vmatpush1.bf16.msra.mxu1 %v2099_v6  ;;  %641 = vmatprep.subr.bf16.mxu0 %v2104_v7  ;;  %v1167_v6 = vld [vmem:[%s2845_s2 + $0xd8] sm:$0xff] }
  0x65   :  { %1047 = vmatprep.subr.bf16.mxu1 %v2107_v8  ;;  %v1887_v7 = vpack.c.bf16 %v1167_v6, %v1166_v5  ;;  %v1150_v8 = vld [vmem:[%s2845_s2 + $0x50] sm:$0xff] }
  0x67   :  { %642 = vmatpush1.bf16.msra.mxu0 %v2102_v9  ;;  %v1151_v9 = vld [vmem:[%s2845_s2 + $0x58] sm:$0xff] }
  0x68   :  { %1048 = vmatpush1.bf16.msra.mxu1 %v2105_v10  ;;  %643 = vmatprep.subr.bf16.mxu0 %v2110_v11  ;;  %v1889_v10 = vpack.c.bf16 %v1151_v9, %v1150_v8  ;;  %v1168_v11 = vld [vmem:[%s2845_s2 + $0xe0] sm:$0xff] }
  0x69   :  { %1049 = vmatprep.subr.bf16.mxu1 %v2113_v13  ;;  %v1169_v13 = vld [vmem:[%s2845_s2 + $0xe8] sm:$0xff] }
  0x6b   :  { %644 = vmatpush1.bf16.msra.mxu0 %v2108_v14  ;;  %v1891_v14 = vpack.c.bf16 %v1169_v13, %v1168_v11 }
  0x6c   :  { %1050 = vmatpush1.bf16.msra.mxu1 %v2111_v15  ;;  %645 = vmatprep.subr.bf16.mxu0 %v2116_v16  ;;  %v1152_v15 = vld [vmem:[%s2845_s2 + $0x60] sm:$0xff]  ;;  %v1153_v16 = vld [vmem:[%s2845_s2 + $0x68] sm:$0xff] }
  0x6d   :  { %1051 = vmatprep.subr.bf16.mxu1 %v2119_v17  ;;  %v1893_v17 = vpack.c.bf16 %v1153_v16, %v1152_v15 }
  0x6f   :  { %646 = vmatpush1.bf16.msra.mxu0 %v2114_v19  ;;  %v1170_v19 = vld [vmem:[%s2845_s2 + $0xf0] sm:$0xff] }
  0x70   :  { %1052 = vmatpush1.bf16.msra.mxu1 %v2117_v20  ;;  %647 = vmatprep.subr.bf16.mxu0 %v2122_v21  ;;  %v1171_v20 = vld [vmem:[%s2845_s2 + $0xf8] sm:$0xff]  ;;  %v1154_v21 = vld [vmem:[%s2845_s2 + $0x70] sm:$0xff] }
  0x71   :  { %1053 = vmatprep.subr.bf16.mxu1 %v2125_v22  ;;  %v1895_v22 = vpack.c.bf16 %v1171_v20, %v1170_v19 }
  0x73   :  { %648 = vmatpush1.bf16.msra.mxu0 %v2120_v23  ;;  %v1155_v23 = vld [vmem:[%s2845_s2 + $0x78] sm:$0xff] }
  0x74   :  { %1054 = vmatpush1.bf16.msra.mxu1 %v2123_v24  ;;  %649 = vmatprep.subr.bf16.mxu0 %v2128_v25  ;;  %v1897_v24 = vpack.c.bf16 %v1155_v23, %v1154_v21 }
  0x75   :  { %1055 = vmatprep.subr.bf16.mxu1 %v2131_v26 }
  0x77   :  { %650 = vmatpush1.bf16.msra.mxu0 %v2126_v27 }
  0x78   :  { %1056 = vmatpush1.bf16.msra.mxu1 %v2129_v28  ;;  %651 = vmatprep.subr.bf16.mxu0 %v2134_v29 }
  0x79   :  { %1057 = vmatprep.subr.bf16.mxu1 %v2137_v30 }
  0x7b   :  { %652 = vmatpush1.bf16.msra.mxu0 %v2132_v32 }
  0x7c   :  { %1058 = vmatpush1.bf16.msra.mxu1 %v2135_v33  ;;  %653 = vmatprep.subr.bf16.mxu0 %v2140_v34 }
  0x7d   :  { %1059 = vmatprep.subr.bf16.mxu1 %v2143_v18 }
  0x7f   :  { %654 = vmatpush1.bf16.msra.mxu0 %v2138_v38 }
  0x80   :  { %1060 = vmatpush1.bf16.msra.mxu1 %v2141_v39  ;;  %1868 = vmatprep.subr.bf16.mxu0 %v1867_v42 }
  0x81   :  { %1900 = vmatprep.subr.bf16.mxu1 %v1867_v42 }
  0x82   :  { %656 = vmatmul.mubr.bf16.vlgmr.msra.gmra.mrb[0].mxu0 %v2378_v1  ;;  %v1877_v1 = vpack.c.bf16 %v1145_v60, %v1144_v59 }
  0x83   :  { %1784 = vmatmul.mubr.msk.bf16.vlgmr.msra.gmra.mrb[0].mxu1 %vm2563_vm15, %v66_v12  ;;  %1870 = vmatpush3.bf16.msra.mxu0 %v1869_v49 }
  0x84   :  { %1902 = vmatpush3.bf16.msra.mxu1 %v1869_v49  ;;  %1872 = vmatprep.subr.bf16.mxu0 %v1871_v50 }
  0x85   :  { %1904 = vmatprep.subr.bf16.mxu1 %v1871_v50 }
  0x87   :  { %1874 = vmatpush3.bf16.msra.mxu0 %v1873_v56 }
  0x88   :  { %1906 = vmatpush3.bf16.msra.mxu1 %v1873_v56  ;;  %1876 = vmatprep.subr.bf16.mxu0 %v1875_v57 }
  0x89   :  { %1908 = vmatprep.subr.bf16.mxu1 %v1875_v57 }
  0x8b   :  { %1878 = vmatpush3.bf16.msra.mxu0 %v1877_v1 }
  0x8c   :  { %1910 = vmatpush3.bf16.msra.mxu1 %v1877_v1  ;;  %1880 = vmatprep.subr.bf16.mxu0 %v1879_v48 }
  0x8d   :  { %1912 = vmatprep.subr.bf16.mxu1 %v1879_v48 }
  0x8f   :  { %1882 = vmatpush3.bf16.msra.mxu0 %v1881_v62 }
  0x90   :  { %1914 = vmatpush3.bf16.msra.mxu1 %v1881_v62  ;;  %1884 = vmatprep.subr.bf16.mxu0 %v1883_v2 }
  0x91   :  { %1916 = vmatprep.subr.bf16.mxu1 %v1883_v2 }
  0x93   :  { %1886 = vmatpush3.bf16.msra.mxu0 %v1885_v4 }
  0x94   :  { %1918 = vmatpush3.bf16.msra.mxu1 %v1885_v4  ;;  %1888 = vmatprep.subr.bf16.mxu0 %v1887_v7 }
  0x95   :  { %1920 = vmatprep.subr.bf16.mxu1 %v1887_v7 }
  0x97   :  { %1890 = vmatpush3.bf16.msra.mxu0 %v1889_v10 }
  0x98   :  { %1922 = vmatpush3.bf16.msra.mxu1 %v1889_v10  ;;  %1892 = vmatprep.subr.bf16.mxu0 %v1891_v14 }
  0x99   :  { %1924 = vmatprep.subr.bf16.mxu1 %v1891_v14 }
  0x9b   :  { %1894 = vmatpush3.bf16.msra.mxu0 %v1893_v17 }
  0x9c   :  { %1926 = vmatpush3.bf16.msra.mxu1 %v1893_v17  ;;  %1896 = vmatprep.subr.bf16.mxu0 %v1895_v22 }
  0x9d   :  { %1928 = vmatprep.subr.bf16.mxu1 %v1895_v22 }
  0x9f   :  { %1898 = vmatpush3.bf16.msra.mxu0 %v1897_v24 }
  0xa0   :  { %1930 = vmatpush3.bf16.msra.mxu1 %v1897_v24 }
 0x155   :  { %v2764_v25 = vpop.f32.mrb[0].mxu0 }
 0x156   :  { %v2766_v26 = vpop.f32.mrb[0].mxu1  ;;  %v2768_v27 = vpop.f32.mrb[1].mxu0  ;;  %v1102_v29 = vmul.f32 %v2764_v25, %v2764_v25 }
 0x157   :  { %v2770_v28 = vpop.f32.mrb[1].mxu1  ;;  %v1120_v30 = vmul.f32 %v2766_v26, %v2766_v26  ;;  %v1103_v31 = vmul.f32 %v2768_v27, %v2768_v27  ;;  %v2780_v33 = vpop.f32.mrb[2].mxu0 }
 0x158   :  { %v1121_v32 = vmul.f32 %v2770_v28, %v2770_v28  ;;  %v2782_v34 = vpop.f32.mrb[2].mxu1  ;;  %v1072_v18 = vadd.f32 %v2780_v33, %v2764_v25  ;;  %v1104_v35 = vmul.f32 %v2780_v33, %v2780_v33  ;;  %v2792_v39 = vpop.f32.mrb[3].mxu0 }
 0x159   :  { %v1086_v36 = vadd.f32 %v2782_v34, %v2766_v26  ;;  %v1122_v38 = vmul.f32 %v2782_v34, %v2782_v34  ;;  %v2794_v40 = vpop.f32.mrb[3].mxu1  ;;  %v1079_v42 = vadd.f32 %v2792_v39, %v2768_v27  ;;  %v1105_v43 = vmul.f32 %v2792_v39, %v2792_v39 }
 0x15a   :  { %v1093_v44 = vadd.f32 %v2794_v40, %v2770_v28  ;;  %v1123_v46 = vmul.f32 %v2794_v40, %v2794_v40  ;;  %v1073_v47 = vrot.slane %v1072_v18, 4  ;;  %v1106_v12 = vadd.f32 %v1104_v35, %v1102_v29 }
 0x15b   :  { %v1087_v49 = vrot.slane %v1086_v36, 4  ;;  %v1124_v50 = vadd.f32 %v1122_v38, %v1120_v30  ;;  %v1080_v51 = vrot.slane %v1079_v42, 4  ;;  %v1113_v52 = vadd.f32 %v1105_v43, %v1103_v31 }
 0x15c   :  { %v1094_v54 = vrot.slane %v1093_v44, 4  ;;  %v1131_v55 = vadd.f32 %v1123_v46, %v1121_v32  ;;  %v1074_v56 = vadd.f32 %v1073_v47, %v1072_v18  ;;  %v1107_v57 = vrot.slane %v1106_v12, 4 }
 0x15d   :  { %v1088_v59 = vadd.f32 %v1087_v49, %v1086_v36  ;;  %v1125_v60 = vrot.slane %v1124_v50, 4  ;;  %v1081_v1 = vadd.f32 %v1080_v51, %v1079_v42  ;;  %v1114_v45 = vrot.slane %v1113_v52, 4  ;;  %v1327_v49 = vld [vmem:[%s2846_s3 + $0x18] sm:$0xff] }
 0x15e   :  { %v1095_v41 = vadd.f32 %v1094_v54, %v1093_v44  ;;  %v1132_v48 = vrot.slane %v1131_v55, 4  ;;  %v1075_v53 = vrot.slane %v1074_v56, 2  ;;  %v1108_v58 = vadd.f32 %v1107_v57, %v1106_v12  ;;  %v1325_v12 = vld [vmem:[%s2846_s3 + $0x8] sm:$0xff]  ;;  %v1326_v54 = vld [vmem:[%s2846_s3 + $0x10] sm:$0xff] }
 0x15f   :  { %v1089_v62 = vrot.slane %v1088_v59, 2  ;;  %v1126_v63 = vadd.f32 %v1125_v60, %v1124_v50  ;;  %v1082_v0 = vrot.slane %v1081_v1, 2  ;;  %v1115_v2 = vadd.f32 %v1114_v45, %v1113_v52  ;;  %v1324_v50 = vld [vmem:[%s2846_s3] sm:$0xff] }
 0x160   :  { %v1096_v61 = vrot.slane %v1095_v41, 2  ;;  %v1133_v3 = vadd.f32 %v1132_v48, %v1131_v55  ;;  %v1076_v4 = vadd.f32 %v1075_v53, %v1074_v56  ;;  %v1109_v5 = vrot.slane %v1108_v58, 2 }
 0x161   :  { %v1090_v6 = vadd.f32 %v1089_v62, %v1088_v59  ;;  %v1127_v7 = vrot.slane %v1126_v63, 2  ;;  %v1083_v8 = vadd.f32 %v1082_v0, %v1081_v1  ;;  %v1116_v9 = vrot.slane %v1115_v2, 2  ;;  %v1317_v0 = vld [vmem:[%s2847_s4] sm:$0x1] }
 0x162   :  { %v1097_v10 = vadd.f32 %v1096_v61, %v1095_v41  ;;  %v1134_v11 = vrot.slane %v1133_v3, 2  ;;  %v1077_v13 = vrot.slane %v1076_v4, 1  ;;  %v1110_v14 = vadd.f32 %v1109_v5, %v1108_v58 }
 0x163   :  { %v1091_v15 = vrot.slane %v1090_v6, 1  ;;  %v1128_v16 = vadd.f32 %v1127_v7, %v1126_v63  ;;  %v1084_v17 = vrot.slane %v1083_v8, 1  ;;  %v1117_v20 = vadd.f32 %v1116_v9, %v1115_v2 }
 0x164   :  { %v1098_v19 = vrot.slane %v1097_v10, 1  ;;  %v1135_v21 = vadd.f32 %v1134_v11, %v1133_v3  ;;  %v1078_v22 = vadd.f32 %v1077_v13, %v1076_v4  ;;  %v1111_v24 = vrot.slane %v1110_v14, 1  ;;  %v1321_v3 = vld [vmem:[%s2848_s5] sm:$0x1] }
 0x165   :  { %v1092_v23 = vadd.f32 %v1091_v15, %v1090_v6  ;;  %v1129_v29 = vrot.slane %v1128_v16, 1  ;;  %v1085_v30 = vadd.f32 %v1084_v17, %v1083_v8  ;;  %v1118_v32 = vrot.slane %v1117_v20, 1 }
 0x166   :  { %v1099_v31 = vadd.f32 %v1098_v19, %v1097_v10  ;;  %v1136_v18 = vrot.slane %v1135_v21, 1  ;;  %v1112_v36 = vadd.f32 %v1111_v24, %v1110_v14  ;;  %v2147_v51 = vmov 0.0  }
 0x167   :  { %v1100_v35 = vadd.f32 %v1092_v23, %v1078_v22  ;;  %v1130_v38 = vadd.f32 %v1129_v29, %v1128_v16  ;;  %v1119_v43 = vadd.f32 %v1118_v32, %v1117_v20  ;;  %v1931_v52 = vpack.c.bf16 %v1327_v49, %v1325_v12 }
 0x168   :  { %v1101_v42 = vadd.f32 %v1099_v31, %v1085_v30  ;;  %v1137_v44 = vadd.f32 %v1136_v18, %v1135_v21  ;;  %v1933_v55 = vpack.c.bf16 %v1326_v54, %v1324_v50  ;;  %v1479_v6 = vsub.s32 0, %v2291_v37 }
 0x169   :  { %v1138_v46 = vadd.f32 %v1130_v38, %v1112_v36  ;;  %1932 = vmatprep.subr.bf16.mxu0 %v1931_v52  ;;  %1936 = vmatprep.subr.bf16.mxu1 %v1931_v52 }
 0x16a   :  { %1236 = vmatprep.mubr.f32.mxu0 %v1101_v42  ;;  %v1139_v47 = vadd.f32 %v1137_v44, %v1119_v43 }
 0x16b   :  { %1237 = vmatmul.mubr.f32.vlgmr.msra.gmra.mrb[4].mxu0 %v1100_v35 }
 0x16c   :  { %1306 = vmatprep.mubr.f32.mxu1 %v1139_v47  ;;  %1396 = vmatprep.mubr.f32.mxu0 %v2147_v51 }
 0x16d   :  { %1307 = vmatmul.mubr.f32.vlgmr.msra.gmra.mrb[4].mxu1 %v1138_v46  ;;  %1934 = vmatpush1.bf16.msra.mxu0 %v1933_v55 }
 0x16e   :  { %1470 = vmatprep.mubr.f32.mxu1 %v2147_v51  ;;  %1938 = vmatpush1.bf16.msra.mxu1 %v1933_v55 }
 0x23e   :  { %v1829_v56 = vpop.f32.mrb[4].mxu0 }
 0x23f   :  { %v1830_v57 = vpop.f32.mrb[5].mxu0 }
 0x240   :  { %v1831_v59 = vadd.f32 %v1830_v57, %v1829_v56  ;;  %v1864_v60 = vpop.f32.mrb[4].mxu1 }
 0x241   :  { %v1865_v1 = vpop.f32.mrb[5].mxu1 }
 0x242   :  { %v1312_v45 = vmul.f32 0.001953125, %v1831_v59  ;;  %v1866_v41 = vadd.f32 %v1865_v1, %v1864_v60 }
 0x244   :  { %v1314_v48 = vmul.f32 %v1312_v45, %v1312_v45  ;;  %v1313_v53 = vmul.f32 0.001953125, %v1866_v41 }
 0x246   :  { %v1315_v58 = vsub.f32 %v1313_v53, %v1314_v48 }
 0x248   :  { %v1316_v62 = vmax.f32 %v1315_v58, 0.0 }
 0x24a   :  { %v1318_v63 = vadd.f32 1e-05, %v1316_v62 }
 0x24c   :  { %2144 = vrsqrt.f32 %v1318_v63 }
 0x256   :  { %v2145_v2 = vpop.eup %2144 }
 0x257   :  { %v1320_v61 = vmul.f32 %v2145_v2, %v1317_v0 }
 0x259   :  { %1785 = vmatmul.mubr.msk.f32.vlgmr.msra.gmra.mrb[6].mxu0 %vm1328_vm0, %v1320_v61  ;;  %v1322_v4 = vmul.f32 %v1320_v61, %v1312_v45 }
 0x25b   :  { %v1323_v5 = vsub.f32 %v1321_v3, %v1322_v4 }
 0x25d   :  { %1786 = vmatmul.mubr.msk.f32.vlgmr.msra.gmra.mrb[6].mxu1 %vm1328_vm0, %v1323_v5 }
 0x32c   :  { %v1398_v7 = vpop.f32.mrb[6].mxu0 }
 0x32d   :  { %v1480_v8 = vrot.slane %v1398_v7, %v1479_v6  ;;  %v1400_v9 = vpop.f32.mrb[7].mxu0 }
 0x32e   :  { %v1484_v10 = vrot.slane %v1400_v9, %v1479_v6 }
 0x32f   :  { %v1485_v11 = vmul.f32 %v1480_v8, %v2764_v25  ;;  %v1487_v13 = vmul.f32 %v1480_v8, %v2780_v33  ;;  %v1519_v14 = vmul.f32 %v1480_v8, %v2766_v26  ;;  %v1521_v15 = vmul.f32 %v1480_v8, %v2782_v34 }
 0x330   :  { %v1486_v16 = vmul.f32 %v1484_v10, %v2768_v27  ;;  %v1488_v17 = vmul.f32 %v1484_v10, %v2792_v39  ;;  %v1520_v19 = vmul.f32 %v1484_v10, %v2770_v28  ;;  %v1522_v37 = vmul.f32 %v1484_v10, %v2794_v40  ;;  %v1472_v20 = vpop.f32.mrb[6].mxu1 }
 0x331   :  { %v1492_v21 = vrot.slane %v1472_v20, %v1479_v6  ;;  %v1474_v22 = vpop.f32.mrb[7].mxu1 }
 0x332   :  { %v1496_v23 = vrot.slane %v1474_v22, %v1479_v6 }
 0x333   :  { %v1497_v24 = vadd.f32 %v1492_v21, %v1485_v11  ;;  %v1499_v25 = vadd.f32 %v1492_v21, %v1487_v13  ;;  %v1523_v29 = vadd.f32 %v1519_v14, %v1492_v21  ;;  %v1525_v33 = vadd.f32 %v1521_v15, %v1492_v21 }
 0x334   :  { %v1498_v30 = vadd.f32 %v1496_v23, %v1486_v16  ;;  %v1500_v26 = vadd.f32 %v1496_v23, %v1488_v17  ;;  %v1524_v31 = vadd.f32 %v1520_v19, %v1496_v23  ;;  %v1526_v34 = vadd.f32 %v1522_v37, %v1496_v23 }
 0x335   :  { %v1501_v32 = vmax.f32 %v1497_v24, 0.0  ;;  %v1503_v27 = vmax.f32 %v1499_v25, 0.0  ;;  %v1527_v18 = vmax.f32 %v1523_v29, 0.0  ;;  %v1529_v39 = vmax.f32 %v1525_v33, 0.0 }
 0x336   :  { %v1502_v35 = vmax.f32 %v1498_v30, 0.0  ;;  %v1504_v28 = vmax.f32 %v1500_v26, 0.0  ;;  %v1528_v36 = vmax.f32 %v1524_v31, 0.0  ;;  %v1530_v40 = vmax.f32 %v1526_v34, 0.0 }
 0x338   :  { %v1791_v38 = vpack.c.bf16 %v1502_v35, %v1501_v32  ;;  %v1792_v42 = vpack.c.bf16 %v1504_v28, %v1503_v27  ;;  %v1793_v43 = vpack.c.bf16 %v1528_v36, %v1527_v18  ;;  %v1794_v44 = vpack.c.bf16 %v1530_v40, %v1529_v39 }
 0x33a   :  { %1517 = vst [vmem:[%s2849_s6] sm:$0xff] %v1791_v38  ;;  %1518 = vst [vmem:[%s2849_s6 + $0x10] sm:$0xff] %v1792_v42 }
 0x33b   :  { %1543 = vst [vmem:[%s2849_s6 + $0x8] sm:$0xff] %v1793_v43  ;;  %1544 = vst [vmem:[%s2849_s6 + $0x18] sm:$0xff] %v1794_v44 }

// kernel: generator_forward.10
= control target key start
LH: loop header
LB: loop body
LE: loop exit
PB: predicated region body
PF: predicated region fallthrough
CT: control target
= control target key end

     0   :  { %v104_v34 = vlaneseq  ;;  %vm46_vm0 = vsmask.f32 256  ;;  %vm81_vm2 = vcmask 1040384   ;;  %vm2382_vm4 = vmmov 0   ;;  %s3217_s1 = inlined_call_operand.vmem [shape: bf16[4,256,256], index: 1, kind: input, shape index: {}]   ;;  %s3218_s0 = inlined_call_operand.vmem [shape: bf16[32,256], index: 0, kind: input, shape index: {}]   ;;  %s3219_s2 = inlined_call_operand.vmem [shape: f32[256,8], index: 2, kind: input, shape index: {}]   ;;  %s3220_s3 = inlined_call_operand.vmem [shape: f32[8,256], index: 3, kind: input, shape index: {}]   ;;  %s3221_s4 = inlined_call_operand.vmem [shape: f32[1,8], index: 4, kind: input, shape index: {}]   ;;  %s3222_s5 = inlined_call_operand.vmem [shape: f32[1,8], index: 5, kind: input, shape index: {}]   ;;  %s3223_s6 = inlined_call_operand.vmem [shape: bf16[32,512], index: 6, kind: output, shape index: {}]  }
   0x1   :  { %v2182_v0 = vld [vmem:[%s3217_s1 + $0x104] ss:$8 sps:$4 sm:$0xff]   ;;  %v2186_v2 = vld [vmem:[%s3217_s1 + $0x100] ss:$8 sps:$4 sm:$0xff]   ;;  %v2188_v4 = vld [vmem:[%s3217_s1 + $0x114] ss:$8 sps:$4 sm:$0xff]  }
   0x2   :  { %v2184_v1 = vld [vmem:[%s3217_s1 + $0x304] ss:$8 sps:$4 sm:$0xff]   ;;  %512 = vmatprep.subr.bf16.mxu0 %v2182_v0  ;;  %v2187_v3 = vld [vmem:[%s3217_s1 + $0x300] ss:$8 sps:$4 sm:$0xff]   ;;  %v2190_v5 = vld [vmem:[%s3217_s1 + $0x314] ss:$8 sps:$4 sm:$0xff]  }
   0x3   :  { %942 = vmatprep.subr.bf16.mxu1 %v2184_v1  ;;  %513 = vmatpush1.bf16.msra.mxu0 %v2186_v2  ;;  %v2192_v6 = vld [vmem:[%s3217_s1 + $0x110] ss:$8 sps:$4 sm:$0xff]   ;;  %v2194_v8 = vld [vmem:[%s3217_s1 + $0x124] ss:$8 sps:$4 sm:$0xff]   ;;  %v2198_v10 = vld [vmem:[%s3217_s1 + $0x120] ss:$8 sps:$4 sm:$0xff]  }
   0x4   :  { %943 = vmatpush1.bf16.msra.mxu1 %v2187_v3  ;;  %514 = vmatprep.subr.bf16.mxu0 %v2188_v4  ;;  %v2193_v7 = vld [vmem:[%s3217_s1 + $0x310] ss:$8 sps:$4 sm:$0xff]   ;;  %v2196_v9 = vld [vmem:[%s3217_s1 + $0x324] ss:$8 sps:$4 sm:$0xff]   ;;  %v2199_v11 = vld [vmem:[%s3217_s1 + $0x320] ss:$8 sps:$4 sm:$0xff]  }
   0x5   :  { %944 = vmatprep.subr.bf16.mxu1 %v2190_v5  ;;  %v2200_v12 = vld [vmem:[%s3217_s1 + $0x134] ss:$8 sps:$4 sm:$0xff]   ;;  %v2204_v14 = vld [vmem:[%s3217_s1 + $0x130] ss:$8 sps:$4 sm:$0xff]   ;;  %v2206_v16 = vld [vmem:[%s3217_s1 + $0x144] ss:$8 sps:$4 sm:$0xff]  }
   0x6   :  { %v2202_v13 = vld [vmem:[%s3217_s1 + $0x334] ss:$8 sps:$4 sm:$0xff]   ;;  %v2205_v15 = vld [vmem:[%s3217_s1 + $0x330] ss:$8 sps:$4 sm:$0xff]   ;;  %v2208_v17 = vld [vmem:[%s3217_s1 + $0x344] ss:$8 sps:$4 sm:$0xff]  }
   0x7   :  { %515 = vmatpush1.bf16.msra.mxu0 %v2192_v6  ;;  %v2210_v18 = vld [vmem:[%s3217_s1 + $0x140] ss:$8 sps:$4 sm:$0xff]   ;;  %v2212_v20 = vld [vmem:[%s3217_s1 + $0x154] ss:$8 sps:$4 sm:$0xff]   ;;  %v2216_v22 = vld [vmem:[%s3217_s1 + $0x150] ss:$8 sps:$4 sm:$0xff]  }
   0x8   :  { %945 = vmatpush1.bf16.msra.mxu1 %v2193_v7  ;;  %516 = vmatprep.subr.bf16.mxu0 %v2194_v8  ;;  %v2211_v19 = vld [vmem:[%s3217_s1 + $0x340] ss:$8 sps:$4 sm:$0xff]   ;;  %v2214_v21 = vld [vmem:[%s3217_s1 + $0x354] ss:$8 sps:$4 sm:$0xff]   ;;  %v2217_v23 = vld [vmem:[%s3217_s1 + $0x350] ss:$8 sps:$4 sm:$0xff]  }
   0x9   :  { %946 = vmatprep.subr.bf16.mxu1 %v2196_v9  ;;  %v2218_v24 = vld [vmem:[%s3217_s1 + $0x164] ss:$8 sps:$4 sm:$0xff]   ;;  %v2222_v26 = vld [vmem:[%s3217_s1 + $0x160] ss:$8 sps:$4 sm:$0xff]   ;;  %v2224_v28 = vld [vmem:[%s3217_s1 + $0x174] ss:$8 sps:$4 sm:$0xff]  }
   0xa   :  { %v2220_v25 = vld [vmem:[%s3217_s1 + $0x364] ss:$8 sps:$4 sm:$0xff]   ;;  %v2223_v27 = vld [vmem:[%s3217_s1 + $0x360] ss:$8 sps:$4 sm:$0xff]   ;;  %v2226_v29 = vld [vmem:[%s3217_s1 + $0x374] ss:$8 sps:$4 sm:$0xff]  }
   0xb   :  { %517 = vmatpush1.bf16.msra.mxu0 %v2198_v10  ;;  %v2228_v30 = vld [vmem:[%s3217_s1 + $0x170] ss:$8 sps:$4 sm:$0xff]   ;;  %v2230_v32 = vld [vmem:[%s3217_s1 + $0x184] ss:$8 sps:$4 sm:$0xff]   ;;  %v2234_v35 = vld [vmem:[%s3217_s1 + $0x180] ss:$8 sps:$4 sm:$0xff]  }
   0xc   :  { %947 = vmatpush1.bf16.msra.mxu1 %v2199_v11  ;;  %518 = vmatprep.subr.bf16.mxu0 %v2200_v12  ;;  %v2229_v31 = vld [vmem:[%s3217_s1 + $0x370] ss:$8 sps:$4 sm:$0xff]   ;;  %v2232_v33 = vld [vmem:[%s3217_s1 + $0x384] ss:$8 sps:$4 sm:$0xff]   ;;  %v2235_v36 = vld [vmem:[%s3217_s1 + $0x380] ss:$8 sps:$4 sm:$0xff]  }
   0xd   :  { %948 = vmatprep.subr.bf16.mxu1 %v2202_v13  ;;  %v2236_v37 = vld [vmem:[%s3217_s1 + $0x194] ss:$8 sps:$4 sm:$0xff]   ;;  %v2534_v39 = vshrl.u32 %v104_v34, 7  ;;  %v2240_v40 = vld [vmem:[%s3217_s1 + $0x190] ss:$8 sps:$4 sm:$0xff]   ;;  %vm170_vm5 = vmpackc.low %vm2382_vm4, %vm2382_vm4  ;;  %v2383_v60 = vmov 0  }
   0xe   :  { %v2238_v38 = vld [vmem:[%s3217_s1 + $0x394] ss:$8 sps:$4 sm:$0xff]   ;;  %v2241_v41 = vld [vmem:[%s3217_s1 + $0x390] ss:$8 sps:$4 sm:$0xff]   ;;  %v2242_v42 = vld [vmem:[%s3217_s1 + $0x1a4] ss:$8 sps:$4 sm:$0xff]  }
   0xf   :  { %519 = vmatpush1.bf16.msra.mxu0 %v2204_v14  ;;  %v2244_v43 = vld [vmem:[%s3217_s1 + $0x3a4] ss:$8 sps:$4 sm:$0xff]   ;;  %v113_v44 = vand.u32 15, %v2534_v39  ;;  %v2246_v45 = vld [vmem:[%s3217_s1 + $0x1a0] ss:$8 sps:$4 sm:$0xff]   ;;  %vm2606_vm6 = vmand %vm81_vm2, %vm46_vm0  ;;  %v2611_v0 = vsel %vm170_vm5, 65537, %v2383_v60 }
  0x10   :  { %949 = vmatpush1.bf16.msra.mxu1 %v2205_v15  ;;  %520 = vmatprep.subr.bf16.mxu0 %v2206_v16  ;;  %v2247_v46 = vld [vmem:[%s3217_s1 + $0x3a0] ss:$8 sps:$4 sm:$0xff]   ;;  %v2248_v47 = vld [vmem:[%s3217_s1 + $0x1b4] ss:$8 sps:$4 sm:$0xff]   ;;  %v2252_v50 = vld [vmem:[%s3217_s1 + $0x1b0] ss:$8 sps:$4 sm:$0xff]  }
  0x11   :  { %950 = vmatprep.subr.bf16.mxu1 %v2208_v17  ;;  %v2250_v48 = vld [vmem:[%s3217_s1 + $0x3b4] ss:$8 sps:$4 sm:$0xff]   ;;  %vm2561_vm1 = vcmp.eq.s32.totalorder %v113_v44, 0  ;;  %v2571_v51 = vld [vmem:[%s3218_s0 + $0x4] ss:$8 sps:$4 sm:$0xff]   ;;  %vm1486_vm4 = vcmask 64512  }
  0x12   :  { %v2253_v52 = vld [vmem:[%s3217_s1 + $0x3b0] ss:$8 sps:$4 sm:$0xff]   ;;  %v2254_v53 = vld [vmem:[%s3217_s1 + $0x1c4] ss:$8 sps:$4 sm:$0xff]   ;;  %v55_v55 = vshrl.u32 %v2571_v51, 16  ;;  %v58_v56 = vshll.u32 %v2571_v51, 16  ;;  %vm169_vm3 = vmpackc.low %vm2561_vm1, %vm2561_vm1  ;;  %974 = vmatprep.mubr.bf16.mxu1 %v2571_v51 }
  0x13   :  { %521 = vmatpush1.bf16.msra.mxu0 %v2210_v18  ;;  %v2256_v54 = vld [vmem:[%s3217_s1 + $0x3c4] ss:$8 sps:$4 sm:$0xff]   ;;  %v2258_v57 = vld [vmem:[%s3217_s1 + $0x1c0] ss:$8 sps:$4 sm:$0xff]   ;;  %v173_v61 = vsel %vm169_vm3, 65537, %v2383_v60 }
  0x14   :  { %951 = vmatpush1.bf16.msra.mxu1 %v2211_v19  ;;  %522 = vmatprep.subr.bf16.mxu0 %v2212_v20  ;;  %v2259_v58 = vld [vmem:[%s3217_s1 + $0x3c0] ss:$8 sps:$4 sm:$0xff]   ;;  %v2596_v59 = vrot.slane %v55_v55, 7  ;;  %v2260_v1 = vld [vmem:[%s3217_s1 + $0x1d4] ss:$8 sps:$4 sm:$0xff]   ;;  %v1763_v4 = vcombine.low %v173_v61, %v2611_v0 }
  0x15   :  { %952 = vmatprep.subr.bf16.mxu1 %v2214_v21  ;;  %v2602_v62 = vld [vmem:[%s3218_s0] ss:$8 sps:$4 sm:$0xff]   ;;  %v2262_v2 = vld [vmem:[%s3217_s1 + $0x3d4] ss:$8 sps:$4 sm:$0xff]   ;;  %v2264_v5 = vld [vmem:[%s3217_s1 + $0x1d0] ss:$8 sps:$4 sm:$0xff]  }
  0x16   :  { %v60_v3 = vor.u32 %v58_v56, %v2596_v59  ;;  %v2265_v7 = vld [vmem:[%s3217_s1 + $0x3d0] ss:$8 sps:$4 sm:$0xff]   ;;  %v48_v8 = vshrl.u32 %v2602_v62, 16  ;;  %vm2632_vm7 = vcmp.eq.s16.totalorder %v1763_v4, 0  ;;  %v2266_v10 = vld [vmem:[%s3217_s1 + $0x1e4] ss:$8 sps:$4 sm:$0xff]  }
  0x17   :  { %523 = vmatpush1.bf16.msra.mxu0 %v2216_v22  ;;  %v2268_v11 = vld [vmem:[%s3217_s1 + $0x3e4] ss:$8 sps:$4 sm:$0xff]   ;;  %v2270_v12 = vld [vmem:[%s3217_s1 + $0x1e0] ss:$8 sps:$4 sm:$0xff]   ;;  %v51_v15 = vshll.u32 %v2602_v62, 16 }
  0x18   :  { %953 = vmatpush1.bf16.msra.mxu1 %v2217_v23  ;;  %524 = vmatprep.subr.bf16.mxu0 %v2218_v24  ;;  %v84_v6 = vsel %vm2606_vm6, 0, %v60_v3  ;;  %v2271_v13 = vld [vmem:[%s3217_s1 + $0x3e0] ss:$8 sps:$4 sm:$0xff]   ;;  %v2652_v14 = vrot.slane %v48_v8, 7  ;;  %v2272_v16 = vld [vmem:[%s3217_s1 + $0x1f4] ss:$8 sps:$4 sm:$0xff]  }
  0x19   :  { %954 = vmatprep.subr.bf16.mxu1 %v2220_v25  ;;  %1896 = vmatprep.mubr.msk.bf16.mxu0 %vm2632_vm7, %v84_v6  ;;  %v2274_v17 = vld [vmem:[%s3217_s1 + $0x3f4] ss:$8 sps:$4 sm:$0xff]   ;;  %v2276_v18 = vld [vmem:[%s3217_s1 + $0x1f0] ss:$8 sps:$4 sm:$0xff]   ;;  %v2283_v21 = vld [vmem:[%s3217_s1 + $0x4] ss:$8 sps:$4 sm:$0xff]  }
  0x1a   :  { %v2277_v19 = vld [vmem:[%s3217_s1 + $0x3f0] ss:$8 sps:$4 sm:$0xff]   ;;  %v53_v20 = vor.u32 %v51_v15, %v2652_v14  ;;  %v2286_v22 = vld [vmem:[%s3217_s1 + $0x204] ss:$8 sps:$4 sm:$0xff]   ;;  %v2281_v23 = vld [vmem:[%s3217_s1] ss:$8 sps:$4 sm:$0xff]  }
  0x1b   :  { %525 = vmatpush1.bf16.msra.mxu0 %v2222_v26  ;;  %v2284_v25 = vld [vmem:[%s3217_s1 + $0x200] ss:$8 sps:$4 sm:$0xff]   ;;  %v2289_v26 = vld [vmem:[%s3217_s1 + $0x14] ss:$8 sps:$4 sm:$0xff]   ;;  %v2310_v44 = vld [vmem:[%s3217_s1 + $0x244] ss:$8 sps:$4 sm:$0xff]  }
  0x1c   :  { %955 = vmatpush1.bf16.msra.mxu1 %v2223_v27  ;;  %526 = vmatprep.subr.bf16.mxu0 %v2224_v28  ;;  %v83_v24 = vsel %vm2606_vm6, 0, %v53_v20  ;;  %v2292_v27 = vld [vmem:[%s3217_s1 + $0x214] ss:$8 sps:$4 sm:$0xff]   ;;  %v2287_v28 = vld [vmem:[%s3217_s1 + $0x10] ss:$8 sps:$4 sm:$0xff]   ;;  %v86_v61 = vrot.slane %v51_v15, 1 }
  0x1d   :  { %956 = vmatprep.subr.bf16.mxu1 %v2226_v29  ;;  %v107_v29 = vadd.s32 16, %v2534_v39  ;;  %vm85_vm10 = vsmask.f32 7424  ;;  %v2313_v49 = vld [vmem:[%s3217_s1 + $0x54] ss:$8 sps:$4 sm:$0xff]  }
  0x1e   :  { %v2317_v9 = vld [vmem:[%s3217_s1 + $0x60] ss:$8 sps:$4 sm:$0xff]   ;;  %v2379_v15 = vld [vmem:[%s3217_s1 + $0x2f4] ss:$8 sps:$4 sm:$0xff]  }
  0x1f   :  { %527 = vmatpush1.bf16.msra.mxu0 %v2228_v30  ;;  %v2290_v30 = vld [vmem:[%s3217_s1 + $0x210] ss:$8 sps:$4 sm:$0xff]   ;;  %v127_v34 = vand.u32 15, %v107_v29 }
  0x20   :  { %957 = vmatpush1.bf16.msra.mxu1 %v2229_v31  ;;  %528 = vmatprep.subr.bf16.mxu0 %v2230_v32  ;;  %v2295_v31 = vld [vmem:[%s3217_s1 + $0x24] ss:$8 sps:$4 sm:$0xff]  }
  0x21   :  { %958 = vmatprep.subr.bf16.mxu1 %v2232_v33  ;;  %v2298_v32 = vld [vmem:[%s3217_s1 + $0x224] ss:$8 sps:$4 sm:$0xff]   ;;  %v2293_v33 = vld [vmem:[%s3217_s1 + $0x20] ss:$8 sps:$4 sm:$0xff]   ;;  %vm2721_vm8 = vcmp.eq.s32.totalorder %v127_v34, 0 }
  0x22   :  { %vm171_vm9 = vmpackc.low %vm2721_vm8, %vm2721_vm8  ;;  %v2340_v34 = vld [vmem:[%s3217_s1 + $0x294] ss:$8 sps:$4 sm:$0xff]  }
  0x23   :  { %529 = vmatpush1.bf16.msra.mxu0 %v2234_v35  ;;  %v2296_v35 = vld [vmem:[%s3217_s1 + $0x220] ss:$8 sps:$4 sm:$0xff]   ;;  %v175_v63 = vsel %vm171_vm9, 65537, %v2383_v60 }
  0x24   :  { %959 = vmatpush1.bf16.msra.mxu1 %v2235_v36  ;;  %530 = vmatprep.subr.bf16.mxu0 %v2236_v37  ;;  %v2301_v36 = vld [vmem:[%s3217_s1 + $0x34] ss:$8 sps:$4 sm:$0xff]  }
  0x25   :  { %960 = vmatprep.subr.bf16.mxu1 %v2238_v38  ;;  %v2304_v37 = vld [vmem:[%s3217_s1 + $0x234] ss:$8 sps:$4 sm:$0xff]   ;;  %v2299_v38 = vld [vmem:[%s3217_s1 + $0x30] ss:$8 sps:$4 sm:$0xff]  }
  0x27   :  { %531 = vmatpush1.bf16.msra.mxu0 %v2240_v40  ;;  %v2344_v40 = vld [vmem:[%s3217_s1 + $0x2a0] ss:$8 sps:$4 sm:$0xff]  }
  0x28   :  { %961 = vmatpush1.bf16.msra.mxu1 %v2241_v41  ;;  %532 = vmatprep.subr.bf16.mxu0 %v2242_v42  ;;  %v106_v41 = vadd.s32 8, %v2534_v39  ;;  %v2302_v42 = vld [vmem:[%s3217_s1 + $0x230] ss:$8 sps:$4 sm:$0xff]  }
  0x29   :  { %962 = vmatprep.subr.bf16.mxu1 %v2244_v43  ;;  %v2307_v43 = vld [vmem:[%s3217_s1 + $0x44] ss:$8 sps:$4 sm:$0xff]  }
  0x2b   :  { %533 = vmatpush1.bf16.msra.mxu0 %v2246_v45  ;;  %v108_v45 = vadd.s32 24, %v2534_v39 }
  0x2c   :  { %963 = vmatpush1.bf16.msra.mxu1 %v2247_v46  ;;  %534 = vmatprep.subr.bf16.mxu0 %v2248_v47  ;;  %v2305_v46 = vld [vmem:[%s3217_s1 + $0x40] ss:$8 sps:$4 sm:$0xff]   ;;  %v120_v47 = vand.u32 15, %v106_v41  ;;  %v2349_v41 = vld [vmem:[%s3217_s1 + $0xb4] ss:$8 sps:$4 sm:$0xff]  }
  0x2d   :  { %964 = vmatprep.subr.bf16.mxu1 %v2250_v48  ;;  %v2308_v48 = vld [vmem:[%s3217_s1 + $0x240] ss:$8 sps:$4 sm:$0xff]  }
  0x2e   :  { %vm2764_vm11 = vcmp.eq.s32.totalorder %v120_v47, 15  ;;  %v2353_v47 = vld [vmem:[%s3217_s1 + $0xc0] ss:$8 sps:$4 sm:$0xff]  }
  0x2f   :  { %535 = vmatpush1.bf16.msra.mxu0 %v2252_v50  ;;  %v2316_v50 = vld [vmem:[%s3217_s1 + $0x254] ss:$8 sps:$4 sm:$0xff]   ;;  %vm202_vm12 = vmpackc.low %vm2764_vm11, %vm2764_vm11 }
  0x30   :  { %965 = vmatpush1.bf16.msra.mxu1 %v2253_v52  ;;  %536 = vmatprep.subr.bf16.mxu0 %v2254_v53  ;;  %v2311_v52 = vld [vmem:[%s3217_s1 + $0x50] ss:$8 sps:$4 sm:$0xff]   ;;  %v206_v20 = vsel %vm202_vm12, 65537, %v2383_v60 }
  0x31   :  { %966 = vmatprep.subr.bf16.mxu1 %v2256_v54  ;;  %v2314_v53 = vld [vmem:[%s3217_s1 + $0x250] ss:$8 sps:$4 sm:$0xff]   ;;  %v134_v54 = vand.u32 15, %v108_v45  ;;  %v2355_v45 = vld [vmem:[%s3217_s1 + $0xc4] ss:$8 sps:$4 sm:$0xff]  }
  0x33   :  { %537 = vmatpush1.bf16.msra.mxu0 %v2258_v57  ;;  %v90_v57 = vrot.slane %v58_v56, 1  ;;  %v2777_v56 = vld [vmem:[%s3218_s0 + $0x10] ss:$8 sps:$4 sm:$0xff]   ;;  %vm2793_vm13 = vcmp.eq.s32.totalorder %v134_v54, 15  ;;  %v2370_v54 = vld [vmem:[%s3217_s1 + $0xe4] ss:$8 sps:$4 sm:$0xff]  }
  0x34   :  { %967 = vmatpush1.bf16.msra.mxu1 %v2259_v58  ;;  %538 = vmatprep.subr.bf16.mxu0 %v2260_v1  ;;  %v2762_v58 = vld [vmem:[%s3218_s0 + $0x14] ss:$8 sps:$4 sm:$0xff]   ;;  %v2319_v1 = vld [vmem:[%s3217_s1 + $0x64] ss:$8 sps:$4 sm:$0xff]   ;;  %v65_v6 = vshll.u32 %v2777_v56, 16  ;;  %vm204_vm14 = vmpackc.low %vm2793_vm13, %vm2793_vm13 }
  0x35   :  { %968 = vmatprep.subr.bf16.mxu1 %v2262_v2  ;;  %v2322_v2 = vld [vmem:[%s3217_s1 + $0x264] ss:$8 sps:$4 sm:$0xff]   ;;  %v70_v3 = vshrl.u32 %v2762_v58, 16  ;;  %v73_v4 = vshll.u32 %v2762_v58, 16 }
  0x37   :  { %539 = vmatpush1.bf16.msra.mxu0 %v2264_v5  ;;  %v62_v5 = vshrl.u32 %v2777_v56, 16 }
  0x38   :  { %969 = vmatpush1.bf16.msra.mxu1 %v2265_v7  ;;  %540 = vmatprep.subr.bf16.mxu0 %v2266_v10  ;;  %v72_v10 = vrot.slane %v70_v3, 7  ;;  %v1317_v7 = vld [vmem:[%s3219_s2 + $0x88] sm:$0xff] }
  0x39   :  { %970 = vmatprep.subr.bf16.mxu1 %v2268_v11  ;;  %v1764_v11 = vcombine.low %v175_v63, %v2611_v0  ;;  %v2368_v63 = vld [vmem:[%s3217_s1 + $0xe0] ss:$8 sps:$4 sm:$0xff]  }
  0x3b   :  { %541 = vmatpush1.bf16.msra.mxu0 %v2270_v12  ;;  %v91_v12 = vor.u32 %v90_v57, %v55_v55  ;;  %v2328_v55 = vld [vmem:[%s3217_s1 + $0x274] ss:$8 sps:$4 sm:$0xff]   ;;  %vm2833_vm15 = vcmp.eq.s16.totalorder %v1764_v11, 0  ;;  %v2373_v57 = vld [vmem:[%s3217_s1 + $0x2e4] ss:$8 sps:$4 sm:$0xff]  }
  0x3c   :  { %971 = vmatpush1.bf16.msra.mxu1 %v2271_v13  ;;  %542 = vmatprep.subr.bf16.mxu0 %v2272_v16  ;;  %v2806_v13 = vrot.slane %v73_v4, 1  ;;  %v2320_v16 = vld [vmem:[%s3217_s1 + $0x260] ss:$8 sps:$4 sm:$0xff]   ;;  %v2374_v11 = vld [vmem:[%s3217_s1 + $0xf0] ss:$8 sps:$4 sm:$0xff]  }
  0x3d   :  { %972 = vmatprep.subr.bf16.mxu1 %v2274_v17  ;;  %v2325_v17 = vld [vmem:[%s3217_s1 + $0x74] ss:$8 sps:$4 sm:$0xff]  }
  0x3f   :  { %543 = vmatpush1.bf16.msra.mxu0 %v2276_v18  ;;  %v64_v18 = vrot.slane %v62_v5, 7 }
  0x40   :  { %973 = vmatpush1.bf16.msra.mxu1 %v2277_v19  ;;  %729 = vmatprep.subr.bf16.mxu0 %v2283_v21  ;;  %v75_v19 = vor.u32 %v73_v4, %v72_v10  ;;  %v1316_v4 = vld [vmem:[%s3219_s2 + $0x80] sm:$0xff]  ;;  %v88_v10 = vrot.slane %v65_v6, 1 }
  0x41   :  { %1155 = vmatprep.subr.bf16.mxu1 %v2286_v22  ;;  %v67_v21 = vor.u32 %v65_v6, %v64_v18  ;;  %v1765_v22 = vcombine.low %v2611_v0, %v206_v20  ;;  %v1301_v18 = vld [vmem:[%s3219_s2 + $0x8] sm:$0xff] }
  0x42   :  { %1898 = vmatmul.mubr.msk.bf16.vlgmr.msra.gmra.mrb[0].mxu0 %vm2632_vm7, %v83_v24 }
  0x43   :  { %975 = vmatmul.mubr.bf16.vlgmr.msra.gmra.mrb[0].mxu1 %v2602_v62  ;;  %730 = vmatpush1.bf16.msra.mxu0 %v2281_v23  ;;  %v76_v23 = vsel %vm46_vm0, %v2596_v59, %v75_v19  ;;  %v2326_v59 = vld [vmem:[%s3217_s1 + $0x270] ss:$8 sps:$4 sm:$0xff]   ;;  %vm2850_vm1 = vcmp.eq.s16.totalorder %v1765_v22, 0  ;;  %v94_v19 = vor.u32 %v88_v10, %v62_v5 }
  0x44   :  { %1156 = vmatpush1.bf16.msra.mxu1 %v2284_v25  ;;  %731 = vmatprep.subr.bf16.mxu0 %v2289_v26  ;;  %v93_v25 = vsel %vm85_vm10, %v91_v12, %v2806_v13  ;;  %v2840_v26 = vsel %vm204_vm14, 65537, %v2383_v60  ;;  %v2377_v12 = vld [vmem:[%s3217_s1 + $0x2f0] ss:$8 sps:$4 sm:$0xff]  }
  0x45   :  { %1157 = vmatprep.subr.bf16.mxu1 %v2292_v27  ;;  %984 = vmatprep.mubr.bf16.mxu1 %v2762_v58  ;;  %v2323_v27 = vld [vmem:[%s3217_s1 + $0x70] ss:$8 sps:$4 sm:$0xff]   ;;  %v1766_v60 = vcombine.low %v2611_v0, %v2840_v26  ;;  %v1305_v26 = vld [vmem:[%s3219_s2 + $0x28] sm:$0xff] }
  0x46   :  { %1900 = vmatprep.mubr.msk.bf16.mxu0 %vm2833_vm15, %v76_v23  ;;  %v1302_v5 = vld [vmem:[%s3219_s2 + $0x10] sm:$0xff]  ;;  %v1321_v23 = vld [vmem:[%s3219_s2 + $0xa8] sm:$0xff] }
  0x47   :  { %732 = vmatpush1.bf16.msra.mxu0 %v2287_v28  ;;  %v68_v28 = vsel %vm46_vm0, %v2652_v14, %v67_v21  ;;  %v2329_v14 = vld [vmem:[%s3217_s1 + $0x80] ss:$8 sps:$4 sm:$0xff]   ;;  %vm100_vm0 = vcmask 1047552   ;;  %vm2028_vm3 = vcmp.eq.s16.totalorder %v1766_v60, 0  ;;  %v1303_v21 = vld [vmem:[%s3219_s2 + $0x18] sm:$0xff]  ;;  %v1306_v60 = vld [vmem:[%s3219_s2 + $0x30] sm:$0xff] }
  0x48   :  { %1158 = vmatpush1.bf16.msra.mxu1 %v2290_v30  ;;  %733 = vmatprep.subr.bf16.mxu0 %v2295_v31  ;;  %v2331_v30 = vld [vmem:[%s3217_s1 + $0x84] ss:$8 sps:$4 sm:$0xff]   ;;  %vm2975_vm2 = vmand %vm100_vm0, %vm85_vm10  ;;  %v2105_v22 = vpack.c.bf16 %v1303_v21, %v1302_v5 }
  0x49   :  { %1159 = vmatprep.subr.bf16.mxu1 %v2298_v32  ;;  %v2334_v31 = vld [vmem:[%s3217_s1 + $0x284] ss:$8 sps:$4 sm:$0xff]   ;;  %v2332_v32 = vld [vmem:[%s3217_s1 + $0x280] ss:$8 sps:$4 sm:$0xff]   ;;  %v102_v0 = vsel %vm2975_vm2, %v94_v19, 0 }
  0x4a   :  { %1902 = vmatmul.mubr.msk.bf16.gmra.mrb[4].mxu0 %vm2833_vm15, %v68_v28  ;;  %v1323_v28 = vld [vmem:[%s3219_s2 + $0xb8] sm:$0xff] }
  0x4b   :  { %734 = vmatpush1.bf16.msra.mxu0 %v2293_v33  ;;  %985 = vmatmul.mubr.bf16.gmra.mrb[4].mxu1 %v2777_v56  ;;  %v2337_v33 = vld [vmem:[%s3217_s1 + $0x94] ss:$8 sps:$4 sm:$0xff]  }
  0x4c   :  { %1160 = vmatpush1.bf16.msra.mxu1 %v2296_v35  ;;  %735 = vmatprep.subr.bf16.mxu0 %v2301_v36  ;;  %v2335_v35 = vld [vmem:[%s3217_s1 + $0x90] ss:$8 sps:$4 sm:$0xff]  }
  0x4d   :  { %1161 = vmatprep.subr.bf16.mxu1 %v2304_v37  ;;  %2000 = vmatprep.mubr.msk.bf16.mxu1 %vm2850_vm1, %v93_v25  ;;  %v2338_v36 = vld [vmem:[%s3217_s1 + $0x290] ss:$8 sps:$4 sm:$0xff]   ;;  %v2343_v37 = vld [vmem:[%s3217_s1 + $0xa4] ss:$8 sps:$4 sm:$0xff]  }
  0x4e   :  { %761 = vmatprep.mubr.bf16.mxu0 %v2571_v51  ;;  %v2346_v51 = vld [vmem:[%s3217_s1 + $0x2a4] ss:$8 sps:$4 sm:$0xff]  }
  0x4f   :  { %736 = vmatpush1.bf16.msra.mxu0 %v2299_v38  ;;  %v2341_v38 = vld [vmem:[%s3217_s1 + $0xa0] ss:$8 sps:$4 sm:$0xff]  }
  0x50   :  { %1162 = vmatpush1.bf16.msra.mxu1 %v2302_v42  ;;  %737 = vmatprep.subr.bf16.mxu0 %v2307_v43  ;;  %v2352_v42 = vld [vmem:[%s3217_s1 + $0x2b4] ss:$8 sps:$4 sm:$0xff]   ;;  %v2347_v43 = vld [vmem:[%s3217_s1 + $0xb0] ss:$8 sps:$4 sm:$0xff]   ;;  %v1304_v25 = vld [vmem:[%s3219_s2 + $0x20] sm:$0xff] }
  0x51   :  { %1163 = vmatprep.subr.bf16.mxu1 %v2310_v44  ;;  %v2350_v44 = vld [vmem:[%s3217_s1 + $0x2b0] ss:$8 sps:$4 sm:$0xff]  }
  0x53   :  { %738 = vmatpush1.bf16.msra.mxu0 %v2305_v46  ;;  %v2358_v46 = vld [vmem:[%s3217_s1 + $0x2c4] ss:$8 sps:$4 sm:$0xff]  }
  0x54   :  { %1164 = vmatpush1.bf16.msra.mxu1 %v2308_v48  ;;  %739 = vmatprep.subr.bf16.mxu0 %v2313_v49  ;;  %v2356_v48 = vld [vmem:[%s3217_s1 + $0x2c0] ss:$8 sps:$4 sm:$0xff]   ;;  %v2361_v49 = vld [vmem:[%s3217_s1 + $0xd4] ss:$8 sps:$4 sm:$0xff]  }
  0x55   :  { %1165 = vmatprep.subr.bf16.mxu1 %v2316_v50  ;;  %v2364_v50 = vld [vmem:[%s3217_s1 + $0x2d4] ss:$8 sps:$4 sm:$0xff]  }
  0x57   :  { %740 = vmatpush1.bf16.msra.mxu0 %v2311_v52  ;;  %v2359_v52 = vld [vmem:[%s3217_s1 + $0xd0] ss:$8 sps:$4 sm:$0xff]  }
  0x58   :  { %1166 = vmatpush1.bf16.msra.mxu1 %v2314_v53  ;;  %741 = vmatprep.subr.bf16.mxu0 %v2319_v1  ;;  %v2362_v53 = vld [vmem:[%s3217_s1 + $0x2d0] ss:$8 sps:$4 sm:$0xff]   ;;  %v2371_v1 = vld [vmem:[%s3217_s1 + $0x2e0] ss:$8 sps:$4 sm:$0xff]  }
  0x59   :  { %1167 = vmatprep.subr.bf16.mxu1 %v2322_v2  ;;  %v2376_v2 = vld [vmem:[%s3217_s1 + $0xf4] ss:$8 sps:$4 sm:$0xff]  }
  0x5b   :  { %742 = vmatpush1.bf16.msra.mxu0 %v2317_v9  ;;  %v87_v9 = vor.u32 %v86_v61, %v48_v8  ;;  %v2099_v8 = vpack.c.bf16 %v1317_v7, %v1316_v4 }
  0x5c   :  { %1168 = vmatpush1.bf16.msra.mxu1 %v2320_v16  ;;  %743 = vmatprep.subr.bf16.mxu0 %v2325_v17  ;;  %v95_v16 = vor.u32 %v2806_v13, %v70_v3  ;;  %v1300_v17 = vld [vmem:[%s3219_s2] sm:$0xff] }
  0x5d   :  { %1169 = vmatprep.subr.bf16.mxu1 %v2328_v55  ;;  %v89_v55 = vsel %vm85_vm10, %v87_v9, %v88_v10  ;;  %v2101_v13 = vpack.c.bf16 %v1301_v18, %v1300_v17 }
  0x5e   :  { %v103_v3 = vsel %vm2975_vm2, %v95_v16, 0 }
  0x5f   :  { %744 = vmatpush1.bf16.msra.mxu0 %v2323_v27  ;;  %v2109_v27 = vpack.c.bf16 %v1305_v26, %v1304_v25 }
  0x60   :  { %1170 = vmatpush1.bf16.msra.mxu1 %v2326_v59  ;;  %745 = vmatprep.subr.bf16.mxu0 %v2331_v30  ;;  %v1322_v59 = vld [vmem:[%s3219_s2 + $0xb0] sm:$0xff]  ;;  %v1307_v30 = vld [vmem:[%s3219_s2 + $0x38] sm:$0xff] }
  0x61   :  { %1171 = vmatprep.subr.bf16.mxu1 %v2334_v31  ;;  %v2111_v29 = vpack.c.bf16 %v1323_v28, %v1322_v59  ;;  %v2113_v31 = vpack.c.bf16 %v1307_v30, %v1306_v60 }
  0x63   :  { %746 = vmatpush1.bf16.msra.mxu0 %v2329_v14  ;;  %v1324_v14 = vld [vmem:[%s3219_s2 + $0xc0] sm:$0xff] }
  0x64   :  { %1172 = vmatpush1.bf16.msra.mxu1 %v2332_v32  ;;  %747 = vmatprep.subr.bf16.mxu0 %v2337_v33  ;;  %v1325_v32 = vld [vmem:[%s3219_s2 + $0xc8] sm:$0xff] }
  0x65   :  { %1173 = vmatprep.subr.bf16.mxu1 %v2340_v34  ;;  %v2115_v33 = vpack.c.bf16 %v1325_v32, %v1324_v14  ;;  %v1308_v34 = vld [vmem:[%s3219_s2 + $0x40] sm:$0xff] }
  0x67   :  { %748 = vmatpush1.bf16.msra.mxu0 %v2335_v35  ;;  %v1309_v35 = vld [vmem:[%s3219_s2 + $0x48] sm:$0xff] }
  0x68   :  { %1174 = vmatpush1.bf16.msra.mxu1 %v2338_v36  ;;  %749 = vmatprep.subr.bf16.mxu0 %v2343_v37  ;;  %v2117_v36 = vpack.c.bf16 %v1309_v35, %v1308_v34  ;;  %v1326_v37 = vld [vmem:[%s3219_s2 + $0xd0] sm:$0xff] }
  0x69   :  { %1175 = vmatprep.subr.bf16.mxu1 %v2346_v51  ;;  %v1327_v51 = vld [vmem:[%s3219_s2 + $0xd8] sm:$0xff] }
  0x6b   :  { %750 = vmatpush1.bf16.msra.mxu0 %v2341_v38  ;;  %v2119_v38 = vpack.c.bf16 %v1327_v51, %v1326_v37 }
  0x6c   :  { %1176 = vmatpush1.bf16.msra.mxu1 %v2344_v40  ;;  %751 = vmatprep.subr.bf16.mxu0 %v2349_v41  ;;  %v1310_v40 = vld [vmem:[%s3219_s2 + $0x50] sm:$0xff]  ;;  %v1311_v41 = vld [vmem:[%s3219_s2 + $0x58] sm:$0xff] }
  0x6d   :  { %1177 = vmatprep.subr.bf16.mxu1 %v2352_v42  ;;  %v2121_v42 = vpack.c.bf16 %v1311_v41, %v1310_v40 }
  0x6f   :  { %752 = vmatpush1.bf16.msra.mxu0 %v2347_v43  ;;  %v1328_v43 = vld [vmem:[%s3219_s2 + $0xe0] sm:$0xff] }
  0x70   :  { %1178 = vmatpush1.bf16.msra.mxu1 %v2350_v44  ;;  %753 = vmatprep.subr.bf16.mxu0 %v2355_v45  ;;  %v1329_v44 = vld [vmem:[%s3219_s2 + $0xe8] sm:$0xff] }
  0x71   :  { %1179 = vmatprep.subr.bf16.mxu1 %v2358_v46  ;;  %v2123_v45 = vpack.c.bf16 %v1329_v44, %v1328_v43  ;;  %v1312_v46 = vld [vmem:[%s3219_s2 + $0x60] sm:$0xff] }
  0x73   :  { %754 = vmatpush1.bf16.msra.mxu0 %v2353_v47  ;;  %v1313_v47 = vld [vmem:[%s3219_s2 + $0x68] sm:$0xff] }
  0x74   :  { %1180 = vmatpush1.bf16.msra.mxu1 %v2356_v48  ;;  %755 = vmatprep.subr.bf16.mxu0 %v2361_v49  ;;  %v2125_v48 = vpack.c.bf16 %v1313_v47, %v1312_v46  ;;  %v1330_v49 = vld [vmem:[%s3219_s2 + $0xf0] sm:$0xff] }
  0x75   :  { %1181 = vmatprep.subr.bf16.mxu1 %v2364_v50  ;;  %v1331_v50 = vld [vmem:[%s3219_s2 + $0xf8] sm:$0xff] }
  0x77   :  { %756 = vmatpush1.bf16.msra.mxu0 %v2359_v52  ;;  %v2127_v52 = vpack.c.bf16 %v1331_v50, %v1330_v49 }
  0x78   :  { %1182 = vmatpush1.bf16.msra.mxu1 %v2362_v53  ;;  %757 = vmatprep.subr.bf16.mxu0 %v2370_v54  ;;  %v1314_v53 = vld [vmem:[%s3219_s2 + $0x70] sm:$0xff]  ;;  %v1315_v54 = vld [vmem:[%s3219_s2 + $0x78] sm:$0xff] }
  0x79   :  { %1183 = vmatprep.subr.bf16.mxu1 %v2373_v57  ;;  %v2129_v57 = vpack.c.bf16 %v1315_v54, %v1314_v53 }
  0x7b   :  { %758 = vmatpush1.bf16.msra.mxu0 %v2368_v63 }
  0x7c   :  { %1184 = vmatpush1.bf16.msra.mxu1 %v2371_v1  ;;  %759 = vmatprep.subr.bf16.mxu0 %v2376_v2 }
  0x7d   :  { %1185 = vmatprep.subr.bf16.mxu1 %v2379_v15 }
  0x7f   :  { %760 = vmatpush1.bf16.msra.mxu0 %v2374_v11 }
  0x80   :  { %1186 = vmatpush1.bf16.msra.mxu1 %v2377_v12  ;;  %2100 = vmatprep.subr.bf16.mxu0 %v2099_v8 }
  0x81   :  { %2132 = vmatprep.subr.bf16.mxu1 %v2099_v8 }
  0x82   :  { %762 = vmatmul.mubr.bf16.vlgmr.msra.gmra.mrb[0].mxu0 %v2602_v62  ;;  %v1318_v62 = vld [vmem:[%s3219_s2 + $0x90] sm:$0xff] }
  0x83   :  { %2002 = vmatmul.mubr.msk.bf16.vlgmr.msra.gmra.mrb[0].mxu1 %vm2850_vm1, %v89_v55  ;;  %771 = vmatprep.mubr.bf16.mxu0 %v2762_v58  ;;  %v1319_v58 = vld [vmem:[%s3219_s2 + $0x98] sm:$0xff] }
  0x84   :  { %2004 = vmatprep.mubr.msk.bf16.mxu1 %vm2028_vm3, %v103_v3  ;;  %2102 = vmatpush3.bf16.msra.mxu0 %v2101_v13  ;;  %v2103_v20 = vpack.c.bf16 %v1319_v58, %v1318_v62 }
  0x85   :  { %2134 = vmatpush3.bf16.msra.mxu1 %v2101_v13 }
  0x86   :  { %2104 = vmatprep.subr.bf16.mxu0 %v2103_v20  ;;  %2136 = vmatprep.subr.bf16.mxu1 %v2103_v20 }
  0x88   :  { %2106 = vmatpush3.bf16.msra.mxu0 %v2105_v22 }
  0x89   :  { %2138 = vmatpush3.bf16.msra.mxu1 %v2105_v22 }
  0x8a   :  { %772 = vmatmul.mubr.bf16.gmra.mrb[4].mxu0 %v2777_v56  ;;  %v1320_v56 = vld [vmem:[%s3219_s2 + $0xa0] sm:$0xff] }
  0x8b   :  { %2006 = vmatmul.mubr.msk.bf16.gmra.mrb[4].mxu1 %vm2028_vm3, %v102_v0  ;;  %v2107_v24 = vpack.c.bf16 %v1321_v23, %v1320_v56 }
  0x8d   :  { %2108 = vmatprep.subr.bf16.mxu0 %v2107_v24  ;;  %2140 = vmatprep.subr.bf16.mxu1 %v2107_v24 }
  0x8e   :  { %2110 = vmatpush3.bf16.msra.mxu0 %v2109_v27  ;;  %2142 = vmatpush3.bf16.msra.mxu1 %v2109_v27 }
  0x8f   :  { %2112 = vmatprep.subr.bf16.mxu0 %v2111_v29  ;;  %2144 = vmatprep.subr.bf16.mxu1 %v2111_v29 }
  0x92   :  { %2114 = vmatpush3.bf16.msra.mxu0 %v2113_v31  ;;  %2146 = vmatpush3.bf16.msra.mxu1 %v2113_v31 }
  0x93   :  { %2116 = vmatprep.subr.bf16.mxu0 %v2115_v33  ;;  %2148 = vmatprep.subr.bf16.mxu1 %v2115_v33 }
  0x96   :  { %2118 = vmatpush3.bf16.msra.mxu0 %v2117_v36  ;;  %2150 = vmatpush3.bf16.msra.mxu1 %v2117_v36 }
  0x97   :  { %2120 = vmatprep.subr.bf16.mxu0 %v2119_v38  ;;  %2152 = vmatprep.subr.bf16.mxu1 %v2119_v38 }
  0x9a   :  { %2122 = vmatpush3.bf16.msra.mxu0 %v2121_v42  ;;  %2154 = vmatpush3.bf16.msra.mxu1 %v2121_v42 }
  0x9b   :  { %2124 = vmatprep.subr.bf16.mxu0 %v2123_v45  ;;  %2156 = vmatprep.subr.bf16.mxu1 %v2123_v45 }
  0x9e   :  { %2126 = vmatpush3.bf16.msra.mxu0 %v2125_v48  ;;  %2158 = vmatpush3.bf16.msra.mxu1 %v2125_v48 }
  0x9f   :  { %2128 = vmatprep.subr.bf16.mxu0 %v2127_v52  ;;  %2160 = vmatprep.subr.bf16.mxu1 %v2127_v52 }
  0xa2   :  { %2130 = vmatpush3.bf16.msra.mxu0 %v2129_v57  ;;  %2162 = vmatpush3.bf16.msra.mxu1 %v2129_v57 }
 0x155   :  { %v3084_v61 = vpop.f32.mrb[0].mxu0 }
 0x156   :  { %v3086_v63 = vpop.f32.mrb[0].mxu1  ;;  %v3088_v1 = vpop.f32.mrb[1].mxu0  ;;  %v1246_v15 = vmul.f32 %v3084_v61, %v3084_v61 }
 0x157   :  { %v3090_v2 = vpop.f32.mrb[1].mxu1  ;;  %v1272_v4 = vmul.f32 %v3086_v63, %v3086_v63  ;;  %v1247_v7 = vmul.f32 %v3088_v1, %v3088_v1  ;;  %v3100_v10 = vpop.f32.mrb[2].mxu0 }
 0x158   :  { %v1273_v9 = vmul.f32 %v3090_v2, %v3090_v2  ;;  %v3102_v11 = vpop.f32.mrb[2].mxu1  ;;  %v1208_v12 = vadd.f32 %v3100_v10, %v3084_v61  ;;  %v1248_v16 = vmul.f32 %v3100_v10, %v3100_v10  ;;  %v3112_v17 = vpop.f32.mrb[3].mxu0 }
 0x159   :  { %v1226_v8 = vadd.f32 %v3102_v11, %v3086_v63  ;;  %v1274_v6 = vmul.f32 %v3102_v11, %v3102_v11  ;;  %v3114_v18 = vpop.f32.mrb[3].mxu1  ;;  %v1217_v55 = vadd.f32 %v3112_v17, %v3088_v1  ;;  %v1249_v3 = vmul.f32 %v3112_v17, %v3112_v17 }
 0x15a   :  { %v1235_v13 = vadd.f32 %v3114_v18, %v3090_v2  ;;  %v1275_v19 = vmul.f32 %v3114_v18, %v3114_v18  ;;  %v1254_v0 = vadd.f32 %v1248_v16, %v1246_v15 }
 0x15b   :  { %v1280_v62 = vadd.f32 %v1274_v6, %v1272_v4  ;;  %v1263_v58 = vadd.f32 %v1249_v3, %v1247_v7 }
 0x15c   :  { %v1289_v20 = vadd.f32 %v1275_v19, %v1273_v9 }
 0x15d   :  { %v3124_v5 = vpop.f32.mrb[4].mxu0 }
 0x15e   :  { %v3126_v21 = vpop.f32.mrb[4].mxu1  ;;  %v1209_v22 = vadd.f32 %v1208_v12, %v3124_v5  ;;  %v1250_v56 = vmul.f32 %v3124_v5, %v3124_v5  ;;  %v3134_v25 = vpop.f32.mrb[5].mxu0 }
 0x15f   :  { %v1227_v23 = vadd.f32 %v1226_v8, %v3126_v21  ;;  %v1276_v24 = vmul.f32 %v3126_v21, %v3126_v21  ;;  %v3136_v26 = vpop.f32.mrb[5].mxu1  ;;  %v1218_v27 = vadd.f32 %v1217_v55, %v3134_v25  ;;  %v1251_v59 = vmul.f32 %v3134_v25, %v3134_v25  ;;  %v3144_v60 = vpop.f32.mrb[6].mxu0 }
 0x160   :  { %v1236_v28 = vadd.f32 %v1235_v13, %v3136_v26  ;;  %v1277_v29 = vmul.f32 %v3136_v26, %v3136_v26  ;;  %v3146_v30 = vpop.f32.mrb[6].mxu1  ;;  %v1255_v31 = vadd.f32 %v1254_v0, %v1250_v56  ;;  %v1210_v32 = vadd.f32 %v1209_v22, %v3144_v60  ;;  %v3151_v34 = vpop.f32.mrb[7].mxu0 }
 0x161   :  { %v1281_v14 = vadd.f32 %v1280_v62, %v1276_v24  ;;  %v1252_v33 = vmul.f32 %v3144_v60, %v3144_v60  ;;  %v3153_v35 = vpop.f32.mrb[7].mxu1  ;;  %v1264_v36 = vadd.f32 %v1263_v58, %v1251_v59  ;;  %v1228_v51 = vadd.f32 %v1227_v23, %v3146_v30 }
 0x162   :  { %v1290_v37 = vadd.f32 %v1289_v20, %v1277_v29  ;;  %v1278_v38 = vmul.f32 %v3146_v30, %v3146_v30  ;;  %v1211_v40 = vrot.slane %v1210_v32, 4  ;;  %v1219_v42 = vadd.f32 %v1218_v27, %v3151_v34 }
 0x163   :  { %v1256_v41 = vadd.f32 %v1255_v31, %v1252_v33  ;;  %v1253_v43 = vmul.f32 %v3151_v34, %v3151_v34  ;;  %v1229_v44 = vrot.slane %v1228_v51, 4  ;;  %v1237_v46 = vadd.f32 %v1236_v28, %v3153_v35 }
 0x164   :  { %v1282_v45 = vadd.f32 %v1281_v14, %v1278_v38  ;;  %v1279_v47 = vmul.f32 %v3153_v35, %v3153_v35  ;;  %v1212_v48 = vadd.f32 %v1211_v40, %v1210_v32  ;;  %v1220_v50 = vrot.slane %v1219_v42, 4 }
 0x165   :  { %v1257_v49 = vrot.slane %v1256_v41, 4  ;;  %v1265_v52 = vadd.f32 %v1264_v36, %v1253_v43  ;;  %v1230_v53 = vadd.f32 %v1229_v44, %v1228_v51  ;;  %v1238_v57 = vrot.slane %v1237_v46, 4 }
 0x166   :  { %v1283_v54 = vrot.slane %v1282_v45, 4  ;;  %v1291_v15 = vadd.f32 %v1290_v37, %v1279_v47  ;;  %v1213_v4 = vrot.slane %v1212_v48, 2  ;;  %v1221_v9 = vadd.f32 %v1220_v50, %v1219_v42 }
 0x167   :  { %v1258_v7 = vadd.f32 %v1257_v49, %v1256_v41  ;;  %v1266_v12 = vrot.slane %v1265_v52, 4  ;;  %v1231_v16 = vrot.slane %v1230_v53, 2  ;;  %v1239_v6 = vadd.f32 %v1238_v57, %v1237_v46  ;;  %v1484_v57 = vld [vmem:[%s3220_s3] sm:$0xff] }
 0x168   :  { %v1284_v8 = vadd.f32 %v1283_v54, %v1282_v45  ;;  %v1292_v55 = vrot.slane %v1291_v15, 4  ;;  %v1214_v3 = vadd.f32 %v1213_v4, %v1212_v48  ;;  %v1222_v19 = vrot.slane %v1221_v9, 2  ;;  %v1485_v54 = vld [vmem:[%s3220_s3 + $0x8] sm:$0xff] }
 0x169   :  { %v1259_v13 = vrot.slane %v1258_v7, 2  ;;  %v1267_v0 = vadd.f32 %v1266_v12, %v1265_v52  ;;  %v1232_v62 = vadd.f32 %v1231_v16, %v1230_v53  ;;  %v1240_v20 = vrot.slane %v1239_v6, 2  ;;  %1490 = vmatprep.subr.mxu0 %v1485_v54  ;;  %1564 = vmatprep.subr.mxu1 %v1485_v54 }
 0x16a   :  { %v1285_v58 = vrot.slane %v1284_v8, 2  ;;  %v1293_v22 = vadd.f32 %v1292_v55, %v1291_v15  ;;  %v1215_v56 = vrot.slane %v1214_v3, 1  ;;  %v1223_v24 = vadd.f32 %v1222_v19, %v1221_v9 }
 0x16b   :  { %v1260_v23 = vadd.f32 %v1259_v13, %v1258_v7  ;;  %v1268_v27 = vrot.slane %v1267_v0, 2  ;;  %v1233_v59 = vrot.slane %v1232_v62, 1  ;;  %v1241_v29 = vadd.f32 %v1240_v20, %v1239_v6 }
 0x16c   :  { %v1286_v28 = vadd.f32 %v1285_v58, %v1284_v8  ;;  %v1294_v31 = vrot.slane %v1293_v22, 2  ;;  %v1216_v14 = vadd.f32 %v1215_v56, %v1214_v3  ;;  %v1224_v33 = vrot.slane %v1223_v24, 1 }
 0x16d   :  { %v1261_v32 = vrot.slane %v1260_v23, 1  ;;  %v1269_v36 = vadd.f32 %v1268_v27, %v1267_v0  ;;  %v1234_v37 = vadd.f32 %v1233_v59, %v1232_v62  ;;  %v1242_v38 = vrot.slane %v1241_v29, 1  ;;  %v1477_v62 = vld [vmem:[%s3221_s4] sm:$0x1] }
 0x16e   :  { %v1287_v51 = vrot.slane %v1286_v28, 1  ;;  %v1295_v40 = vadd.f32 %v1294_v31, %v1293_v22  ;;  %v1225_v42 = vadd.f32 %v1224_v33, %v1223_v24  ;;  %v2384_v15 = vmov 0.0   ;;  %v1481_v22 = vld [vmem:[%s3222_s5] sm:$0x1] }
 0x16f   :  { %v1262_v41 = vadd.f32 %v1261_v32, %v1260_v23  ;;  %v1270_v43 = vrot.slane %v1269_v36, 1  ;;  %v1244_v44 = vadd.f32 %v1234_v37, %v1216_v14  ;;  %v1243_v46 = vadd.f32 %v1242_v38, %v1241_v29 }
 0x170   :  { %v1288_v45 = vadd.f32 %v1287_v51, %v1286_v28  ;;  %v1296_v47 = vrot.slane %v1295_v40, 1  ;;  %v1637_v24 = vsub.s32 0, %v2534_v39 }
 0x171   :  { %v1271_v48 = vadd.f32 %v1270_v43, %v1269_v36  ;;  %v1245_v49 = vadd.f32 %v1243_v46, %v1225_v42 }
 0x172   :  { %v1297_v50 = vadd.f32 %v1296_v47, %v1295_v40  ;;  %v1298_v52 = vadd.f32 %v1288_v45, %v1262_v41 }
 0x173   :  { %1396 = vmatprep.mubr.f32.mxu0 %v1245_v49 }
 0x174   :  { %v1299_v53 = vadd.f32 %v1297_v50, %v1271_v48  ;;  %1397 = vmatmul.mubr.f32.vlgmr.msra.gmra.mrb[8].mxu0 %v1244_v44 }
 0x175   :  { %1554 = vmatprep.mubr.f32.mxu0 %v2384_v15  ;;  %1491 = vmatpush1.msra.mxu0 %v1484_v57 }
 0x176   :  { %1466 = vmatprep.mubr.f32.mxu1 %v1299_v53 }
 0x177   :  { %1467 = vmatmul.mubr.f32.vlgmr.msra.gmra.mrb[8].mxu1 %v1298_v52 }
 0x178   :  { %1628 = vmatprep.mubr.f32.mxu1 %v2384_v15  ;;  %1565 = vmatpush1.msra.mxu1 %v1484_v57 }
 0x247   :  { %v2061_v4 = vpop.f32.mrb[8].mxu0 }
 0x248   :  { %v2062_v7 = vpop.f32.mrb[9].mxu0 }
 0x249   :  { %v2063_v9 = vadd.f32 %v2062_v7, %v2061_v4 }
 0x24a   :  { %v2096_v12 = vpop.f32.mrb[8].mxu1 }
 0x24b   :  { %v2097_v16 = vpop.f32.mrb[9].mxu1  ;;  %v1472_v8 = vmul.f32 0.00048828125, %v2063_v9 }
 0x24c   :  { %v2098_v6 = vadd.f32 %v2097_v16, %v2096_v12 }
 0x24d   :  { %v1474_v55 = vmul.f32 %v1472_v8, %v1472_v8 }
 0x24e   :  { %v1473_v3 = vmul.f32 0.00048828125, %v2098_v6 }
 0x250   :  { %v1475_v13 = vsub.f32 %v1473_v3, %v1474_v55 }
 0x252   :  { %v1476_v19 = vmax.f32 %v1475_v13, 0.0 }
 0x254   :  { %v1478_v0 = vadd.f32 1e-05, %v1476_v19 }
 0x256   :  { %2380 = vrsqrt.f32 %v1478_v0 }
 0x260   :  { %v2381_v58 = vpop.eup %2380 }
 0x261   :  { %v1480_v20 = vmul.f32 %v2381_v58, %v1477_v62 }
 0x263   :  { %2007 = vmatmul.mubr.msk.f32.vlgmr.msra.gmra.mrb[10].mxu0 %vm1486_vm4, %v1480_v20  ;;  %v1482_v56 = vmul.f32 %v1480_v20, %v1472_v8 }
 0x265   :  { %v1483_v23 = vsub.f32 %v1481_v22, %v1482_v56 }
 0x267   :  { %2008 = vmatmul.mubr.msk.f32.vlgmr.msra.gmra.mrb[10].mxu1 %vm1486_vm4, %v1483_v23 }
 0x336   :  { %v1556_v27 = vpop.f32.mrb[10].mxu0 }
 0x337   :  { %v1638_v59 = vrot.slane %v1556_v27, %v1637_v24  ;;  %v1558_v28 = vpop.f32.mrb[11].mxu0 }
 0x338   :  { %v1642_v29 = vrot.slane %v1558_v28, %v1637_v24 }
 0x339   :  { %v1643_v31 = vmul.f32 %v1638_v59, %v3084_v61  ;;  %v1645_v14 = vmul.f32 %v1638_v59, %v3100_v10  ;;  %v1647_v32 = vmul.f32 %v1638_v59, %v3124_v5  ;;  %v1649_v33 = vmul.f32 %v1638_v59, %v3144_v60 }
 0x33a   :  { %v1703_v36 = vmul.f32 %v1638_v59, %v3086_v63  ;;  %v1705_v37 = vmul.f32 %v1638_v59, %v3102_v11  ;;  %v1707_v51 = vmul.f32 %v1638_v59, %v3126_v21  ;;  %v1709_v39 = vmul.f32 %v1638_v59, %v3146_v30  ;;  %v1630_v38 = vpop.f32.mrb[10].mxu1 }
 0x33b   :  { %v1644_v40 = vmul.f32 %v1642_v29, %v3088_v1  ;;  %v1646_v41 = vmul.f32 %v1642_v29, %v3112_v17  ;;  %v1648_v61 = vmul.f32 %v1642_v29, %v3134_v25  ;;  %v1650_v10 = vmul.f32 %v1642_v29, %v3151_v34  ;;  %v1632_v5 = vpop.f32.mrb[11].mxu1 }
 0x33c   :  { %v1704_v60 = vmul.f32 %v1642_v29, %v3090_v2  ;;  %v1706_v63 = vmul.f32 %v1642_v29, %v3114_v18  ;;  %v1708_v11 = vmul.f32 %v1642_v29, %v3136_v26  ;;  %v1710_v21 = vmul.f32 %v1642_v29, %v3153_v35 }
 0x33d   :  { %v1654_v42 = vrot.slane %v1630_v38, %v1637_v24  ;;  %v1658_v30 = vrot.slane %v1632_v5, %v1637_v24 }
 0x33f   :  { %v1659_v43 = vadd.f32 %v1654_v42, %v1643_v31  ;;  %v1661_v44 = vadd.f32 %v1654_v42, %v1645_v14  ;;  %v1663_v1 = vadd.f32 %v1654_v42, %v1647_v32  ;;  %v1665_v45 = vadd.f32 %v1654_v42, %v1649_v33 }
 0x340   :  { %v1711_v17 = vadd.f32 %v1703_v36, %v1654_v42  ;;  %v1713_v46 = vadd.f32 %v1705_v37, %v1654_v42  ;;  %v1715_v25 = vadd.f32 %v1707_v51, %v1654_v42  ;;  %v1717_v47 = vadd.f32 %v1709_v39, %v1654_v42 }
 0x341   :  { %v1667_v34 = vmax.f32 %v1659_v43, 0.0  ;;  %v1669_v48 = vmax.f32 %v1661_v44, 0.0  ;;  %v1671_v49 = vmax.f32 %v1663_v1, 0.0  ;;  %v1673_v2 = vmax.f32 %v1665_v45, 0.0 }
 0x342   :  { %v1719_v50 = vmax.f32 %v1711_v17, 0.0  ;;  %v1721_v18 = vmax.f32 %v1713_v46, 0.0  ;;  %v1723_v52 = vmax.f32 %v1715_v25, 0.0  ;;  %v1725_v26 = vmax.f32 %v1717_v47, 0.0 }
 0x343   :  { %v1660_v53 = vadd.f32 %v1658_v30, %v1644_v40  ;;  %v1662_v35 = vadd.f32 %v1658_v30, %v1646_v41  ;;  %v1664_v54 = vadd.f32 %v1658_v30, %v1648_v61  ;;  %v1666_v57 = vadd.f32 %v1658_v30, %v1650_v10 }
 0x344   :  { %v1712_v15 = vadd.f32 %v1704_v60, %v1658_v30  ;;  %v1714_v4 = vadd.f32 %v1706_v63, %v1658_v30  ;;  %v1716_v7 = vadd.f32 %v1708_v11, %v1658_v30  ;;  %v1718_v9 = vadd.f32 %v1710_v21, %v1658_v30 }
 0x345   :  { %v1668_v12 = vmax.f32 %v1660_v53, 0.0  ;;  %v1670_v16 = vmax.f32 %v1662_v35, 0.0  ;;  %v1672_v8 = vmax.f32 %v1664_v54, 0.0  ;;  %v1674_v6 = vmax.f32 %v1666_v57, 0.0 }
 0x346   :  { %v1720_v55 = vmax.f32 %v1712_v15, 0.0  ;;  %v1722_v3 = vmax.f32 %v1714_v4, 0.0  ;;  %v1724_v13 = vmax.f32 %v1716_v7, 0.0  ;;  %v1726_v19 = vmax.f32 %v1718_v9, 0.0 }
 0x347   :  { %v2017_v0 = vpack.c.bf16 %v1668_v12, %v1667_v34  ;;  %v2018_v62 = vpack.c.bf16 %v1670_v16, %v1669_v48  ;;  %v2019_v58 = vpack.c.bf16 %v1672_v8, %v1671_v49  ;;  %v2020_v20 = vpack.c.bf16 %v1674_v6, %v1673_v2 }
 0x348   :  { %v2021_v22 = vpack.c.bf16 %v1720_v55, %v1719_v50  ;;  %v2022_v56 = vpack.c.bf16 %v1722_v3, %v1721_v18  ;;  %v2023_v23 = vpack.c.bf16 %v1724_v13, %v1723_v52  ;;  %v2024_v24 = vpack.c.bf16 %v1726_v19, %v1725_v26 }
 0x349   :  { %1699 = vst [vmem:[%s3223_s6] sm:$0xff] %v2017_v0  ;;  %1700 = vst [vmem:[%s3223_s6 + $0x10] sm:$0xff] %v2018_v62 }
 0x34a   :  { %1701 = vst [vmem:[%s3223_s6 + $0x20] sm:$0xff] %v2019_v58  ;;  %1702 = vst [vmem:[%s3223_s6 + $0x30] sm:$0xff] %v2020_v20 }
 0x34b   :  { %1751 = vst [vmem:[%s3223_s6 + $0x8] sm:$0xff] %v2021_v22  ;;  %1752 = vst [vmem:[%s3223_s6 + $0x18] sm:$0xff] %v2022_v56 }
 0x34c   :  { %1753 = vst [vmem:[%s3223_s6 + $0x28] sm:$0xff] %v2023_v23  ;;  %1754 = vst [vmem:[%s3223_s6 + $0x38] sm:$0xff] %v2024_v24 }

// kernel: generator_forward.11
= control target key start
LH: loop header
LB: loop body
LE: loop exit
PB: predicated region body
PF: predicated region fallthrough
CT: control target
= control target key end

     0   :  { %v176_v34 = vlaneseq  ;;  %vm66_vm0 = vsmask.f32 256  ;;  %vm137_vm2 = vcmask 1040384   ;;  %vm2880_vm4 = vmmov 0   ;;  %s3980_s1 = inlined_call_operand.vmem [shape: bf16[4,256,256], index: 1, kind: input, shape index: {}]   ;;  %s3981_s0 = inlined_call_operand.vmem [shape: bf16[64,256], index: 0, kind: input, shape index: {}]   ;;  %s3982_s2 = inlined_call_operand.vmem [shape: f32[256,4], index: 2, kind: input, shape index: {}]   ;;  %s3983_s3 = inlined_call_operand.vmem [shape: f32[4,256], index: 3, kind: input, shape index: {}]   ;;  %s3984_s4 = inlined_call_operand.vmem [shape: f32[1,4], index: 4, kind: input, shape index: {}]   ;;  %s3985_s5 = inlined_call_operand.vmem [shape: f32[1,4], index: 5, kind: input, shape index: {}]   ;;  %s3986_s6 = inlined_call_operand.vmem [shape: bf16[64,512], index: 6, kind: output, shape index: {}]  }
   0x1   :  { %v2673_v0 = vld [vmem:[%s3980_s1 + $0x104] ss:$8 sps:$4 sm:$0xff]   ;;  %v2677_v2 = vld [vmem:[%s3980_s1 + $0x100] ss:$8 sps:$4 sm:$0xff]   ;;  %v2679_v4 = vld [vmem:[%s3980_s1 + $0x114] ss:$8 sps:$4 sm:$0xff]  }
   0x2   :  { %v2675_v1 = vld [vmem:[%s3980_s1 + $0x304] ss:$8 sps:$4 sm:$0xff]   ;;  %700 = vmatprep.subr.bf16.mxu0 %v2673_v0  ;;  %v2678_v3 = vld [vmem:[%s3980_s1 + $0x300] ss:$8 sps:$4 sm:$0xff]   ;;  %v2681_v5 = vld [vmem:[%s3980_s1 + $0x314] ss:$8 sps:$4 sm:$0xff]  }
   0x3   :  { %1174 = vmatprep.subr.bf16.mxu1 %v2675_v1  ;;  %701 = vmatpush1.bf16.msra.mxu0 %v2677_v2  ;;  %v2683_v6 = vld [vmem:[%s3980_s1 + $0x110] ss:$8 sps:$4 sm:$0xff]   ;;  %v2685_v8 = vld [vmem:[%s3980_s1 + $0x124] ss:$8 sps:$4 sm:$0xff]   ;;  %v2689_v10 = vld [vmem:[%s3980_s1 + $0x120] ss:$8 sps:$4 sm:$0xff]  }
   0x4   :  { %1175 = vmatpush1.bf16.msra.mxu1 %v2678_v3  ;;  %702 = vmatprep.subr.bf16.mxu0 %v2679_v4  ;;  %v2684_v7 = vld [vmem:[%s3980_s1 + $0x310] ss:$8 sps:$4 sm:$0xff]   ;;  %v2687_v9 = vld [vmem:[%s3980_s1 + $0x324] ss:$8 sps:$4 sm:$0xff]   ;;  %v2690_v11 = vld [vmem:[%s3980_s1 + $0x320] ss:$8 sps:$4 sm:$0xff]  }
   0x5   :  { %1176 = vmatprep.subr.bf16.mxu1 %v2681_v5  ;;  %v2691_v12 = vld [vmem:[%s3980_s1 + $0x134] ss:$8 sps:$4 sm:$0xff]   ;;  %v2695_v14 = vld [vmem:[%s3980_s1 + $0x130] ss:$8 sps:$4 sm:$0xff]   ;;  %v2697_v16 = vld [vmem:[%s3980_s1 + $0x144] ss:$8 sps:$4 sm:$0xff]  }
   0x6   :  { %v2693_v13 = vld [vmem:[%s3980_s1 + $0x334] ss:$8 sps:$4 sm:$0xff]   ;;  %v2696_v15 = vld [vmem:[%s3980_s1 + $0x330] ss:$8 sps:$4 sm:$0xff]   ;;  %v2699_v17 = vld [vmem:[%s3980_s1 + $0x344] ss:$8 sps:$4 sm:$0xff]  }
   0x7   :  { %703 = vmatpush1.bf16.msra.mxu0 %v2683_v6  ;;  %v2701_v18 = vld [vmem:[%s3980_s1 + $0x140] ss:$8 sps:$4 sm:$0xff]   ;;  %v2703_v20 = vld [vmem:[%s3980_s1 + $0x154] ss:$8 sps:$4 sm:$0xff]   ;;  %v2707_v22 = vld [vmem:[%s3980_s1 + $0x150] ss:$8 sps:$4 sm:$0xff]  }
   0x8   :  { %1177 = vmatpush1.bf16.msra.mxu1 %v2684_v7  ;;  %704 = vmatprep.subr.bf16.mxu0 %v2685_v8  ;;  %v2702_v19 = vld [vmem:[%s3980_s1 + $0x340] ss:$8 sps:$4 sm:$0xff]   ;;  %v2705_v21 = vld [vmem:[%s3980_s1 + $0x354] ss:$8 sps:$4 sm:$0xff]   ;;  %v2708_v23 = vld [vmem:[%s3980_s1 + $0x350] ss:$8 sps:$4 sm:$0xff]  }
   0x9   :  { %1178 = vmatprep.subr.bf16.mxu1 %v2687_v9  ;;  %v2709_v24 = vld [vmem:[%s3980_s1 + $0x164] ss:$8 sps:$4 sm:$0xff]   ;;  %v2713_v26 = vld [vmem:[%s3980_s1 + $0x160] ss:$8 sps:$4 sm:$0xff]   ;;  %v2715_v28 = vld [vmem:[%s3980_s1 + $0x174] ss:$8 sps:$4 sm:$0xff]  }
   0xa   :  { %v2711_v25 = vld [vmem:[%s3980_s1 + $0x364] ss:$8 sps:$4 sm:$0xff]   ;;  %v2714_v27 = vld [vmem:[%s3980_s1 + $0x360] ss:$8 sps:$4 sm:$0xff]   ;;  %v2717_v29 = vld [vmem:[%s3980_s1 + $0x374] ss:$8 sps:$4 sm:$0xff]  }
   0xb   :  { %705 = vmatpush1.bf16.msra.mxu0 %v2689_v10  ;;  %v2719_v30 = vld [vmem:[%s3980_s1 + $0x170] ss:$8 sps:$4 sm:$0xff]   ;;  %v2721_v32 = vld [vmem:[%s3980_s1 + $0x184] ss:$8 sps:$4 sm:$0xff]   ;;  %v2725_v35 = vld [vmem:[%s3980_s1 + $0x180] ss:$8 sps:$4 sm:$0xff]  }
   0xc   :  { %1179 = vmatpush1.bf16.msra.mxu1 %v2690_v11  ;;  %706 = vmatprep.subr.bf16.mxu0 %v2691_v12  ;;  %v2720_v31 = vld [vmem:[%s3980_s1 + $0x370] ss:$8 sps:$4 sm:$0xff]   ;;  %v2723_v33 = vld [vmem:[%s3980_s1 + $0x384] ss:$8 sps:$4 sm:$0xff]   ;;  %v2726_v36 = vld [vmem:[%s3980_s1 + $0x380] ss:$8 sps:$4 sm:$0xff]  }
   0xd   :  { %1180 = vmatprep.subr.bf16.mxu1 %v2693_v13  ;;  %v2727_v37 = vld [vmem:[%s3980_s1 + $0x194] ss:$8 sps:$4 sm:$0xff]   ;;  %v3032_v39 = vshrl.u32 %v176_v34, 7  ;;  %v2731_v40 = vld [vmem:[%s3980_s1 + $0x190] ss:$8 sps:$4 sm:$0xff]   ;;  %vm306_vm5 = vmpackc.low %vm2880_vm4, %vm2880_vm4  ;;  %v2881_v60 = vmov 0  }
   0xe   :  { %v2729_v38 = vld [vmem:[%s3980_s1 + $0x394] ss:$8 sps:$4 sm:$0xff]   ;;  %v2732_v41 = vld [vmem:[%s3980_s1 + $0x390] ss:$8 sps:$4 sm:$0xff]   ;;  %v2733_v42 = vld [vmem:[%s3980_s1 + $0x1a4] ss:$8 sps:$4 sm:$0xff]  }
   0xf   :  { %707 = vmatpush1.bf16.msra.mxu0 %v2695_v14  ;;  %v2735_v43 = vld [vmem:[%s3980_s1 + $0x3a4] ss:$8 sps:$4 sm:$0xff]   ;;  %v189_v44 = vand.u32 31, %v3032_v39  ;;  %v2737_v45 = vld [vmem:[%s3980_s1 + $0x1a0] ss:$8 sps:$4 sm:$0xff]   ;;  %vm3104_vm6 = vmand %vm137_vm2, %vm66_vm0  ;;  %v3109_v0 = vsel %vm306_vm5, 65537, %v2881_v60 }
  0x10   :  { %1181 = vmatpush1.bf16.msra.mxu1 %v2696_v15  ;;  %708 = vmatprep.subr.bf16.mxu0 %v2697_v16  ;;  %v2738_v46 = vld [vmem:[%s3980_s1 + $0x3a0] ss:$8 sps:$4 sm:$0xff]   ;;  %v2739_v47 = vld [vmem:[%s3980_s1 + $0x1b4] ss:$8 sps:$4 sm:$0xff]   ;;  %v2743_v50 = vld [vmem:[%s3980_s1 + $0x1b0] ss:$8 sps:$4 sm:$0xff]  }
  0x11   :  { %1182 = vmatprep.subr.bf16.mxu1 %v2699_v17  ;;  %v2741_v48 = vld [vmem:[%s3980_s1 + $0x3b4] ss:$8 sps:$4 sm:$0xff]   ;;  %vm3059_vm1 = vcmp.eq.s32.totalorder %v189_v44, 0  ;;  %v3069_v51 = vld [vmem:[%s3981_s0 + $0x4] ss:$8 sps:$4 sm:$0xff]   ;;  %vm172_vm2 = vcmask 1047552  }
  0x12   :  { %v2744_v52 = vld [vmem:[%s3980_s1 + $0x3b0] ss:$8 sps:$4 sm:$0xff]   ;;  %v2745_v53 = vld [vmem:[%s3980_s1 + $0x1c4] ss:$8 sps:$4 sm:$0xff]   ;;  %v75_v55 = vshrl.u32 %v3069_v51, 16  ;;  %v78_v56 = vshll.u32 %v3069_v51, 16  ;;  %vm305_vm3 = vmpackc.low %vm3059_vm1, %vm3059_vm1  ;;  %1206 = vmatprep.mubr.bf16.mxu1 %v3069_v51 }
  0x13   :  { %709 = vmatpush1.bf16.msra.mxu0 %v2701_v18  ;;  %v2747_v54 = vld [vmem:[%s3980_s1 + $0x3c4] ss:$8 sps:$4 sm:$0xff]   ;;  %v2749_v57 = vld [vmem:[%s3980_s1 + $0x1c0] ss:$8 sps:$4 sm:$0xff]   ;;  %v313_v61 = vsel %vm305_vm3, 65537, %v2881_v60  ;;  %vm1811_vm5 = vcmask 1043456  }
  0x14   :  { %1183 = vmatpush1.bf16.msra.mxu1 %v2702_v19  ;;  %710 = vmatprep.subr.bf16.mxu0 %v2703_v20  ;;  %v2750_v58 = vld [vmem:[%s3980_s1 + $0x3c0] ss:$8 sps:$4 sm:$0xff]   ;;  %v3094_v59 = vrot.slane %v75_v55, 7  ;;  %v2751_v1 = vld [vmem:[%s3980_s1 + $0x1d4] ss:$8 sps:$4 sm:$0xff]   ;;  %v2197_v4 = vcombine.low %v313_v61, %v3109_v0 }
  0x15   :  { %1184 = vmatprep.subr.bf16.mxu1 %v2705_v21  ;;  %v3100_v62 = vld [vmem:[%s3981_s0] ss:$8 sps:$4 sm:$0xff]   ;;  %v2753_v2 = vld [vmem:[%s3980_s1 + $0x3d4] ss:$8 sps:$4 sm:$0xff]   ;;  %v2755_v5 = vld [vmem:[%s3980_s1 + $0x1d0] ss:$8 sps:$4 sm:$0xff]  }
  0x16   :  { %v80_v3 = vor.u32 %v78_v56, %v3094_v59  ;;  %v2756_v7 = vld [vmem:[%s3980_s1 + $0x3d0] ss:$8 sps:$4 sm:$0xff]   ;;  %v68_v8 = vshrl.u32 %v3100_v62, 16  ;;  %vm3130_vm7 = vcmp.eq.s16.totalorder %v2197_v4, 0  ;;  %v2757_v10 = vld [vmem:[%s3980_s1 + $0x1e4] ss:$8 sps:$4 sm:$0xff]  }
  0x17   :  { %711 = vmatpush1.bf16.msra.mxu0 %v2707_v22  ;;  %v2759_v11 = vld [vmem:[%s3980_s1 + $0x3e4] ss:$8 sps:$4 sm:$0xff]   ;;  %v2761_v12 = vld [vmem:[%s3980_s1 + $0x1e0] ss:$8 sps:$4 sm:$0xff]   ;;  %v71_v15 = vshll.u32 %v3100_v62, 16 }
  0x18   :  { %1185 = vmatpush1.bf16.msra.mxu1 %v2708_v23  ;;  %712 = vmatprep.subr.bf16.mxu0 %v2709_v24  ;;  %v140_v6 = vsel %vm3104_vm6, 0, %v80_v3  ;;  %v2762_v13 = vld [vmem:[%s3980_s1 + $0x3e0] ss:$8 sps:$4 sm:$0xff]   ;;  %v3150_v14 = vrot.slane %v68_v8, 7  ;;  %v2763_v16 = vld [vmem:[%s3980_s1 + $0x1f4] ss:$8 sps:$4 sm:$0xff]  }
  0x19   :  { %1186 = vmatprep.subr.bf16.mxu1 %v2711_v25  ;;  %2334 = vmatprep.mubr.msk.bf16.mxu0 %vm3130_vm7, %v140_v6  ;;  %v2765_v17 = vld [vmem:[%s3980_s1 + $0x3f4] ss:$8 sps:$4 sm:$0xff]   ;;  %v2767_v18 = vld [vmem:[%s3980_s1 + $0x1f0] ss:$8 sps:$4 sm:$0xff]   ;;  %v2774_v21 = vld [vmem:[%s3980_s1 + $0x4] ss:$8 sps:$4 sm:$0xff]  }
  0x1a   :  { %v2768_v19 = vld [vmem:[%s3980_s1 + $0x3f0] ss:$8 sps:$4 sm:$0xff]   ;;  %v73_v20 = vor.u32 %v71_v15, %v3150_v14  ;;  %v2777_v22 = vld [vmem:[%s3980_s1 + $0x204] ss:$8 sps:$4 sm:$0xff]   ;;  %v2772_v23 = vld [vmem:[%s3980_s1] ss:$8 sps:$4 sm:$0xff]  }
  0x1b   :  { %713 = vmatpush1.bf16.msra.mxu0 %v2713_v26  ;;  %v2775_v25 = vld [vmem:[%s3980_s1 + $0x200] ss:$8 sps:$4 sm:$0xff]   ;;  %v180_v26 = vadd.s32 24, %v3032_v39  ;;  %v2789_v34 = vld [vmem:[%s3980_s1 + $0x224] ss:$8 sps:$4 sm:$0xff]  }
  0x1c   :  { %1187 = vmatpush1.bf16.msra.mxu1 %v2714_v27  ;;  %714 = vmatprep.subr.bf16.mxu0 %v2715_v28  ;;  %v139_v24 = vsel %vm3104_vm6, 0, %v73_v20  ;;  %v2780_v27 = vld [vmem:[%s3980_s1 + $0x14] ss:$8 sps:$4 sm:$0xff]   ;;  %v3230_v44 = vld [vmem:[%s3981_s0 + $0x10] ss:$8 sps:$4 sm:$0xff]   ;;  %vm1807_vm6 = vcmask 31744  }
  0x1d   :  { %1188 = vmatprep.subr.bf16.mxu1 %v2717_v29  ;;  %v2783_v28 = vld [vmem:[%s3980_s1 + $0x214] ss:$8 sps:$4 sm:$0xff]   ;;  %v181_v29 = vadd.s32 32, %v3032_v39  ;;  %v2801_v61 = vld [vmem:[%s3980_s1 + $0x244] ss:$8 sps:$4 sm:$0xff]  }
  0x1e   :  { %v2796_v3 = vld [vmem:[%s3980_s1 + $0x40] ss:$8 sps:$4 sm:$0xff]   ;;  %vm141_vm14 = vsmask.f32 7424 }
  0x1f   :  { %715 = vmatpush1.bf16.msra.mxu0 %v2719_v30  ;;  %v2778_v30 = vld [vmem:[%s3980_s1 + $0x10] ss:$8 sps:$4 sm:$0xff]   ;;  %v2799_v6 = vld [vmem:[%s3980_s1 + $0x240] ss:$8 sps:$4 sm:$0xff]   ;;  %vm173_vm3 = vmand %vm172_vm2, %vm141_vm14 }
  0x20   :  { %1189 = vmatpush1.bf16.msra.mxu1 %v2720_v31  ;;  %716 = vmatprep.subr.bf16.mxu0 %v2721_v32  ;;  %v2781_v31 = vld [vmem:[%s3980_s1 + $0x210] ss:$8 sps:$4 sm:$0xff]   ;;  %v210_v32 = vand.u32 31, %v180_v26 }
  0x21   :  { %1190 = vmatprep.subr.bf16.mxu1 %v2723_v33  ;;  %v2786_v33 = vld [vmem:[%s3980_s1 + $0x24] ss:$8 sps:$4 sm:$0xff]  }
  0x22   :  { %vm3218_vm8 = vcmp.eq.s32.totalorder %v210_v32, 31 }
  0x23   :  { %717 = vmatpush1.bf16.msra.mxu0 %v2725_v35  ;;  %v217_v35 = vand.u32 31, %v181_v29  ;;  %vm372_vm10 = vmpackc.low %vm3218_vm8, %vm3218_vm8  ;;  %v2808_v29 = vld [vmem:[%s3980_s1 + $0x60] ss:$8 sps:$4 sm:$0xff]  }
  0x24   :  { %1191 = vmatpush1.bf16.msra.mxu1 %v2726_v36  ;;  %718 = vmatprep.subr.bf16.mxu0 %v2727_v37  ;;  %v2784_v36 = vld [vmem:[%s3980_s1 + $0x20] ss:$8 sps:$4 sm:$0xff]  }
  0x25   :  { %1192 = vmatprep.subr.bf16.mxu1 %v2729_v38  ;;  %v2787_v37 = vld [vmem:[%s3980_s1 + $0x220] ss:$8 sps:$4 sm:$0xff]   ;;  %v184_v38 = vadd.s32 56, %v3032_v39  ;;  %vm3237_vm9 = vcmp.eq.s32.totalorder %v217_v35, 0 }
  0x26   :  { %vm309_vm11 = vmpackc.low %vm3237_vm9, %vm3237_vm9 }
  0x27   :  { %719 = vmatpush1.bf16.msra.mxu0 %v2731_v40  ;;  %v2792_v40 = vld [vmem:[%s3980_s1 + $0x34] ss:$8 sps:$4 sm:$0xff]  }
  0x28   :  { %1193 = vmatpush1.bf16.msra.mxu1 %v2732_v41  ;;  %720 = vmatprep.subr.bf16.mxu0 %v2733_v42  ;;  %v2795_v41 = vld [vmem:[%s3980_s1 + $0x234] ss:$8 sps:$4 sm:$0xff]  }
  0x29   :  { %1194 = vmatprep.subr.bf16.mxu1 %v2735_v43  ;;  %v3225_v43 = vld [vmem:[%s3981_s0 + $0x14] ss:$8 sps:$4 sm:$0xff]  }
  0x2a   :  { %v90_v49 = vshrl.u32 %v3225_v43, 16  ;;  %v2819_v42 = vld [vmem:[%s3980_s1 + $0x274] ss:$8 sps:$4 sm:$0xff]  }
  0x2b   :  { %721 = vmatpush1.bf16.msra.mxu0 %v2737_v45  ;;  %v2198_v45 = vcombine.low %v3109_v0, %v3109_v0 }
  0x2c   :  { %1195 = vmatpush1.bf16.msra.mxu1 %v2738_v46  ;;  %722 = vmatprep.subr.bf16.mxu0 %v2739_v47  ;;  %v2790_v46 = vld [vmem:[%s3980_s1 + $0x30] ss:$8 sps:$4 sm:$0xff]   ;;  %v92_v63 = vrot.slane %v90_v49, 7 }
  0x2d   :  { %1196 = vmatprep.subr.bf16.mxu1 %v2741_v48  ;;  %v238_v48 = vand.u32 31, %v184_v38  ;;  %vm3278_vm13 = vcmp.eq.s16.totalorder %v2198_v45, 0 }
  0x2f   :  { %723 = vmatpush1.bf16.msra.mxu0 %v2743_v50  ;;  %v93_v50 = vshll.u32 %v3225_v43, 16  ;;  %vm3274_vm12 = vcmp.eq.s32.totalorder %v238_v48, 31 }
  0x30   :  { %1197 = vmatpush1.bf16.msra.mxu1 %v2744_v52  ;;  %724 = vmatprep.subr.bf16.mxu0 %v2745_v53  ;;  %v82_v52 = vshrl.u32 %v3230_v44, 16  ;;  %v85_v53 = vshll.u32 %v3230_v44, 16  ;;  %vm376_vm15 = vmpackc.low %vm3274_vm12, %vm3274_vm12 }
  0x31   :  { %1198 = vmatprep.subr.bf16.mxu1 %v2747_v54  ;;  %v2793_v54 = vld [vmem:[%s3980_s1 + $0x230] ss:$8 sps:$4 sm:$0xff]   ;;  %v95_v9 = vor.u32 %v93_v50, %v92_v63 }
  0x33   :  { %725 = vmatpush1.bf16.msra.mxu0 %v2749_v57  ;;  %v2798_v57 = vld [vmem:[%s3980_s1 + $0x44] ss:$8 sps:$4 sm:$0xff]  }
  0x34   :  { %1199 = vmatpush1.bf16.msra.mxu1 %v2750_v58  ;;  %726 = vmatprep.subr.bf16.mxu0 %v2751_v1  ;;  %v3256_v58 = vsel %vm372_vm10, 65537, %v2881_v60  ;;  %v84_v1 = vrot.slane %v82_v52, 7 }
  0x35   :  { %1200 = vmatprep.subr.bf16.mxu1 %v2753_v2  ;;  %v2202_v2 = vcombine.low %v3109_v0, %v3256_v58 }
  0x37   :  { %727 = vmatpush1.bf16.msra.mxu0 %v2755_v5 }
  0x38   :  { %1201 = vmatpush1.bf16.msra.mxu1 %v2756_v7  ;;  %728 = vmatprep.subr.bf16.mxu0 %v2757_v10  ;;  %v2804_v7 = vld [vmem:[%s3980_s1 + $0x54] ss:$8 sps:$4 sm:$0xff]   ;;  %v87_v10 = vor.u32 %v85_v53, %v84_v1 }
  0x39   :  { %1202 = vmatprep.subr.bf16.mxu1 %v2759_v11  ;;  %v3295_v11 = vld [vmem:[%s3981_s0 + $0x24] ss:$8 sps:$4 sm:$0xff]  }
  0x3a   :  { %v109_v20 = vshll.u32 %v3295_v11, 16 }
  0x3b   :  { %729 = vmatpush1.bf16.msra.mxu0 %v2761_v12  ;;  %v317_v12 = vsel %vm309_vm11, 65537, %v2881_v60 }
  0x3c   :  { %1203 = vmatpush1.bf16.msra.mxu1 %v2762_v13  ;;  %730 = vmatprep.subr.bf16.mxu0 %v2763_v16  ;;  %v3301_v13 = vld [vmem:[%s3981_s0 + $0x20] ss:$8 sps:$4 sm:$0xff]   ;;  %v2807_v16 = vld [vmem:[%s3980_s1 + $0x254] ss:$8 sps:$4 sm:$0xff]  }
  0x3d   :  { %1204 = vmatprep.subr.bf16.mxu1 %v2765_v17  ;;  %v96_v17 = vsel %vm66_vm0, %v3094_v59, %v95_v9  ;;  %v146_v59 = vrot.slane %v78_v56, 1  ;;  %v2823_v9 = vld [vmem:[%s3980_s1 + $0x280] ss:$8 sps:$4 sm:$0xff]  }
  0x3f   :  { %731 = vmatpush1.bf16.msra.mxu0 %v2767_v18  ;;  %v88_v18 = vsel %vm66_vm0, %v3150_v14, %v87_v10  ;;  %v2802_v14 = vld [vmem:[%s3980_s1 + $0x50] ss:$8 sps:$4 sm:$0xff]   ;;  %v147_v38 = vor.u32 %v146_v59, %v75_v55  ;;  %v2837_v59 = vld [vmem:[%s3980_s1 + $0xa4] ss:$8 sps:$4 sm:$0xff]  }
  0x40   :  { %1205 = vmatpush1.bf16.msra.mxu1 %v2768_v19  ;;  %941 = vmatprep.subr.bf16.mxu0 %v2774_v21  ;;  %v106_v19 = vshrl.u32 %v3295_v11, 16  ;;  %v98_v21 = vshrl.u32 %v3301_v13, 16 }
  0x41   :  { %1407 = vmatprep.subr.bf16.mxu1 %v2777_v22  ;;  %v101_v22 = vshll.u32 %v3301_v13, 16 }
  0x42   :  { %2336 = vmatmul.mubr.msk.bf16.vlgmr.msra.gmra.mrb[0].mxu0 %vm3130_vm7, %v139_v24  ;;  %v3329_v24 = vsel %vm376_vm15, 65537, %v2881_v60  ;;  %v108_v56 = vrot.slane %v106_v19, 7  ;;  %v100_v26 = vrot.slane %v98_v21, 7  ;;  %v2810_v60 = vld [vmem:[%s3980_s1 + $0x64] ss:$8 sps:$4 sm:$0xff]  }
  0x43   :  { %1207 = vmatmul.mubr.bf16.vlgmr.msra.gmra.mrb[0].mxu1 %v3100_v62  ;;  %942 = vmatpush1.bf16.msra.mxu0 %v2772_v23  ;;  %v2199_v23 = vcombine.low %v317_v12, %v3109_v0  ;;  %v2828_v12 = vld [vmem:[%s3980_s1 + $0x94] ss:$8 sps:$4 sm:$0xff]  }
  0x44   :  { %1408 = vmatpush1.bf16.msra.mxu1 %v2775_v25  ;;  %943 = vmatprep.subr.bf16.mxu0 %v2780_v27  ;;  %v2805_v25 = vld [vmem:[%s3980_s1 + $0x250] ss:$8 sps:$4 sm:$0xff]   ;;  %v2204_v27 = vcombine.low %v3109_v0, %v3329_v24  ;;  %v103_v32 = vor.u32 %v101_v22, %v100_v26  ;;  %v1636_v0 = vld [vmem:[%s3982_s2 + $0x80] sm:$0xff] }
  0x45   :  { %1409 = vmatprep.subr.bf16.mxu1 %v2783_v28  ;;  %1216 = vmatprep.mubr.bf16.mxu1 %v3225_v43  ;;  %v2813_v28 = vld [vmem:[%s3980_s1 + $0x264] ss:$8 sps:$4 sm:$0xff]   ;;  %vm3357_vm1 = vcmp.eq.s16.totalorder %v2199_v23, 0  ;;  %v2835_v23 = vld [vmem:[%s3980_s1 + $0xa0] ss:$8 sps:$4 sm:$0xff]  }
  0x46   :  { %2338 = vmatprep.mubr.msk.bf16.mxu0 %vm3278_vm13, %v96_v17  ;;  %v2826_v17 = vld [vmem:[%s3980_s1 + $0x90] ss:$8 sps:$4 sm:$0xff]   ;;  %vm2503_vm4 = vcmp.eq.s16.totalorder %v2204_v27, 0  ;;  %v1620_v24 = vld [vmem:[%s3982_s2] sm:$0xff]  ;;  %v1621_v27 = vld [vmem:[%s3982_s2 + $0x8] sm:$0xff] }
  0x47   :  { %944 = vmatpush1.bf16.msra.mxu0 %v2778_v30  ;;  %v2811_v30 = vld [vmem:[%s3980_s1 + $0x260] ss:$8 sps:$4 sm:$0xff]  }
  0x48   :  { %1410 = vmatpush1.bf16.msra.mxu1 %v2781_v31  ;;  %945 = vmatprep.subr.bf16.mxu0 %v2786_v33  ;;  %v111_v31 = vor.u32 %v109_v20, %v108_v56  ;;  %v2861_v33 = vld [vmem:[%s3980_s1 + $0x2d4] ss:$8 sps:$4 sm:$0xff]  }
  0x49   :  { %1411 = vmatprep.subr.bf16.mxu1 %v2789_v34  ;;  %v3364_v34 = vld [vmem:[%s3981_s0 + $0x34] ss:$8 sps:$4 sm:$0xff]  }
  0x4a   :  { %2340 = vmatmul.mubr.msk.bf16.gmra.mrb[4].mxu0 %vm3278_vm13, %v88_v18  ;;  %v112_v35 = vsel %vm66_vm0, %v92_v63, %v111_v31  ;;  %v122_v45 = vshrl.u32 %v3364_v34, 16  ;;  %v2822_v63 = vld [vmem:[%s3980_s1 + $0x84] ss:$8 sps:$4 sm:$0xff]   ;;  %v2829_v18 = vld [vmem:[%s3980_s1 + $0x290] ss:$8 sps:$4 sm:$0xff]  }
  0x4b   :  { %946 = vmatpush1.bf16.msra.mxu0 %v2784_v36  ;;  %1217 = vmatmul.mubr.bf16.gmra.mrb[4].mxu1 %v3230_v44  ;;  %v104_v36 = vsel %vm66_vm0, %v84_v1, %v103_v32  ;;  %v2825_v1 = vld [vmem:[%s3980_s1 + $0x284] ss:$8 sps:$4 sm:$0xff]   ;;  %v2853_v31 = vld [vmem:[%s3980_s1 + $0x2c0] ss:$8 sps:$4 sm:$0xff]   ;;  %v2858_v32 = vld [vmem:[%s3980_s1 + $0xd4] ss:$8 sps:$4 sm:$0xff]  }
  0x4c   :  { %1412 = vmatpush1.bf16.msra.mxu1 %v2787_v37  ;;  %947 = vmatprep.subr.bf16.mxu0 %v2792_v40  ;;  %v3371_v37 = vld [vmem:[%s3981_s0 + $0x30] ss:$8 sps:$4 sm:$0xff]   ;;  %v3377_v40 = vrot.slane %v93_v50, 1  ;;  %v124_v48 = vrot.slane %v122_v45, 7 }
  0x4d   :  { %1413 = vmatprep.subr.bf16.mxu1 %v2795_v41  ;;  %1226 = vmatprep.mubr.bf16.mxu1 %v3295_v11  ;;  %v2816_v41 = vld [vmem:[%s3980_s1 + $0x74] ss:$8 sps:$4 sm:$0xff]   ;;  %v114_v55 = vshrl.u32 %v3371_v37, 16  ;;  %v117_v47 = vshll.u32 %v3371_v37, 16  ;;  %v2814_v50 = vld [vmem:[%s3980_s1 + $0x70] ss:$8 sps:$4 sm:$0xff]  }
  0x4e   :  { %2342 = vmatprep.mubr.msk.bf16.mxu0 %vm3357_vm1, %v112_v35  ;;  %v2856_v35 = vld [vmem:[%s3980_s1 + $0xd0] ss:$8 sps:$4 sm:$0xff]  }
  0x4f   :  { %948 = vmatpush1.bf16.msra.mxu0 %v2790_v46  ;;  %v125_v46 = vshll.u32 %v3364_v34, 16 }
  0x50   :  { %1414 = vmatpush1.bf16.msra.mxu1 %v2793_v54  ;;  %949 = vmatprep.subr.bf16.mxu0 %v2798_v57  ;;  %v2817_v54 = vld [vmem:[%s3980_s1 + $0x270] ss:$8 sps:$4 sm:$0xff]   ;;  %v116_v57 = vrot.slane %v114_v55, 7 }
  0x51   :  { %1415 = vmatprep.subr.bf16.mxu1 %v2801_v61  ;;  %v149_v61 = vsel %vm141_vm14, %v147_v38, %v3377_v40  ;;  %v2867_v38 = vld [vmem:[%s3980_s1 + $0xe4] ss:$8 sps:$4 sm:$0xff]   ;;  %v160_v58 = vrot.slane %v125_v46, 1 }
  0x52   :  { %2344 = vmatmul.mubr.msk.bf16.gmra.mrb[8].mxu0 %vm3357_vm1, %v104_v36  ;;  %v119_v4 = vor.u32 %v117_v47, %v116_v57  ;;  %v2859_v36 = vld [vmem:[%s3980_s1 + $0x2d0] ss:$8 sps:$4 sm:$0xff]  }
  0x53   :  { %950 = vmatpush1.bf16.msra.mxu0 %v2796_v3  ;;  %1227 = vmatmul.mubr.bf16.gmra.mrb[8].mxu1 %v3301_v13  ;;  %v127_v3 = vor.u32 %v125_v46, %v124_v48  ;;  %v2865_v48 = vld [vmem:[%s3980_s1 + $0xe0] ss:$8 sps:$4 sm:$0xff]  }
  0x54   :  { %1416 = vmatpush1.bf16.msra.mxu1 %v2799_v6  ;;  %951 = vmatprep.subr.bf16.mxu0 %v2804_v7  ;;  %v2820_v7 = vld [vmem:[%s3980_s1 + $0x80] ss:$8 sps:$4 sm:$0xff]   ;;  %v120_v10 = vsel %vm66_vm0, %v100_v26, %v119_v4  ;;  %v2841_v26 = vld [vmem:[%s3980_s1 + $0xb0] ss:$8 sps:$4 sm:$0xff]  }
  0x55   :  { %1417 = vmatprep.subr.bf16.mxu1 %v2807_v16  ;;  %1236 = vmatprep.mubr.bf16.mxu1 %v3364_v34  ;;  %v128_v6 = vsel %vm66_vm0, %v108_v56, %v127_v3  ;;  %v2831_v16 = vld [vmem:[%s3980_s1 + $0x294] ss:$8 sps:$4 sm:$0xff]   ;;  %v153_v3 = vor.u32 %v3377_v40, %v90_v49  ;;  %vm2502_vm0 = vcmp.eq.s16.totalorder %v2202_v2, 0 }
  0x56   :  { %2346 = vmatprep.mubr.msk.bf16.mxu0 %vm3278_vm13, %v128_v6  ;;  %v2843_v56 = vld [vmem:[%s3980_s1 + $0xb4] ss:$8 sps:$4 sm:$0xff]  }
  0x57   :  { %952 = vmatpush1.bf16.msra.mxu0 %v2802_v14  ;;  %v2840_v14 = vld [vmem:[%s3980_s1 + $0x2a4] ss:$8 sps:$4 sm:$0xff]  }
  0x58   :  { %1418 = vmatpush1.bf16.msra.mxu1 %v2805_v25  ;;  %953 = vmatprep.subr.bf16.mxu0 %v2810_v60  ;;  %v2838_v25 = vld [vmem:[%s3980_s1 + $0x2a0] ss:$8 sps:$4 sm:$0xff]   ;;  %v2844_v60 = vld [vmem:[%s3980_s1 + $0x2b0] ss:$8 sps:$4 sm:$0xff]  }
  0x59   :  { %1419 = vmatprep.subr.bf16.mxu1 %v2813_v28  ;;  %v2852_v28 = vld [vmem:[%s3980_s1 + $0xc4] ss:$8 sps:$4 sm:$0xff]  }
  0x5a   :  { %2348 = vmatmul.mubr.msk.bf16.gmra.mrb[12].mxu0 %vm3278_vm13, %v120_v10 }
  0x5b   :  { %954 = vmatpush1.bf16.msra.mxu0 %v2808_v29  ;;  %1237 = vmatmul.mubr.bf16.gmra.mrb[12].mxu1 %v3371_v37  ;;  %v2855_v29 = vld [vmem:[%s3980_s1 + $0x2c4] ss:$8 sps:$4 sm:$0xff]  }
  0x5c   :  { %1420 = vmatpush1.bf16.msra.mxu1 %v2811_v30  ;;  %955 = vmatprep.subr.bf16.mxu0 %v2816_v41  ;;  %v2850_v30 = vld [vmem:[%s3980_s1 + $0xc0] ss:$8 sps:$4 sm:$0xff]   ;;  %v2870_v41 = vld [vmem:[%s3980_s1 + $0x2e4] ss:$8 sps:$4 sm:$0xff]  }
  0x5d   :  { %1421 = vmatprep.subr.bf16.mxu1 %v2819_v42  ;;  %2446 = vmatprep.mubr.msk.bf16.mxu1 %vm3278_vm13, %v149_v61  ;;  %v142_v42 = vrot.slane %v71_v15, 1  ;;  %v2876_v15 = vld [vmem:[%s3980_s1 + $0x2f4] ss:$8 sps:$4 sm:$0xff]   ;;  %v144_v61 = vrot.slane %v85_v53, 1 }
  0x5e   :  { %973 = vmatprep.mubr.bf16.mxu0 %v3069_v51  ;;  %v2846_v51 = vld [vmem:[%s3980_s1 + $0x2b4] ss:$8 sps:$4 sm:$0xff]  }
  0x5f   :  { %956 = vmatpush1.bf16.msra.mxu0 %v2814_v50  ;;  %v2868_v50 = vld [vmem:[%s3980_s1 + $0x2e0] ss:$8 sps:$4 sm:$0xff]   ;;  %v143_v57 = vor.u32 %v142_v42, %v68_v8  ;;  %v154_v8 = vrot.slane %v109_v20, 1  ;;  %v150_v49 = vor.u32 %v144_v61, %v82_v52  ;;  %v151_v20 = vrot.slane %v101_v22, 1 }
  0x60   :  { %1422 = vmatpush1.bf16.msra.mxu1 %v2817_v54  ;;  %957 = vmatprep.subr.bf16.mxu0 %v2822_v63  ;;  %v2873_v54 = vld [vmem:[%s3980_s1 + $0xf4] ss:$8 sps:$4 sm:$0xff]   ;;  %v2871_v63 = vld [vmem:[%s3980_s1 + $0xf0] ss:$8 sps:$4 sm:$0xff]   ;;  %v157_v52 = vrot.slane %v117_v47, 1  ;;  %v1649_v42 = vld [vmem:[%s3982_s2 + $0xe8] sm:$0xff] }
  0x61   :  { %1423 = vmatprep.subr.bf16.mxu1 %v2825_v1  ;;  %v2874_v1 = vld [vmem:[%s3980_s1 + $0x2f0] ss:$8 sps:$4 sm:$0xff]   ;;  %v145_v53 = vsel %vm141_vm14, %v143_v57, %v144_v61  ;;  %v155_v4 = vsel %vm141_vm14, %v153_v3, %v154_v8  ;;  %v159_v40 = vor.u32 %v154_v8, %v106_v19  ;;  %v163_v19 = vor.u32 %v160_v58, %v122_v45 }
  0x62   :  { %v1639_v45 = vld [vmem:[%s3982_s2 + $0x98] sm:$0xff]  ;;  %v1650_v57 = vld [vmem:[%s3982_s2 + $0xf0] sm:$0xff] }
  0x63   :  { %958 = vmatpush1.bf16.msra.mxu0 %v2820_v7  ;;  %v161_v2 = vsel %vm141_vm14, %v159_v40, %v160_v58  ;;  %v175_v22 = vsel %vm173_vm3, %v163_v19, 0  ;;  %v1623_v47 = vld [vmem:[%s3982_s2 + $0x18] sm:$0xff]  ;;  %v1640_v7 = vld [vmem:[%s3982_s2 + $0xa0] sm:$0xff] }
  0x64   :  { %1424 = vmatpush1.bf16.msra.mxu1 %v2823_v9  ;;  %959 = vmatprep.subr.bf16.mxu0 %v2828_v12  ;;  %v1641_v9 = vld [vmem:[%s3982_s2 + $0xa8] sm:$0xff]  ;;  %v1624_v12 = vld [vmem:[%s3982_s2 + $0x20] sm:$0xff]  ;;  %v1651_v61 = vld [vmem:[%s3982_s2 + $0xf8] sm:$0xff] }
  0x65   :  { %1425 = vmatprep.subr.bf16.mxu1 %v2831_v16  ;;  %v2582_v10 = vpack.c.bf16 %v1641_v9, %v1640_v7  ;;  %v1625_v16 = vld [vmem:[%s3982_s2 + $0x28] sm:$0xff]  ;;  %v1635_v3 = vld [vmem:[%s3982_s2 + $0x78] sm:$0xff] }
  0x67   :  { %960 = vmatpush1.bf16.msra.mxu0 %v2826_v17  ;;  %v2584_v17 = vpack.c.bf16 %v1625_v16, %v1624_v12 }
  0x68   :  { %1426 = vmatpush1.bf16.msra.mxu1 %v2829_v18  ;;  %961 = vmatprep.subr.bf16.mxu0 %v2837_v59  ;;  %v1642_v18 = vld [vmem:[%s3982_s2 + $0xb0] sm:$0xff]  ;;  %v1643_v59 = vld [vmem:[%s3982_s2 + $0xb8] sm:$0xff] }
  0x69   :  { %1427 = vmatprep.subr.bf16.mxu1 %v2840_v14  ;;  %v2586_v14 = vpack.c.bf16 %v1643_v59, %v1642_v18 }
  0x6b   :  { %962 = vmatpush1.bf16.msra.mxu0 %v2835_v23  ;;  %v1626_v23 = vld [vmem:[%s3982_s2 + $0x30] sm:$0xff] }
  0x6c   :  { %1428 = vmatpush1.bf16.msra.mxu1 %v2838_v25  ;;  %963 = vmatprep.subr.bf16.mxu0 %v2843_v56  ;;  %v1627_v25 = vld [vmem:[%s3982_s2 + $0x38] sm:$0xff] }
  0x6d   :  { %1429 = vmatprep.subr.bf16.mxu1 %v2846_v51  ;;  %v2588_v56 = vpack.c.bf16 %v1627_v25, %v1626_v23  ;;  %v1644_v51 = vld [vmem:[%s3982_s2 + $0xc0] sm:$0xff] }
  0x6f   :  { %964 = vmatpush1.bf16.msra.mxu0 %v2841_v26  ;;  %v1645_v26 = vld [vmem:[%s3982_s2 + $0xc8] sm:$0xff] }
  0x70   :  { %1430 = vmatpush1.bf16.msra.mxu1 %v2844_v60  ;;  %965 = vmatprep.subr.bf16.mxu0 %v2852_v28  ;;  %v2590_v60 = vpack.c.bf16 %v1645_v26, %v1644_v51  ;;  %v1628_v28 = vld [vmem:[%s3982_s2 + $0x40] sm:$0xff] }
  0x71   :  { %1431 = vmatprep.subr.bf16.mxu1 %v2855_v29  ;;  %v1629_v29 = vld [vmem:[%s3982_s2 + $0x48] sm:$0xff] }
  0x73   :  { %966 = vmatpush1.bf16.msra.mxu0 %v2850_v30  ;;  %v2592_v30 = vpack.c.bf16 %v1629_v29, %v1628_v28 }
  0x74   :  { %1432 = vmatpush1.bf16.msra.mxu1 %v2853_v31  ;;  %967 = vmatprep.subr.bf16.mxu0 %v2858_v32  ;;  %v1646_v31 = vld [vmem:[%s3982_s2 + $0xd0] sm:$0xff]  ;;  %v1647_v32 = vld [vmem:[%s3982_s2 + $0xd8] sm:$0xff] }
  0x75   :  { %1433 = vmatprep.subr.bf16.mxu1 %v2861_v33  ;;  %v2594_v33 = vpack.c.bf16 %v1647_v32, %v1646_v31 }
  0x77   :  { %968 = vmatpush1.bf16.msra.mxu0 %v2856_v35  ;;  %v1630_v35 = vld [vmem:[%s3982_s2 + $0x50] sm:$0xff] }
  0x78   :  { %1434 = vmatpush1.bf16.msra.mxu1 %v2859_v36  ;;  %969 = vmatprep.subr.bf16.mxu0 %v2867_v38  ;;  %v1631_v36 = vld [vmem:[%s3982_s2 + $0x58] sm:$0xff] }
  0x79   :  { %1435 = vmatprep.subr.bf16.mxu1 %v2870_v41  ;;  %v2596_v38 = vpack.c.bf16 %v1631_v36, %v1630_v35  ;;  %v1648_v41 = vld [vmem:[%s3982_s2 + $0xe0] sm:$0xff] }
  0x7b   :  { %970 = vmatpush1.bf16.msra.mxu0 %v2865_v48  ;;  %v2598_v48 = vpack.c.bf16 %v1649_v42, %v1648_v41 }
  0x7c   :  { %1436 = vmatpush1.bf16.msra.mxu1 %v2868_v50  ;;  %971 = vmatprep.subr.bf16.mxu0 %v2873_v54  ;;  %v1632_v50 = vld [vmem:[%s3982_s2 + $0x60] sm:$0xff]  ;;  %v1633_v54 = vld [vmem:[%s3982_s2 + $0x68] sm:$0xff] }
  0x7d   :  { %1437 = vmatprep.subr.bf16.mxu1 %v2876_v15  ;;  %v2600_v15 = vpack.c.bf16 %v1633_v54, %v1632_v50 }
  0x7f   :  { %972 = vmatpush1.bf16.msra.mxu0 %v2871_v63  ;;  %v2602_v63 = vpack.c.bf16 %v1651_v61, %v1650_v57 }
  0x80   :  { %1438 = vmatpush1.bf16.msra.mxu1 %v2874_v1  ;;  %v1634_v1 = vld [vmem:[%s3982_s2 + $0x70] sm:$0xff] }
  0x81   :  { %v2604_v8 = vpack.c.bf16 %v1635_v3, %v1634_v1 }
  0x82   :  { %974 = vmatmul.mubr.bf16.vlgmr.msra.gmra.mrb[0].mxu0 %v3100_v62  ;;  %v152_v62 = vsel %vm141_vm14, %v150_v49, %v151_v20 }
  0x83   :  { %2448 = vmatmul.mubr.msk.bf16.vlgmr.msra.gmra.mrb[0].mxu1 %vm3278_vm13, %v145_v53  ;;  %983 = vmatprep.mubr.bf16.mxu0 %v3225_v43  ;;  %v156_v43 = vor.u32 %v151_v20, %v98_v21 }
  0x84   :  { %2450 = vmatprep.mubr.msk.bf16.mxu1 %vm2502_vm0, %v155_v4 }
  0x8a   :  { %984 = vmatmul.mubr.bf16.gmra.mrb[4].mxu0 %v3230_v44  ;;  %v158_v44 = vsel %vm141_vm14, %v156_v43, %v157_v52 }
  0x8b   :  { %2452 = vmatmul.mubr.msk.bf16.gmra.mrb[4].mxu1 %vm2502_vm0, %v152_v62  ;;  %993 = vmatprep.mubr.bf16.mxu0 %v3295_v11  ;;  %v162_v11 = vor.u32 %v157_v52, %v114_v55  ;;  %v1622_v55 = vld [vmem:[%s3982_s2 + $0x10] sm:$0xff] }
  0x8c   :  { %2454 = vmatprep.mubr.msk.bf16.mxu1 %vm3278_vm13, %v161_v2  ;;  %v2580_v6 = vpack.c.bf16 %v1623_v47, %v1622_v55 }
  0x8d   :  { %v174_v21 = vsel %vm173_vm3, %v162_v11, 0 }
  0x92   :  { %994 = vmatmul.mubr.bf16.gmra.mrb[8].mxu0 %v3301_v13  ;;  %v1637_v13 = vld [vmem:[%s3982_s2 + $0x88] sm:$0xff] }
  0x93   :  { %2456 = vmatmul.mubr.msk.bf16.gmra.mrb[8].mxu1 %vm3278_vm13, %v158_v44  ;;  %1003 = vmatprep.mubr.bf16.mxu0 %v3364_v34  ;;  %v2574_v5 = vpack.c.bf16 %v1637_v13, %v1636_v0  ;;  %v2576_v34 = vpack.c.bf16 %v1621_v27, %v1620_v24 }
  0x94   :  { %2458 = vmatprep.mubr.msk.bf16.mxu1 %vm2503_vm4, %v175_v22 }
  0x95   :  { %2575 = vmatprep.subr.bf16.mxu0 %v2574_v5  ;;  %2607 = vmatprep.subr.bf16.mxu1 %v2574_v5 }
  0x96   :  { %2577 = vmatpush3.bf16.msra.mxu0 %v2576_v34  ;;  %2609 = vmatpush3.bf16.msra.mxu1 %v2576_v34 }
  0x9a   :  { %1004 = vmatmul.mubr.bf16.gmra.mrb[12].mxu0 %v3371_v37  ;;  %v1638_v37 = vld [vmem:[%s3982_s2 + $0x90] sm:$0xff] }
  0x9b   :  { %2460 = vmatmul.mubr.msk.bf16.gmra.mrb[12].mxu1 %vm2503_vm4, %v174_v21  ;;  %v2578_v46 = vpack.c.bf16 %v1639_v45, %v1638_v37 }
  0x9d   :  { %2579 = vmatprep.subr.bf16.mxu0 %v2578_v46  ;;  %2611 = vmatprep.subr.bf16.mxu1 %v2578_v46 }
  0x9e   :  { %2581 = vmatpush3.bf16.msra.mxu0 %v2580_v6  ;;  %2613 = vmatpush3.bf16.msra.mxu1 %v2580_v6 }
  0x9f   :  { %2583 = vmatprep.subr.bf16.mxu0 %v2582_v10  ;;  %2615 = vmatprep.subr.bf16.mxu1 %v2582_v10 }
  0xa2   :  { %2585 = vmatpush3.bf16.msra.mxu0 %v2584_v17  ;;  %2617 = vmatpush3.bf16.msra.mxu1 %v2584_v17 }
  0xa3   :  { %2587 = vmatprep.subr.bf16.mxu0 %v2586_v14  ;;  %2619 = vmatprep.subr.bf16.mxu1 %v2586_v14 }
  0xa6   :  { %2589 = vmatpush3.bf16.msra.mxu0 %v2588_v56  ;;  %2621 = vmatpush3.bf16.msra.mxu1 %v2588_v56 }
  0xa7   :  { %2591 = vmatprep.subr.bf16.mxu0 %v2590_v60  ;;  %2623 = vmatprep.subr.bf16.mxu1 %v2590_v60 }
  0xaa   :  { %2593 = vmatpush3.bf16.msra.mxu0 %v2592_v30  ;;  %2625 = vmatpush3.bf16.msra.mxu1 %v2592_v30 }
  0xab   :  { %2595 = vmatprep.subr.bf16.mxu0 %v2594_v33  ;;  %2627 = vmatprep.subr.bf16.mxu1 %v2594_v33 }
  0xae   :  { %2597 = vmatpush3.bf16.msra.mxu0 %v2596_v38  ;;  %2629 = vmatpush3.bf16.msra.mxu1 %v2596_v38 }
  0xaf   :  { %2599 = vmatprep.subr.bf16.mxu0 %v2598_v48  ;;  %2631 = vmatprep.subr.bf16.mxu1 %v2598_v48 }
  0xb2   :  { %2601 = vmatpush3.bf16.msra.mxu0 %v2600_v15  ;;  %2633 = vmatpush3.bf16.msra.mxu1 %v2600_v15 }
  0xb3   :  { %2603 = vmatprep.subr.bf16.mxu0 %v2602_v63  ;;  %2635 = vmatprep.subr.bf16.mxu1 %v2602_v63 }
  0xb6   :  { %2605 = vmatpush3.bf16.msra.mxu0 %v2604_v8  ;;  %2637 = vmatpush3.bf16.msra.mxu1 %v2604_v8 }
 0x155   :  { %v3664_v53 = vpop.f32.mrb[0].mxu0 }
 0x156   :  { %v3666_v4 = vpop.f32.mrb[0].mxu1  ;;  %v3668_v49 = vpop.f32.mrb[1].mxu0  ;;  %v1534_v40 = vmul.f32 %v3664_v53, %v3664_v53 }
 0x157   :  { %v3670_v20 = vpop.f32.mrb[1].mxu1  ;;  %v1576_v58 = vmul.f32 %v3666_v4, %v3666_v4  ;;  %v1535_v62 = vmul.f32 %v3668_v49, %v3668_v49  ;;  %v3680_v43 = vpop.f32.mrb[2].mxu0 }
 0x158   :  { %v1577_v2 = vmul.f32 %v3670_v20, %v3670_v20  ;;  %v3682_v52 = vpop.f32.mrb[2].mxu1  ;;  %v1480_v19 = vadd.f32 %v3680_v43, %v3664_v53  ;;  %v1536_v44 = vmul.f32 %v3680_v43, %v3680_v43  ;;  %v3692_v21 = vpop.f32.mrb[3].mxu0 }
 0x159   :  { %v1506_v22 = vadd.f32 %v3682_v52, %v3666_v4  ;;  %v1578_v11 = vmul.f32 %v3682_v52, %v3682_v52  ;;  %v3694_v0 = vpop.f32.mrb[3].mxu1  ;;  %v1493_v13 = vadd.f32 %v3692_v21, %v3668_v49  ;;  %v1537_v5 = vmul.f32 %v3692_v21, %v3692_v21 }
 0x15a   :  { %v1519_v24 = vadd.f32 %v3694_v0, %v3670_v20  ;;  %v1579_v27 = vmul.f32 %v3694_v0, %v3694_v0  ;;  %v1550_v34 = vadd.f32 %v1536_v44, %v1534_v40 }
 0x15b   :  { %v1592_v37 = vadd.f32 %v1578_v11, %v1576_v58  ;;  %v1563_v45 = vadd.f32 %v1537_v5, %v1535_v62 }
 0x15c   :  { %v1605_v46 = vadd.f32 %v1579_v27, %v1577_v2 }
 0x15d   :  { %v3704_v55 = vpop.f32.mrb[4].mxu0 }
 0x15e   :  { %v3706_v47 = vpop.f32.mrb[4].mxu1  ;;  %v1481_v6 = vadd.f32 %v1480_v19, %v3704_v55  ;;  %v1538_v7 = vmul.f32 %v3704_v55, %v3704_v55  ;;  %v3714_v12 = vpop.f32.mrb[5].mxu0 }
 0x15f   :  { %v1507_v9 = vadd.f32 %v1506_v22, %v3706_v47  ;;  %v1580_v10 = vmul.f32 %v3706_v47, %v3706_v47  ;;  %v3716_v16 = vpop.f32.mrb[5].mxu1  ;;  %v1494_v17 = vadd.f32 %v1493_v13, %v3714_v12  ;;  %v1539_v18 = vmul.f32 %v3714_v12, %v3714_v12  ;;  %v3724_v23 = vpop.f32.mrb[6].mxu0 }
 0x160   :  { %v1520_v59 = vadd.f32 %v1519_v24, %v3716_v16  ;;  %v1581_v14 = vmul.f32 %v3716_v16, %v3716_v16  ;;  %v3726_v25 = vpop.f32.mrb[6].mxu1  ;;  %v1551_v56 = vadd.f32 %v1550_v34, %v1538_v7  ;;  %v1482_v26 = vadd.f32 %v1481_v6, %v3724_v23  ;;  %v3731_v28 = vpop.f32.mrb[7].mxu0 }
 0x161   :  { %v1593_v51 = vadd.f32 %v1592_v37, %v1580_v10  ;;  %v1540_v60 = vmul.f32 %v3724_v23, %v3724_v23  ;;  %v3733_v29 = vpop.f32.mrb[7].mxu1  ;;  %v1564_v30 = vadd.f32 %v1563_v45, %v1539_v18  ;;  %v1508_v32 = vadd.f32 %v1507_v9, %v3726_v25 }
 0x162   :  { %v1606_v31 = vadd.f32 %v1605_v46, %v1581_v14  ;;  %v1582_v33 = vmul.f32 %v3726_v25, %v3726_v25  ;;  %v1495_v36 = vadd.f32 %v1494_v17, %v3731_v28  ;;  %v1541_v38 = vmul.f32 %v3731_v28, %v3731_v28 }
 0x163   :  { %v1552_v35 = vadd.f32 %v1551_v56, %v1540_v60  ;;  %v1521_v41 = vadd.f32 %v1520_v59, %v3733_v29  ;;  %v1583_v48 = vmul.f32 %v3733_v29, %v3733_v29 }
 0x164   :  { %v1594_v42 = vadd.f32 %v1593_v51, %v1582_v33  ;;  %v1565_v50 = vadd.f32 %v1564_v30, %v1541_v38 }
 0x165   :  { %v1607_v54 = vadd.f32 %v1606_v31, %v1583_v48  ;;  %v3744_v15 = vpop.f32.mrb[8].mxu0 }
 0x166   :  { %v3746_v57 = vpop.f32.mrb[8].mxu1  ;;  %v1483_v61 = vadd.f32 %v1482_v26, %v3744_v15  ;;  %v1542_v63 = vmul.f32 %v3744_v15, %v3744_v15  ;;  %v3754_v8 = vpop.f32.mrb[9].mxu0 }
 0x167   :  { %v1509_v1 = vadd.f32 %v1508_v32, %v3746_v57  ;;  %v1584_v3 = vmul.f32 %v3746_v57, %v3746_v57  ;;  %v3756_v40 = vpop.f32.mrb[9].mxu1  ;;  %v1496_v58 = vadd.f32 %v1495_v36, %v3754_v8  ;;  %v1543_v62 = vmul.f32 %v3754_v8, %v3754_v8  ;;  %v3764_v44 = vpop.f32.mrb[10].mxu0 }
 0x168   :  { %v1522_v2 = vadd.f32 %v1521_v41, %v3756_v40  ;;  %v1585_v19 = vmul.f32 %v3756_v40, %v3756_v40  ;;  %v3766_v22 = vpop.f32.mrb[10].mxu1  ;;  %v1553_v11 = vadd.f32 %v1552_v35, %v1542_v63  ;;  %v1484_v5 = vadd.f32 %v1483_v61, %v3764_v44  ;;  %v3771_v27 = vpop.f32.mrb[11].mxu0 }
 0x169   :  { %v1595_v13 = vadd.f32 %v1594_v42, %v1584_v3  ;;  %v1544_v24 = vmul.f32 %v3764_v44, %v3764_v44  ;;  %v3773_v34 = vpop.f32.mrb[11].mxu1  ;;  %v1566_v37 = vadd.f32 %v1565_v50, %v1543_v62  ;;  %v1510_v46 = vadd.f32 %v1509_v1, %v3766_v22 }
 0x16a   :  { %v1608_v45 = vadd.f32 %v1607_v54, %v1585_v19  ;;  %v1586_v6 = vmul.f32 %v3766_v22, %v3766_v22  ;;  %v1497_v9 = vadd.f32 %v1496_v58, %v3771_v27  ;;  %v1545_v10 = vmul.f32 %v3771_v27, %v3771_v27 }
 0x16b   :  { %v1554_v7 = vadd.f32 %v1553_v11, %v1544_v24  ;;  %v1523_v17 = vadd.f32 %v1522_v2, %v3773_v34  ;;  %v1587_v59 = vmul.f32 %v3773_v34, %v3773_v34 }
 0x16c   :  { %v1596_v18 = vadd.f32 %v1595_v13, %v1586_v6  ;;  %v1567_v14 = vadd.f32 %v1566_v37, %v1545_v10 }
 0x16d   :  { %v1609_v56 = vadd.f32 %v1608_v45, %v1587_v59  ;;  %v3784_v51 = vpop.f32.mrb[12].mxu0 }
 0x16e   :  { %v3786_v26 = vpop.f32.mrb[12].mxu1  ;;  %v1485_v60 = vadd.f32 %v1484_v5, %v3784_v51  ;;  %v1546_v30 = vmul.f32 %v3784_v51, %v3784_v51  ;;  %v3794_v33 = vpop.f32.mrb[13].mxu0 }
 0x16f   :  { %v1511_v31 = vadd.f32 %v1510_v46, %v3786_v26  ;;  %v1588_v32 = vmul.f32 %v3786_v26, %v3786_v26  ;;  %v3796_v35 = vpop.f32.mrb[13].mxu1  ;;  %v1498_v36 = vadd.f32 %v1497_v9, %v3794_v33  ;;  %v1547_v38 = vmul.f32 %v3794_v33, %v3794_v33  ;;  %v3804_v48 = vpop.f32.mrb[14].mxu0 }
 0x170   :  { %4005 = vst [vmem:[#allocation2_spill] sm:$0xff] %v3796_v35  ;;  %v1524_v41 = vadd.f32 %v1523_v17, %v3796_v35  ;;  %v1589_v42 = vmul.f32 %v3796_v35, %v3796_v35  ;;  %v3806_v50 = vpop.f32.mrb[14].mxu1  ;;  %v1555_v54 = vadd.f32 %v1554_v7, %v1546_v30  ;;  %v1486_v63 = vadd.f32 %v1485_v60, %v3804_v48  ;;  %v3811_v3 = vpop.f32.mrb[15].mxu0 }
 0x171   :  { %v1597_v61 = vadd.f32 %v1596_v18, %v1588_v32  ;;  %v1548_v1 = vmul.f32 %v3804_v48, %v3804_v48  ;;  %v3813_v58 = vpop.f32.mrb[15].mxu1  ;;  %v1568_v62 = vadd.f32 %v1567_v14, %v1547_v38  ;;  %v1512_v19 = vadd.f32 %v1511_v31, %v3806_v50 }
 0x172   :  { %4006 = vst [vmem:[#allocation3_spill] sm:$0xff] %v3813_v58  ;;  %v1610_v2 = vadd.f32 %v1609_v56, %v1589_v42  ;;  %v1590_v11 = vmul.f32 %v3806_v50, %v3806_v50  ;;  %v1487_v13 = vrot.slane %v1486_v63, 4  ;;  %v1499_v24 = vadd.f32 %v1498_v36, %v3811_v3 }
 0x173   :  { %v1556_v5 = vadd.f32 %v1555_v54, %v1548_v1  ;;  %v1549_v37 = vmul.f32 %v3811_v3, %v3811_v3  ;;  %v1513_v45 = vrot.slane %v1512_v19, 4  ;;  %v1525_v6 = vadd.f32 %v1524_v41, %v3813_v58 }
 0x174   :  { %v1598_v46 = vadd.f32 %v1597_v61, %v1590_v11  ;;  %v1591_v7 = vmul.f32 %v3813_v58, %v3813_v58  ;;  %v1488_v9 = vadd.f32 %v1487_v13, %v1486_v63  ;;  %v1500_v17 = vrot.slane %v1499_v24, 4 }
 0x175   :  { %v1557_v10 = vrot.slane %v1556_v5, 4  ;;  %v1569_v18 = vadd.f32 %v1568_v62, %v1549_v37  ;;  %v1514_v59 = vadd.f32 %v1513_v45, %v1512_v19  ;;  %v1526_v56 = vrot.slane %v1525_v6, 4 }
 0x176   :  { %v1599_v14 = vrot.slane %v1598_v46, 4  ;;  %v1611_v60 = vadd.f32 %v1610_v2, %v1591_v7  ;;  %v1489_v30 = vrot.slane %v1488_v9, 2  ;;  %v1501_v32 = vadd.f32 %v1500_v17, %v1499_v24 }
 0x177   :  { %v1558_v31 = vadd.f32 %v1557_v10, %v1556_v5  ;;  %v1570_v36 = vrot.slane %v1569_v18, 4  ;;  %v1515_v38 = vrot.slane %v1514_v59, 2  ;;  %v1527_v54 = vadd.f32 %v1526_v56, %v1525_v6 }
 0x178   :  { %v1600_v42 = vadd.f32 %v1599_v14, %v1598_v46  ;;  %v1612_v61 = vrot.slane %v1611_v60, 4  ;;  %v1490_v41 = vadd.f32 %v1489_v30, %v1488_v9  ;;  %v1502_v11 = vrot.slane %v1501_v32, 2 }
 0x179   :  { %v1559_v1 = vrot.slane %v1558_v31, 2  ;;  %v1571_v58 = vadd.f32 %v1570_v36, %v1569_v18  ;;  %v1516_v63 = vadd.f32 %v1515_v38, %v1514_v59  ;;  %v1528_v35 = vrot.slane %v1527_v54, 2 }
 0x17a   :  { %v1601_v13 = vrot.slane %v1600_v42, 2  ;;  %v1613_v62 = vadd.f32 %v1612_v61, %v1611_v60  ;;  %v1491_v19 = vrot.slane %v1490_v41, 1  ;;  %v1503_v45 = vadd.f32 %v1502_v11, %v1501_v32 }
 0x17b   :  { %v1560_v37 = vadd.f32 %v1559_v1, %v1558_v31  ;;  %v1572_v2 = vrot.slane %v1571_v58, 2  ;;  %v1517_v7 = vrot.slane %v1516_v63, 1  ;;  %v1529_v24 = vadd.f32 %v1528_v35, %v1527_v54 }
 0x17c   :  { %v1602_v5 = vadd.f32 %v1601_v13, %v1600_v42  ;;  %v1614_v10 = vrot.slane %v1613_v62, 2  ;;  %v1492_v17 = vadd.f32 %v1491_v19, %v1490_v41  ;;  %v1504_v6 = vrot.slane %v1503_v45, 1 }
 0x17d   :  { %v1561_v46 = vrot.slane %v1560_v37, 1  ;;  %v1573_v14 = vadd.f32 %v1572_v2, %v1571_v58  ;;  %v1518_v9 = vadd.f32 %v1517_v7, %v1516_v63  ;;  %v1530_v30 = vrot.slane %v1529_v24, 1  ;;  %v1804_v58 = vld [vmem:[%s3983_s3] sm:$0xff] }
 0x17e   :  { %v1603_v56 = vrot.slane %v1602_v5, 1  ;;  %v1615_v18 = vadd.f32 %v1614_v10, %v1613_v62  ;;  %v1505_v36 = vadd.f32 %v1504_v6, %v1503_v45  ;;  %v2882_v41 = vmov 0.0   ;;  %v1797_v6 = vld [vmem:[%s3984_s4] sm:$0x1] }
 0x17f   :  { %v1562_v59 = vadd.f32 %v1561_v46, %v1560_v37  ;;  %v1574_v38 = vrot.slane %v1573_v14, 1  ;;  %v1532_v60 = vadd.f32 %v1518_v9, %v1492_v17  ;;  %v1531_v31 = vadd.f32 %v1530_v30, %v1529_v24 }
 0x180   :  { %v1604_v61 = vadd.f32 %v1603_v56, %v1602_v5  ;;  %v1616_v32 = vrot.slane %v1615_v18, 1  ;;  %v1806_v63 = vcombine.high %v1804_v58, %v1804_v58  ;;  %v1801_v56 = vld [vmem:[%s3985_s5] sm:$0x1] }
 0x181   :  { %v1575_v1 = vadd.f32 %v1574_v38, %v1573_v14  ;;  %v1533_v11 = vadd.f32 %v1531_v31, %v1505_v36 }
 0x182   :  { %v1617_v42 = vadd.f32 %v1616_v32, %v1615_v18  ;;  %v1618_v35 = vadd.f32 %v1604_v61, %v1562_v59  ;;  %2461 = vmatprep.subr.msk.mxu0 %vm1811_vm5, %v1806_v63  ;;  %2464 = vmatprep.subr.msk.mxu1 %vm1811_vm5, %v1806_v63  ;;  %v1963_v59 = vsub.s32 0, %v3032_v39 }
 0x183   :  { %1716 = vmatprep.mubr.f32.mxu0 %v1533_v11 }
 0x184   :  { %v1619_v54 = vadd.f32 %v1617_v42, %v1575_v1  ;;  %1717 = vmatmul.mubr.f32.vlgmr.msra.gmra.mrb[16].mxu0 %v1532_v60 }
 0x185   :  { %1880 = vmatprep.mubr.f32.mxu0 %v2882_v41  ;;  %2462 = vmatpush1.msk.msra.mxu0 %vm1811_vm5, %v1804_v58 }
 0x186   :  { %1786 = vmatprep.mubr.f32.mxu1 %v1619_v54 }
 0x187   :  { %1787 = vmatmul.mubr.f32.vlgmr.msra.gmra.mrb[16].mxu1 %v1618_v35 }
 0x188   :  { %1954 = vmatprep.mubr.f32.mxu1 %v2882_v41  ;;  %2465 = vmatpush1.msk.msra.mxu1 %vm1811_vm5, %v1804_v58 }
 0x257   :  { %v2536_v13 = vpop.f32.mrb[16].mxu0 }
 0x258   :  { %v2537_v62 = vpop.f32.mrb[17].mxu0 }
 0x259   :  { %v2538_v19 = vadd.f32 %v2537_v62, %v2536_v13 }
 0x25a   :  { %v2571_v37 = vpop.f32.mrb[16].mxu1 }
 0x25b   :  { %v2572_v45 = vpop.f32.mrb[17].mxu1  ;;  %v1792_v2 = vmul.f32 0.00012207031, %v2538_v19 }
 0x25c   :  { %v2573_v7 = vadd.f32 %v2572_v45, %v2571_v37 }
 0x25d   :  { %v1794_v5 = vmul.f32 %v1792_v2, %v1792_v2 }
 0x25e   :  { %v1793_v24 = vmul.f32 0.00012207031, %v2573_v7 }
 0x260   :  { %v1795_v10 = vsub.f32 %v1793_v24, %v1794_v5 }
 0x262   :  { %v1796_v17 = vmax.f32 %v1795_v10, 0.0 }
 0x264   :  { %v1798_v46 = vadd.f32 1e-05, %v1796_v17 }
 0x266   :  { %2878 = vrsqrt.f32 %v1798_v46 }
 0x270   :  { %v2879_v14 = vpop.eup %2878 }
 0x271   :  { %v1800_v9 = vmul.f32 %v2879_v14, %v1797_v6 }
 0x273   :  { %2463 = vmatmul.mubr.msk.f32.vlgmr.msra.gmra.mrb[18].mxu0 %vm1807_vm6, %v1800_v9  ;;  %v1802_v30 = vmul.f32 %v1800_v9, %v1792_v2 }
 0x275   :  { %v1803_v18 = vsub.f32 %v1801_v56, %v1802_v30 }
 0x277   :  { %2466 = vmatmul.mubr.msk.f32.vlgmr.msra.gmra.mrb[18].mxu1 %vm1807_vm6, %v1803_v18 }
 0x346   :  { %v1882_v36 = vpop.f32.mrb[18].mxu0 }
 0x347   :  { %v1964_v38 = vrot.slane %v1882_v36, %v1963_v59  ;;  %v1884_v60 = vpop.f32.mrb[19].mxu0 }
 0x348   :  { %v1968_v61 = vrot.slane %v1884_v60, %v1963_v59 }
 0x349   :  { %v1969_v31 = vmul.f32 %v1964_v38, %v3664_v53  ;;  %v1971_v32 = vmul.f32 %v1964_v38, %v3680_v43  ;;  %v1973_v1 = vmul.f32 %v1964_v38, %v3704_v55  ;;  %v1975_v11 = vmul.f32 %v1964_v38, %v3724_v23 }
 0x34a   :  { %v1977_v42 = vmul.f32 %v1964_v38, %v3744_v15  ;;  %v1979_v35 = vmul.f32 %v1964_v38, %v3764_v44  ;;  %v1981_v54 = vmul.f32 %v1964_v38, %v3784_v51  ;;  %v1983_v39 = vmul.f32 %v1964_v38, %v3804_v48  ;;  %v1956_v58 = vpop.f32.mrb[18].mxu1 }
 0x34b   :  { %v2081_v41 = vmul.f32 %v1964_v38, %v3666_v4  ;;  %v2083_v63 = vmul.f32 %v1964_v38, %v3682_v52  ;;  %v2085_v53 = vmul.f32 %v1964_v38, %v3706_v47  ;;  %v2087_v43 = vmul.f32 %v1964_v38, %v3726_v25  ;;  %v1958_v55 = vpop.f32.mrb[19].mxu1 }
 0x34c   :  { %v2089_v23 = vmul.f32 %v1964_v38, %v3746_v57  ;;  %v2091_v15 = vmul.f32 %v1964_v38, %v3766_v22  ;;  %v2093_v44 = vmul.f32 %v1964_v38, %v3786_v26  ;;  %v2095_v51 = vmul.f32 %v1964_v38, %v3806_v50 }
 0x34d   :  { %v1970_v48 = vmul.f32 %v1968_v61, %v3668_v49  ;;  %v1972_v13 = vmul.f32 %v1968_v61, %v3692_v21  ;;  %v1974_v4 = vmul.f32 %v1968_v61, %v3714_v12  ;;  %v1976_v52 = vmul.f32 %v1968_v61, %v3731_v28 }
 0x34e   :  { %v1978_v47 = vmul.f32 %v1968_v61, %v3754_v8  ;;  %v1980_v25 = vmul.f32 %v1968_v61, %v3771_v27  ;;  %v1982_v57 = vmul.f32 %v1968_v61, %v3794_v33  ;;  %v1984_v22 = vmul.f32 %v1968_v61, %v3811_v3  ;;  %v4007_v8 = vld [vmem:[#allocation2_spill] sm:$0xff] }
 0x34f   :  { %v3859_v26 = vmul.f32 %v1968_v61, %v3670_v20  ;;  %v3862_v50 = vmul.f32 %v1968_v61, %v3694_v0  ;;  %v3865_v49 = vmul.f32 %v1968_v61, %v3716_v16  ;;  %v3868_v21 = vmul.f32 %v1968_v61, %v3733_v29  ;;  %v4008_v20 = vld [vmem:[#allocation3_spill] sm:$0xff] }
 0x350   :  { %v3871_v12 = vmul.f32 %v1968_v61, %v3756_v40  ;;  %v3874_v28 = vmul.f32 %v1968_v61, %v3773_v34  ;;  %v3877_v27 = vmul.f32 %v1968_v61, %v4007_v8  ;;  %v3880_v33 = vmul.f32 %v1968_v61, %v4008_v20 }
 0x351   :  { %v1988_v0 = vrot.slane %v1956_v58, %v1963_v59  ;;  %v3882_v3 = vrot.slane %v1958_v55, %v1963_v59 }
 0x353   :  { %v1993_v16 = vadd.f32 %v1988_v0, %v1969_v31  ;;  %v1995_v62 = vadd.f32 %v1988_v0, %v1971_v32  ;;  %v1997_v19 = vadd.f32 %v1988_v0, %v1973_v1  ;;  %v1999_v29 = vadd.f32 %v1988_v0, %v1975_v11 }
 0x354   :  { %v2001_v37 = vadd.f32 %v1988_v0, %v1977_v42  ;;  %v2003_v45 = vadd.f32 %v1988_v0, %v1979_v35  ;;  %v2005_v40 = vadd.f32 %v1988_v0, %v1981_v54  ;;  %v2007_v2 = vadd.f32 %v1988_v0, %v1983_v39 }
 0x355   :  { %v2009_v7 = vmax.f32 %v1993_v16, 0.0  ;;  %v2011_v34 = vmax.f32 %v1995_v62, 0.0  ;;  %v2013_v5 = vmax.f32 %v1997_v19, 0.0  ;;  %v2015_v24 = vmax.f32 %v1999_v29, 0.0 }
 0x356   :  { %v2017_v10 = vmax.f32 %v2001_v37, 0.0  ;;  %v2019_v17 = vmax.f32 %v2003_v45, 0.0  ;;  %v2021_v46 = vmax.f32 %v2005_v40, 0.0  ;;  %v2023_v6 = vmax.f32 %v2007_v2, 0.0 }
 0x357   :  { %v3884_v14 = vadd.f32 %v2081_v41, %v1988_v0  ;;  %v3886_v9 = vadd.f32 %v2083_v63, %v1988_v0  ;;  %v3888_v56 = vadd.f32 %v2085_v53, %v1988_v0  ;;  %v3890_v30 = vadd.f32 %v2087_v43, %v1988_v0 }
 0x358   :  { %v3892_v18 = vadd.f32 %v2089_v23, %v1988_v0  ;;  %v3894_v59 = vadd.f32 %v2091_v15, %v1988_v0  ;;  %v3896_v36 = vadd.f32 %v2093_v44, %v1988_v0  ;;  %v3898_v38 = vadd.f32 %v2095_v51, %v1988_v0 }
 0x359   :  { %v2113_v60 = vmax.f32 %v3884_v14, 0.0  ;;  %v2115_v61 = vmax.f32 %v3886_v9, 0.0  ;;  %v2117_v31 = vmax.f32 %v3888_v56, 0.0  ;;  %v2119_v32 = vmax.f32 %v3890_v30, 0.0 }
 0x35a   :  { %v2121_v1 = vmax.f32 %v3892_v18, 0.0  ;;  %v2123_v11 = vmax.f32 %v3894_v59, 0.0  ;;  %v2125_v42 = vmax.f32 %v3896_v36, 0.0  ;;  %v2127_v35 = vmax.f32 %v3898_v38, 0.0 }
 0x35b   :  { %v1994_v54 = vadd.f32 %v3882_v3, %v1970_v48  ;;  %v1996_v39 = vadd.f32 %v3882_v3, %v1972_v13  ;;  %v1998_v58 = vadd.f32 %v3882_v3, %v1974_v4  ;;  %v2000_v41 = vadd.f32 %v3882_v3, %v1976_v52 }
 0x35c   :  { %v2002_v63 = vadd.f32 %v3882_v3, %v1978_v47  ;;  %v2004_v53 = vadd.f32 %v3882_v3, %v1980_v25  ;;  %v2006_v43 = vadd.f32 %v3882_v3, %v1982_v57  ;;  %v2008_v55 = vadd.f32 %v3882_v3, %v1984_v22 }
 0x35d   :  { %v2010_v23 = vmax.f32 %v1994_v54, 0.0  ;;  %v2012_v15 = vmax.f32 %v1996_v39, 0.0  ;;  %v2014_v44 = vmax.f32 %v1998_v58, 0.0  ;;  %v2016_v51 = vmax.f32 %v2000_v41, 0.0 }
 0x35e   :  { %v2018_v8 = vmax.f32 %v2002_v63, 0.0  ;;  %v2020_v48 = vmax.f32 %v2004_v53, 0.0  ;;  %v2022_v20 = vmax.f32 %v2006_v43, 0.0  ;;  %v2024_v13 = vmax.f32 %v2008_v55, 0.0 }
 0x35f   :  { %v2483_v0 = vpack.c.bf16 %v2010_v23, %v2009_v7  ;;  %v2484_v4 = vpack.c.bf16 %v2012_v15, %v2011_v34  ;;  %v2485_v16 = vpack.c.bf16 %v2014_v44, %v2013_v5  ;;  %v2486_v52 = vpack.c.bf16 %v2016_v51, %v2015_v24 }
 0x360   :  { %v2487_v62 = vpack.c.bf16 %v2018_v8, %v2017_v10  ;;  %v2488_v47 = vpack.c.bf16 %v2020_v48, %v2019_v17  ;;  %v2489_v19 = vpack.c.bf16 %v2022_v20, %v2021_v46  ;;  %v2490_v25 = vpack.c.bf16 %v2024_v13, %v2023_v6 }
 0x361   :  { %2073 = vst [vmem:[%s3986_s6] sm:$0xff] %v2483_v0  ;;  %2074 = vst [vmem:[%s3986_s6 + $0x10] sm:$0xff] %v2484_v4  ;;  %v2098_v57 = vadd.f32 %v3859_v26, %v3882_v3  ;;  %v2100_v22 = vadd.f32 %v3862_v50, %v3882_v3  ;;  %v2102_v29 = vadd.f32 %v3865_v49, %v3882_v3 }
 0x362   :  { %2075 = vst [vmem:[%s3986_s6 + $0x20] sm:$0xff] %v2485_v16  ;;  %2076 = vst [vmem:[%s3986_s6 + $0x30] sm:$0xff] %v2486_v52  ;;  %v2104_v37 = vadd.f32 %v3868_v21, %v3882_v3  ;;  %v2106_v26 = vadd.f32 %v3871_v12, %v3882_v3  ;;  %v2108_v50 = vadd.f32 %v3874_v28, %v3882_v3 }
 0x363   :  { %2077 = vst [vmem:[%s3986_s6 + $0x40] sm:$0xff] %v2487_v62  ;;  %2078 = vst [vmem:[%s3986_s6 + $0x50] sm:$0xff] %v2488_v47  ;;  %v2110_v49 = vadd.f32 %v3877_v27, %v3882_v3  ;;  %v2112_v21 = vadd.f32 %v3880_v33, %v3882_v3  ;;  %v2114_v45 = vmax.f32 %v2098_v57, 0.0  ;;  %v2116_v40 = vmax.f32 %v2100_v22, 0.0 }
 0x364   :  { %2079 = vst [vmem:[%s3986_s6 + $0x60] sm:$0xff] %v2489_v19  ;;  %2080 = vst [vmem:[%s3986_s6 + $0x70] sm:$0xff] %v2490_v25  ;;  %v2118_v2 = vmax.f32 %v2102_v29, 0.0  ;;  %v2120_v7 = vmax.f32 %v2104_v37, 0.0  ;;  %v2122_v34 = vmax.f32 %v2106_v26, 0.0  ;;  %v2124_v5 = vmax.f32 %v2108_v50, 0.0 }
 0x365   :  { %v2126_v24 = vmax.f32 %v2110_v49, 0.0  ;;  %v2128_v10 = vmax.f32 %v2112_v21, 0.0  ;;  %v2491_v17 = vpack.c.bf16 %v2114_v45, %v2113_v60  ;;  %v2492_v46 = vpack.c.bf16 %v2116_v40, %v2115_v61 }
 0x366   :  { %v2493_v12 = vpack.c.bf16 %v2118_v2, %v2117_v31  ;;  %v2494_v6 = vpack.c.bf16 %v2120_v7, %v2119_v32  ;;  %v2495_v14 = vpack.c.bf16 %v2122_v34, %v2121_v1  ;;  %v2496_v28 = vpack.c.bf16 %v2124_v5, %v2123_v11 }
 0x367   :  { %v2497_v9 = vpack.c.bf16 %v2126_v24, %v2125_v42  ;;  %v2498_v56 = vpack.c.bf16 %v2128_v10, %v2127_v35  ;;  %2177 = vst [vmem:[%s3986_s6 + $0x8] sm:$0xff] %v2491_v17  ;;  %2178 = vst [vmem:[%s3986_s6 + $0x18] sm:$0xff] %v2492_v46 }
 0x368   :  { %2179 = vst [vmem:[%s3986_s6 + $0x28] sm:$0xff] %v2493_v12  ;;  %2180 = vst [vmem:[%s3986_s6 + $0x38] sm:$0xff] %v2494_v6 }
 0x369   :  { %2181 = vst [vmem:[%s3986_s6 + $0x48] sm:$0xff] %v2495_v14  ;;  %2182 = vst [vmem:[%s3986_s6 + $0x58] sm:$0xff] %v2496_v28 }
 0x36a   :  { %2183 = vst [vmem:[%s3986_s6 + $0x68] sm:$0xff] %v2497_v9  ;;  %2184 = vst [vmem:[%s3986_s6 + $0x78] sm:$0xff] %v2498_v56 }

// kernel: generator_forward.12
= control target key start
LH: loop header
LB: loop body
LE: loop exit
PB: predicated region body
PF: predicated region fallthrough
CT: control target
= control target key end

     0   :  { %v320_v34 = vlaneseq  ;;  %vm106_vm0 = vsmask.f32 256  ;;  %vm249_vm2 = vcmask 1040384   ;;  %vm3859_vm4 = vmmov 0   ;;  %s5763_s1 = inlined_call_operand.vmem [shape: bf16[4,256,256], index: 1, kind: input, shape index: {}]   ;;  %s5764_s0 = inlined_call_operand.vmem [shape: bf16[128,256], index: 0, kind: input, shape index: {}]   ;;  %s5765_s2 = inlined_call_operand.vmem [shape: f32[256,2], index: 2, kind: input, shape index: {}]   ;;  %s5766_s3 = inlined_call_operand.vmem [shape: f32[2,256], index: 3, kind: input, shape index: {}]   ;;  %s5767_s4 = inlined_call_operand.vmem [shape: f32[1,2], index: 4, kind: input, shape index: {}]   ;;  %s5768_s5 = inlined_call_operand.vmem [shape: f32[1,2], index: 5, kind: input, shape index: {}]   ;;  %s5769_s6 = inlined_call_operand.vmem [shape: bf16[128,512], index: 6, kind: output, shape index: {}]  }
   0x1   :  { %v3641_v0 = vld [vmem:[%s5763_s1 + $0x104] ss:$8 sps:$4 sm:$0xff]   ;;  %v3645_v2 = vld [vmem:[%s5763_s1 + $0x100] ss:$8 sps:$4 sm:$0xff]   ;;  %v3647_v4 = vld [vmem:[%s5763_s1 + $0x114] ss:$8 sps:$4 sm:$0xff]  }
   0x2   :  { %v3643_v1 = vld [vmem:[%s5763_s1 + $0x304] ss:$8 sps:$4 sm:$0xff]   ;;  %1076 = vmatprep.subr.bf16.mxu0 %v3641_v0  ;;  %v3646_v3 = vld [vmem:[%s5763_s1 + $0x300] ss:$8 sps:$4 sm:$0xff]   ;;  %v3649_v5 = vld [vmem:[%s5763_s1 + $0x314] ss:$8 sps:$4 sm:$0xff]  }
   0x3   :  { %1638 = vmatprep.subr.bf16.mxu1 %v3643_v1  ;;  %1077 = vmatpush1.bf16.msra.mxu0 %v3645_v2  ;;  %v3651_v6 = vld [vmem:[%s5763_s1 + $0x110] ss:$8 sps:$4 sm:$0xff]   ;;  %v3653_v8 = vld [vmem:[%s5763_s1 + $0x124] ss:$8 sps:$4 sm:$0xff]   ;;  %v3657_v10 = vld [vmem:[%s5763_s1 + $0x120] ss:$8 sps:$4 sm:$0xff]  }
   0x4   :  { %1639 = vmatpush1.bf16.msra.mxu1 %v3646_v3  ;;  %1078 = vmatprep.subr.bf16.mxu0 %v3647_v4  ;;  %v3652_v7 = vld [vmem:[%s5763_s1 + $0x310] ss:$8 sps:$4 sm:$0xff]   ;;  %v3655_v9 = vld [vmem:[%s5763_s1 + $0x324] ss:$8 sps:$4 sm:$0xff]   ;;  %v3658_v11 = vld [vmem:[%s5763_s1 + $0x320] ss:$8 sps:$4 sm:$0xff]  }
   0x5   :  { %1640 = vmatprep.subr.bf16.mxu1 %v3649_v5  ;;  %v3659_v12 = vld [vmem:[%s5763_s1 + $0x134] ss:$8 sps:$4 sm:$0xff]   ;;  %v3663_v14 = vld [vmem:[%s5763_s1 + $0x130] ss:$8 sps:$4 sm:$0xff]   ;;  %v3665_v16 = vld [vmem:[%s5763_s1 + $0x144] ss:$8 sps:$4 sm:$0xff]  }
   0x6   :  { %v3661_v13 = vld [vmem:[%s5763_s1 + $0x334] ss:$8 sps:$4 sm:$0xff]   ;;  %v3664_v15 = vld [vmem:[%s5763_s1 + $0x330] ss:$8 sps:$4 sm:$0xff]   ;;  %v3667_v17 = vld [vmem:[%s5763_s1 + $0x344] ss:$8 sps:$4 sm:$0xff]  }
   0x7   :  { %1079 = vmatpush1.bf16.msra.mxu0 %v3651_v6  ;;  %v3669_v18 = vld [vmem:[%s5763_s1 + $0x140] ss:$8 sps:$4 sm:$0xff]   ;;  %v3671_v20 = vld [vmem:[%s5763_s1 + $0x154] ss:$8 sps:$4 sm:$0xff]   ;;  %v3675_v22 = vld [vmem:[%s5763_s1 + $0x150] ss:$8 sps:$4 sm:$0xff]  }
   0x8   :  { %1641 = vmatpush1.bf16.msra.mxu1 %v3652_v7  ;;  %1080 = vmatprep.subr.bf16.mxu0 %v3653_v8  ;;  %v3670_v19 = vld [vmem:[%s5763_s1 + $0x340] ss:$8 sps:$4 sm:$0xff]   ;;  %v3673_v21 = vld [vmem:[%s5763_s1 + $0x354] ss:$8 sps:$4 sm:$0xff]   ;;  %v3676_v23 = vld [vmem:[%s5763_s1 + $0x350] ss:$8 sps:$4 sm:$0xff]  }
   0x9   :  { %1642 = vmatprep.subr.bf16.mxu1 %v3655_v9  ;;  %v3677_v24 = vld [vmem:[%s5763_s1 + $0x164] ss:$8 sps:$4 sm:$0xff]   ;;  %v3681_v26 = vld [vmem:[%s5763_s1 + $0x160] ss:$8 sps:$4 sm:$0xff]   ;;  %v3683_v28 = vld [vmem:[%s5763_s1 + $0x174] ss:$8 sps:$4 sm:$0xff]  }
   0xa   :  { %v3679_v25 = vld [vmem:[%s5763_s1 + $0x364] ss:$8 sps:$4 sm:$0xff]   ;;  %v3682_v27 = vld [vmem:[%s5763_s1 + $0x360] ss:$8 sps:$4 sm:$0xff]   ;;  %v3685_v29 = vld [vmem:[%s5763_s1 + $0x374] ss:$8 sps:$4 sm:$0xff]  }
   0xb   :  { %1081 = vmatpush1.bf16.msra.mxu0 %v3657_v10  ;;  %v3687_v30 = vld [vmem:[%s5763_s1 + $0x170] ss:$8 sps:$4 sm:$0xff]   ;;  %v3689_v32 = vld [vmem:[%s5763_s1 + $0x184] ss:$8 sps:$4 sm:$0xff]   ;;  %v3693_v35 = vld [vmem:[%s5763_s1 + $0x180] ss:$8 sps:$4 sm:$0xff]  }
   0xc   :  { %1643 = vmatpush1.bf16.msra.mxu1 %v3658_v11  ;;  %1082 = vmatprep.subr.bf16.mxu0 %v3659_v12  ;;  %v3688_v31 = vld [vmem:[%s5763_s1 + $0x370] ss:$8 sps:$4 sm:$0xff]   ;;  %v3691_v33 = vld [vmem:[%s5763_s1 + $0x384] ss:$8 sps:$4 sm:$0xff]   ;;  %v3694_v36 = vld [vmem:[%s5763_s1 + $0x380] ss:$8 sps:$4 sm:$0xff]  }
   0xd   :  { %1644 = vmatprep.subr.bf16.mxu1 %v3661_v13  ;;  %v3695_v37 = vld [vmem:[%s5763_s1 + $0x194] ss:$8 sps:$4 sm:$0xff]   ;;  %v4011_v39 = vshrl.u32 %v320_v34, 7  ;;  %v3699_v40 = vld [vmem:[%s5763_s1 + $0x190] ss:$8 sps:$4 sm:$0xff]   ;;  %vm578_vm5 = vmpackc.low %vm3859_vm4, %vm3859_vm4  ;;  %v3860_v62 = vmov 0  }
   0xe   :  { %v3697_v38 = vld [vmem:[%s5763_s1 + $0x394] ss:$8 sps:$4 sm:$0xff]   ;;  %v3700_v41 = vld [vmem:[%s5763_s1 + $0x390] ss:$8 sps:$4 sm:$0xff]   ;;  %v3701_v42 = vld [vmem:[%s5763_s1 + $0x1a4] ss:$8 sps:$4 sm:$0xff]  }
   0xf   :  { %1083 = vmatpush1.bf16.msra.mxu0 %v3663_v14  ;;  %v3703_v43 = vld [vmem:[%s5763_s1 + $0x3a4] ss:$8 sps:$4 sm:$0xff]   ;;  %v341_v44 = vand.u32 63, %v4011_v39  ;;  %v3705_v45 = vld [vmem:[%s5763_s1 + $0x1a0] ss:$8 sps:$4 sm:$0xff]   ;;  %v328_v52 = vadd.s32 56, %v4011_v39  ;;  %vm4082_vm6 = vmand %vm249_vm2, %vm106_vm0 }
  0x10   :  { %1645 = vmatpush1.bf16.msra.mxu1 %v3664_v15  ;;  %1084 = vmatprep.subr.bf16.mxu0 %v3665_v16  ;;  %v3706_v46 = vld [vmem:[%s5763_s1 + $0x3a0] ss:$8 sps:$4 sm:$0xff]   ;;  %v3707_v47 = vld [vmem:[%s5763_s1 + $0x1b4] ss:$8 sps:$4 sm:$0xff]   ;;  %v3711_v50 = vld [vmem:[%s5763_s1 + $0x1b0] ss:$8 sps:$4 sm:$0xff]  }
  0x11   :  { %1646 = vmatprep.subr.bf16.mxu1 %v3667_v17  ;;  %v3709_v48 = vld [vmem:[%s5763_s1 + $0x3b4] ss:$8 sps:$4 sm:$0xff]   ;;  %vm4038_vm1 = vcmp.eq.s32.totalorder %v341_v44, 0  ;;  %v4048_v51 = vld [vmem:[%s5764_s0 + $0x4] ss:$8 sps:$4 sm:$0xff]   ;;  %v390_v0 = vand.u32 63, %v328_v52 }
  0x12   :  { %v3712_v53 = vld [vmem:[%s5763_s1 + $0x3b0] ss:$8 sps:$4 sm:$0xff]   ;;  %v3713_v54 = vld [vmem:[%s5763_s1 + $0x1c4] ss:$8 sps:$4 sm:$0xff]   ;;  %v115_v56 = vshrl.u32 %v4048_v51, 16  ;;  %v118_v57 = vshll.u32 %v4048_v51, 16  ;;  %vm577_vm3 = vmpackc.low %vm4038_vm1, %vm4038_vm1  ;;  %1670 = vmatprep.mubr.bf16.mxu1 %v4048_v51 }
  0x13   :  { %1085 = vmatpush1.bf16.msra.mxu0 %v3669_v18  ;;  %v3715_v55 = vld [vmem:[%s5763_s1 + $0x3c4] ss:$8 sps:$4 sm:$0xff]   ;;  %v3717_v58 = vld [vmem:[%s5763_s1 + $0x1c0] ss:$8 sps:$4 sm:$0xff]   ;;  %v593_v63 = vsel %vm577_vm3, 65537, %v3860_v62  ;;  %v4087_v3 = vsel %vm578_vm5, 65537, %v3860_v62 }
  0x14   :  { %1647 = vmatpush1.bf16.msra.mxu1 %v3670_v19  ;;  %1086 = vmatprep.subr.bf16.mxu0 %v3671_v20  ;;  %v3718_v59 = vld [vmem:[%s5763_s1 + $0x3c0] ss:$8 sps:$4 sm:$0xff]   ;;  %v4072_v60 = vrot.slane %v115_v56, 7  ;;  %v258_v61 = vrot.slane %v118_v57, 1  ;;  %v3719_v4 = vld [vmem:[%s5763_s1 + $0x1d4] ss:$8 sps:$4 sm:$0xff]   ;;  %v3060_v8 = vcombine.low %v593_v63, %v4087_v3 }
  0x15   :  { %1648 = vmatprep.subr.bf16.mxu1 %v3673_v21  ;;  %v4078_v1 = vld [vmem:[%s5764_s0] ss:$8 sps:$4 sm:$0xff]   ;;  %v3721_v5 = vld [vmem:[%s5763_s1 + $0x3d4] ss:$8 sps:$4 sm:$0xff]   ;;  %v3723_v7 = vld [vmem:[%s5763_s1 + $0x1d0] ss:$8 sps:$4 sm:$0xff]  }
  0x16   :  { %v120_v6 = vor.u32 %v118_v57, %v4072_v60  ;;  %v4100_v9 = vor.u32 %v258_v61, %v115_v56  ;;  %v4107_v11 = vld [vmem:[%s5764_s0 + $0x14] ss:$8 sps:$4 sm:$0xff]   ;;  %vm4109_vm7 = vcmp.eq.s32.totalorder %v390_v0, 63  ;;  %v3724_v13 = vld [vmem:[%s5763_s1 + $0x3d0] ss:$8 sps:$4 sm:$0xff]   ;;  %v108_v14 = vshrl.u32 %v4078_v1, 16 }
  0x17   :  { %1087 = vmatpush1.bf16.msra.mxu0 %v3675_v22  ;;  %vm4117_vm8 = vcmp.eq.s16.totalorder %v3060_v8, 0  ;;  %v3725_v16 = vld [vmem:[%s5763_s1 + $0x1e4] ss:$8 sps:$4 sm:$0xff]   ;;  %v3729_v18 = vld [vmem:[%s5763_s1 + $0x1e0] ss:$8 sps:$4 sm:$0xff]   ;;  %vm712_vm9 = vmpackc.low %vm4109_vm7, %vm4109_vm7  ;;  %v130_v20 = vshrl.u32 %v4107_v11, 16 }
  0x18   :  { %1649 = vmatpush1.bf16.msra.mxu1 %v3676_v23  ;;  %1088 = vmatprep.subr.bf16.mxu0 %v3677_v24  ;;  %v252_v10 = vsel %vm4082_vm6, 0, %v120_v6  ;;  %v3727_v17 = vld [vmem:[%s5763_s1 + $0x3e4] ss:$8 sps:$4 sm:$0xff]   ;;  %v3730_v19 = vld [vmem:[%s5763_s1 + $0x3e0] ss:$8 sps:$4 sm:$0xff]   ;;  %v4144_v22 = vrot.slane %v108_v14, 7 }
  0x19   :  { %1650 = vmatprep.subr.bf16.mxu1 %v3679_v25  ;;  %3205 = vmatprep.mubr.msk.bf16.mxu0 %vm4117_vm8, %v252_v10  ;;  %v3731_v21 = vld [vmem:[%s5763_s1 + $0x1f4] ss:$8 sps:$4 sm:$0xff]   ;;  %v111_v23 = vshll.u32 %v4078_v1, 16  ;;  %v4150_v24 = vld [vmem:[%s5764_s0 + $0x10] ss:$8 sps:$4 sm:$0xff]   ;;  %v329_v61 = vadd.s32 64, %v4011_v39 }
  0x1a   :  { %v3733_v25 = vld [vmem:[%s5763_s1 + $0x3f4] ss:$8 sps:$4 sm:$0xff]   ;;  %v3742_v34 = vld [vmem:[%s5763_s1 + $0x4] ss:$8 sps:$4 sm:$0xff]   ;;  %v3758_v6 = vld [vmem:[%s5763_s1 + $0x220] ss:$8 sps:$4 sm:$0xff]  }
  0x1b   :  { %1089 = vmatpush1.bf16.msra.mxu0 %v3681_v26  ;;  %v4156_v26 = vsel %vm712_vm9, 65537, %v3860_v62  ;;  %v3751_v49 = vld [vmem:[%s5763_s1 + $0x214] ss:$8 sps:$4 sm:$0xff]   ;;  %v3757_v63 = vld [vmem:[%s5763_s1 + $0x24] ss:$8 sps:$4 sm:$0xff]   ;;  %vm316_vm2 = vcmask 1047552  }
  0x1c   :  { %1651 = vmatpush1.bf16.msra.mxu1 %v3682_v27  ;;  %1090 = vmatprep.subr.bf16.mxu0 %v3683_v28  ;;  %v3735_v27 = vld [vmem:[%s5763_s1 + $0x1f0] ss:$8 sps:$4 sm:$0xff]   ;;  %v3071_v28 = vcombine.low %v4087_v3, %v4156_v26  ;;  %v3760_v0 = vld [vmem:[%s5763_s1 + $0x224] ss:$8 sps:$4 sm:$0xff]   ;;  %vm253_vm1 = vsmask.f32 7424 }
  0x1d   :  { %1652 = vmatprep.subr.bf16.mxu1 %v3685_v29  ;;  %v4165_v29 = vrot.slane %v130_v20, 7  ;;  %v4281_v15 = vld [vmem:[%s5764_s0 + $0x30] ss:$8 sps:$4 sm:$0xff]   ;;  %vm317_vm3 = vmand %vm316_vm2, %vm253_vm1  ;;  %v2260_v52 = vld [vmem:[%s5765_s2] sm:$0xff]  ;;  %vm2458_vm5 = vcmask 1041408  }
  0x1f   :  { %1091 = vmatpush1.bf16.msra.mxu0 %v3687_v30  ;;  %v133_v30 = vshll.u32 %v4107_v11, 16 }
  0x20   :  { %1653 = vmatpush1.bf16.msra.mxu1 %v3688_v31  ;;  %1092 = vmatprep.subr.bf16.mxu0 %v3689_v32  ;;  %v4171_v31 = vld [vmem:[%s5764_s0 + $0x24] ss:$8 sps:$4 sm:$0xff]   ;;  %v3736_v32 = vld [vmem:[%s5763_s1 + $0x3f0] ss:$8 sps:$4 sm:$0xff]  }
  0x21   :  { %1654 = vmatprep.subr.bf16.mxu1 %v3691_v33  ;;  %v113_v33 = vor.u32 %v111_v23, %v4144_v22  ;;  %v146_v44 = vshrl.u32 %v4171_v31, 16  ;;  %v149_v57 = vshll.u32 %v4171_v31, 16 }
  0x23   :  { %1093 = vmatpush1.bf16.msra.mxu0 %v3693_v35  ;;  %v122_v35 = vshrl.u32 %v4150_v24, 16  ;;  %v4234_v56 = vrot.slane %v146_v44, 7 }
  0x24   :  { %1655 = vmatpush1.bf16.msra.mxu1 %v3694_v36  ;;  %1094 = vmatprep.subr.bf16.mxu0 %v3695_v37  ;;  %v3745_v36 = vld [vmem:[%s5763_s1 + $0x204] ss:$8 sps:$4 sm:$0xff]   ;;  %v3061_v37 = vcombine.low %v4087_v3, %v4087_v3 }
  0x25   :  { %1656 = vmatprep.subr.bf16.mxu1 %v3697_v38  ;;  %v3740_v38 = vld [vmem:[%s5763_s1] ss:$8 sps:$4 sm:$0xff]  }
  0x26   :  { %vm4217_vm10 = vcmp.eq.s16.totalorder %v3061_v37, 0  ;;  %v3796_v37 = vld [vmem:[%s5763_s1 + $0x274] ss:$8 sps:$4 sm:$0xff]  }
  0x27   :  { %1095 = vmatpush1.bf16.msra.mxu0 %v3699_v40  ;;  %v3743_v40 = vld [vmem:[%s5763_s1 + $0x200] ss:$8 sps:$4 sm:$0xff]  }
  0x28   :  { %1657 = vmatpush1.bf16.msra.mxu1 %v3700_v41  ;;  %1096 = vmatprep.subr.bf16.mxu0 %v3701_v42  ;;  %v336_v41 = vadd.s32 120, %v4011_v39  ;;  %v3748_v42 = vld [vmem:[%s5763_s1 + $0x14] ss:$8 sps:$4 sm:$0xff]  }
  0x29   :  { %1658 = vmatprep.subr.bf16.mxu1 %v3703_v43  ;;  %v135_v43 = vor.u32 %v133_v30, %v4165_v29 }
  0x2b   :  { %1097 = vmatpush1.bf16.msra.mxu0 %v3705_v45  ;;  %v251_v45 = vsel %vm4082_vm6, 0, %v113_v33  ;;  %v3772_v33 = vld [vmem:[%s5763_s1 + $0x44] ss:$8 sps:$4 sm:$0xff]   ;;  %vm2454_vm6 = vcmask 15360  }
  0x2c   :  { %1659 = vmatpush1.bf16.msra.mxu1 %v3706_v46  ;;  %1098 = vmatprep.subr.bf16.mxu0 %v3707_v47  ;;  %v4206_v46 = vrot.slane %v122_v35, 7  ;;  %v125_v47 = vshll.u32 %v4150_v24, 16 }
  0x2d   :  { %1660 = vmatprep.subr.bf16.mxu1 %v3709_v48  ;;  %v4212_v48 = vld [vmem:[%s5764_s0 + $0x20] ss:$8 sps:$4 sm:$0xff]  }
  0x2f   :  { %1099 = vmatpush1.bf16.msra.mxu0 %v3711_v50  ;;  %v446_v50 = vand.u32 63, %v336_v41 }
  0x30   :  { %1661 = vmatpush1.bf16.msra.mxu1 %v3712_v53  ;;  %1100 = vmatprep.subr.bf16.mxu0 %v3713_v54  ;;  %v3746_v53 = vld [vmem:[%s5763_s1 + $0x10] ss:$8 sps:$4 sm:$0xff]  }
  0x31   :  { %1662 = vmatprep.subr.bf16.mxu1 %v3715_v55  ;;  %v3749_v54 = vld [vmem:[%s5763_s1 + $0x210] ss:$8 sps:$4 sm:$0xff]   ;;  %v136_v55 = vsel %vm106_vm0, %v4072_v60, %v135_v43  ;;  %vm672_vm11 = vcmp.eq.s32.totalorder %v446_v50, 63  ;;  %v138_v60 = vshrl.u32 %v4212_v48, 16  ;;  %v4350_v50 = vld [vmem:[%s5764_s0 + $0x40] ss:$8 sps:$4 sm:$0xff]  }
  0x32   :  { %vm720_vm12 = vmpackc.low %vm672_vm11, %vm672_vm11 }
  0x33   :  { %1101 = vmatpush1.bf16.msra.mxu0 %v3717_v58  ;;  %v4240_v58 = vld [vmem:[%s5764_s0 + $0x34] ss:$8 sps:$4 sm:$0xff]   ;;  %v4254_v2 = vsel %vm720_vm12, 65537, %v3860_v62  ;;  %v4275_v12 = vrot.slane %v138_v60, 7 }
  0x34   :  { %1663 = vmatpush1.bf16.msra.mxu1 %v3718_v59  ;;  %1102 = vmatprep.subr.bf16.mxu0 %v3719_v4  ;;  %v127_v59 = vor.u32 %v125_v47, %v4206_v46  ;;  %v162_v8 = vshrl.u32 %v4240_v58, 16  ;;  %v4534_v4 = vld [vmem:[%s5764_s0 + $0x70] ss:$8 sps:$4 sm:$0xff]  }
  0x35   :  { %1664 = vmatprep.subr.bf16.mxu1 %v3721_v5  ;;  %v3755_v5 = vld [vmem:[%s5763_s1 + $0x20] ss:$8 sps:$4 sm:$0xff]  }
  0x36   :  { %v128_v10 = vsel %vm106_vm0, %v4144_v22, %v127_v59  ;;  %v4299_v22 = vrot.slane %v162_v8, 7 }
  0x37   :  { %1103 = vmatpush1.bf16.msra.mxu0 %v3723_v7  ;;  %v151_v7 = vor.u32 %v149_v57, %v4234_v56 }
  0x38   :  { %1665 = vmatpush1.bf16.msra.mxu1 %v3724_v13  ;;  %1104 = vmatprep.subr.bf16.mxu0 %v3725_v16  ;;  %v141_v13 = vshll.u32 %v4212_v48, 16  ;;  %v3763_v16 = vld [vmem:[%s5763_s1 + $0x34] ss:$8 sps:$4 sm:$0xff]  }
  0x39   :  { %1666 = vmatprep.subr.bf16.mxu1 %v3727_v17  ;;  %v3766_v17 = vld [vmem:[%s5763_s1 + $0x234] ss:$8 sps:$4 sm:$0xff]  }
  0x3b   :  { %1105 = vmatpush1.bf16.msra.mxu0 %v3729_v18  ;;  %v397_v18 = vand.u32 63, %v329_v61 }
  0x3c   :  { %1667 = vmatpush1.bf16.msra.mxu1 %v3730_v19  ;;  %1106 = vmatprep.subr.bf16.mxu0 %v3731_v21  ;;  %v3761_v19 = vld [vmem:[%s5763_s1 + $0x30] ss:$8 sps:$4 sm:$0xff]   ;;  %v152_v21 = vsel %vm106_vm0, %v4165_v29, %v151_v7  ;;  %v143_v29 = vor.u32 %v141_v13, %v4275_v12  ;;  %v3790_v7 = vld [vmem:[%s5763_s1 + $0x264] ss:$8 sps:$4 sm:$0xff]  }
  0x3d   :  { %1668 = vmatprep.subr.bf16.mxu1 %v3733_v25  ;;  %v165_v25 = vshll.u32 %v4240_v58, 16  ;;  %vm4320_vm13 = vcmp.eq.s32.totalorder %v397_v18, 0  ;;  %v3793_v18 = vld [vmem:[%s5763_s1 + $0x74] ss:$8 sps:$4 sm:$0xff]  }
  0x3e   :  { %v144_v43 = vsel %vm106_vm0, %v4206_v46, %v143_v29  ;;  %vm585_vm14 = vmpackc.low %vm4320_vm13, %vm4320_vm13  ;;  %v3778_v46 = vld [vmem:[%s5763_s1 + $0x54] ss:$8 sps:$4 sm:$0xff]  }
  0x3f   :  { %1107 = vmatpush1.bf16.msra.mxu0 %v3735_v27  ;;  %v4305_v27 = vld [vmem:[%s5764_s0 + $0x44] ss:$8 sps:$4 sm:$0xff]   ;;  %v167_v41 = vor.u32 %v165_v25, %v4299_v22 }
  0x40   :  { %1669 = vmatpush1.bf16.msra.mxu1 %v3736_v32  ;;  %1365 = vmatprep.subr.bf16.mxu0 %v3742_v34  ;;  %v3764_v32 = vld [vmem:[%s5763_s1 + $0x230] ss:$8 sps:$4 sm:$0xff]   ;;  %v154_v34 = vshrl.u32 %v4281_v15, 16  ;;  %v181_v61 = vshll.u32 %v4305_v27, 16 }
  0x41   :  { %1911 = vmatprep.subr.bf16.mxu1 %v3745_v36  ;;  %v3775_v36 = vld [vmem:[%s5763_s1 + $0x244] ss:$8 sps:$4 sm:$0xff]  }
  0x42   :  { %3207 = vmatmul.mubr.msk.bf16.vlgmr.msra.gmra.mrb[0].mxu0 %vm4117_vm8, %v251_v45  ;;  %v4341_v45 = vrot.slane %v154_v34, 7 }
  0x43   :  { %1671 = vmatmul.mubr.bf16.vlgmr.msra.gmra.mrb[0].mxu1 %v4078_v1  ;;  %1366 = vmatpush1.bf16.msra.mxu0 %v3740_v38  ;;  %v3770_v38 = vld [vmem:[%s5763_s1 + $0x40] ss:$8 sps:$4 sm:$0xff]  }
  0x44   :  { %1912 = vmatpush1.bf16.msra.mxu1 %v3743_v40  ;;  %1367 = vmatprep.subr.bf16.mxu0 %v3748_v42  ;;  %v3773_v40 = vld [vmem:[%s5763_s1 + $0x240] ss:$8 sps:$4 sm:$0xff]   ;;  %v178_v42 = vshrl.u32 %v4305_v27, 16 }
  0x45   :  { %1913 = vmatprep.subr.bf16.mxu1 %v3751_v49  ;;  %3209 = vmatprep.mubr.msk.bf16.mxu0 %vm4217_vm10, %v136_v55  ;;  %v157_v49 = vshll.u32 %v4281_v15, 16  ;;  %v168_v55 = vsel %vm106_vm0, %v4234_v56, %v167_v41 }
  0x46   :  { %1680 = vmatprep.mubr.bf16.mxu1 %v4107_v11  ;;  %v4368_v59 = vrot.slane %v178_v42, 7 }
  0x47   :  { %1368 = vmatpush1.bf16.msra.mxu0 %v3746_v53  ;;  %v3781_v53 = vld [vmem:[%s5763_s1 + $0x254] ss:$8 sps:$4 sm:$0xff]   ;;  %v159_v56 = vor.u32 %v157_v49, %v4341_v45 }
  0x48   :  { %1914 = vmatpush1.bf16.msra.mxu1 %v3749_v54  ;;  %1369 = vmatprep.subr.bf16.mxu0 %v3757_v63  ;;  %v3776_v54 = vld [vmem:[%s5763_s1 + $0x50] ss:$8 sps:$4 sm:$0xff]   ;;  %v601_v63 = vsel %vm585_vm14, 65537, %v3860_v62  ;;  %v3787_v62 = vld [vmem:[%s5763_s1 + $0x64] ss:$8 sps:$4 sm:$0xff]  }
  0x49   :  { %1915 = vmatprep.subr.bf16.mxu1 %v3760_v0  ;;  %v4375_v0 = vld [vmem:[%s5764_s0 + $0x54] ss:$8 sps:$4 sm:$0xff]  }
  0x4a   :  { %3211 = vmatmul.mubr.msk.bf16.gmra.mrb[4].mxu0 %vm4217_vm10, %v128_v10  ;;  %v3785_v10 = vld [vmem:[%s5763_s1 + $0x60] ss:$8 sps:$4 sm:$0xff]  }
  0x4b   :  { %1681 = vmatmul.mubr.bf16.gmra.mrb[4].mxu1 %v4150_v24  ;;  %1370 = vmatpush1.bf16.msra.mxu0 %v3755_v5  ;;  %v3779_v5 = vld [vmem:[%s5763_s1 + $0x250] ss:$8 sps:$4 sm:$0xff]  }
  0x4c   :  { %1916 = vmatpush1.bf16.msra.mxu1 %v3758_v6  ;;  %1371 = vmatprep.subr.bf16.mxu0 %v3763_v16  ;;  %v170_v6 = vshrl.u32 %v4350_v50, 16  ;;  %v3064_v16 = vcombine.low %v601_v63, %v4087_v3  ;;  %v3805_v63 = vld [vmem:[%s5763_s1 + $0x284] ss:$8 sps:$4 sm:$0xff]  }
  0x4d   :  { %1917 = vmatprep.subr.bf16.mxu1 %v3766_v17  ;;  %3213 = vmatprep.mubr.msk.bf16.mxu0 %vm4217_vm10, %v152_v21  ;;  %v3788_v17 = vld [vmem:[%s5763_s1 + $0x260] ss:$8 sps:$4 sm:$0xff]   ;;  %v194_v21 = vshrl.u32 %v4375_v0, 16 }
  0x4e   :  { %1690 = vmatprep.mubr.bf16.mxu1 %v4171_v31  ;;  %v4411_v29 = vrot.slane %v170_v6, 7  ;;  %vm4425_vm15 = vcmp.eq.s16.totalorder %v3064_v16, 0 }
  0x4f   :  { %1372 = vmatpush1.bf16.msra.mxu0 %v3761_v19  ;;  %v183_v19 = vor.u32 %v181_v61, %v4368_v59  ;;  %v4436_v41 = vrot.slane %v194_v21, 7 }
  0x50   :  { %1918 = vmatpush1.bf16.msra.mxu1 %v3764_v32  ;;  %1373 = vmatprep.subr.bf16.mxu0 %v3772_v33  ;;  %v160_v32 = vsel %vm106_vm0, %v4275_v12, %v159_v56  ;;  %v173_v33 = vshll.u32 %v4350_v50, 16  ;;  %v3791_v12 = vld [vmem:[%s5763_s1 + $0x70] ss:$8 sps:$4 sm:$0xff]   ;;  %v3803_v56 = vld [vmem:[%s5763_s1 + $0x280] ss:$8 sps:$4 sm:$0xff]  }
  0x51   :  { %1919 = vmatprep.subr.bf16.mxu1 %v3775_v36  ;;  %v4417_v36 = vld [vmem:[%s5764_s0 + $0x50] ss:$8 sps:$4 sm:$0xff]  }
  0x52   :  { %3215 = vmatmul.mubr.msk.bf16.gmra.mrb[8].mxu0 %vm4217_vm10, %v144_v43  ;;  %v197_v43 = vshll.u32 %v4375_v0, 16 }
  0x53   :  { %1691 = vmatmul.mubr.bf16.gmra.mrb[8].mxu1 %v4212_v48  ;;  %1374 = vmatpush1.bf16.msra.mxu0 %v3770_v38  ;;  %v3806_v38 = vld [vmem:[%s5763_s1 + $0x90] ss:$8 sps:$4 sm:$0xff]  }
  0x54   :  { %1920 = vmatpush1.bf16.msra.mxu1 %v3773_v40  ;;  %1375 = vmatprep.subr.bf16.mxu0 %v3778_v46  ;;  %v184_v40 = vsel %vm106_vm0, %v4299_v22, %v183_v19  ;;  %v4442_v46 = vld [vmem:[%s5764_s0 + $0x64] ss:$8 sps:$4 sm:$0xff]   ;;  %v175_v22 = vor.u32 %v173_v33, %v4411_v29  ;;  %v3808_v19 = vld [vmem:[%s5763_s1 + $0x94] ss:$8 sps:$4 sm:$0xff]   ;;  %v284_v26 = vrot.slane %v197_v43, 1 }
  0x55   :  { %1921 = vmatprep.subr.bf16.mxu1 %v3781_v53  ;;  %3217 = vmatprep.mubr.msk.bf16.mxu0 %vm4217_vm10, %v168_v55  ;;  %v3794_v53 = vld [vmem:[%s5763_s1 + $0x270] ss:$8 sps:$4 sm:$0xff]   ;;  %v186_v55 = vshrl.u32 %v4417_v36, 16 }
  0x56   :  { %1700 = vmatprep.mubr.bf16.mxu1 %v4240_v58 }
  0x57   :  { %1376 = vmatpush1.bf16.msra.mxu0 %v3776_v54  ;;  %v3802_v54 = vld [vmem:[%s5763_s1 + $0x84] ss:$8 sps:$4 sm:$0xff]   ;;  %v188_v16 = vrot.slane %v186_v55, 7 }
  0x58   :  { %1922 = vmatpush1.bf16.msra.mxu1 %v3779_v5  ;;  %1377 = vmatprep.subr.bf16.mxu0 %v3787_v62  ;;  %v3800_v5 = vld [vmem:[%s5763_s1 + $0x80] ss:$8 sps:$4 sm:$0xff]   ;;  %v199_v62 = vor.u32 %v197_v43, %v4436_v41 }
  0x59   :  { %1923 = vmatprep.subr.bf16.mxu1 %v3790_v7  ;;  %v5772_v7 = vshrl.u32 %v4442_v46, 16 }
  0x5a   :  { %3219 = vmatmul.mubr.msk.bf16.gmra.mrb[12].mxu0 %vm4217_vm10, %v160_v32  ;;  %v200_v32 = vsel %vm106_vm0, %v4368_v59, %v199_v62  ;;  %v3809_v59 = vld [vmem:[%s5763_s1 + $0x290] ss:$8 sps:$4 sm:$0xff]  }
  0x5b   :  { %1701 = vmatmul.mubr.bf16.gmra.mrb[12].mxu1 %v4281_v15  ;;  %1378 = vmatpush1.bf16.msra.mxu0 %v3785_v10  ;;  %v176_v10 = vsel %vm106_vm0, %v4341_v45, %v175_v22  ;;  %v3811_v45 = vld [vmem:[%s5763_s1 + $0x294] ss:$8 sps:$4 sm:$0xff]  }
  0x5c   :  { %1924 = vmatpush1.bf16.msra.mxu1 %v3788_v17  ;;  %1379 = vmatprep.subr.bf16.mxu0 %v3793_v18  ;;  %v189_v17 = vshll.u32 %v4417_v36, 16  ;;  %v4478_v18 = vld [vmem:[%s5764_s0 + $0x60] ss:$8 sps:$4 sm:$0xff]  }
  0x5d   :  { %1925 = vmatprep.subr.bf16.mxu1 %v3796_v37  ;;  %3221 = vmatprep.mubr.msk.bf16.mxu0 %vm4425_vm15, %v184_v40  ;;  %v212_v37 = vrot.slane %v5772_v7, 7  ;;  %v4497_v40 = vld [vmem:[%s5764_s0 + $0x74] ss:$8 sps:$4 sm:$0xff]   ;;  %v5770_v22 = vshrl.u32 %v4478_v18, 16  ;;  %v221_v7 = vshll.u32 %v4534_v4, 16 }
  0x5e   :  { %1710 = vmatprep.mubr.bf16.mxu1 %v4305_v27  ;;  %v5771_v62 = vshrl.u32 %v4497_v40, 16 }
  0x5f   :  { %1380 = vmatpush1.bf16.msra.mxu0 %v3791_v12  ;;  %v213_v12 = vshll.u32 %v4442_v46, 16 }
  0x60   :  { %1926 = vmatpush1.bf16.msra.mxu1 %v3794_v53  ;;  %1381 = vmatprep.subr.bf16.mxu0 %v3802_v54  ;;  %v191_v53 = vor.u32 %v189_v17, %v188_v16  ;;  %v3817_v54 = vld [vmem:[%s5763_s1 + $0xa4] ss:$8 sps:$4 sm:$0xff]  }
  0x61   :  { %1927 = vmatprep.subr.bf16.mxu1 %v3805_v63  ;;  %v3820_v63 = vld [vmem:[%s5763_s1 + $0x2a4] ss:$8 sps:$4 sm:$0xff]  }
  0x62   :  { %3223 = vmatmul.mubr.msk.bf16.gmra.mrb[16].mxu0 %vm4425_vm15, %v176_v10  ;;  %v192_v10 = vsel %vm106_vm0, %v4411_v29, %v191_v53  ;;  %v3823_v29 = vld [vmem:[%s5763_s1 + $0xb4] ss:$8 sps:$4 sm:$0xff]   ;;  %v228_v53 = vrot.slane %v5771_v62, 7  ;;  %v3833_v62 = vld [vmem:[%s5763_s1 + $0x2c0] ss:$8 sps:$4 sm:$0xff]  }
  0x63   :  { %1711 = vmatmul.mubr.bf16.gmra.mrb[16].mxu1 %v4350_v50  ;;  %1382 = vmatpush1.bf16.msra.mxu0 %v3800_v5  ;;  %v3815_v5 = vld [vmem:[%s5763_s1 + $0xa0] ss:$8 sps:$4 sm:$0xff]  }
  0x64   :  { %1928 = vmatpush1.bf16.msra.mxu1 %v3803_v56  ;;  %1383 = vmatprep.subr.bf16.mxu0 %v3808_v19  ;;  %v215_v56 = vor.u32 %v213_v12, %v212_v37  ;;  %v3818_v19 = vld [vmem:[%s5763_s1 + $0x2a0] ss:$8 sps:$4 sm:$0xff]  }
  0x65   :  { %1929 = vmatprep.subr.bf16.mxu1 %v3811_v45  ;;  %3225 = vmatprep.mubr.msk.bf16.mxu0 %vm4217_vm10, %v200_v32  ;;  %v204_v45 = vrot.slane %v5770_v22, 7  ;;  %v205_v32 = vshll.u32 %v4478_v18, 16 }
  0x66   :  { %1720 = vmatprep.mubr.bf16.mxu1 %v4375_v0 }
  0x67   :  { %1384 = vmatpush1.bf16.msra.mxu0 %v3806_v38  ;;  %v3826_v38 = vld [vmem:[%s5763_s1 + $0x2b4] ss:$8 sps:$4 sm:$0xff]   ;;  %v207_v22 = vor.u32 %v205_v32, %v204_v45 }
  0x68   :  { %1930 = vmatpush1.bf16.msra.mxu1 %v3809_v59  ;;  %1385 = vmatprep.subr.bf16.mxu0 %v3817_v54  ;;  %v216_v59 = vsel %vm106_vm0, %v4436_v41, %v215_v56  ;;  %v229_v54 = vshll.u32 %v4497_v40, 16  ;;  %v218_v41 = vshrl.u32 %v4534_v4, 16  ;;  %v3835_v56 = vld [vmem:[%s5763_s1 + $0x2c4] ss:$8 sps:$4 sm:$0xff]  }
  0x69   :  { %1931 = vmatprep.subr.bf16.mxu1 %v3820_v63  ;;  %v3821_v63 = vld [vmem:[%s5763_s1 + $0xb0] ss:$8 sps:$4 sm:$0xff]  }
  0x6a   :  { %3227 = vmatmul.mubr.msk.bf16.gmra.mrb[20].mxu0 %vm4217_vm10, %v192_v10  ;;  %v3824_v10 = vld [vmem:[%s5763_s1 + $0x2b0] ss:$8 sps:$4 sm:$0xff]  }
  0x6b   :  { %1721 = vmatmul.mubr.bf16.gmra.mrb[20].mxu1 %v4417_v36  ;;  %1386 = vmatpush1.bf16.msra.mxu0 %v3815_v5  ;;  %v3832_v5 = vld [vmem:[%s5763_s1 + $0xc4] ss:$8 sps:$4 sm:$0xff]  }
  0x6c   :  { %1932 = vmatpush1.bf16.msra.mxu1 %v3818_v19  ;;  %1387 = vmatprep.subr.bf16.mxu0 %v3823_v29  ;;  %v231_v19 = vor.u32 %v229_v54, %v228_v53  ;;  %v208_v29 = vsel %vm106_vm0, %v188_v16, %v207_v22  ;;  %v3838_v53 = vld [vmem:[%s5763_s1 + $0xd4] ss:$8 sps:$4 sm:$0xff]  }
  0x6d   :  { %1933 = vmatprep.subr.bf16.mxu1 %v3826_v38  ;;  %3229 = vmatprep.mubr.msk.bf16.mxu0 %vm4217_vm10, %v216_v59  ;;  %v3830_v38 = vld [vmem:[%s5763_s1 + $0xc0] ss:$8 sps:$4 sm:$0xff]   ;;  %v220_v59 = vrot.slane %v218_v41, 7  ;;  %v3841_v16 = vld [vmem:[%s5763_s1 + $0x2d4] ss:$8 sps:$4 sm:$0xff]  }
  0x6e   :  { %1730 = vmatprep.mubr.bf16.mxu1 %v4442_v46  ;;  %v232_v22 = vsel %vm106_vm0, %v212_v37, %v231_v19  ;;  %v3850_v37 = vld [vmem:[%s5763_s1 + $0x2e4] ss:$8 sps:$4 sm:$0xff]   ;;  %v254_v19 = vrot.slane %v111_v23, 1  ;;  %v3856_v23 = vld [vmem:[%s5763_s1 + $0x2f4] ss:$8 sps:$4 sm:$0xff]  }
  0x6f   :  { %1388 = vmatpush1.bf16.msra.mxu0 %v3821_v63  ;;  %v3836_v63 = vld [vmem:[%s5763_s1 + $0xd0] ss:$8 sps:$4 sm:$0xff]  }
  0x70   :  { %1934 = vmatpush1.bf16.msra.mxu1 %v3824_v10  ;;  %1389 = vmatprep.subr.bf16.mxu0 %v3832_v5  ;;  %v3839_v10 = vld [vmem:[%s5763_s1 + $0x2d0] ss:$8 sps:$4 sm:$0xff]   ;;  %v223_v5 = vor.u32 %v221_v7, %v220_v59  ;;  %v3848_v59 = vld [vmem:[%s5763_s1 + $0x2e0] ss:$8 sps:$4 sm:$0xff]  }
  0x71   :  { %1935 = vmatprep.subr.bf16.mxu1 %v3835_v56  ;;  %v3847_v56 = vld [vmem:[%s5763_s1 + $0xe4] ss:$8 sps:$4 sm:$0xff]  }
  0x72   :  { %3231 = vmatmul.mubr.msk.bf16.gmra.mrb[24].mxu0 %vm4217_vm10, %v208_v29  ;;  %v224_v29 = vsel %vm106_vm0, %v204_v45, %v223_v5  ;;  %vm3438_vm0 = vcmp.eq.s16.totalorder %v3071_v28, 0 }
  0x73   :  { %1731 = vmatmul.mubr.bf16.gmra.mrb[24].mxu1 %v4478_v18  ;;  %1390 = vmatpush1.bf16.msra.mxu0 %v3830_v38  ;;  %v3845_v38 = vld [vmem:[%s5763_s1 + $0xe0] ss:$8 sps:$4 sm:$0xff]  }
  0x74   :  { %1936 = vmatpush1.bf16.msra.mxu1 %v3833_v62  ;;  %1391 = vmatprep.subr.bf16.mxu0 %v3838_v53  ;;  %v260_v62 = vrot.slane %v133_v30, 1  ;;  %v3853_v30 = vld [vmem:[%s5763_s1 + $0xf4] ss:$8 sps:$4 sm:$0xff]   ;;  %v255_v53 = vor.u32 %v254_v19, %v108_v14  ;;  %v266_v14 = vrot.slane %v149_v57, 1 }
  0x75   :  { %1937 = vmatprep.subr.bf16.mxu1 %v3841_v16  ;;  %3233 = vmatprep.mubr.msk.bf16.mxu0 %vm4217_vm10, %v232_v22  ;;  %v256_v16 = vrot.slane %v125_v47, 1  ;;  %v3851_v22 = vld [vmem:[%s5763_s1 + $0xf0] ss:$8 sps:$4 sm:$0xff]  }
  0x76   :  { %1740 = vmatprep.mubr.bf16.mxu1 %v4497_v40  ;;  %v261_v45 = vsel %vm253_vm1, %v4100_v9, %v260_v62  ;;  %v265_v9 = vor.u32 %v260_v62, %v130_v20  ;;  %v263_v20 = vrot.slane %v141_v13, 1  ;;  %v271_v57 = vor.u32 %v266_v14, %v146_v44  ;;  %v2279_v19 = vld [vmem:[%s5765_s2 + $0x98] sm:$0xff] }
  0x77   :  { %1392 = vmatpush1.bf16.msra.mxu0 %v3836_v63  ;;  %v3854_v63 = vld [vmem:[%s5763_s1 + $0x2f0] ss:$8 sps:$4 sm:$0xff]   ;;  %v257_v47 = vsel %vm253_vm1, %v255_v53, %v256_v16  ;;  %v2264_v53 = vld [vmem:[%s5765_s2 + $0x20] sm:$0xff] }
  0x78   :  { %1938 = vmatpush1.bf16.msra.mxu1 %v3839_v10  ;;  %1393 = vmatprep.subr.bf16.mxu0 %v3847_v56  ;;  %v267_v10 = vsel %vm253_vm1, %v265_v9, %v266_v14  ;;  %v2282_v9 = vld [vmem:[%s5765_s2 + $0xb0] sm:$0xff]  ;;  %v2283_v14 = vld [vmem:[%s5765_s2 + $0xb8] sm:$0xff] }
  0x79   :  { %1939 = vmatprep.subr.bf16.mxu1 %v3850_v37 }
  0x7a   :  { %3235 = vmatmul.mubr.msk.bf16.gmra.mrb[28].mxu0 %vm4217_vm10, %v224_v29  ;;  %v2262_v29 = vld [vmem:[%s5765_s2 + $0x10] sm:$0xff] }
  0x7b   :  { %1741 = vmatmul.mubr.bf16.gmra.mrb[28].mxu1 %v4534_v4  ;;  %1394 = vmatpush1.bf16.msra.mxu0 %v3845_v38 }
  0x7c   :  { %1940 = vmatpush1.bf16.msra.mxu1 %v3848_v59  ;;  %1395 = vmatprep.subr.bf16.mxu0 %v3853_v30  ;;  %v2263_v59 = vld [vmem:[%s5765_s2 + $0x18] sm:$0xff] }
  0x7d   :  { %1941 = vmatprep.subr.bf16.mxu1 %v3856_v23  ;;  %1397 = vmatprep.mubr.bf16.mxu0 %v4048_v51  ;;  %v262_v51 = vor.u32 %v256_v16, %v122_v35  ;;  %v269_v35 = vrot.slane %v157_v49, 1  ;;  %v290_v49 = vrot.slane %v213_v12, 1  ;;  %v293_v12 = vrot.slane %v221_v7, 1  ;;  %v2280_v23 = vld [vmem:[%s5765_s2 + $0xa0] sm:$0xff] }
  0x7e   :  { %3333 = vmatprep.mubr.msk.bf16.mxu1 %vm4217_vm10, %v261_v45  ;;  %v3516_v30 = vpack.c.bf16 %v2263_v59, %v2262_v29  ;;  %v2281_v45 = vld [vmem:[%s5765_s2 + $0xa8] sm:$0xff] }
  0x7f   :  { %1396 = vmatpush1.bf16.msra.mxu0 %v3851_v22  ;;  %v264_v5 = vsel %vm253_vm1, %v262_v51, %v263_v20  ;;  %v298_v7 = vor.u32 %v293_v12, %v218_v41  ;;  %v3518_v16 = vpack.c.bf16 %v2281_v45, %v2280_v23  ;;  %v2265_v22 = vld [vmem:[%s5765_s2 + $0x28] sm:$0xff]  ;;  %v2267_v51 = vld [vmem:[%s5765_s2 + $0x38] sm:$0xff] }
  0x80   :  { %1942 = vmatpush1.bf16.msra.mxu1 %v3854_v63  ;;  %v3520_v63 = vpack.c.bf16 %v2265_v22, %v2264_v53 }
  0x81   :  { %v318_v62 = vsel %vm317_vm3, %v298_v7, 0 }
  0x82   :  { %1398 = vmatmul.mubr.bf16.vlgmr.msra.gmra.mrb[0].mxu0 %v4078_v1  ;;  %v272_v1 = vrot.slane %v165_v25, 1 }
  0x83   :  { %3335 = vmatmul.mubr.msk.bf16.vlgmr.msra.gmra.mrb[0].mxu1 %vm4217_vm10, %v257_v47  ;;  %1407 = vmatprep.mubr.bf16.mxu0 %v4107_v11  ;;  %v268_v11 = vor.u32 %v263_v20, %v138_v60  ;;  %v275_v60 = vrot.slane %v173_v33, 1  ;;  %v2266_v47 = vld [vmem:[%s5765_s2 + $0x30] sm:$0xff] }
  0x84   :  { %3337 = vmatprep.mubr.msk.bf16.mxu1 %vm4217_vm10, %v267_v10  ;;  %v273_v56 = vsel %vm253_vm1, %v271_v57, %v272_v1  ;;  %v277_v44 = vor.u32 %v272_v1, %v162_v8  ;;  %v3522_v10 = vpack.c.bf16 %v2283_v14, %v2282_v9  ;;  %v3524_v20 = vpack.c.bf16 %v2267_v51, %v2266_v47  ;;  %v2284_v57 = vld [vmem:[%s5765_s2 + $0xc0] sm:$0xff]  ;;  %v2285_v1 = vld [vmem:[%s5765_s2 + $0xc8] sm:$0xff] }
  0x85   :  { %v270_v13 = vsel %vm253_vm1, %v268_v11, %v269_v35  ;;  %v2269_v11 = vld [vmem:[%s5765_s2 + $0x48] sm:$0xff] }
  0x8a   :  { %1408 = vmatmul.mubr.bf16.gmra.mrb[4].mxu0 %v4150_v24  ;;  %v278_v24 = vrot.slane %v181_v61, 1 }
  0x8b   :  { %3339 = vmatmul.mubr.msk.bf16.gmra.mrb[4].mxu1 %vm4217_vm10, %v264_v5  ;;  %1417 = vmatprep.mubr.bf16.mxu0 %v4171_v31  ;;  %v274_v31 = vor.u32 %v269_v35, %v154_v34  ;;  %v281_v34 = vrot.slane %v189_v17, 1  ;;  %v2268_v5 = vld [vmem:[%s5765_s2 + $0x40] sm:$0xff] }
  0x8c   :  { %3341 = vmatprep.mubr.msk.bf16.mxu1 %vm4217_vm10, %v273_v56  ;;  %v279_v25 = vsel %vm253_vm1, %v277_v44, %v278_v24  ;;  %v283_v8 = vor.u32 %v278_v24, %v178_v42  ;;  %v289_v42 = vor.u32 %v284_v26, %v194_v21  ;;  %v5829_v21 = vshrl.u32 %v4442_v46, 16  ;;  %v2286_v44 = vld [vmem:[%s5765_s2 + $0xd0] sm:$0xff]  ;;  %v2287_v24 = vld [vmem:[%s5765_s2 + $0xd8] sm:$0xff] }
  0x8d   :  { %v276_v28 = vsel %vm253_vm1, %v274_v31, %v275_v60  ;;  %v3526_v56 = vpack.c.bf16 %v2285_v1, %v2284_v57  ;;  %v3528_v35 = vpack.c.bf16 %v2269_v11, %v2268_v5  ;;  %v2271_v31 = vld [vmem:[%s5765_s2 + $0x58] sm:$0xff] }
  0x8e   :  { %v291_v61 = vsel %vm253_vm1, %v289_v42, %v290_v49  ;;  %v295_v33 = vor.u32 %v290_v49, %v5829_v21  ;;  %v2290_v42 = vld [vmem:[%s5765_s2 + $0xf0] sm:$0xff]  ;;  %v2291_v49 = vld [vmem:[%s5765_s2 + $0xf8] sm:$0xff] }
  0x92   :  { %1418 = vmatmul.mubr.bf16.gmra.mrb[8].mxu0 %v4212_v48  ;;  %v285_v48 = vsel %vm253_vm1, %v283_v8, %v284_v26  ;;  %v2288_v8 = vld [vmem:[%s5765_s2 + $0xe0] sm:$0xff]  ;;  %v2289_v26 = vld [vmem:[%s5765_s2 + $0xe8] sm:$0xff] }
  0x93   :  { %3343 = vmatmul.mubr.msk.bf16.gmra.mrb[8].mxu1 %vm4217_vm10, %v270_v13  ;;  %1427 = vmatprep.mubr.bf16.mxu0 %v4240_v58  ;;  %v280_v58 = vor.u32 %v275_v60, %v170_v6  ;;  %v287_v6 = vrot.slane %v205_v32, 1  ;;  %v5831_v32 = vshrl.u32 %v4497_v40, 16  ;;  %v2270_v13 = vld [vmem:[%s5765_s2 + $0x50] sm:$0xff] }
  0x94   :  { %3345 = vmatprep.mubr.msk.bf16.mxu1 %vm3438_vm0, %v279_v25  ;;  %v3530_v25 = vpack.c.bf16 %v2287_v24, %v2286_v44  ;;  %v3532_v60 = vpack.c.bf16 %v2271_v31, %v2270_v13 }
  0x9a   :  { %1428 = vmatmul.mubr.bf16.gmra.mrb[12].mxu0 %v4281_v15  ;;  %v282_v15 = vsel %vm253_vm1, %v280_v58, %v281_v34  ;;  %v2273_v58 = vld [vmem:[%s5765_s2 + $0x68] sm:$0xff] }
  0x9b   :  { %3347 = vmatmul.mubr.msk.bf16.gmra.mrb[12].mxu1 %vm3438_vm0, %v276_v28  ;;  %1437 = vmatprep.mubr.bf16.mxu0 %v4305_v27  ;;  %v286_v27 = vor.u32 %v281_v34, %v186_v55  ;;  %v3534_v28 = vpack.c.bf16 %v2289_v26, %v2288_v8 }
  0x9c   :  { %3349 = vmatprep.mubr.msk.bf16.mxu1 %vm4217_vm10, %v285_v48  ;;  %v2272_v48 = vld [vmem:[%s5765_s2 + $0x60] sm:$0xff] }
  0x9d   :  { %v288_v43 = vsel %vm253_vm1, %v286_v27, %v287_v6  ;;  %v3536_v34 = vpack.c.bf16 %v2273_v58, %v2272_v48  ;;  %v2275_v27 = vld [vmem:[%s5765_s2 + $0x78] sm:$0xff] }
  0xa2   :  { %1438 = vmatmul.mubr.bf16.gmra.mrb[16].mxu0 %v4350_v50  ;;  %v296_v50 = vrot.slane %v229_v54, 1 }
  0xa3   :  { %3351 = vmatmul.mubr.msk.bf16.gmra.mrb[16].mxu1 %vm4217_vm10, %v282_v15  ;;  %1447 = vmatprep.mubr.bf16.mxu0 %v4375_v0  ;;  %v5830_v0 = vshrl.u32 %v4478_v18, 16  ;;  %v3538_v15 = vpack.c.bf16 %v2291_v49, %v2290_v42 }
  0xa4   :  { %3353 = vmatprep.mubr.msk.bf16.mxu1 %vm4217_vm10, %v291_v61  ;;  %v297_v17 = vsel %vm253_vm1, %v295_v33, %v296_v50  ;;  %v299_v54 = vor.u32 %v296_v50, %v5831_v32  ;;  %v2274_v61 = vld [vmem:[%s5765_s2 + $0x70] sm:$0xff] }
  0xa5   :  { %v292_v55 = vor.u32 %v287_v6, %v5830_v0  ;;  %v3540_v6 = vpack.c.bf16 %v2275_v27, %v2274_v61 }
  0xa6   :  { %v319_v37 = vsel %vm317_vm3, %v299_v54, 0 }
  0xaa   :  { %1448 = vmatmul.mubr.bf16.gmra.mrb[20].mxu0 %v4417_v36  ;;  %v294_v36 = vsel %vm253_vm1, %v292_v55, %v293_v12 }
  0xab   :  { %3355 = vmatmul.mubr.msk.bf16.gmra.mrb[20].mxu1 %vm4217_vm10, %v288_v43  ;;  %1457 = vmatprep.mubr.bf16.mxu0 %v4442_v46  ;;  %v5832_v46 = vcombine.low %v4087_v3, %v4254_v2  ;;  %v2276_v3 = vld [vmem:[%s5765_s2 + $0x80] sm:$0xff]  ;;  %v2277_v2 = vld [vmem:[%s5765_s2 + $0x88] sm:$0xff] }
  0xac   :  { %3357 = vmatprep.mubr.msk.bf16.mxu1 %vm4217_vm10, %v297_v17 }
  0xad   :  { %vm3439_vm4 = vcmp.eq.s16.totalorder %v5832_v46, 0 }
  0xb2   :  { %1458 = vmatmul.mubr.bf16.gmra.mrb[24].mxu0 %v4478_v18  ;;  %v3510_v18 = vpack.c.bf16 %v2277_v2, %v2276_v3 }
  0xb3   :  { %3359 = vmatmul.mubr.msk.bf16.gmra.mrb[24].mxu1 %vm4217_vm10, %v294_v36  ;;  %1467 = vmatprep.mubr.bf16.mxu0 %v4497_v40  ;;  %v2261_v40 = vld [vmem:[%s5765_s2 + $0x8] sm:$0xff] }
  0xb4   :  { %3361 = vmatprep.mubr.msk.bf16.mxu1 %vm3439_vm4, %v319_v37  ;;  %v3512_v41 = vpack.c.bf16 %v2261_v40, %v2260_v52  ;;  %3511 = vmatprep.subr.bf16.mxu0 %v3510_v18 }
  0xb5   :  { %3543 = vmatprep.subr.bf16.mxu1 %v3510_v18 }
  0xb6   :  { %3513 = vmatpush3.bf16.msra.mxu0 %v3512_v41  ;;  %3545 = vmatpush3.bf16.msra.mxu1 %v3512_v41 }
  0xba   :  { %1468 = vmatmul.mubr.bf16.gmra.mrb[28].mxu0 %v4534_v4  ;;  %v2278_v4 = vld [vmem:[%s5765_s2 + $0x90] sm:$0xff] }
  0xbb   :  { %3363 = vmatmul.mubr.msk.bf16.gmra.mrb[28].mxu1 %vm3439_vm4, %v318_v62  ;;  %v3514_v38 = vpack.c.bf16 %v2279_v19, %v2278_v4 }
  0xbd   :  { %3515 = vmatprep.subr.bf16.mxu0 %v3514_v38  ;;  %3547 = vmatprep.subr.bf16.mxu1 %v3514_v38 }
  0xbe   :  { %3517 = vmatpush3.bf16.msra.mxu0 %v3516_v30  ;;  %3549 = vmatpush3.bf16.msra.mxu1 %v3516_v30 }
  0xbf   :  { %3519 = vmatprep.subr.bf16.mxu0 %v3518_v16  ;;  %3551 = vmatprep.subr.bf16.mxu1 %v3518_v16 }
  0xc2   :  { %3521 = vmatpush3.bf16.msra.mxu0 %v3520_v63  ;;  %3553 = vmatpush3.bf16.msra.mxu1 %v3520_v63 }
  0xc3   :  { %3523 = vmatprep.subr.bf16.mxu0 %v3522_v10  ;;  %3555 = vmatprep.subr.bf16.mxu1 %v3522_v10 }
  0xc6   :  { %3525 = vmatpush3.bf16.msra.mxu0 %v3524_v20  ;;  %3557 = vmatpush3.bf16.msra.mxu1 %v3524_v20 }
  0xc7   :  { %3527 = vmatprep.subr.bf16.mxu0 %v3526_v56  ;;  %3559 = vmatprep.subr.bf16.mxu1 %v3526_v56 }
  0xca   :  { %3529 = vmatpush3.bf16.msra.mxu0 %v3528_v35  ;;  %3561 = vmatpush3.bf16.msra.mxu1 %v3528_v35 }
  0xcb   :  { %3531 = vmatprep.subr.bf16.mxu0 %v3530_v25  ;;  %3563 = vmatprep.subr.bf16.mxu1 %v3530_v25 }
  0xce   :  { %3533 = vmatpush3.bf16.msra.mxu0 %v3532_v60  ;;  %3565 = vmatpush3.bf16.msra.mxu1 %v3532_v60 }
  0xcf   :  { %3535 = vmatprep.subr.bf16.mxu0 %v3534_v28  ;;  %3567 = vmatprep.subr.bf16.mxu1 %v3534_v28 }
  0xd2   :  { %3537 = vmatpush3.bf16.msra.mxu0 %v3536_v34  ;;  %3569 = vmatpush3.bf16.msra.mxu1 %v3536_v34 }
  0xd3   :  { %3539 = vmatprep.subr.bf16.mxu0 %v3538_v15  ;;  %3571 = vmatprep.subr.bf16.mxu1 %v3538_v15 }
  0xd6   :  { %3541 = vmatpush3.bf16.msra.mxu0 %v3540_v6  ;;  %3573 = vmatpush3.bf16.msra.mxu1 %v3540_v6 }
 0x155   :  { %v4847_v21 = vpop.f32.mrb[0].mxu0 }
 0x156   :  { %v4849_v33 = vpop.f32.mrb[0].mxu1  ;;  %v4851_v50 = vpop.f32.mrb[1].mxu0  ;;  %v2110_v17 = vmul.f32 %v4847_v21, %v4847_v21 }
 0x157   :  { %5833 = vst [vmem:[#allocation2_spill] sm:$0xff] %v4851_v50  ;;  %v4853_v43 = vpop.f32.mrb[1].mxu1  ;;  %v2184_v0 = vmul.f32 %v4849_v33, %v4849_v33  ;;  %v2111_v55 = vmul.f32 %v4851_v50, %v4851_v50  ;;  %v4863_v32 = vpop.f32.mrb[2].mxu0 }
 0x158   :  { %5834 = vst [vmem:[#allocation3_spill] sm:$0xff] %v4853_v43  ;;  %v2185_v12 = vmul.f32 %v4853_v43, %v4853_v43  ;;  %v4865_v54 = vpop.f32.mrb[2].mxu1  ;;  %v2024_v36 = vadd.f32 %v4863_v32, %v4847_v21  ;;  %v2112_v37 = vmul.f32 %v4863_v32, %v4863_v32  ;;  %v4875_v62 = vpop.f32.mrb[3].mxu0 }
 0x159   :  { %v2066_v46 = vadd.f32 %v4865_v54, %v4849_v33  ;;  %v2186_v7 = vmul.f32 %v4865_v54, %v4865_v54  ;;  %5835 = vst [vmem:[#allocation4_spill] sm:$0xff] %v4875_v62  ;;  %v4877_v3 = vpop.f32.mrb[3].mxu1  ;;  %v2045_v2 = vadd.f32 %v4875_v62, %v4851_v50  ;;  %v2113_v52 = vmul.f32 %v4875_v62, %v4875_v62 }
 0x15a   :  { %5836 = vst [vmem:[#allocation5_spill] sm:$0xff] %v4877_v3  ;;  %v2087_v18 = vadd.f32 %v4877_v3, %v4853_v43  ;;  %v2187_v40 = vmul.f32 %v4877_v3, %v4877_v3  ;;  %v2142_v41 = vadd.f32 %v2112_v37, %v2110_v17 }
 0x15b   :  { %v2216_v4 = vadd.f32 %v2186_v7, %v2184_v0  ;;  %v2163_v19 = vadd.f32 %v2113_v52, %v2111_v55 }
 0x15c   :  { %v2237_v29 = vadd.f32 %v2187_v40, %v2185_v12 }
 0x15d   :  { %v4887_v38 = vpop.f32.mrb[4].mxu0 }
 0x15e   :  { %v4889_v59 = vpop.f32.mrb[4].mxu1  ;;  %v2025_v30 = vadd.f32 %v2024_v36, %v4887_v38  ;;  %v2114_v23 = vmul.f32 %v4887_v38, %v4887_v38  ;;  %v4897_v16 = vpop.f32.mrb[5].mxu0 }
 0x15f   :  { %v2067_v45 = vadd.f32 %v2066_v46, %v4889_v59  ;;  %v2188_v53 = vmul.f32 %v4889_v59, %v4889_v59  ;;  %5837 = vst [vmem:[#allocation6_spill] sm:$0xff] %v4897_v16  ;;  %v4899_v22 = vpop.f32.mrb[5].mxu1  ;;  %v2046_v63 = vadd.f32 %v2045_v2, %v4897_v16  ;;  %v2115_v9 = vmul.f32 %v4897_v16, %v4897_v16  ;;  %v4907_v10 = vpop.f32.mrb[6].mxu0 }
 0x160   :  { %5838 = vst [vmem:[#allocation7_spill] sm:$0xff] %v4899_v22  ;;  %v2088_v14 = vadd.f32 %v2087_v18, %v4899_v22  ;;  %v2189_v47 = vmul.f32 %v4899_v22, %v4899_v22  ;;  %v4909_v51 = vpop.f32.mrb[6].mxu1  ;;  %v2143_v20 = vadd.f32 %v2142_v41, %v2114_v23  ;;  %v2026_v1 = vadd.f32 %v2025_v30, %v4907_v10  ;;  %v4914_v56 = vpop.f32.mrb[7].mxu0 }
 0x161   :  { %v2217_v57 = vadd.f32 %v2216_v4, %v2188_v53  ;;  %v2116_v5 = vmul.f32 %v4907_v10, %v4907_v10  ;;  %5839 = vst [vmem:[#allocation8_spill] sm:$0xff] %v4914_v56  ;;  %v4916_v11 = vpop.f32.mrb[7].mxu1  ;;  %v2164_v35 = vadd.f32 %v2163_v19, %v2115_v9  ;;  %v2068_v24 = vadd.f32 %v2067_v45, %v4909_v51 }
 0x162   :  { %5840 = vst [vmem:[#allocation9_spill] sm:$0xff] %v4916_v11  ;;  %v2238_v44 = vadd.f32 %v2237_v29, %v2189_v47  ;;  %v2190_v13 = vmul.f32 %v4909_v51, %v4909_v51  ;;  %v2047_v31 = vadd.f32 %v2046_v63, %v4914_v56  ;;  %v2117_v60 = vmul.f32 %v4914_v56, %v4914_v56 }
 0x163   :  { %v2144_v25 = vadd.f32 %v2143_v20, %v2116_v5  ;;  %v2089_v8 = vadd.f32 %v2088_v14, %v4916_v11  ;;  %v2191_v28 = vmul.f32 %v4916_v11, %v4916_v11 }
 0x164   :  { %v2218_v26 = vadd.f32 %v2217_v57, %v2190_v13  ;;  %v2165_v48 = vadd.f32 %v2164_v35, %v2117_v60 }
 0x165   :  { %v2239_v58 = vadd.f32 %v2238_v44, %v2191_v28  ;;  %v4927_v34 = vpop.f32.mrb[8].mxu0 }
 0x166   :  { %v4929_v42 = vpop.f32.mrb[8].mxu1  ;;  %v2027_v49 = vadd.f32 %v2026_v1, %v4927_v34  ;;  %v2118_v15 = vmul.f32 %v4927_v34, %v4927_v34  ;;  %v4937_v6 = vpop.f32.mrb[9].mxu0 }
 0x167   :  { %v2069_v61 = vadd.f32 %v2068_v24, %v4929_v42  ;;  %v2192_v27 = vmul.f32 %v4929_v42, %v4929_v42  ;;  %5841 = vst [vmem:[#allocation10_spill] sm:$0xff] %v4937_v6  ;;  %v4939_v17 = vpop.f32.mrb[9].mxu1  ;;  %v2048_v0 = vadd.f32 %v2047_v31, %v4937_v6  ;;  %v2119_v55 = vmul.f32 %v4937_v6, %v4937_v6  ;;  %v4947_v37 = vpop.f32.mrb[10].mxu0 }
 0x168   :  { %5842 = vst [vmem:[#allocation11_spill] sm:$0xff] %v4939_v17  ;;  %v2090_v12 = vadd.f32 %v2089_v8, %v4939_v17  ;;  %v2193_v36 = vmul.f32 %v4939_v17, %v4939_v17  ;;  %v4949_v46 = vpop.f32.mrb[10].mxu1  ;;  %v2145_v7 = vadd.f32 %v2144_v25, %v2118_v15  ;;  %v2028_v52 = vadd.f32 %v2027_v49, %v4947_v37  ;;  %v4954_v40 = vpop.f32.mrb[11].mxu0 }
 0x169   :  { %v2219_v2 = vadd.f32 %v2218_v26, %v2192_v27  ;;  %v2120_v18 = vmul.f32 %v4947_v37, %v4947_v37  ;;  %5843 = vst [vmem:[#allocation12_spill] sm:$0xff] %v4954_v40  ;;  %v4956_v41 = vpop.f32.mrb[11].mxu1  ;;  %v2166_v4 = vadd.f32 %v2165_v48, %v2119_v55  ;;  %v2070_v29 = vadd.f32 %v2069_v61, %v4949_v46 }
 0x16a   :  { %5844 = vst [vmem:[#allocation13_spill] sm:$0xff] %v4956_v41  ;;  %v2240_v19 = vadd.f32 %v2239_v58, %v2193_v36  ;;  %v2194_v30 = vmul.f32 %v4949_v46, %v4949_v46  ;;  %v2049_v45 = vadd.f32 %v2048_v0, %v4954_v40  ;;  %v2121_v53 = vmul.f32 %v4954_v40, %v4954_v40 }
 0x16b   :  { %v2146_v23 = vadd.f32 %v2145_v7, %v2120_v18  ;;  %v2091_v63 = vadd.f32 %v2090_v12, %v4956_v41  ;;  %v2195_v14 = vmul.f32 %v4956_v41, %v4956_v41 }
 0x16c   :  { %v2220_v9 = vadd.f32 %v2219_v2, %v2194_v30  ;;  %v2167_v47 = vadd.f32 %v2166_v4, %v2121_v53 }
 0x16d   :  { %v2241_v20 = vadd.f32 %v2240_v19, %v2195_v14  ;;  %v4967_v57 = vpop.f32.mrb[12].mxu0 }
 0x16e   :  { %v4969_v1 = vpop.f32.mrb[12].mxu1  ;;  %v2029_v5 = vadd.f32 %v2028_v52, %v4967_v57  ;;  %v2122_v35 = vmul.f32 %v4967_v57, %v4967_v57  ;;  %v4977_v13 = vpop.f32.mrb[13].mxu0 }
 0x16f   :  { %v2071_v44 = vadd.f32 %v2070_v29, %v4969_v1  ;;  %v2196_v24 = vmul.f32 %v4969_v1, %v4969_v1  ;;  %5845 = vst [vmem:[#allocation14_spill] sm:$0xff] %v4977_v13  ;;  %v4979_v25 = vpop.f32.mrb[13].mxu1  ;;  %v2050_v31 = vadd.f32 %v2049_v45, %v4977_v13  ;;  %v2123_v60 = vmul.f32 %v4977_v13, %v4977_v13  ;;  %v4987_v28 = vpop.f32.mrb[14].mxu0 }
 0x170   :  { %5846 = vst [vmem:[#allocation15_spill] sm:$0xff] %v4979_v25  ;;  %v2092_v8 = vadd.f32 %v2091_v63, %v4979_v25  ;;  %v2197_v26 = vmul.f32 %v4979_v25, %v4979_v25  ;;  %v4989_v48 = vpop.f32.mrb[14].mxu1  ;;  %v2147_v58 = vadd.f32 %v2146_v23, %v2122_v35  ;;  %v2030_v15 = vadd.f32 %v2029_v5, %v4987_v28  ;;  %v4994_v27 = vpop.f32.mrb[15].mxu0 }
 0x171   :  { %v2221_v49 = vadd.f32 %v2220_v9, %v2196_v24  ;;  %v2124_v61 = vmul.f32 %v4987_v28, %v4987_v28  ;;  %5847 = vst [vmem:[#allocation16_spill] sm:$0xff] %v4994_v27  ;;  %v4996_v0 = vpop.f32.mrb[15].mxu1  ;;  %v2168_v55 = vadd.f32 %v2167_v47, %v2123_v60  ;;  %v2072_v36 = vadd.f32 %v2071_v44, %v4989_v48 }
 0x172   :  { %5848 = vst [vmem:[#allocation17_spill] sm:$0xff] %v4996_v0  ;;  %v2242_v12 = vadd.f32 %v2241_v20, %v2197_v26  ;;  %v2198_v7 = vmul.f32 %v4989_v48, %v4989_v48  ;;  %v2051_v52 = vadd.f32 %v2050_v31, %v4994_v27  ;;  %v2125_v18 = vmul.f32 %v4994_v27, %v4994_v27 }
 0x173   :  { %v2148_v2 = vadd.f32 %v2147_v58, %v2124_v61  ;;  %v2093_v4 = vadd.f32 %v2092_v8, %v4996_v0  ;;  %v2199_v29 = vmul.f32 %v4996_v0, %v4996_v0 }
 0x174   :  { %v2222_v19 = vadd.f32 %v2221_v49, %v2198_v7  ;;  %v2169_v30 = vadd.f32 %v2168_v55, %v2125_v18 }
 0x175   :  { %v2243_v23 = vadd.f32 %v2242_v12, %v2199_v29  ;;  %v5007_v45 = vpop.f32.mrb[16].mxu0 }
 0x176   :  { %v5009_v53 = vpop.f32.mrb[16].mxu1  ;;  %v2031_v63 = vadd.f32 %v2030_v15, %v5007_v45  ;;  %v2126_v9 = vmul.f32 %v5007_v45, %v5007_v45  ;;  %v5017_v20 = vpop.f32.mrb[17].mxu0 }
 0x177   :  { %v2073_v14 = vadd.f32 %v2072_v36, %v5009_v53  ;;  %v2200_v47 = vmul.f32 %v5009_v53, %v5009_v53  ;;  %5849 = vst [vmem:[#allocation18_spill] sm:$0xff] %v5017_v20  ;;  %v5019_v5 = vpop.f32.mrb[17].mxu1  ;;  %v2052_v35 = vadd.f32 %v2051_v52, %v5017_v20  ;;  %v2127_v44 = vmul.f32 %v5017_v20, %v5017_v20  ;;  %v5027_v60 = vpop.f32.mrb[18].mxu0 }
 0x178   :  { %5850 = vst [vmem:[#allocation19_spill] sm:$0xff] %v5019_v5  ;;  %v2094_v24 = vadd.f32 %v2093_v4, %v5019_v5  ;;  %v2201_v31 = vmul.f32 %v5019_v5, %v5019_v5  ;;  %v5029_v8 = vpop.f32.mrb[18].mxu1  ;;  %v2149_v26 = vadd.f32 %v2148_v2, %v2126_v9  ;;  %v2032_v49 = vadd.f32 %v2031_v63, %v5027_v60  ;;  %v5034_v61 = vpop.f32.mrb[19].mxu0 }
 0x179   :  { %v2223_v58 = vadd.f32 %v2222_v19, %v2200_v47  ;;  %v2128_v15 = vmul.f32 %v5027_v60, %v5027_v60  ;;  %5851 = vst [vmem:[#allocation20_spill] sm:$0xff] %v5034_v61  ;;  %v5036_v55 = vpop.f32.mrb[19].mxu1  ;;  %v2170_v12 = vadd.f32 %v2169_v30, %v2127_v44  ;;  %v2074_v7 = vadd.f32 %v2073_v14, %v5029_v8 }
 0x17a   :  { %5852 = vst [vmem:[#allocation21_spill] sm:$0xff] %v5036_v55  ;;  %v2244_v36 = vadd.f32 %v2243_v23, %v2201_v31  ;;  %v2202_v52 = vmul.f32 %v5029_v8, %v5029_v8  ;;  %v2053_v2 = vadd.f32 %v2052_v35, %v5034_v61  ;;  %v2129_v4 = vmul.f32 %v5034_v61, %v5034_v61 }
 0x17b   :  { %v2150_v18 = vadd.f32 %v2149_v26, %v2128_v15  ;;  %v2095_v19 = vadd.f32 %v2094_v24, %v5036_v55  ;;  %v2203_v63 = vmul.f32 %v5036_v55, %v5036_v55 }
 0x17c   :  { %v2224_v29 = vadd.f32 %v2223_v58, %v2202_v52  ;;  %v2171_v9 = vadd.f32 %v2170_v12, %v2129_v4 }
 0x17d   :  { %v2245_v30 = vadd.f32 %v2244_v36, %v2203_v63  ;;  %v5047_v23 = vpop.f32.mrb[20].mxu0 }
 0x17e   :  { %v5049_v14 = vpop.f32.mrb[20].mxu1  ;;  %v2033_v47 = vadd.f32 %v2032_v49, %v5047_v23  ;;  %v2130_v35 = vmul.f32 %v5047_v23, %v5047_v23  ;;  %v5057_v31 = vpop.f32.mrb[21].mxu0 }
 0x17f   :  { %v2075_v44 = vadd.f32 %v2074_v7, %v5049_v14  ;;  %v2204_v24 = vmul.f32 %v5049_v14, %v5049_v14  ;;  %5853 = vst [vmem:[#allocation22_spill] sm:$0xff] %v5057_v31  ;;  %v5059_v26 = vpop.f32.mrb[21].mxu1  ;;  %v2054_v58 = vadd.f32 %v2053_v2, %v5057_v31  ;;  %v2131_v15 = vmul.f32 %v5057_v31, %v5057_v31  ;;  %v5067_v36 = vpop.f32.mrb[22].mxu0 }
 0x180   :  { %5854 = vst [vmem:[#allocation23_spill] sm:$0xff] %v5059_v26  ;;  %v2096_v12 = vadd.f32 %v2095_v19, %v5059_v26  ;;  %v2205_v49 = vmul.f32 %v5059_v26, %v5059_v26  ;;  %v5069_v7 = vpop.f32.mrb[22].mxu1  ;;  %v2151_v52 = vadd.f32 %v2150_v18, %v2130_v35  ;;  %v2034_v63 = vadd.f32 %v2033_v47, %v5067_v36  ;;  %v5074_v2 = vpop.f32.mrb[23].mxu0 }
 0x181   :  { %v2225_v4 = vadd.f32 %v2224_v29, %v2204_v24  ;;  %v2132_v55 = vmul.f32 %v5067_v36, %v5067_v36  ;;  %5855 = vst [vmem:[#allocation24_spill] sm:$0xff] %v5074_v2  ;;  %v5076_v5 = vpop.f32.mrb[23].mxu1  ;;  %v2172_v0 = vadd.f32 %v2171_v9, %v2131_v15  ;;  %v2076_v25 = vadd.f32 %v2075_v44, %v5069_v7 }
 0x182   :  { %5856 = vst [vmem:[#allocation25_spill] sm:$0xff] %v5076_v5  ;;  %v2246_v19 = vadd.f32 %v2245_v30, %v2205_v49  ;;  %v2206_v26 = vmul.f32 %v5069_v7, %v5069_v7  ;;  %v2055_v18 = vadd.f32 %v2054_v58, %v5074_v2  ;;  %v2133_v29 = vmul.f32 %v5074_v2, %v5074_v2 }
 0x183   :  { %v2152_v41 = vadd.f32 %v2151_v52, %v2132_v55  ;;  %v2097_v47 = vadd.f32 %v2096_v12, %v5076_v5  ;;  %v2207_v24 = vmul.f32 %v5076_v5, %v5076_v5 }
 0x184   :  { %v2226_v35 = vadd.f32 %v2225_v4, %v2206_v26  ;;  %v2173_v17 = vadd.f32 %v2172_v0, %v2133_v29 }
 0x185   :  { %v2247_v9 = vadd.f32 %v2246_v19, %v2207_v24  ;;  %v5087_v30 = vpop.f32.mrb[24].mxu0 }
 0x186   :  { %v5089_v44 = vpop.f32.mrb[24].mxu1  ;;  %v2035_v15 = vadd.f32 %v2034_v63, %v5087_v30  ;;  %v2134_v55 = vmul.f32 %v5087_v30, %v5087_v30  ;;  %v5097_v26 = vpop.f32.mrb[25].mxu0 }
 0x187   :  { %v2077_v58 = vadd.f32 %v2076_v25, %v5089_v44  ;;  %v2208_v12 = vmul.f32 %v5089_v44, %v5089_v44  ;;  %5857 = vst [vmem:[#allocation26_spill] sm:$0xff] %v5097_v26  ;;  %v5099_v49 = vpop.f32.mrb[25].mxu1  ;;  %v2056_v0 = vadd.f32 %v2055_v18, %v5097_v26  ;;  %v2135_v52 = vmul.f32 %v5097_v26, %v5097_v26  ;;  %v5107_v19 = vpop.f32.mrb[26].mxu0 }
 0x188   :  { %5858 = vst [vmem:[#allocation27_spill] sm:$0xff] %v5099_v49  ;;  %v2098_v4 = vadd.f32 %v2097_v47, %v5099_v49  ;;  %v2209_v63 = vmul.f32 %v5099_v49, %v5099_v49  ;;  %v5109_v25 = vpop.f32.mrb[26].mxu1  ;;  %v2153_v29 = vadd.f32 %v2152_v41, %v2134_v55  ;;  %v2036_v5 = vadd.f32 %v2035_v15, %v5107_v19  ;;  %v5114_v18 = vpop.f32.mrb[27].mxu0 }
 0x189   :  { %v2227_v24 = vadd.f32 %v2226_v35, %v2208_v12  ;;  %v2136_v11 = vmul.f32 %v5107_v19, %v5107_v19  ;;  %5859 = vst [vmem:[#allocation28_spill] sm:$0xff] %v5114_v18  ;;  %v5116_v22 = vpop.f32.mrb[27].mxu1  ;;  %v2174_v3 = vadd.f32 %v2173_v17, %v2135_v52  ;;  %v2078_v43 = vadd.f32 %v2077_v58, %v5109_v25 }
 0x18a   :  { %5860 = vst [vmem:[#allocation29_spill] sm:$0xff] %v5116_v22  ;;  %v2248_v47 = vadd.f32 %v2247_v9, %v2209_v63  ;;  %v2210_v49 = vmul.f32 %v5109_v25, %v5109_v25  ;;  %v2057_v41 = vadd.f32 %v2056_v0, %v5114_v18  ;;  %v2137_v35 = vmul.f32 %v5114_v18, %v5114_v18 }
 0x18b   :  { %v2154_v26 = vadd.f32 %v2153_v29, %v2136_v11  ;;  %v2099_v15 = vadd.f32 %v2098_v4, %v5116_v22  ;;  %v2211_v12 = vmul.f32 %v5116_v22, %v5116_v22 }
 0x18c   :  { %v2228_v55 = vadd.f32 %v2227_v24, %v2210_v49  ;;  %v2175_v2 = vadd.f32 %v2174_v3, %v2137_v35 }
 0x18d   :  { %v2249_v17 = vadd.f32 %v2248_v47, %v2211_v12  ;;  %v5127_v9 = vpop.f32.mrb[28].mxu0 }
 0x18e   :  { %v5129_v58 = vpop.f32.mrb[28].mxu1  ;;  %v2037_v52 = vadd.f32 %v2036_v5, %v5127_v9  ;;  %v2138_v11 = vmul.f32 %v5127_v9, %v5127_v9  ;;  %v5137_v49 = vpop.f32.mrb[29].mxu0 }
 0x18f   :  { %5861 = vst [vmem:[#allocation30_spill] sm:$0xff] %v5129_v58  ;;  %v2079_v0 = vadd.f32 %v2078_v43, %v5129_v58  ;;  %v2212_v4 = vmul.f32 %v5129_v58, %v5129_v58  ;;  %5862 = vst [vmem:[#allocation31_spill] sm:$0xff] %v5137_v49  ;;  %v5139_v63 = vpop.f32.mrb[29].mxu1  ;;  %v2058_v3 = vadd.f32 %v2057_v41, %v5137_v49  ;;  %v5147_v47 = vpop.f32.mrb[30].mxu0 }
 0x190   :  { %5863 = vst [vmem:[#allocation32_spill] sm:$0xff] %v5139_v63  ;;  %v2139_v29 = vmul.f32 %v5137_v49, %v5137_v49  ;;  %v2100_v24 = vadd.f32 %v2099_v15, %v5139_v63  ;;  %v2213_v5 = vmul.f32 %v5139_v63, %v5139_v63  ;;  %v5149_v43 = vpop.f32.mrb[30].mxu1  ;;  %v2155_v35 = vadd.f32 %v2154_v26, %v2138_v11  ;;  %v5154_v41 = vpop.f32.mrb[31].mxu0 }
 0x191   :  { %5864 = vst [vmem:[#allocation33_spill] sm:$0xff] %v5149_v43  ;;  %v2229_v12 = vadd.f32 %v2228_v55, %v2212_v4  ;;  %v2038_v22 = vadd.f32 %v2037_v52, %v5147_v47  ;;  %v2140_v18 = vmul.f32 %v5147_v47, %v5147_v47  ;;  %5865 = vst [vmem:[#allocation34_spill] sm:$0xff] %v5154_v41  ;;  %v5156_v31 = vpop.f32.mrb[31].mxu1 }
 0x192   :  { %5866 = vst [vmem:[#allocation35_spill] sm:$0xff] %v5156_v31  ;;  %v2176_v49 = vadd.f32 %v2175_v2, %v2139_v29  ;;  %v2250_v15 = vadd.f32 %v2249_v17, %v2213_v5  ;;  %v2080_v61 = vadd.f32 %v2079_v0, %v5149_v43  ;;  %v2214_v63 = vmul.f32 %v5149_v43, %v5149_v43 }
 0x193   :  { %v2039_v20 = vrot.slane %v2038_v22, 4  ;;  %v2156_v27 = vadd.f32 %v2155_v35, %v2140_v18  ;;  %v2059_v26 = vadd.f32 %v2058_v3, %v5154_v41  ;;  %v2141_v55 = vmul.f32 %v5154_v41, %v5154_v41 }
 0x194   :  { %v2081_v52 = vrot.slane %v2080_v61, 4  ;;  %v2230_v11 = vadd.f32 %v2229_v12, %v2214_v63  ;;  %v2101_v4 = vadd.f32 %v2100_v24, %v5156_v31  ;;  %v2215_v2 = vmul.f32 %v5156_v31, %v5156_v31 }
 0x195   :  { %v2040_v17 = vadd.f32 %v2039_v20, %v2038_v22  ;;  %v2157_v29 = vrot.slane %v2156_v27, 4  ;;  %v2060_v0 = vrot.slane %v2059_v26, 4  ;;  %v2177_v5 = vadd.f32 %v2176_v49, %v2141_v55 }
 0x196   :  { %v2082_v13 = vadd.f32 %v2081_v52, %v2080_v61  ;;  %v2231_v40 = vrot.slane %v2230_v11, 4  ;;  %v2102_v6 = vrot.slane %v2101_v4, 4  ;;  %v2251_v18 = vadd.f32 %v2250_v15, %v2215_v2 }
 0x197   :  { %v2041_v35 = vrot.slane %v2040_v17, 2  ;;  %v2158_v3 = vadd.f32 %v2157_v29, %v2156_v27  ;;  %v2061_v56 = vadd.f32 %v2060_v0, %v2059_v26  ;;  %v2178_v16 = vrot.slane %v2177_v5, 4 }
 0x198   :  { %v2083_v41 = vrot.slane %v2082_v13, 2  ;;  %v2232_v62 = vadd.f32 %v2231_v40, %v2230_v11  ;;  %v2103_v63 = vadd.f32 %v2102_v6, %v2101_v4  ;;  %v2252_v12 = vrot.slane %v2251_v18, 4 }
 0x199   :  { %v2042_v24 = vadd.f32 %v2041_v35, %v2040_v17  ;;  %v2159_v50 = vrot.slane %v2158_v3, 2  ;;  %v2062_v43 = vrot.slane %v2061_v56, 2  ;;  %v2179_v31 = vadd.f32 %v2178_v16, %v2177_v5 }
 0x19a   :  { %v2084_v22 = vadd.f32 %v2083_v41, %v2082_v13  ;;  %v2233_v20 = vrot.slane %v2232_v62, 2  ;;  %v2104_v58 = vrot.slane %v2103_v63, 2  ;;  %v2253_v49 = vadd.f32 %v2252_v12, %v2251_v18 }
 0x19b   :  { %v2043_v61 = vrot.slane %v2042_v24, 1  ;;  %v2160_v55 = vadd.f32 %v2159_v50, %v2158_v3  ;;  %v2063_v52 = vadd.f32 %v2062_v43, %v2061_v56  ;;  %v2180_v15 = vrot.slane %v2179_v31, 2 }
 0x19c   :  { %v2085_v2 = vrot.slane %v2084_v22, 1  ;;  %v2234_v27 = vadd.f32 %v2233_v20, %v2232_v62  ;;  %v2105_v26 = vadd.f32 %v2104_v58, %v2103_v63  ;;  %v2254_v29 = vrot.slane %v2253_v49, 2 }
 0x19d   :  { %v2044_v0 = vadd.f32 %v2043_v61, %v2042_v24  ;;  %v2161_v40 = vrot.slane %v2160_v55, 1  ;;  %v2064_v6 = vrot.slane %v2063_v52, 1  ;;  %v2181_v11 = vadd.f32 %v2180_v15, %v2179_v31  ;;  %v3364_v31 = vld.sshfl [vmem:[%s5766_s3] sm:$0x33 pattern:$0x76325410] }
 0x19e   :  { %v2086_v4 = vadd.f32 %v2085_v2, %v2084_v22  ;;  %v2235_v17 = vrot.slane %v2234_v27, 1  ;;  %v2106_v35 = vrot.slane %v2105_v26, 1  ;;  %v2255_v16 = vadd.f32 %v2254_v29, %v2253_v49 }
 0x19f   :  { %v2162_v13 = vadd.f32 %v2161_v40, %v2160_v55  ;;  %v2065_v41 = vadd.f32 %v2064_v6, %v2063_v52  ;;  %v2182_v5 = vrot.slane %v2181_v11, 1  ;;  %v3861_v24 = vmov 0.0   ;;  %v2437_v6 = vld [vmem:[%s5767_s4] sm:$0x1] }
 0x1a0   :  { %v2108_v18 = vadd.f32 %v2086_v4, %v2044_v0  ;;  %v2236_v12 = vadd.f32 %v2235_v17, %v2234_v27  ;;  %v2107_v50 = vadd.f32 %v2106_v35, %v2105_v26  ;;  %v2256_v56 = vrot.slane %v2255_v16, 1  ;;  %v2441_v17 = vld [vmem:[%s5768_s5] sm:$0x1] }
 0x1a1   :  { %v2183_v43 = vadd.f32 %v2182_v5, %v2181_v11  ;;  %v2453_v22 = vcombine.high %v3364_v31, %v3364_v31 }
 0x1a2   :  { %v2109_v3 = vadd.f32 %v2107_v50, %v2065_v41  ;;  %v2257_v62 = vadd.f32 %v2256_v56, %v2255_v16  ;;  %v2258_v58 = vadd.f32 %v2236_v12, %v2162_v13  ;;  %v5177_v13 = vsub.s32 0, %v4011_v39 }
 0x1a3   :  { %3365 = vmatprep.subr.msk.mxu0 %vm2458_vm5, %v2453_v22  ;;  %3368 = vmatprep.subr.msk.mxu1 %vm2458_vm5, %v2453_v22 }
 0x1a4   :  { %2356 = vmatprep.mubr.f32.mxu0 %v2109_v3  ;;  %v2259_v63 = vadd.f32 %v2257_v62, %v2183_v43 }
 0x1a5   :  { %2357 = vmatmul.mubr.f32.vlgmr.msra.gmra.mrb[32].mxu0 %v2108_v18 }
 0x1a6   :  { %2426 = vmatprep.mubr.f32.mxu1 %v2259_v63  ;;  %2527 = vmatprep.mubr.f32.mxu0 %v3861_v24 }
 0x1a7   :  { %2427 = vmatmul.mubr.f32.vlgmr.msra.gmra.mrb[32].mxu1 %v2258_v58  ;;  %3366 = vmatpush1.msk.msra.mxu0 %vm2458_vm5, %v3364_v31 }
 0x1a8   :  { %2601 = vmatprep.mubr.f32.mxu1 %v3861_v24  ;;  %3369 = vmatpush1.msk.msra.mxu1 %vm2458_vm5, %v3364_v31 }
 0x278   :  { %v3472_v20 = vpop.f32.mrb[32].mxu0 }
 0x279   :  { %v3473_v49 = vpop.f32.mrb[33].mxu0 }
 0x27a   :  { %v3474_v61 = vadd.f32 %v3473_v49, %v3472_v20  ;;  %v3507_v55 = vpop.f32.mrb[32].mxu1  ;;  %v5871_v49 = vld [vmem:[#allocation6_spill] sm:$0xff] }
 0x27b   :  { %v3508_v52 = vpop.f32.mrb[33].mxu1 }
 0x27c   :  { %v2432_v15 = vmul.f32 3.0517578e-05, %v3474_v61  ;;  %v3509_v2 = vadd.f32 %v3508_v52, %v3507_v55  ;;  %v5873_v55 = vld [vmem:[#allocation10_spill] sm:$0xff] }
 0x27e   :  { %v2434_v27 = vmul.f32 %v2432_v15, %v2432_v15  ;;  %v2433_v26 = vmul.f32 3.0517578e-05, %v3509_v2 }
 0x280   :  { %v2435_v29 = vsub.f32 %v2433_v26, %v2434_v27  ;;  %v5875_v27 = vld [vmem:[#allocation14_spill] sm:$0xff] }
 0x282   :  { %v2436_v0 = vmax.f32 %v2435_v29, 0.0  ;;  %v5876_v29 = vld [vmem:[#allocation16_spill] sm:$0xff] }
 0x284   :  { %v2438_v40 = vadd.f32 1e-05, %v2436_v0 }
 0x286   :  { %3857 = vrsqrt.f32 %v2438_v40  ;;  %v5877_v40 = vld [vmem:[#allocation18_spill] sm:$0xff] }
 0x290   :  { %v3858_v11 = vpop.eup %3857 }
 0x291   :  { %v2440_v4 = vmul.f32 %v3858_v11, %v2437_v6  ;;  %v5878_v11 = vld [vmem:[#allocation20_spill] sm:$0xff] }
 0x293   :  { %3367 = vmatmul.mubr.msk.f32.vlgmr.msra.gmra.mrb[34].mxu0 %vm2454_vm6, %v2440_v4  ;;  %v2442_v35 = vmul.f32 %v2440_v4, %v2432_v15  ;;  %v5874_v15 = vld [vmem:[#allocation12_spill] sm:$0xff] }
 0x295   :  { %v2443_v16 = vsub.f32 %v2441_v17, %v2442_v35  ;;  %v5879_v17 = vld [vmem:[#allocation22_spill] sm:$0xff] }
 0x297   :  { %3370 = vmatmul.mubr.msk.f32.vlgmr.msra.gmra.mrb[34].mxu1 %vm2454_vm6, %v2443_v16  ;;  %v5880_v16 = vld [vmem:[#allocation24_spill] sm:$0xff] }
 0x366   :  { %v2529_v41 = vpop.f32.mrb[34].mxu0 }
 0x367   :  { %v2611_v5 = vrot.slane %v2529_v41, %v5177_v13  ;;  %v2531_v18 = vpop.f32.mrb[35].mxu0 }
 0x368   :  { %v5181_v12 = vrot.slane %v2531_v18, %v5177_v13 }
 0x369   :  { %v5184_v50 = vmul.f32 %v2611_v5, %v4847_v21  ;;  %v5187_v56 = vmul.f32 %v2611_v5, %v4863_v32  ;;  %v5190_v43 = vmul.f32 %v2611_v5, %v4887_v38  ;;  %v5193_v3 = vmul.f32 %v2611_v5, %v4907_v10 }
 0x36a   :  { %v5196_v39 = vmul.f32 %v2611_v5, %v4927_v34  ;;  %v5199_v62 = vmul.f32 %v2611_v5, %v4947_v37  ;;  %v5202_v58 = vmul.f32 %v2611_v5, %v4967_v57  ;;  %v5205_v21 = vmul.f32 %v2611_v5, %v4987_v28  ;;  %v2603_v32 = vpop.f32.mrb[34].mxu1 }
 0x36b   :  { %v5208_v63 = vmul.f32 %v2611_v5, %v5007_v45  ;;  %v5211_v38 = vmul.f32 %v2611_v5, %v5027_v60  ;;  %v5214_v10 = vmul.f32 %v2611_v5, %v5047_v23  ;;  %v5217_v34 = vmul.f32 %v2611_v5, %v5067_v36  ;;  %v2605_v37 = vpop.f32.mrb[35].mxu1 }
 0x36c   :  { %v5220_v57 = vmul.f32 %v2611_v5, %v5087_v30  ;;  %v5223_v28 = vmul.f32 %v2611_v5, %v5107_v19  ;;  %v5226_v31 = vmul.f32 %v2611_v5, %v5127_v9  ;;  %v5229_v45 = vmul.f32 %v2611_v5, %v5147_v47 }
 0x36d   :  { %v5232_v60 = vmul.f32 %v2611_v5, %v4849_v33  ;;  %v5235_v23 = vmul.f32 %v2611_v5, %v4865_v54  ;;  %v5238_v36 = vmul.f32 %v2611_v5, %v4889_v59  ;;  %v5241_v30 = vmul.f32 %v2611_v5, %v4909_v51 }
 0x36e   :  { %v5244_v19 = vmul.f32 %v2611_v5, %v4929_v42  ;;  %v5247_v9 = vmul.f32 %v2611_v5, %v4949_v46  ;;  %v5250_v47 = vmul.f32 %v2611_v5, %v4969_v1  ;;  %v5253_v33 = vmul.f32 %v2611_v5, %v4989_v48  ;;  %v5867_v48 = vld [vmem:[#allocation30_spill] sm:$0xff] }
 0x36f   :  { %v5256_v54 = vmul.f32 %v2611_v5, %v5009_v53  ;;  %v5259_v59 = vmul.f32 %v2611_v5, %v5029_v8  ;;  %v5262_v51 = vmul.f32 %v2611_v5, %v5049_v14  ;;  %v5265_v42 = vmul.f32 %v2611_v5, %v5069_v7  ;;  %v5868_v53 = vld [vmem:[#allocation33_spill] sm:$0xff]  ;;  %v5869_v8 = vld [vmem:[#allocation2_spill] sm:$0xff]  ;;  %v5870_v14 = vld [vmem:[#allocation4_spill] sm:$0xff] }
 0x370   :  { %v5268_v46 = vmul.f32 %v2611_v5, %v5089_v44  ;;  %v5271_v1 = vmul.f32 %v2611_v5, %v5109_v25  ;;  %v5274_v24 = vmul.f32 %v2611_v5, %v5867_v48  ;;  %v5277_v22 = vmul.f32 %v2611_v5, %v5868_v53  ;;  %v5872_v25 = vld [vmem:[#allocation8_spill] sm:$0xff]  ;;  %v5881_v5 = vld [vmem:[#allocation26_spill] sm:$0xff] }
 0x371   :  { %v5281_v20 = vmul.f32 %v5181_v12, %v5869_v8  ;;  %v5285_v7 = vmul.f32 %v5181_v12, %v5870_v14  ;;  %v5289_v44 = vmul.f32 %v5181_v12, %v5871_v49  ;;  %v5293_v61 = vmul.f32 %v5181_v12, %v5872_v25  ;;  %v5882_v48 = vld [vmem:[#allocation28_spill] sm:$0xff]  ;;  %v5883_v8 = vld [vmem:[#allocation31_spill] sm:$0xff]  ;;  %v5884_v49 = vld [vmem:[#allocation34_spill] sm:$0xff] }
 0x372   :  { %v5297_v52 = vmul.f32 %v5181_v12, %v5873_v55  ;;  %v5301_v2 = vmul.f32 %v5181_v12, %v5874_v15  ;;  %v5305_v26 = vmul.f32 %v5181_v12, %v5875_v27  ;;  %v5309_v0 = vmul.f32 %v5181_v12, %v5876_v29  ;;  %v5885_v55 = vld [vmem:[#allocation3_spill] sm:$0xff]  ;;  %v5886_v27 = vld [vmem:[#allocation5_spill] sm:$0xff] }
 0x373   :  { %v5313_v6 = vmul.f32 %v5181_v12, %v5877_v40  ;;  %v5317_v4 = vmul.f32 %v5181_v12, %v5878_v11  ;;  %v5321_v35 = vmul.f32 %v5181_v12, %v5879_v17  ;;  %v5325_v41 = vmul.f32 %v5181_v12, %v5880_v16  ;;  %v5888_v40 = vld [vmem:[#allocation7_spill] sm:$0xff]  ;;  %v5890_v17 = vld [vmem:[#allocation9_spill] sm:$0xff] }
 0x374   :  { %v5329_v18 = vmul.f32 %v5181_v12, %v5881_v5  ;;  %v5333_v53 = vmul.f32 %v5181_v12, %v5882_v48  ;;  %v5337_v14 = vmul.f32 %v5181_v12, %v5883_v8  ;;  %v5341_v25 = vmul.f32 %v5181_v12, %v5884_v49  ;;  %v5892_v5 = vld [vmem:[#allocation11_spill] sm:$0xff]  ;;  %v5894_v8 = vld [vmem:[#allocation13_spill] sm:$0xff] }
 0x375   :  { %v5345_v15 = vmul.f32 %v5181_v12, %v5885_v55  ;;  %v5349_v29 = vmul.f32 %v5181_v12, %v5886_v27  ;;  %v5353_v11 = vmul.f32 %v5181_v12, %v5888_v40  ;;  %v5357_v16 = vmul.f32 %v5181_v12, %v5890_v17  ;;  %v5896_v55 = vld [vmem:[#allocation15_spill] sm:$0xff] }
 0x376   :  { %v5361_v48 = vmul.f32 %v5181_v12, %v5892_v5  ;;  %v5365_v49 = vmul.f32 %v5181_v12, %v5894_v8  ;;  %v5369_v27 = vmul.f32 %v5181_v12, %v5896_v55 }
 0x377   :  { %5887 = vst [vmem:[#allocation30_spill] sm:$0xff] %v5349_v29  ;;  %5889 = vst [vmem:[#allocation33_spill] sm:$0xff] %v5353_v11  ;;  %v5898_v29 = vld [vmem:[#allocation17_spill] sm:$0xff]  ;;  %v5900_v11 = vld [vmem:[#allocation19_spill] sm:$0xff] }
 0x378   :  { %5891 = vst [vmem:[#allocation2_spill] sm:$0xff] %v5357_v16  ;;  %5893 = vst [vmem:[#allocation4_spill] sm:$0xff] %v5361_v48  ;;  %v5373_v40 = vmul.f32 %v5181_v12, %v5898_v29  ;;  %v5377_v17 = vmul.f32 %v5181_v12, %v5900_v11  ;;  %v5902_v16 = vld [vmem:[#allocation21_spill] sm:$0xff]  ;;  %v5904_v48 = vld [vmem:[#allocation23_spill] sm:$0xff] }
 0x379   :  { %5895 = vst [vmem:[#allocation6_spill] sm:$0xff] %v5365_v49  ;;  %5897 = vst [vmem:[#allocation8_spill] sm:$0xff] %v5369_v27  ;;  %v5381_v5 = vmul.f32 %v5181_v12, %v5902_v16  ;;  %v5385_v8 = vmul.f32 %v5181_v12, %v5904_v48  ;;  %v5906_v49 = vld [vmem:[#allocation25_spill] sm:$0xff]  ;;  %v5907_v27 = vld [vmem:[#allocation27_spill] sm:$0xff] }
 0x37a   :  { %5899 = vst [vmem:[#allocation10_spill] sm:$0xff] %v5373_v40  ;;  %5901 = vst [vmem:[#allocation12_spill] sm:$0xff] %v5377_v17  ;;  %v5389_v55 = vmul.f32 %v5181_v12, %v5906_v49  ;;  %v5393_v29 = vmul.f32 %v5181_v12, %v5907_v27  ;;  %v5909_v40 = vld [vmem:[#allocation29_spill] sm:$0xff]  ;;  %v5910_v17 = vld [vmem:[#allocation32_spill] sm:$0xff]  ;;  %v5409_v49 = vrot.slane %v2605_v37, %v5177_v13 }
 0x37b   :  { %5903 = vst [vmem:[#allocation14_spill] sm:$0xff] %v5381_v5  ;;  %5905 = vst [vmem:[#allocation16_spill] sm:$0xff] %v5385_v8  ;;  %v5397_v11 = vmul.f32 %v5181_v12, %v5909_v40  ;;  %v5401_v16 = vmul.f32 %v5181_v12, %v5910_v17  ;;  %v5911_v5 = vld [vmem:[#allocation35_spill] sm:$0xff]  ;;  %v2651_v8 = vrot.slane %v2603_v32, %v5177_v13 }
 0x37c   :  { %5908 = vst [vmem:[#allocation18_spill] sm:$0xff] %v5393_v29  ;;  %v5405_v48 = vmul.f32 %v5181_v12, %v5911_v5 }
 0x37d   :  { %v5412_v27 = vadd.f32 %v2651_v8, %v5184_v50  ;;  %v5415_v29 = vadd.f32 %v2651_v8, %v5187_v56  ;;  %v5418_v40 = vadd.f32 %v2651_v8, %v5190_v43  ;;  %v5421_v17 = vadd.f32 %v2651_v8, %v5193_v3 }
 0x37e   :  { %5912 = vst [vmem:[#allocation20_spill] sm:$0xff] %v5405_v48  ;;  %v5424_v12 = vadd.f32 %v2651_v8, %v5196_v39  ;;  %v5427_v32 = vadd.f32 %v2651_v8, %v5199_v62  ;;  %v5430_v13 = vadd.f32 %v2651_v8, %v5202_v58  ;;  %v5433_v50 = vadd.f32 %v2651_v8, %v5205_v21 }
 0x37f   :  { %v5436_v56 = vadd.f32 %v2651_v8, %v5208_v63  ;;  %v5439_v43 = vadd.f32 %v2651_v8, %v5211_v38  ;;  %v5442_v3 = vadd.f32 %v2651_v8, %v5214_v10  ;;  %v5445_v39 = vadd.f32 %v2651_v8, %v5217_v34 }
 0x380   :  { %v5448_v62 = vadd.f32 %v2651_v8, %v5220_v57  ;;  %v5451_v58 = vadd.f32 %v2651_v8, %v5223_v28  ;;  %v5454_v21 = vadd.f32 %v2651_v8, %v5226_v31  ;;  %v5457_v63 = vadd.f32 %v2651_v8, %v5229_v45 }
 0x381   :  { %v5476_v28 = vadd.f32 %v5232_v60, %v2651_v8  ;;  %v5479_v31 = vadd.f32 %v5235_v23, %v2651_v8  ;;  %v5482_v45 = vadd.f32 %v5238_v36, %v2651_v8  ;;  %v5485_v38 = vadd.f32 %v5241_v30, %v2651_v8 }
 0x382   :  { %v5488_v37 = vadd.f32 %v5244_v19, %v2651_v8  ;;  %v5491_v34 = vadd.f32 %v5247_v9, %v2651_v8  ;;  %v5494_v5 = vadd.f32 %v5250_v47, %v2651_v8  ;;  %v5497_v60 = vadd.f32 %v5253_v33, %v2651_v8 }
 0x383   :  { %v5500_v23 = vadd.f32 %v5256_v54, %v2651_v8  ;;  %v5503_v36 = vadd.f32 %v5259_v59, %v2651_v8  ;;  %v5506_v30 = vadd.f32 %v5262_v51, %v2651_v8  ;;  %v5509_v19 = vadd.f32 %v5265_v42, %v2651_v8 }
 0x384   :  { %v5512_v9 = vadd.f32 %v5268_v46, %v2651_v8  ;;  %v5515_v47 = vadd.f32 %v5271_v1, %v2651_v8  ;;  %v5518_v33 = vadd.f32 %v5274_v24, %v2651_v8  ;;  %v5521_v54 = vadd.f32 %v5277_v22, %v2651_v8 }
 0x385   :  { %5913 = vst [vmem:[#allocation22_spill] sm:$0xff] %v5500_v23  ;;  %5914 = vst [vmem:[#allocation24_spill] sm:$0xff] %v5503_v36  ;;  %v2657_v1 = vadd.f32 %v5409_v49, %v5281_v20  ;;  %v2659_v48 = vadd.f32 %v5409_v49, %v5285_v7  ;;  %v2661_v22 = vadd.f32 %v5409_v49, %v5289_v44 }
 0x386   :  { %5915 = vst [vmem:[#allocation26_spill] sm:$0xff] %v5506_v30  ;;  %5916 = vst [vmem:[#allocation28_spill] sm:$0xff] %v5509_v19  ;;  %v2663_v51 = vadd.f32 %v5409_v49, %v5293_v61  ;;  %v2665_v57 = vadd.f32 %v5409_v49, %v5297_v52  ;;  %v2667_v46 = vadd.f32 %v5409_v49, %v5301_v2 }
 0x387   :  { %5917 = vst [vmem:[#allocation31_spill] sm:$0xff] %v5512_v9  ;;  %5918 = vst [vmem:[#allocation34_spill] sm:$0xff] %v5515_v47  ;;  %v2669_v10 = vadd.f32 %v5409_v49, %v5305_v26  ;;  %v2671_v20 = vadd.f32 %v5409_v49, %v5309_v0  ;;  %v2673_v7 = vadd.f32 %v5409_v49, %v5313_v6  ;;  %v2689_v42 = vmax.f32 %v2657_v1, 0.0 }
 0x388   :  { %5919 = vst [vmem:[#allocation3_spill] sm:$0xff] %v5518_v33  ;;  %5920 = vst [vmem:[#allocation5_spill] sm:$0xff] %v5521_v54  ;;  %v2675_v44 = vadd.f32 %v5409_v49, %v5317_v4  ;;  %v2677_v61 = vadd.f32 %v5409_v49, %v5321_v35  ;;  %v2679_v52 = vadd.f32 %v5409_v49, %v5325_v41  ;;  %v2691_v4 = vmax.f32 %v2659_v48, 0.0 }
 0x389   :  { %v2681_v2 = vadd.f32 %v5409_v49, %v5329_v18  ;;  %v2683_v26 = vadd.f32 %v5409_v49, %v5333_v53  ;;  %v2685_v0 = vadd.f32 %v5409_v49, %v5337_v14  ;;  %v2687_v6 = vadd.f32 %v5409_v49, %v5341_v25 }
 0x38a   :  { %v2693_v8 = vmax.f32 %v2661_v22, 0.0  ;;  %v2695_v24 = vmax.f32 %v2663_v51, 0.0  ;;  %v2697_v35 = vmax.f32 %v2665_v57, 0.0  ;;  %v2699_v59 = vmax.f32 %v2667_v46, 0.0 }
 0x38b   :  { %v2701_v54 = vmax.f32 %v2669_v10, 0.0  ;;  %v2703_v41 = vmax.f32 %v2671_v20, 0.0  ;;  %v2705_v33 = vmax.f32 %v2673_v7, 0.0  ;;  %v2707_v47 = vmax.f32 %v2675_v44, 0.0 }
 0x38c   :  { %v2709_v18 = vmax.f32 %v2677_v61, 0.0  ;;  %v2711_v9 = vmax.f32 %v2679_v52, 0.0  ;;  %v2713_v19 = vmax.f32 %v2681_v2, 0.0  ;;  %v2715_v53 = vmax.f32 %v2683_v26, 0.0  ;;  %v5943_v26 = vld [vmem:[#allocation10_spill] sm:$0xff] }
 0x38d   :  { %v2717_v30 = vmax.f32 %v2685_v0, 0.0  ;;  %v2719_v36 = vmax.f32 %v2687_v6, 0.0  ;;  %v5921_v14 = vmax.f32 %v5412_v27, 0.0  ;;  %v5922_v25 = vmax.f32 %v5415_v29, 0.0  ;;  %v5944_v6 = vld [vmem:[#allocation12_spill] sm:$0xff] }
 0x38e   :  { %v5923_v51 = vmax.f32 %v5418_v40, 0.0  ;;  %v5924_v10 = vmax.f32 %v5421_v17, 0.0  ;;  %v5925_v1 = vmax.f32 %v5424_v12, 0.0  ;;  %v5926_v20 = vmax.f32 %v5427_v32, 0.0 }
 0x38f   :  { %v3403_v23 = vpack.c.bf16 %v2689_v42, %v5921_v14  ;;  %v3404_v48 = vpack.c.bf16 %v2691_v4, %v5922_v25  ;;  %v5927_v44 = vmax.f32 %v5430_v13, 0.0  ;;  %v5928_v27 = vmax.f32 %v5433_v50, 0.0  ;;  %v5947_v25 = vld [vmem:[#allocation18_spill] sm:$0xff] }
 0x390   :  { %v3405_v57 = vpack.c.bf16 %v2693_v8, %v5923_v51  ;;  %v3406_v46 = vpack.c.bf16 %v2695_v24, %v5924_v10  ;;  %v3407_v22 = vpack.c.bf16 %v2697_v35, %v5925_v1  ;;  %v3408_v7 = vpack.c.bf16 %v2699_v59, %v5926_v20  ;;  %v5945_v35 = vld [vmem:[#allocation14_spill] sm:$0xff]  ;;  %v5948_v10 = vld [vmem:[#allocation20_spill] sm:$0xff] }
 0x391   :  { %v3409_v61 = vpack.c.bf16 %v2701_v54, %v5927_v44  ;;  %v3410_v42 = vpack.c.bf16 %v2703_v41, %v5928_v27  ;;  %v5929_v29 = vmax.f32 %v5436_v56, 0.0  ;;  %v5930_v40 = vmax.f32 %v5439_v43, 0.0  ;;  %2816 = vst [vmem:[%s5769_s6] sm:$0xff] %v3403_v23  ;;  %2817 = vst [vmem:[%s5769_s6 + $0x10] sm:$0xff] %v3404_v48  ;;  %v5942_v54 = vld [vmem:[#allocation8_spill] sm:$0xff] }
 0x392   :  { %v5931_v17 = vmax.f32 %v5442_v3, 0.0  ;;  %v5932_v12 = vmax.f32 %v5445_v39, 0.0  ;;  %2818 = vst [vmem:[%s5769_s6 + $0x20] sm:$0xff] %v3405_v57  ;;  %2819 = vst [vmem:[%s5769_s6 + $0x30] sm:$0xff] %v3406_v46  ;;  %v5933_v32 = vmax.f32 %v5448_v62, 0.0  ;;  %v5934_v50 = vmax.f32 %v5451_v58, 0.0 }
 0x393   :  { %v3411_v52 = vpack.c.bf16 %v2705_v33, %v5929_v29  ;;  %v3412_v8 = vpack.c.bf16 %v2707_v47, %v5930_v40  ;;  %v5935_v43 = vmax.f32 %v5454_v21, 0.0  ;;  %v5936_v39 = vmax.f32 %v5457_v63, 0.0  ;;  %2820 = vst [vmem:[%s5769_s6 + $0x40] sm:$0xff] %v3407_v22  ;;  %2821 = vst [vmem:[%s5769_s6 + $0x50] sm:$0xff] %v3408_v7  ;;  %v5937_v58 = vld [vmem:[#allocation30_spill] sm:$0xff]  ;;  %v5938_v63 = vld [vmem:[#allocation33_spill] sm:$0xff] }
 0x394   :  { %v3413_v24 = vpack.c.bf16 %v2709_v18, %v5931_v17  ;;  %v3414_v2 = vpack.c.bf16 %v2711_v9, %v5932_v12  ;;  %v3415_v13 = vpack.c.bf16 %v2713_v19, %v5933_v32  ;;  %v3416_v56 = vpack.c.bf16 %v2715_v53, %v5934_v50  ;;  %2822 = vst [vmem:[%s5769_s6 + $0x60] sm:$0xff] %v3409_v61  ;;  %v5941_v47 = vld [vmem:[#allocation6_spill] sm:$0xff]  ;;  %v5946_v18 = vld [vmem:[#allocation16_spill] sm:$0xff] }
 0x395   :  { %v3417_v3 = vpack.c.bf16 %v2717_v30, %v5935_v43  ;;  %v3418_v23 = vpack.c.bf16 %v2719_v36, %v5936_v39  ;;  %2823 = vst [vmem:[%s5769_s6 + $0x70] sm:$0xff] %v3410_v42  ;;  %2824 = vst [vmem:[%s5769_s6 + $0x80] sm:$0xff] %v3411_v52  ;;  %v2865_v62 = vadd.f32 %v5345_v15, %v5409_v49  ;;  %v5939_v30 = vld [vmem:[#allocation2_spill] sm:$0xff]  ;;  %v5940_v15 = vld [vmem:[#allocation4_spill] sm:$0xff]  ;;  %v5951_v32 = vmax.f32 %v5482_v45, 0.0 }
 0x396   :  { %2825 = vst [vmem:[%s5769_s6 + $0x90] sm:$0xff] %v3412_v8  ;;  %2826 = vst [vmem:[%s5769_s6 + $0xa0] sm:$0xff] %v3413_v24  ;;  %v2867_v21 = vadd.f32 %v5937_v58, %v5409_v49  ;;  %v2869_v36 = vadd.f32 %v5938_v63, %v5409_v49  ;;  %v2871_v19 = vadd.f32 %v5939_v30, %v5409_v49  ;;  %v5952_v50 = vmax.f32 %v5485_v38, 0.0  ;;  %v5959_v45 = vld [vmem:[#allocation24_spill] sm:$0xff]  ;;  %v5961_v38 = vld [vmem:[#allocation26_spill] sm:$0xff] }
 0x397   :  { %2827 = vst [vmem:[%s5769_s6 + $0xb0] sm:$0xff] %v3414_v2  ;;  %2828 = vst [vmem:[%s5769_s6 + $0xc0] sm:$0xff] %v3415_v13  ;;  %v2873_v9 = vadd.f32 %v5940_v15, %v5409_v49  ;;  %v2875_v33 = vadd.f32 %v5941_v47, %v5409_v49  ;;  %v2877_v59 = vadd.f32 %v5942_v54, %v5409_v49  ;;  %v2897_v1 = vmax.f32 %v2865_v62, 0.0  ;;  %v5967_v54 = vld [vmem:[#allocation34_spill] sm:$0xff] }
 0x398   :  { %2829 = vst [vmem:[%s5769_s6 + $0xd0] sm:$0xff] %v3416_v56  ;;  %2830 = vst [vmem:[%s5769_s6 + $0xe0] sm:$0xff] %v3417_v3  ;;  %v2879_v0 = vadd.f32 %v5943_v26, %v5409_v49  ;;  %v2881_v4 = vadd.f32 %v5944_v6, %v5409_v49  ;;  %v2883_v41 = vadd.f32 %v5945_v35, %v5409_v49  ;;  %v2899_v22 = vmax.f32 %v2867_v21, 0.0  ;;  %v5971_v35 = vld [vmem:[#allocation5_spill] sm:$0xff] }
 0x399   :  { %2831 = vst [vmem:[%s5769_s6 + $0xf0] sm:$0xff] %v3418_v23  ;;  %v2885_v53 = vadd.f32 %v5946_v18, %v5409_v49  ;;  %v2887_v14 = vadd.f32 %v5389_v55, %v5409_v49  ;;  %v2889_v48 = vadd.f32 %v5947_v25, %v5409_v49  ;;  %v2891_v51 = vadd.f32 %v5397_v11, %v5409_v49 }
 0x39a   :  { %v2893_v57 = vadd.f32 %v5401_v16, %v5409_v49  ;;  %v2895_v46 = vadd.f32 %v5948_v10, %v5409_v49  ;;  %v2901_v20 = vmax.f32 %v2869_v36, 0.0  ;;  %v2903_v7 = vmax.f32 %v2871_v19, 0.0 }
 0x39b   :  { %v2905_v44 = vmax.f32 %v2873_v9, 0.0  ;;  %v2907_v61 = vmax.f32 %v2875_v33, 0.0  ;;  %v2909_v27 = vmax.f32 %v2877_v59, 0.0  ;;  %v2911_v55 = vmax.f32 %v2879_v0, 0.0  ;;  %v5969_v0 = vld [vmem:[#allocation3_spill] sm:$0xff] }
 0x39c   :  { %v2913_v42 = vmax.f32 %v2881_v4, 0.0  ;;  %v2915_v29 = vmax.f32 %v2883_v41, 0.0  ;;  %v2917_v52 = vmax.f32 %v2885_v53, 0.0  ;;  %v2919_v40 = vmax.f32 %v2887_v14, 0.0 }
 0x39d   :  { %v2921_v8 = vmax.f32 %v2889_v48, 0.0  ;;  %v2923_v11 = vmax.f32 %v2891_v51, 0.0  ;;  %v2925_v17 = vmax.f32 %v2893_v57, 0.0  ;;  %v2927_v24 = vmax.f32 %v2895_v46, 0.0 }
 0x39e   :  { %v5949_v16 = vmax.f32 %v5476_v28, 0.0  ;;  %v5950_v49 = vmax.f32 %v5479_v31, 0.0  ;;  %v3421_v13 = vpack.c.bf16 %v2901_v20, %v5951_v32  ;;  %v3422_v56 = vpack.c.bf16 %v2903_v7, %v5952_v50  ;;  %v5957_v31 = vld [vmem:[#allocation22_spill] sm:$0xff] }
 0x39f   :  { %v5953_v43 = vmax.f32 %v5488_v37, 0.0  ;;  %v5954_v39 = vmax.f32 %v5491_v34, 0.0  ;;  %v5955_v62 = vmax.f32 %v5494_v5, 0.0  ;;  %v5956_v28 = vmax.f32 %v5497_v60, 0.0  ;;  %v5963_v37 = vld [vmem:[#allocation28_spill] sm:$0xff]  ;;  %v5965_v34 = vld [vmem:[#allocation31_spill] sm:$0xff] }
 0x3a0   :  { %v3419_v12 = vpack.c.bf16 %v2897_v1, %v5949_v16  ;;  %v3420_v2 = vpack.c.bf16 %v2899_v22, %v5950_v49  ;;  %v5958_v63 = vmax.f32 %v5957_v31, 0.0  ;;  %v5960_v30 = vmax.f32 %v5959_v45, 0.0  ;;  %3026 = vst [vmem:[%s5769_s6 + $0x28] sm:$0xff] %v3421_v13  ;;  %3027 = vst [vmem:[%s5769_s6 + $0x38] sm:$0xff] %v3422_v56 }
 0x3a1   :  { %v3423_v3 = vpack.c.bf16 %v2905_v44, %v5953_v43  ;;  %v3424_v23 = vpack.c.bf16 %v2907_v61, %v5954_v39  ;;  %v3425_v58 = vpack.c.bf16 %v2909_v27, %v5955_v62  ;;  %v3426_v21 = vpack.c.bf16 %v2911_v55, %v5956_v28 }
 0x3a2   :  { %v3427_v36 = vpack.c.bf16 %v2913_v42, %v5958_v63  ;;  %v3428_v19 = vpack.c.bf16 %v2915_v29, %v5960_v30  ;;  %v5962_v15 = vmax.f32 %v5961_v38, 0.0  ;;  %v5964_v47 = vmax.f32 %v5963_v37, 0.0  ;;  %3024 = vst [vmem:[%s5769_s6 + $0x8] sm:$0xff] %v3419_v12  ;;  %3025 = vst [vmem:[%s5769_s6 + $0x18] sm:$0xff] %v3420_v2 }
 0x3a3   :  { %v5966_v5 = vmax.f32 %v5965_v34, 0.0  ;;  %v5968_v59 = vmax.f32 %v5967_v54, 0.0  ;;  %v5970_v6 = vmax.f32 %v5969_v0, 0.0  ;;  %v5972_v41 = vmax.f32 %v5971_v35, 0.0  ;;  %3028 = vst [vmem:[%s5769_s6 + $0x48] sm:$0xff] %v3423_v3  ;;  %3029 = vst [vmem:[%s5769_s6 + $0x58] sm:$0xff] %v3424_v23 }
 0x3a4   :  { %v3429_v9 = vpack.c.bf16 %v2917_v52, %v5962_v15  ;;  %v3430_v33 = vpack.c.bf16 %v2919_v40, %v5964_v47  ;;  %3030 = vst [vmem:[%s5769_s6 + $0x68] sm:$0xff] %v3425_v58  ;;  %3031 = vst [vmem:[%s5769_s6 + $0x78] sm:$0xff] %v3426_v21 }
 0x3a5   :  { %v3431_v60 = vpack.c.bf16 %v2921_v8, %v5966_v5  ;;  %v3432_v26 = vpack.c.bf16 %v2923_v11, %v5968_v59  ;;  %v3433_v4 = vpack.c.bf16 %v2925_v17, %v5970_v6  ;;  %v3434_v18 = vpack.c.bf16 %v2927_v24, %v5972_v41  ;;  %3032 = vst [vmem:[%s5769_s6 + $0x88] sm:$0xff] %v3427_v36 }
 0x3a6   :  { %3033 = vst [vmem:[%s5769_s6 + $0x98] sm:$0xff] %v3428_v19  ;;  %3034 = vst [vmem:[%s5769_s6 + $0xa8] sm:$0xff] %v3429_v9 }
 0x3a7   :  { %3035 = vst [vmem:[%s5769_s6 + $0xb8] sm:$0xff] %v3430_v33  ;;  %3036 = vst [vmem:[%s5769_s6 + $0xc8] sm:$0xff] %v3431_v60 }
 0x3a8   :  { %3037 = vst [vmem:[%s5769_s6 + $0xd8] sm:$0xff] %v3432_v26  ;;  %3038 = vst [vmem:[%s5769_s6 + $0xe8] sm:$0xff] %v3433_v4 }
 0x3a9   :  { %3039 = vst [vmem:[%s5769_s6 + $0xf8] sm:$0xff] %v3434_v18 }

// kernel: generator_forward.13
= control target key start
LH: loop header
LB: loop body
LE: loop exit
PB: predicated region body
PF: predicated region fallthrough
CT: control target
= control target key end

     0   :  { %v596_v34 = vlaneseq  ;;  %vm174_vm0 = vsmask.f32 256  ;;  %vm461_vm2 = vcmask 1040384   ;;  %vm4414_vm4 = vmmov 0   ;;  %s5978_s1 = inlined_call_operand.vmem [shape: bf16[4,256,256], index: 1, kind: input, shape index: {}]   ;;  %s5979_s0 = inlined_call_operand.vmem [shape: bf16[256,256], index: 0, kind: input, shape index: {}]   ;;  %s5980_s2 = inlined_call_operand.vmem [shape: f32[256,512], index: 2, kind: output, shape index: {}]  }
   0x1   :  { %v3911_v0 = vld [vmem:[%s5978_s1 + $0x104] ss:$8 sps:$4 sm:$0xff]   ;;  %v3915_v2 = vld [vmem:[%s5978_s1 + $0x100] ss:$8 sps:$4 sm:$0xff]   ;;  %v3917_v4 = vld [vmem:[%s5978_s1 + $0x114] ss:$8 sps:$4 sm:$0xff]  }
   0x2   :  { %v3913_v1 = vld [vmem:[%s5978_s1 + $0x304] ss:$8 sps:$4 sm:$0xff]   ;;  %1816 = vmatprep.subr.bf16.mxu0 %v3911_v0  ;;  %v3916_v3 = vld [vmem:[%s5978_s1 + $0x300] ss:$8 sps:$4 sm:$0xff]   ;;  %v3919_v5 = vld [vmem:[%s5978_s1 + $0x314] ss:$8 sps:$4 sm:$0xff]  }
   0x3   :  { %2554 = vmatprep.subr.bf16.mxu1 %v3913_v1  ;;  %1817 = vmatpush1.bf16.msra.mxu0 %v3915_v2  ;;  %v3921_v6 = vld [vmem:[%s5978_s1 + $0x110] ss:$8 sps:$4 sm:$0xff]   ;;  %v3923_v8 = vld [vmem:[%s5978_s1 + $0x124] ss:$8 sps:$4 sm:$0xff]   ;;  %v3927_v10 = vld [vmem:[%s5978_s1 + $0x120] ss:$8 sps:$4 sm:$0xff]  }
   0x4   :  { %2555 = vmatpush1.bf16.msra.mxu1 %v3916_v3  ;;  %1818 = vmatprep.subr.bf16.mxu0 %v3917_v4  ;;  %v3922_v7 = vld [vmem:[%s5978_s1 + $0x310] ss:$8 sps:$4 sm:$0xff]   ;;  %v3925_v9 = vld [vmem:[%s5978_s1 + $0x324] ss:$8 sps:$4 sm:$0xff]   ;;  %v3928_v11 = vld [vmem:[%s5978_s1 + $0x320] ss:$8 sps:$4 sm:$0xff]  }
   0x5   :  { %2556 = vmatprep.subr.bf16.mxu1 %v3919_v5  ;;  %v3929_v12 = vld [vmem:[%s5978_s1 + $0x134] ss:$8 sps:$4 sm:$0xff]   ;;  %v3933_v14 = vld [vmem:[%s5978_s1 + $0x130] ss:$8 sps:$4 sm:$0xff]   ;;  %v3935_v16 = vld [vmem:[%s5978_s1 + $0x144] ss:$8 sps:$4 sm:$0xff]  }
   0x6   :  { %v3931_v13 = vld [vmem:[%s5978_s1 + $0x334] ss:$8 sps:$4 sm:$0xff]   ;;  %v3934_v15 = vld [vmem:[%s5978_s1 + $0x330] ss:$8 sps:$4 sm:$0xff]   ;;  %v3937_v17 = vld [vmem:[%s5978_s1 + $0x344] ss:$8 sps:$4 sm:$0xff]  }
   0x7   :  { %1819 = vmatpush1.bf16.msra.mxu0 %v3921_v6  ;;  %v3939_v18 = vld [vmem:[%s5978_s1 + $0x140] ss:$8 sps:$4 sm:$0xff]   ;;  %v3941_v20 = vld [vmem:[%s5978_s1 + $0x154] ss:$8 sps:$4 sm:$0xff]   ;;  %v3945_v22 = vld [vmem:[%s5978_s1 + $0x150] ss:$8 sps:$4 sm:$0xff]  }
   0x8   :  { %2557 = vmatpush1.bf16.msra.mxu1 %v3922_v7  ;;  %1820 = vmatprep.subr.bf16.mxu0 %v3923_v8  ;;  %v3940_v19 = vld [vmem:[%s5978_s1 + $0x340] ss:$8 sps:$4 sm:$0xff]   ;;  %v3943_v21 = vld [vmem:[%s5978_s1 + $0x354] ss:$8 sps:$4 sm:$0xff]   ;;  %v3946_v23 = vld [vmem:[%s5978_s1 + $0x350] ss:$8 sps:$4 sm:$0xff]  }
   0x9   :  { %2558 = vmatprep.subr.bf16.mxu1 %v3925_v9  ;;  %v3947_v24 = vld [vmem:[%s5978_s1 + $0x164] ss:$8 sps:$4 sm:$0xff]   ;;  %v3951_v26 = vld [vmem:[%s5978_s1 + $0x160] ss:$8 sps:$4 sm:$0xff]   ;;  %v3953_v28 = vld [vmem:[%s5978_s1 + $0x174] ss:$8 sps:$4 sm:$0xff]  }
   0xa   :  { %v3949_v25 = vld [vmem:[%s5978_s1 + $0x364] ss:$8 sps:$4 sm:$0xff]   ;;  %v3952_v27 = vld [vmem:[%s5978_s1 + $0x360] ss:$8 sps:$4 sm:$0xff]   ;;  %v3955_v29 = vld [vmem:[%s5978_s1 + $0x374] ss:$8 sps:$4 sm:$0xff]  }
   0xb   :  { %1821 = vmatpush1.bf16.msra.mxu0 %v3927_v10  ;;  %v3957_v30 = vld [vmem:[%s5978_s1 + $0x170] ss:$8 sps:$4 sm:$0xff]   ;;  %v3959_v32 = vld [vmem:[%s5978_s1 + $0x184] ss:$8 sps:$4 sm:$0xff]   ;;  %v3963_v35 = vld [vmem:[%s5978_s1 + $0x180] ss:$8 sps:$4 sm:$0xff]  }
   0xc   :  { %2559 = vmatpush1.bf16.msra.mxu1 %v3928_v11  ;;  %1822 = vmatprep.subr.bf16.mxu0 %v3929_v12  ;;  %v3958_v31 = vld [vmem:[%s5978_s1 + $0x370] ss:$8 sps:$4 sm:$0xff]   ;;  %v3961_v33 = vld [vmem:[%s5978_s1 + $0x384] ss:$8 sps:$4 sm:$0xff]   ;;  %v3964_v36 = vld [vmem:[%s5978_s1 + $0x380] ss:$8 sps:$4 sm:$0xff]  }
   0xd   :  { %2560 = vmatprep.subr.bf16.mxu1 %v3931_v13  ;;  %v3965_v37 = vld [vmem:[%s5978_s1 + $0x194] ss:$8 sps:$4 sm:$0xff]   ;;  %v4545_v39 = vshrl.u32 %v596_v34, 7  ;;  %v3969_v40 = vld [vmem:[%s5978_s1 + $0x190] ss:$8 sps:$4 sm:$0xff]   ;;  %vm1110_vm5 = vmpackc.low %vm4414_vm4, %vm4414_vm4  ;;  %v5981_v63 = vmov 0  }
   0xe   :  { %v3967_v38 = vld [vmem:[%s5978_s1 + $0x394] ss:$8 sps:$4 sm:$0xff]   ;;  %v3970_v41 = vld [vmem:[%s5978_s1 + $0x390] ss:$8 sps:$4 sm:$0xff]   ;;  %v3971_v42 = vld [vmem:[%s5978_s1 + $0x1a4] ss:$8 sps:$4 sm:$0xff]  }
   0xf   :  { %1823 = vmatpush1.bf16.msra.mxu0 %v3933_v14  ;;  %v3973_v43 = vld [vmem:[%s5978_s1 + $0x3a4] ss:$8 sps:$4 sm:$0xff]   ;;  %v633_v44 = vand.u32 127, %v4545_v39  ;;  %v3975_v45 = vld [vmem:[%s5978_s1 + $0x1a0] ss:$8 sps:$4 sm:$0xff]   ;;  %vm4618_vm6 = vmand %vm461_vm2, %vm174_vm0  ;;  %v4623_v3 = vsel %vm1110_vm5, 65537, %v5981_v63 }
  0x10   :  { %2561 = vmatpush1.bf16.msra.mxu1 %v3934_v15  ;;  %1824 = vmatprep.subr.bf16.mxu0 %v3935_v16  ;;  %v3976_v46 = vld [vmem:[%s5978_s1 + $0x3a0] ss:$8 sps:$4 sm:$0xff]   ;;  %v3977_v47 = vld [vmem:[%s5978_s1 + $0x1b4] ss:$8 sps:$4 sm:$0xff]   ;;  %v3981_v49 = vld [vmem:[%s5978_s1 + $0x1b0] ss:$8 sps:$4 sm:$0xff]  }
  0x11   :  { %2562 = vmatprep.subr.bf16.mxu1 %v3937_v17  ;;  %v3979_v48 = vld [vmem:[%s5978_s1 + $0x3b4] ss:$8 sps:$4 sm:$0xff]   ;;  %v3982_v50 = vld [vmem:[%s5978_s1 + $0x3b0] ss:$8 sps:$4 sm:$0xff]   ;;  %vm4578_vm1 = vcmp.eq.s32.totalorder %v633_v44, 0  ;;  %vm592_vm2 = vcmask 1047552  }
  0x12   :  { %v4585_v52 = vld [vmem:[%s5979_s0] ss:$8 sps:$4 sm:$0xff]   ;;  %v4590_v53 = vld [vmem:[%s5979_s0 + $0x4] ss:$8 sps:$4 sm:$0xff]   ;;  %vm1109_vm3 = vmpackc.low %vm4578_vm1, %vm4578_vm1  ;;  %vm465_vm9 = vsmask.f32 7424 }
  0x13   :  { %1825 = vmatpush1.bf16.msra.mxu0 %v3939_v18  ;;  %v3983_v54 = vld [vmem:[%s5978_s1 + $0x1c4] ss:$8 sps:$4 sm:$0xff]   ;;  %v179_v56 = vshll.u32 %v4585_v52, 16  ;;  %v183_v57 = vshrl.u32 %v4590_v53, 16  ;;  %v186_v58 = vshll.u32 %v4590_v53, 16  ;;  %2586 = vmatprep.mubr.bf16.mxu1 %v4590_v53  ;;  %v176_v60 = vshrl.u32 %v4585_v52, 16 }
  0x14   :  { %2563 = vmatpush1.bf16.msra.mxu1 %v3940_v19  ;;  %1826 = vmatprep.subr.bf16.mxu0 %v3941_v20  ;;  %v3985_v55 = vld [vmem:[%s5978_s1 + $0x3c4] ss:$8 sps:$4 sm:$0xff]   ;;  %v3987_v59 = vld [vmem:[%s5978_s1 + $0x1c0] ss:$8 sps:$4 sm:$0xff]   ;;  %v1141_v0 = vsel %vm1109_vm3, 65537, %v5981_v63  ;;  %vm593_vm3 = vmand %vm592_vm2, %vm465_vm9 }
  0x15   :  { %2564 = vmatprep.subr.bf16.mxu1 %v3943_v21  ;;  %v4611_v61 = vrot.slane %v183_v57, 7  ;;  %v466_v62 = vrot.slane %v179_v56, 1  ;;  %v3988_v1 = vld [vmem:[%s5978_s1 + $0x3c0] ss:$8 sps:$4 sm:$0xff]   ;;  %v3989_v4 = vld [vmem:[%s5978_s1 + $0x1d4] ss:$8 sps:$4 sm:$0xff]   ;;  %v3392_v8 = vcombine.low %v1141_v0, %v4623_v3 }
  0x16   :  { %v3991_v5 = vld [vmem:[%s5978_s1 + $0x3d4] ss:$8 sps:$4 sm:$0xff]   ;;  %v3993_v10 = vld [vmem:[%s5978_s1 + $0x1d0] ss:$8 sps:$4 sm:$0xff]   ;;  %v3995_v13 = vld [vmem:[%s5978_s1 + $0x1e4] ss:$8 sps:$4 sm:$0xff]  }
  0x17   :  { %1827 = vmatpush1.bf16.msra.mxu0 %v3945_v22  ;;  %v188_v6 = vor.u32 %v186_v58, %v4611_v61  ;;  %v4632_v7 = vor.u32 %v466_v62, %v176_v60  ;;  %v4638_v9 = vld [vmem:[%s5979_s0 + $0x14] ss:$8 sps:$4 sm:$0xff]   ;;  %v3994_v12 = vld [vmem:[%s5978_s1 + $0x3d0] ss:$8 sps:$4 sm:$0xff]   ;;  %vm4651_vm7 = vcmp.eq.s16.totalorder %v3392_v8, 0  ;;  %v4670_v20 = vrot.slane %v176_v60, 7 }
  0x18   :  { %2565 = vmatpush1.bf16.msra.mxu1 %v3946_v23  ;;  %1828 = vmatprep.subr.bf16.mxu0 %v3947_v24  ;;  %v3997_v15 = vld [vmem:[%s5978_s1 + $0x3e4] ss:$8 sps:$4 sm:$0xff]   ;;  %v3999_v16 = vld [vmem:[%s5978_s1 + $0x1e0] ss:$8 sps:$4 sm:$0xff]   ;;  %v198_v17 = vshrl.u32 %v4638_v9, 16  ;;  %v470_v23 = vrot.slane %v186_v58, 1 }
  0x19   :  { %2566 = vmatprep.subr.bf16.mxu1 %v3949_v25  ;;  %v464_v11 = vsel %vm4618_vm6, 0, %v188_v6  ;;  %v4000_v18 = vld [vmem:[%s5978_s1 + $0x3e0] ss:$8 sps:$4 sm:$0xff]   ;;  %v4001_v19 = vld [vmem:[%s5978_s1 + $0x1f4] ss:$8 sps:$4 sm:$0xff]  }
  0x1a   :  { %3553 = vmatprep.mubr.msk.bf16.mxu0 %vm4651_vm7, %v464_v11  ;;  %v4675_v21 = vld [vmem:[%s5979_s0 + $0x10] ss:$8 sps:$4 sm:$0xff]   ;;  %v4003_v22 = vld [vmem:[%s5978_s1 + $0x3f4] ss:$8 sps:$4 sm:$0xff]   ;;  %v4683_v24 = vld [vmem:[%s5979_s0 + $0x24] ss:$8 sps:$4 sm:$0xff]   ;;  %v471_v34 = vor.u32 %v470_v23, %v183_v57 }
  0x1b   :  { %1829 = vmatpush1.bf16.msra.mxu0 %v3951_v26  ;;  %v4685_v25 = vrot.slane %v198_v17, 7  ;;  %v201_v26 = vshll.u32 %v4638_v9, 16  ;;  %v4021_v44 = vld [vmem:[%s5978_s1 + $0x14] ss:$8 sps:$4 sm:$0xff]   ;;  %v4030_v58 = vld [vmem:[%s5978_s1 + $0x24] ss:$8 sps:$4 sm:$0xff]  }
  0x1c   :  { %2567 = vmatpush1.bf16.msra.mxu1 %v3952_v27  ;;  %1830 = vmatprep.subr.bf16.mxu0 %v3953_v28  ;;  %v4005_v27 = vld [vmem:[%s5978_s1 + $0x1f0] ss:$8 sps:$4 sm:$0xff]   ;;  %v4024_v51 = vld [vmem:[%s5978_s1 + $0x214] ss:$8 sps:$4 sm:$0xff]   ;;  %v4033_v60 = vld [vmem:[%s5978_s1 + $0x224] ss:$8 sps:$4 sm:$0xff]  }
  0x1d   :  { %2568 = vmatprep.subr.bf16.mxu1 %v3955_v29  ;;  %v4006_v28 = vld [vmem:[%s5978_s1 + $0x3f0] ss:$8 sps:$4 sm:$0xff]   ;;  %v181_v29 = vor.u32 %v179_v56, %v4670_v20  ;;  %v472_v53 = vrot.slane %v201_v26, 1  ;;  %v4028_v2 = vld [vmem:[%s5978_s1 + $0x20] ss:$8 sps:$4 sm:$0xff]  }
  0x1e   :  { %v4039_v14 = vld [vmem:[%s5978_s1 + $0x34] ss:$8 sps:$4 sm:$0xff]   ;;  %v4040_v23 = vld [vmem:[%s5978_s1 + $0x230] ss:$8 sps:$4 sm:$0xff]  }
  0x1f   :  { %1831 = vmatpush1.bf16.msra.mxu0 %v3957_v30  ;;  %v4012_v30 = vld [vmem:[%s5978_s1 + $0x4] ss:$8 sps:$4 sm:$0xff]   ;;  %v4770_v0 = vsel %vm465_vm9, %v471_v34, %v472_v53 }
  0x20   :  { %2569 = vmatpush1.bf16.msra.mxu1 %v3958_v31  ;;  %1832 = vmatprep.subr.bf16.mxu0 %v3959_v32  ;;  %v190_v31 = vshrl.u32 %v4675_v21, 16  ;;  %v4015_v32 = vld [vmem:[%s5978_s1 + $0x204] ss:$8 sps:$4 sm:$0xff]  }
  0x21   :  { %2570 = vmatprep.subr.bf16.mxu1 %v3961_v33  ;;  %v214_v33 = vshrl.u32 %v4683_v24, 16 }
  0x23   :  { %1833 = vmatpush1.bf16.msra.mxu0 %v3963_v35  ;;  %v3393_v35 = vcombine.low %v4623_v3, %v4623_v3 }
  0x24   :  { %2571 = vmatpush1.bf16.msra.mxu1 %v3964_v36  ;;  %1834 = vmatprep.subr.bf16.mxu0 %v3965_v37  ;;  %v4010_v36 = vld [vmem:[%s5978_s1] ss:$8 sps:$4 sm:$0xff]   ;;  %v203_v37 = vor.u32 %v201_v26, %v4685_v25 }
  0x25   :  { %2572 = vmatprep.subr.bf16.mxu1 %v3967_v38  ;;  %v4013_v38 = vld [vmem:[%s5978_s1 + $0x200] ss:$8 sps:$4 sm:$0xff]   ;;  %vm4737_vm8 = vcmp.eq.s16.totalorder %v3393_v35, 0 }
  0x27   :  { %1835 = vmatpush1.bf16.msra.mxu0 %v3969_v40  ;;  %v4717_v40 = vld [vmem:[%s5979_s0 + $0x20] ss:$8 sps:$4 sm:$0xff]  }
  0x28   :  { %2573 = vmatpush1.bf16.msra.mxu1 %v3970_v41  ;;  %1836 = vmatprep.subr.bf16.mxu0 %v3971_v42  ;;  %v463_v41 = vsel %vm4618_vm6, 0, %v181_v29  ;;  %v4721_v42 = vrot.slane %v190_v31, 7  ;;  %v206_v56 = vshrl.u32 %v4717_v40, 16  ;;  %v209_v62 = vshll.u32 %v4717_v40, 16 }
  0x29   :  { %2574 = vmatprep.subr.bf16.mxu1 %v3973_v43  ;;  %v193_v43 = vshll.u32 %v4675_v21, 16 }
  0x2a   :  { %v4786_v8 = vrot.slane %v206_v56, 7 }
  0x2b   :  { %1837 = vmatpush1.bf16.msra.mxu0 %v3975_v45  ;;  %v4730_v45 = vld [vmem:[%s5979_s0 + $0x34] ss:$8 sps:$4 sm:$0xff]   ;;  %v195_v57 = vor.u32 %v193_v43, %v4721_v42 }
  0x2c   :  { %2575 = vmatpush1.bf16.msra.mxu1 %v3976_v46  ;;  %1838 = vmatprep.subr.bf16.mxu0 %v3977_v47  ;;  %v4734_v46 = vrot.slane %v214_v33, 7  ;;  %v217_v47 = vshll.u32 %v4683_v24, 16 }
  0x2d   :  { %2576 = vmatprep.subr.bf16.mxu1 %v3979_v48  ;;  %v196_v6 = vsel %vm174_vm0, %v4670_v20, %v195_v57  ;;  %v211_v20 = vor.u32 %v209_v62, %v4786_v8 }
  0x2f   :  { %1839 = vmatpush1.bf16.msra.mxu0 %v3981_v49  ;;  %v204_v49 = vsel %vm174_vm0, %v4611_v61, %v203_v37  ;;  %v230_v61 = vshrl.u32 %v4730_v45, 16  ;;  %v4864_v37 = vld [vmem:[%s5979_s0 + $0x54] ss:$8 sps:$4 sm:$0xff]  }
  0x30   :  { %2577 = vmatpush1.bf16.msra.mxu1 %v3982_v50  ;;  %1840 = vmatprep.subr.bf16.mxu0 %v3983_v54  ;;  %v468_v50 = vrot.slane %v193_v43, 1  ;;  %v4019_v54 = vld [vmem:[%s5978_s1 + $0x10] ss:$8 sps:$4 sm:$0xff]   ;;  %v4057_v43 = vld [vmem:[%s5978_s1 + $0x54] ss:$8 sps:$4 sm:$0xff]  }
  0x31   :  { %2578 = vmatprep.subr.bf16.mxu1 %v3985_v55  ;;  %v4022_v55 = vld [vmem:[%s5978_s1 + $0x210] ss:$8 sps:$4 sm:$0xff]  }
  0x33   :  { %1841 = vmatpush1.bf16.msra.mxu0 %v3987_v59  ;;  %v219_v59 = vor.u32 %v217_v47, %v4734_v46 }
  0x34   :  { %2579 = vmatpush1.bf16.msra.mxu1 %v3988_v1  ;;  %1842 = vmatprep.subr.bf16.mxu0 %v3989_v4  ;;  %v4774_v1 = vsel %vm465_vm9, %v4632_v7, %v468_v50  ;;  %v4031_v4 = vld [vmem:[%s5978_s1 + $0x220] ss:$8 sps:$4 sm:$0xff]   ;;  %v4791_v7 = vld [vmem:[%s5979_s0 + $0x30] ss:$8 sps:$4 sm:$0xff]  }
  0x35   :  { %2580 = vmatprep.subr.bf16.mxu1 %v3991_v5  ;;  %v478_v5 = vrot.slane %v217_v47, 1  ;;  %v220_v11 = vsel %vm174_vm0, %v4685_v25, %v219_v59  ;;  %v4060_v47 = vld [vmem:[%s5978_s1 + $0x254] ss:$8 sps:$4 sm:$0xff]   ;;  %v4915_v59 = vld [vmem:[%s5979_s0 + $0x50] ss:$8 sps:$4 sm:$0xff]  }
  0x37   :  { %1843 = vmatpush1.bf16.msra.mxu0 %v3993_v10  ;;  %v475_v10 = vrot.slane %v209_v62, 1  ;;  %v483_v25 = vor.u32 %v478_v5, %v214_v33  ;;  %v212_v33 = vsel %vm174_vm0, %v4721_v42, %v211_v20  ;;  %v265_v62 = vshll.u32 %v4864_v37, 16 }
  0x38   :  { %2581 = vmatpush1.bf16.msra.mxu1 %v3994_v12  ;;  %1844 = vmatprep.subr.bf16.mxu0 %v3995_v13  ;;  %v4797_v12 = vrot.slane %v230_v61, 7  ;;  %v233_v13 = vshll.u32 %v4730_v45, 16  ;;  %v613_v20 = vadd.s32 128, %v4545_v39 }
  0x39   :  { %2582 = vmatprep.subr.bf16.mxu1 %v3997_v15  ;;  %v4806_v15 = vld [vmem:[%s5979_s0 + $0x44] ss:$8 sps:$4 sm:$0xff]  }
  0x3a   :  { %v235_v26 = vor.u32 %v233_v13, %v4797_v12  ;;  %v484_v29 = vrot.slane %v233_v13, 1  ;;  %v249_v35 = vshll.u32 %v4806_v15, 16 }
  0x3b   :  { %1845 = vmatpush1.bf16.msra.mxu0 %v3999_v16 }
  0x3c   :  { %2583 = vmatpush1.bf16.msra.mxu1 %v4000_v18  ;;  %1846 = vmatprep.subr.bf16.mxu0 %v4001_v19  ;;  %v4037_v19 = vld [vmem:[%s5978_s1 + $0x30] ss:$8 sps:$4 sm:$0xff]  }
  0x3d   :  { %2584 = vmatprep.subr.bf16.mxu1 %v4003_v22  ;;  %v222_v22 = vshrl.u32 %v4791_v7, 16 }
  0x3f   :  { %1847 = vmatpush1.bf16.msra.mxu0 %v4005_v27  ;;  %v246_v27 = vshrl.u32 %v4806_v15, 16  ;;  %v4855_v34 = vrot.slane %v222_v22, 7 }
  0x40   :  { %2585 = vmatpush1.bf16.msra.mxu1 %v4006_v28  ;;  %2201 = vmatprep.subr.bf16.mxu0 %v4012_v30  ;;  %v4051_v28 = vld [vmem:[%s5978_s1 + $0x244] ss:$8 sps:$4 sm:$0xff]   ;;  %v225_v30 = vshll.u32 %v4791_v7, 16 }
  0x41   :  { %2907 = vmatprep.subr.bf16.mxu1 %v4015_v32  ;;  %v4851_v32 = vsel %vm465_vm9, %v483_v25, %v484_v29  ;;  %v4872_v42 = vrot.slane %v246_v27, 7  ;;  %v4076_v25 = vld [vmem:[%s5978_s1 + $0x270] ss:$8 sps:$4 sm:$0xff]  }
  0x42   :  { %3555 = vmatmul.mubr.msk.bf16.vlgmr.msra.gmra.mrb[0].mxu0 %vm4651_vm7, %v463_v41  ;;  %v236_v41 = vsel %vm174_vm0, %v4734_v46, %v235_v26  ;;  %v4084_v26 = vld [vmem:[%s5978_s1 + $0x84] ss:$8 sps:$4 sm:$0xff]  }
  0x43   :  { %2587 = vmatmul.mubr.bf16.vlgmr.msra.gmra.mrb[0].mxu1 %v4585_v52  ;;  %2202 = vmatpush1.bf16.msra.mxu0 %v4010_v36  ;;  %v477_v52 = vor.u32 %v472_v53, %v198_v17  ;;  %v4042_v17 = vld [vmem:[%s5978_s1 + $0x234] ss:$8 sps:$4 sm:$0xff]   ;;  %v4049_v36 = vld [vmem:[%s5978_s1 + $0x240] ss:$8 sps:$4 sm:$0xff]   ;;  %v489_v53 = vor.u32 %v484_v29, %v230_v61  ;;  %v496_v29 = vrot.slane %v265_v62, 1 }
  0x44   :  { %2908 = vmatpush1.bf16.msra.mxu1 %v4013_v38  ;;  %3557 = vmatprep.mubr.msk.bf16.mxu0 %vm4737_vm8, %v204_v49  ;;  %v480_v38 = vor.u32 %v475_v10, %v206_v56  ;;  %v490_v56 = vrot.slane %v249_v35, 1 }
  0x45   :  { %2596 = vmatprep.mubr.bf16.mxu1 %v4638_v9  ;;  %2203 = vmatprep.subr.bf16.mxu0 %v4021_v44  ;;  %v474_v9 = vor.u32 %v468_v50, %v190_v31  ;;  %v4809_v16 = vsel %vm465_vm9, %v477_v52, %v478_v5  ;;  %v4046_v31 = vld [vmem:[%s5978_s1 + $0x40] ss:$8 sps:$4 sm:$0xff]   ;;  %v481_v44 = vrot.slane %v225_v30, 1  ;;  %v227_v50 = vor.u32 %v225_v30, %v4855_v34 }
  0x46   :  { %2909 = vmatprep.subr.bf16.mxu1 %v4024_v51  ;;  %v4055_v51 = vld [vmem:[%s5978_s1 + $0x50] ss:$8 sps:$4 sm:$0xff]  }
  0x47   :  { %2204 = vmatpush1.bf16.msra.mxu0 %v4019_v54  ;;  %v4815_v18 = vsel %vm465_vm9, %v474_v9, %v475_v10  ;;  %v4885_v49 = vsel %vm465_vm9, %v480_v38, %v481_v44  ;;  %v262_v54 = vshrl.u32 %v4864_v37, 16  ;;  %v228_v61 = vsel %vm174_vm0, %v4786_v8, %v227_v50  ;;  %v4064_v8 = vld [vmem:[%s5978_s1 + $0x60] ss:$8 sps:$4 sm:$0xff]   ;;  %v4093_v50 = vld [vmem:[%s5978_s1 + $0x94] ss:$8 sps:$4 sm:$0xff]  }
  0x48   :  { %2910 = vmatpush1.bf16.msra.mxu1 %v4022_v55  ;;  %2205 = vmatprep.subr.bf16.mxu0 %v4030_v58  ;;  %v4058_v55 = vld [vmem:[%s5978_s1 + $0x250] ss:$8 sps:$4 sm:$0xff]   ;;  %v4069_v58 = vld [vmem:[%s5978_s1 + $0x264] ss:$8 sps:$4 sm:$0xff]   ;;  %v4067_v10 = vld [vmem:[%s5978_s1 + $0x260] ss:$8 sps:$4 sm:$0xff]  }
  0x49   :  { %2911 = vmatprep.subr.bf16.mxu1 %v4033_v60  ;;  %v4918_v60 = vsel %vm465_vm9, %v489_v53, %v490_v56  ;;  %v4932_v9 = vrot.slane %v262_v54, 7  ;;  %v4082_v38 = vld [vmem:[%s5978_s1 + $0x80] ss:$8 sps:$4 sm:$0xff]  }
  0x4a   :  { %3559 = vmatmul.mubr.msk.bf16.gmra.mrb[4].mxu0 %vm4737_vm8, %v196_v6 }
  0x4b   :  { %2597 = vmatmul.mubr.bf16.gmra.mrb[4].mxu1 %v4675_v21  ;;  %3561 = vmatprep.mubr.msk.bf16.mxu0 %vm4737_vm8, %v220_v11  ;;  %v4048_v21 = vld [vmem:[%s5978_s1 + $0x44] ss:$8 sps:$4 sm:$0xff]   ;;  %v4075_v11 = vld [vmem:[%s5978_s1 + $0x74] ss:$8 sps:$4 sm:$0xff]  }
  0x4c   :  { %2606 = vmatprep.mubr.bf16.mxu1 %v4683_v24  ;;  %2206 = vmatpush1.bf16.msra.mxu0 %v4028_v2  ;;  %v4845_v24 = vld [vmem:[%s5979_s0 + $0x40] ss:$8 sps:$4 sm:$0xff]   ;;  %v4926_v2 = vld [vmem:[%s5979_s0 + $0x64] ss:$8 sps:$4 sm:$0xff]  }
  0x4d   :  { %2912 = vmatpush1.bf16.msra.mxu1 %v4031_v4  ;;  %2207 = vmatprep.subr.bf16.mxu0 %v4039_v14  ;;  %v238_v46 = vshrl.u32 %v4845_v24, 16  ;;  %v241_v57 = vshll.u32 %v4845_v24, 16  ;;  %v486_v4 = vor.u32 %v481_v44, %v222_v22  ;;  %v254_v14 = vshrl.u32 %v4915_v59, 16 }
  0x4e   :  { %2913 = vmatprep.subr.bf16.mxu1 %v4042_v17  ;;  %v495_v22 = vor.u32 %v490_v56, %v246_v27  ;;  %v4087_v27 = vld [vmem:[%s5978_s1 + $0x284] ss:$8 sps:$4 sm:$0xff]   ;;  %v4091_v56 = vld [vmem:[%s5978_s1 + $0x90] ss:$8 sps:$4 sm:$0xff]  }
  0x4f   :  { %v4910_v52 = vrot.slane %v238_v46, 7  ;;  %v487_v5 = vrot.slane %v241_v57, 1  ;;  %v4977_v30 = vrot.slane %v254_v14, 7 }
  0x50   :  { %2208 = vmatpush1.bf16.msra.mxu0 %v4037_v19  ;;  %v278_v19 = vshrl.u32 %v4926_v2, 16 }
  0x51   :  { %2914 = vmatpush1.bf16.msra.mxu1 %v4040_v23  ;;  %2209 = vmatprep.subr.bf16.mxu0 %v4048_v21  ;;  %v4947_v13 = vsel %vm465_vm9, %v486_v4, %v487_v5  ;;  %v243_v17 = vor.u32 %v241_v57, %v4910_v52  ;;  %v267_v23 = vor.u32 %v265_v62, %v4932_v9  ;;  %v4073_v21 = vld [vmem:[%s5978_s1 + $0x70] ss:$8 sps:$4 sm:$0xff]   ;;  %v4102_v4 = vld [vmem:[%s5978_s1 + $0xa4] ss:$8 sps:$4 sm:$0xff]  }
  0x52   :  { %2915 = vmatprep.subr.bf16.mxu1 %v4051_v28  ;;  %3563 = vmatmul.mubr.msk.bf16.gmra.mrb[8].mxu0 %vm4737_vm8, %v212_v33  ;;  %v257_v28 = vshll.u32 %v4915_v59, 16  ;;  %v4983_v33 = vld [vmem:[%s5979_s0 + $0x60] ss:$8 sps:$4 sm:$0xff]   ;;  %v492_v44 = vor.u32 %v487_v5, %v238_v46  ;;  %v4096_v46 = vld [vmem:[%s5978_s1 + $0x294] ss:$8 sps:$4 sm:$0xff]   ;;  %v501_v57 = vor.u32 %v496_v29, %v262_v54 }
  0x53   :  { %2607 = vmatmul.mubr.bf16.gmra.mrb[8].mxu1 %v4717_v40  ;;  %3565 = vmatprep.mubr.msk.bf16.mxu0 %vm4737_vm8, %v236_v41  ;;  %v251_v40 = vor.u32 %v249_v35, %v4872_v42  ;;  %v244_v35 = vsel %vm174_vm0, %v4855_v34, %v243_v17  ;;  %v4085_v41 = vld [vmem:[%s5978_s1 + $0x280] ss:$8 sps:$4 sm:$0xff]   ;;  %v268_v34 = vsel %vm174_vm0, %v4872_v42, %v267_v23  ;;  %v745_v42 = vand.u32 127, %v613_v20  ;;  %v4105_v54 = vld [vmem:[%s5978_s1 + $0x2a4] ss:$8 sps:$4 sm:$0xff]  }
  0x54   :  { %2616 = vmatprep.mubr.bf16.mxu1 %v4730_v45  ;;  %2210 = vmatpush1.bf16.msra.mxu0 %v4046_v31  ;;  %v4066_v45 = vld [vmem:[%s5978_s1 + $0x64] ss:$8 sps:$4 sm:$0xff]   ;;  %v281_v31 = vshll.u32 %v4926_v2, 16  ;;  %v5045_v5 = vld [vmem:[%s5979_s0 + $0x70] ss:$8 sps:$4 sm:$0xff]   ;;  %v273_v17 = vshll.u32 %v4983_v33, 16 }
  0x55   :  { %2916 = vmatpush1.bf16.msra.mxu1 %v4049_v36  ;;  %2211 = vmatprep.subr.bf16.mxu0 %v4057_v43  ;;  %v252_v6 = vsel %vm174_vm0, %v4797_v12, %v251_v40  ;;  %v4078_v12 = vld [vmem:[%s5978_s1 + $0x274] ss:$8 sps:$4 sm:$0xff]   ;;  %v4999_v43 = vsel %vm465_vm9, %v495_v22, %v496_v29  ;;  %v259_v40 = vor.u32 %v257_v28, %v4977_v30  ;;  %vm5052_vm10 = vcmp.eq.s32.totalorder %v745_v42, 0 }
  0x56   :  { %2917 = vmatprep.subr.bf16.mxu1 %v4060_v47  ;;  %v4990_v36 = vld [vmem:[%s5979_s0 + $0x74] ss:$8 sps:$4 sm:$0xff]   ;;  %v5007_v47 = vrot.slane %v278_v19, 7  ;;  %v502_v62 = vrot.slane %v281_v31, 1  ;;  %vm1125_vm11 = vmpackc.low %vm5052_vm10, %vm5052_vm10  ;;  %v289_v42 = vshll.u32 %v5045_v5, 16 }
  0x57   :  { %v297_v20 = vshll.u32 %v4990_v36, 16 }
  0x58   :  { %2212 = vmatpush1.bf16.msra.mxu0 %v4055_v51  ;;  %v493_v51 = vrot.slane %v257_v28, 1  ;;  %v286_v28 = vshrl.u32 %v5045_v5, 16 }
  0x59   :  { %2918 = vmatpush1.bf16.msra.mxu1 %v4058_v55  ;;  %2213 = vmatprep.subr.bf16.mxu0 %v4066_v45  ;;  %v270_v55 = vshrl.u32 %v4983_v33, 16  ;;  %v283_v45 = vor.u32 %v281_v31, %v5007_v47 }
  0x5a   :  { %2919 = vmatprep.subr.bf16.mxu1 %v4069_v58  ;;  %3567 = vmatmul.mubr.msk.bf16.gmra.mrb[12].mxu0 %vm4737_vm8, %v228_v61  ;;  %v5019_v53 = vsel %vm465_vm9, %v492_v44, %v493_v51  ;;  %v294_v58 = vshrl.u32 %v4990_v36, 16  ;;  %v4094_v61 = vld [vmem:[%s5978_s1 + $0x290] ss:$8 sps:$4 sm:$0xff]  }
  0x5b   :  { %2617 = vmatmul.mubr.bf16.gmra.mrb[12].mxu1 %v4791_v7  ;;  %3569 = vmatprep.mubr.msk.bf16.mxu0 %vm4737_vm8, %v252_v6  ;;  %v5050_v6 = vld [vmem:[%s5979_s0 + $0x84] ss:$8 sps:$4 sm:$0xff]   ;;  %v284_v22 = vsel %vm174_vm0, %v4932_v9, %v283_v45  ;;  %v4111_v9 = vld [vmem:[%s5978_s1 + $0xb4] ss:$8 sps:$4 sm:$0xff]   ;;  %v4118_v45 = vld [vmem:[%s5978_s1 + $0xc0] ss:$8 sps:$4 sm:$0xff]  }
  0x5c   :  { %2626 = vmatprep.mubr.bf16.mxu1 %v4806_v15  ;;  %2214 = vmatpush1.bf16.msra.mxu0 %v4064_v8  ;;  %v5071_v23 = vrot.slane %v294_v58, 7  ;;  %v310_v29 = vshrl.u32 %v5050_v6, 16 }
  0x5d   :  { %2920 = vmatpush1.bf16.msra.mxu1 %v4067_v10  ;;  %2215 = vmatprep.subr.bf16.mxu0 %v4075_v11  ;;  %v5057_v10 = vsel %vm465_vm9, %v501_v57, %v502_v62  ;;  %v260_v11 = vsel %vm174_vm0, %v4910_v52, %v259_v40  ;;  %v4100_v52 = vld [vmem:[%s5978_s1 + $0xa0] ss:$8 sps:$4 sm:$0xff]   ;;  %v5138_v57 = vld [vmem:[%s5979_s0 + $0x94] ss:$8 sps:$4 sm:$0xff]  }
  0x5e   :  { %2921 = vmatprep.subr.bf16.mxu1 %v4078_v12  ;;  %v5063_v12 = vrot.slane %v270_v55, 7  ;;  %v299_v31 = vor.u32 %v297_v20, %v5071_v23  ;;  %v5125_v40 = vld [vmem:[%s5979_s0 + $0x80] ss:$8 sps:$4 sm:$0xff]  }
  0x60   :  { %2216 = vmatpush1.bf16.msra.mxu0 %v4073_v21  ;;  %v4103_v21 = vld [vmem:[%s5978_s1 + $0x2a0] ss:$8 sps:$4 sm:$0xff]  }
  0x61   :  { %2922 = vmatpush1.bf16.msra.mxu1 %v4076_v25  ;;  %2217 = vmatprep.subr.bf16.mxu0 %v4084_v26  ;;  %v498_v25 = vor.u32 %v493_v51, %v254_v14  ;;  %v4114_v26 = vld [vmem:[%s5978_s1 + $0x2b4] ss:$8 sps:$4 sm:$0xff]   ;;  %v275_v14 = vor.u32 %v273_v17, %v5063_v12  ;;  %v508_v51 = vrot.slane %v297_v20, 1 }
  0x62   :  { %2923 = vmatprep.subr.bf16.mxu1 %v4087_v27  ;;  %3571 = vmatmul.mubr.msk.bf16.gmra.mrb[16].mxu0 %vm4737_vm8, %v244_v35  ;;  %v499_v27 = vrot.slane %v273_v17, 1  ;;  %v4109_v35 = vld [vmem:[%s5978_s1 + $0xb0] ss:$8 sps:$4 sm:$0xff]   ;;  %v505_v17 = vrot.slane %v289_v42, 1 }
  0x63   :  { %2627 = vmatmul.mubr.bf16.gmra.mrb[16].mxu1 %v4845_v24  ;;  %3573 = vmatprep.mubr.msk.bf16.mxu0 %vm4737_vm8, %v268_v34  ;;  %v507_v34 = vor.u32 %v502_v62, %v278_v19  ;;  %v276_v19 = vsel %vm174_vm0, %v4977_v30, %v275_v14  ;;  %v300_v30 = vsel %vm174_vm0, %v5007_v47, %v299_v31  ;;  %v5150_v62 = vrot.slane %v310_v29, 7  ;;  %v4129_v47 = vld [vmem:[%s5978_s1 + $0xd4] ss:$8 sps:$4 sm:$0xff]   ;;  %v4130_v14 = vld [vmem:[%s5978_s1 + $0x2d0] ss:$8 sps:$4 sm:$0xff]  }
  0x64   :  { %2636 = vmatprep.mubr.bf16.mxu1 %v4864_v37  ;;  %2218 = vmatpush1.bf16.msra.mxu0 %v4082_v38  ;;  %v4112_v38 = vld [vmem:[%s5978_s1 + $0x2b0] ss:$8 sps:$4 sm:$0xff]   ;;  %v5110_v44 = vsel %vm465_vm9, %v498_v25, %v499_v27  ;;  %v504_v8 = vor.u32 %v499_v27, %v270_v55  ;;  %v513_v25 = vor.u32 %v508_v51, %v294_v58  ;;  %v305_v31 = vshll.u32 %v5125_v40, 16  ;;  %v4138_v58 = vld [vmem:[%s5978_s1 + $0xe4] ss:$8 sps:$4 sm:$0xff]  }
  0x65   :  { %2924 = vmatpush1.bf16.msra.mxu1 %v4085_v41  ;;  %2219 = vmatprep.subr.bf16.mxu0 %v4093_v50  ;;  %v4120_v41 = vld [vmem:[%s5978_s1 + $0xc4] ss:$8 sps:$4 sm:$0xff]   ;;  %v4127_v27 = vld [vmem:[%s5978_s1 + $0xd0] ss:$8 sps:$4 sm:$0xff]  }
  0x66   :  { %2925 = vmatprep.subr.bf16.mxu1 %v4096_v46  ;;  %v4123_v50 = vld [vmem:[%s5978_s1 + $0x2c4] ss:$8 sps:$4 sm:$0xff]   ;;  %v5119_v46 = vrot.slane %v286_v28, 7 }
  0x68   :  { %2220 = vmatpush1.bf16.msra.mxu0 %v4091_v56  ;;  %v1157_v56 = vsel %vm1125_vm11, 65537, %v5981_v63  ;;  %v291_v20 = vor.u32 %v289_v42, %v5119_v46  ;;  %v329_v42 = vshll.u32 %v5138_v57, 16 }
  0x69   :  { %2926 = vmatpush1.bf16.msra.mxu1 %v4094_v61  ;;  %2221 = vmatprep.subr.bf16.mxu0 %v4102_v4  ;;  %v5144_v61 = vsel %vm465_vm9, %v507_v34, %v508_v51  ;;  %v313_v4 = vshll.u32 %v5050_v6, 16  ;;  %v3400_v55 = vcombine.low %v1157_v56, %v4623_v3  ;;  %v510_v56 = vor.u32 %v505_v17, %v286_v28  ;;  %v4150_v28 = vld [vmem:[%s5978_s1 + $0x2f4] ss:$8 sps:$4 sm:$0xff]  }
  0x6a   :  { %2927 = vmatprep.subr.bf16.mxu1 %v4105_v54  ;;  %3575 = vmatmul.mubr.msk.bf16.gmra.mrb[20].mxu0 %vm4737_vm8, %v260_v11  ;;  %v4121_v54 = vld [vmem:[%s5978_s1 + $0x2c0] ss:$8 sps:$4 sm:$0xff]   ;;  %v4132_v11 = vld [vmem:[%s5978_s1 + $0x2d4] ss:$8 sps:$4 sm:$0xff]  }
  0x6b   :  { %2637 = vmatmul.mubr.bf16.gmra.mrb[20].mxu1 %v4915_v59  ;;  %3577 = vmatprep.mubr.msk.bf16.mxu0 %vm4737_vm8, %v284_v22  ;;  %v302_v22 = vshrl.u32 %v5125_v40, 16  ;;  %vm5198_vm12 = vcmp.eq.s16.totalorder %v3400_v55, 0 }
  0x6c   :  { %2646 = vmatprep.mubr.bf16.mxu1 %v4926_v2  ;;  %2222 = vmatpush1.bf16.msra.mxu0 %v4100_v52  ;;  %v326_v52 = vshrl.u32 %v5138_v57, 16 }
  0x6d   :  { %2928 = vmatpush1.bf16.msra.mxu1 %v4103_v21  ;;  %2223 = vmatprep.subr.bf16.mxu0 %v4111_v9  ;;  %v5175_v21 = vsel %vm465_vm9, %v504_v8, %v505_v17  ;;  %v514_v9 = vrot.slane %v313_v4, 1 }
  0x6e   :  { %2929 = vmatprep.subr.bf16.mxu1 %v4114_v26  ;;  %v315_v26 = vor.u32 %v313_v4, %v5150_v62  ;;  %v5204_v51 = vrot.slane %v326_v52, 7  ;;  %v4136_v4 = vld [vmem:[%s5978_s1 + $0xe0] ss:$8 sps:$4 sm:$0xff]  }
  0x6f   :  { %v519_v17 = vor.u32 %v514_v9, %v310_v29 }
  0x70   :  { %2224 = vmatpush1.bf16.msra.mxu0 %v4109_v35  ;;  %v4141_v35 = vld [vmem:[%s5978_s1 + $0x2e4] ss:$8 sps:$4 sm:$0xff]   ;;  %v331_v55 = vor.u32 %v329_v42, %v5204_v51 }
  0x71   :  { %2930 = vmatpush1.bf16.msra.mxu1 %v4112_v38  ;;  %2225 = vmatprep.subr.bf16.mxu0 %v4120_v41  ;;  %v5194_v38 = vsel %vm465_vm9, %v513_v25, %v514_v9  ;;  %v292_v41 = vsel %vm174_vm0, %v5063_v12, %v291_v20  ;;  %v511_v12 = vrot.slane %v305_v31, 1  ;;  %v520_v20 = vrot.slane %v329_v42, 1 }
  0x72   :  { %2931 = vmatprep.subr.bf16.mxu1 %v4123_v50  ;;  %3579 = vmatmul.mubr.msk.bf16.gmra.mrb[24].mxu0 %vm4737_vm8, %v276_v19  ;;  %v304_v50 = vrot.slane %v302_v22, 7  ;;  %v5210_v19 = vld [vmem:[%s5979_s0 + $0x90] ss:$8 sps:$4 sm:$0xff]   ;;  %v332_v42 = vsel %vm174_vm0, %v5150_v62, %v331_v55 }
  0x73   :  { %2647 = vmatmul.mubr.bf16.gmra.mrb[24].mxu1 %v4983_v33  ;;  %3581 = vmatprep.mubr.msk.bf16.mxu0 %vm4737_vm8, %v300_v30  ;;  %v5219_v30 = vld [vmem:[%s5979_s0 + $0xa4] ss:$8 sps:$4 sm:$0xff]   ;;  %v5234_v8 = vsel %vm465_vm9, %v510_v56, %v511_v12  ;;  %v5255_v29 = vsel %vm465_vm9, %v519_v17, %v520_v20 }
  0x74   :  { %2656 = vmatprep.mubr.bf16.mxu1 %v4990_v36  ;;  %2226 = vmatpush1.bf16.msra.mxu0 %v4118_v45  ;;  %v316_v45 = vsel %vm174_vm0, %v5071_v23, %v315_v26  ;;  %v4147_v23 = vld [vmem:[%s5978_s1 + $0xf4] ss:$8 sps:$4 sm:$0xff]   ;;  %v342_v25 = vshrl.u32 %v5219_v30, 16  ;;  %v4145_v26 = vld [vmem:[%s5978_s1 + $0xf0] ss:$8 sps:$4 sm:$0xff]  }
  0x75   :  { %2932 = vmatpush1.bf16.msra.mxu1 %v4121_v54  ;;  %2227 = vmatprep.subr.bf16.mxu0 %v4129_v47  ;;  %v4139_v54 = vld [vmem:[%s5978_s1 + $0x2e0] ss:$8 sps:$4 sm:$0xff]   ;;  %v307_v47 = vor.u32 %v305_v31, %v304_v50 }
  0x76   :  { %2933 = vmatprep.subr.bf16.mxu1 %v4132_v11  ;;  %v318_v11 = vshrl.u32 %v5210_v19, 16  ;;  %v344_v56 = vrot.slane %v342_v25, 7 }
  0x77   :  { %v308_v9 = vsel %vm174_vm0, %v5119_v46, %v307_v47 }
  0x78   :  { %2228 = vmatpush1.bf16.msra.mxu0 %v4127_v27  ;;  %v4148_v27 = vld [vmem:[%s5978_s1 + $0x2f0] ss:$8 sps:$4 sm:$0xff]   ;;  %v320_v31 = vrot.slane %v318_v11, 7 }
  0x79   :  { %2934 = vmatpush1.bf16.msra.mxu1 %v4130_v14  ;;  %2229 = vmatprep.subr.bf16.mxu0 %v4138_v58  ;;  %v321_v14 = vshll.u32 %v5210_v19, 16  ;;  %v5262_v58 = vld [vmem:[%s5979_s0 + $0xa0] ss:$8 sps:$4 sm:$0xff]  }
  0x7a   :  { %2935 = vmatprep.subr.bf16.mxu1 %v4141_v35  ;;  %3583 = vmatmul.mubr.msk.bf16.gmra.mrb[28].mxu0 %vm4737_vm8, %v292_v41  ;;  %6003 = vst [vmem:[#allocation2_spill] sm:$0xff] %v5262_v58  ;;  %v516_v35 = vor.u32 %v511_v12, %v302_v22  ;;  %v334_v22 = vshrl.u32 %v5262_v58, 16  ;;  %v525_v12 = vor.u32 %v520_v20, %v326_v52  ;;  %v337_v34 = vshll.u32 %v5262_v58, 16 }
  0x7b   :  { %2657 = vmatmul.mubr.bf16.gmra.mrb[28].mxu1 %v5045_v5  ;;  %3585 = vmatprep.mubr.msk.bf16.mxu0 %vm5198_vm12, %v316_v45  ;;  %v517_v41 = vrot.slane %v321_v14, 1  ;;  %v345_v45 = vshll.u32 %v5219_v30, 16  ;;  %v323_v62 = vor.u32 %v321_v14, %v320_v31 }
  0x7c   :  { %2666 = vmatprep.mubr.bf16.mxu1 %v5050_v6  ;;  %2230 = vmatpush1.bf16.msra.mxu0 %v4136_v4  ;;  %v5270_v4 = vld [vmem:[%s5979_s0 + $0xb4] ss:$8 sps:$4 sm:$0xff]   ;;  %v336_v55 = vrot.slane %v334_v22, 7  ;;  %v523_v14 = vrot.slane %v337_v34, 1 }
  0x7d   :  { %2936 = vmatpush1.bf16.msra.mxu1 %v4139_v54  ;;  %2231 = vmatprep.subr.bf16.mxu0 %v4147_v23  ;;  %6004 = vst [vmem:[#allocation3_spill] sm:$0xff] %v5270_v4  ;;  %v5273_v46 = vsel %vm465_vm9, %v516_v35, %v517_v41  ;;  %v526_v54 = vrot.slane %v345_v45, 1  ;;  %v347_v23 = vor.u32 %v345_v45, %v344_v56  ;;  %v5301_v35 = vld [vmem:[%s5979_s0 + $0xc4] ss:$8 sps:$4 sm:$0xff]  }
  0x7e   :  { %2937 = vmatprep.subr.bf16.mxu1 %v4150_v28  ;;  %v358_v28 = vshrl.u32 %v5270_v4, 16  ;;  %v324_v17 = vsel %vm174_vm0, %v304_v50, %v323_v62  ;;  %6006 = vst [vmem:[#allocation5_spill] sm:$0xff] %v5301_v35  ;;  %v374_v62 = vshrl.u32 %v5301_v35, 16 }
  0x7f   :  { %v5287_v47 = vsel %vm465_vm9, %v525_v12, %v526_v54  ;;  %v348_v52 = vsel %vm174_vm0, %v5204_v51, %v347_v23  ;;  %v339_v51 = vor.u32 %v337_v34, %v336_v55  ;;  %v528_v34 = vor.u32 %v523_v14, %v334_v22 }
  0x80   :  { %2232 = vmatpush1.bf16.msra.mxu0 %v4145_v26  ;;  %v5293_v26 = vld [vmem:[%s5979_s0 + $0xb0] ss:$8 sps:$4 sm:$0xff]   ;;  %v360_v20 = vrot.slane %v358_v28, 7 }
  0x81   :  { %2938 = vmatpush1.bf16.msra.mxu1 %v4148_v27  ;;  %6005 = vst [vmem:[#allocation4_spill] sm:$0xff] %v5293_v26  ;;  %v522_v27 = vor.u32 %v517_v41, %v318_v11  ;;  %v350_v11 = vshrl.u32 %v5293_v26, 16  ;;  %v531_v41 = vor.u32 %v526_v54, %v342_v25  ;;  %v353_v12 = vshll.u32 %v5293_v26, 16 }
  0x82   :  { %3587 = vmatmul.mubr.msk.bf16.gmra.mrb[32].mxu0 %vm5198_vm12, %v308_v9  ;;  %v361_v9 = vshll.u32 %v5270_v4, 16  ;;  %v376_v54 = vrot.slane %v374_v62, 7 }
  0x83   :  { %2667 = vmatmul.mubr.bf16.gmra.mrb[32].mxu1 %v5125_v40  ;;  %3589 = vmatprep.mubr.msk.bf16.mxu0 %vm4737_vm8, %v332_v42  ;;  %v5304_v50 = vsel %vm465_vm9, %v522_v27, %v523_v14  ;;  %v352_v27 = vrot.slane %v350_v11, 7  ;;  %v529_v63 = vrot.slane %v353_v12, 1 }
  0x84   :  { %2676 = vmatprep.mubr.bf16.mxu1 %v5138_v57  ;;  %v532_v42 = vrot.slane %v361_v9, 1  ;;  %v363_v45 = vor.u32 %v361_v9, %v360_v20  ;;  %v377_v9 = vshll.u32 %v5301_v35, 16 }
  0x86   :  { %v5316_v23 = vsel %vm465_vm9, %v531_v41, %v532_v42  ;;  %v364_v25 = vsel %vm174_vm0, %v344_v56, %v363_v45  ;;  %v5329_v41 = vld [vmem:[%s5979_s0 + $0xd4] ss:$8 sps:$4 sm:$0xff]   ;;  %v355_v56 = vor.u32 %v353_v12, %v352_v27  ;;  %v537_v14 = vor.u32 %v532_v42, %v358_v28 }
  0x87   :  { %6007 = vst [vmem:[#allocation6_spill] sm:$0xff] %v5316_v23  ;;  %6009 = vst [vmem:[#allocation8_spill] sm:$0xff] %v5329_v41  ;;  %v379_v45 = vor.u32 %v377_v9, %v376_v54  ;;  %v390_v23 = vshrl.u32 %v5329_v41, 16  ;;  %v534_v12 = vor.u32 %v529_v63, %v350_v11 }
  0x89   :  { %v380_v28 = vsel %vm174_vm0, %v360_v20, %v379_v45  ;;  %v392_v42 = vrot.slane %v390_v23, 7 }
  0x8a   :  { %3591 = vmatmul.mubr.msk.bf16.gmra.mrb[36].mxu0 %vm4737_vm8, %v324_v17  ;;  %v340_v17 = vsel %vm174_vm0, %v320_v31, %v339_v51  ;;  %v5332_v31 = vsel %vm465_vm9, %v528_v34, %v529_v63  ;;  %v538_v51 = vrot.slane %v377_v9, 1  ;;  %v393_v9 = vshll.u32 %v5329_v41, 16 }
  0x8b   :  { %2677 = vmatmul.mubr.bf16.gmra.mrb[36].mxu1 %v5210_v19  ;;  %3593 = vmatprep.mubr.msk.bf16.mxu0 %vm4737_vm8, %v348_v52  ;;  %v5322_v52 = vld [vmem:[%s5979_s0 + $0xc0] ss:$8 sps:$4 sm:$0xff]   ;;  %6010 = vst [vmem:[#allocation9_spill] sm:$0xff] %v5332_v31 }
  0x8c   :  { %2686 = vmatprep.mubr.bf16.mxu1 %v5219_v30  ;;  %6008 = vst [vmem:[#allocation7_spill] sm:$0xff] %v5322_v52  ;;  %v366_v22 = vshrl.u32 %v5322_v52, 16  ;;  %v369_v34 = vshll.u32 %v5322_v52, 16  ;;  %v5344_v31 = vsel %vm465_vm9, %v537_v14, %v538_v51  ;;  %v5357_v14 = vld [vmem:[%s5979_s0 + $0xe4] ss:$8 sps:$4 sm:$0xff]   ;;  %v543_v11 = vor.u32 %v538_v51, %v374_v62 }
  0x8d   :  { %6011 = vst [vmem:[#allocation10_spill] sm:$0xff] %v5344_v31  ;;  %6012 = vst [vmem:[#allocation11_spill] sm:$0xff] %v5357_v14  ;;  %v395_v45 = vor.u32 %v393_v9, %v392_v42  ;;  %v406_v31 = vshrl.u32 %v5357_v14, 16 }
  0x8f   :  { %v396_v62 = vsel %vm174_vm0, %v376_v54, %v395_v45  ;;  %v408_v51 = vrot.slane %v406_v31, 7 }
  0x92   :  { %3595 = vmatmul.mubr.msk.bf16.gmra.mrb[40].mxu0 %vm4737_vm8, %v340_v17  ;;  %v356_v17 = vsel %vm174_vm0, %v336_v55, %v355_v56  ;;  %v544_v56 = vrot.slane %v393_v9, 1  ;;  %v409_v9 = vshll.u32 %v5357_v14, 16 }
  0x93   :  { %2687 = vmatmul.mubr.bf16.gmra.mrb[40].mxu1 %v5262_v58  ;;  %3597 = vmatprep.mubr.msk.bf16.mxu0 %vm4737_vm8, %v364_v25  ;;  %v368_v58 = vrot.slane %v366_v22, 7  ;;  %v5350_v25 = vld [vmem:[%s5979_s0 + $0xd0] ss:$8 sps:$4 sm:$0xff]  }
  0x94   :  { %2696 = vmatprep.mubr.bf16.mxu1 %v5270_v4  ;;  %v535_v4 = vrot.slane %v369_v34, 1  ;;  %v382_v20 = vshrl.u32 %v5350_v25, 16  ;;  %v411_v45 = vor.u32 %v409_v9, %v408_v51 }
  0x95   :  { %v371_v63 = vor.u32 %v369_v34, %v368_v58 }
  0x96   :  { %v5360_v55 = vsel %vm465_vm9, %v534_v12, %v535_v4  ;;  %v385_v12 = vshll.u32 %v5350_v25, 16  ;;  %v540_v34 = vor.u32 %v535_v4, %v366_v22  ;;  %v549_v22 = vor.u32 %v544_v56, %v390_v23 }
  0x97   :  { %6013 = vst [vmem:[#allocation12_spill] sm:$0xff] %v5360_v55  ;;  %v5372_v55 = vsel %vm465_vm9, %v543_v11, %v544_v56  ;;  %v5385_v11 = vld [vmem:[%s5979_s0 + $0xf4] ss:$8 sps:$4 sm:$0xff]   ;;  %v412_v23 = vsel %vm174_vm0, %v392_v42, %v411_v45 }
  0x98   :  { %6014 = vst [vmem:[#allocation13_spill] sm:$0xff] %v5372_v55  ;;  %v5989_v55 = vshrl.u32 %v5385_v11, 16 }
  0x9a   :  { %3599 = vmatmul.mubr.msk.bf16.gmra.mrb[44].mxu0 %vm4737_vm8, %v356_v17  ;;  %v372_v17 = vsel %vm174_vm0, %v352_v27, %v371_v63  ;;  %v550_v63 = vrot.slane %v409_v9, 1  ;;  %v424_v56 = vrot.slane %v5989_v55, 7  ;;  %v425_v9 = vshll.u32 %v5385_v11, 16 }
  0x9b   :  { %2697 = vmatmul.mubr.bf16.gmra.mrb[44].mxu1 %v5293_v26  ;;  %3601 = vmatprep.mubr.msk.bf16.mxu0 %vm4737_vm8, %v380_v28  ;;  %v384_v26 = vrot.slane %v382_v20, 7  ;;  %v5378_v28 = vld [vmem:[%s5979_s0 + $0xe0] ss:$8 sps:$4 sm:$0xff]  }
  0x9c   :  { %2706 = vmatprep.mubr.bf16.mxu1 %v5301_v35  ;;  %v541_v35 = vrot.slane %v385_v12, 1  ;;  %v398_v54 = vshrl.u32 %v5378_v28, 16  ;;  %v555_v42 = vor.u32 %v550_v63, %v406_v31 }
  0x9d   :  { %v387_v4 = vor.u32 %v385_v12, %v384_v26 }
  0x9e   :  { %v5388_v27 = vsel %vm465_vm9, %v540_v34, %v541_v35  ;;  %v401_v34 = vshll.u32 %v5378_v28, 16  ;;  %v546_v12 = vor.u32 %v541_v35, %v382_v20  ;;  %v5422_v20 = vrot.slane %v425_v9, 1 }
  0x9f   :  { %6015 = vst [vmem:[#allocation14_spill] sm:$0xff] %v5388_v27  ;;  %v5400_v27 = vsel %vm465_vm9, %v549_v22, %v550_v63 }
  0xa2   :  { %3603 = vmatmul.mubr.msk.bf16.gmra.mrb[48].mxu0 %vm4737_vm8, %v372_v17  ;;  %v388_v17 = vsel %vm174_vm0, %v368_v58, %v387_v4  ;;  %v427_v4 = vor.u32 %v425_v9, %v424_v56 }
  0xa3   :  { %2707 = vmatmul.mubr.bf16.gmra.mrb[48].mxu1 %v5322_v52  ;;  %3605 = vmatprep.mubr.msk.bf16.mxu0 %vm4737_vm8, %v396_v62  ;;  %v400_v52 = vrot.slane %v398_v54, 7  ;;  %v5406_v62 = vld [vmem:[%s5979_s0 + $0xf0] ss:$8 sps:$4 sm:$0xff]  }
  0xa4   :  { %2716 = vmatprep.mubr.bf16.mxu1 %v5329_v41  ;;  %v547_v41 = vrot.slane %v401_v34, 1  ;;  %v414_v35 = vshrl.u32 %v5406_v62, 16  ;;  %v417_v45 = vshll.u32 %v5406_v62, 16 }
  0xa5   :  { %v403_v58 = vor.u32 %v401_v34, %v400_v52  ;;  %v428_v34 = vsel %vm174_vm0, %v408_v51, %v427_v4  ;;  %v4408_v51 = vld [vmem:[%s5979_s0] ss:$8 sps:$4 sm:$0xff]  }
  0xa6   :  { %v5413_v22 = vsel %vm465_vm9, %v546_v12, %v547_v41  ;;  %v5427_v12 = vsel %vm465_vm9, %v555_v42, %v5422_v20  ;;  %v552_v55 = vor.u32 %v547_v41, %v398_v54 }
  0xaa   :  { %3607 = vmatmul.mubr.msk.bf16.gmra.mrb[52].mxu0 %vm4737_vm8, %v388_v17  ;;  %v404_v17 = vsel %vm174_vm0, %v384_v26, %v403_v58 }
  0xab   :  { %2717 = vmatmul.mubr.bf16.gmra.mrb[52].mxu1 %v5350_v25  ;;  %3609 = vmatprep.mubr.msk.bf16.mxu0 %vm4737_vm8, %v412_v23  ;;  %v416_v23 = vrot.slane %v414_v35, 7 }
  0xac   :  { %2726 = vmatprep.mubr.bf16.mxu1 %v5357_v14  ;;  %v5432_v14 = vrot.slane %v417_v45, 1 }
  0xad   :  { %v419_v26 = vor.u32 %v417_v45, %v416_v23 }
  0xae   :  { %v5437_v31 = vsel %vm465_vm9, %v552_v55, %v5432_v14  ;;  %v4407_v55 = vld [vmem:[%s5979_s0 + $0x4] ss:$8 sps:$4 sm:$0xff]  }
  0xaf   :  { %v420_v41 = vsel %vm174_vm0, %v400_v52, %v419_v26  ;;  %v4409_v52 = vld [vmem:[%s5979_s0 + $0x14] ss:$8 sps:$4 sm:$0xff]  }
  0xb2   :  { %3611 = vmatmul.mubr.msk.bf16.gmra.mrb[56].mxu0 %vm4737_vm8, %v404_v17 }
  0xb3   :  { %2727 = vmatmul.mubr.bf16.gmra.mrb[56].mxu1 %v5378_v28  ;;  %3613 = vmatprep.mubr.msk.bf16.mxu0 %vm4737_vm8, %v428_v34 }
  0xb4   :  { %2736 = vmatprep.mubr.bf16.mxu1 %v5385_v11 }
  0xba   :  { %3615 = vmatmul.mubr.msk.bf16.gmra.mrb[60].mxu0 %vm4737_vm8, %v420_v41 }
  0xbb   :  { %2737 = vmatmul.mubr.bf16.gmra.mrb[60].mxu1 %v5406_v62  ;;  %2233 = vmatprep.mubr.bf16.mxu0 %v4407_v55 }
  0xbc   :  { %3713 = vmatprep.mubr.msk.bf16.mxu1 %vm4737_vm8, %v4770_v0  ;;  %v4410_v0 = vld [vmem:[%s5979_s0 + $0x10] ss:$8 sps:$4 sm:$0xff]  }
  0xc2   :  { %2234 = vmatmul.mubr.bf16.vlgmr.msra.gmra.mrb[0].mxu0 %v4408_v51 }
  0xc3   :  { %3715 = vmatmul.mubr.msk.bf16.vlgmr.msra.gmra.mrb[0].mxu1 %vm4737_vm8, %v4774_v1  ;;  %2243 = vmatprep.mubr.bf16.mxu0 %v4409_v52  ;;  %v4411_v1 = vld [vmem:[%s5979_s0 + $0x24] ss:$8 sps:$4 sm:$0xff]  }
  0xc4   :  { %3717 = vmatprep.mubr.msk.bf16.mxu1 %vm4737_vm8, %v4809_v16  ;;  %v4412_v16 = vld [vmem:[%s5979_s0 + $0x20] ss:$8 sps:$4 sm:$0xff]  }
  0xca   :  { %2244 = vmatmul.mubr.bf16.gmra.mrb[4].mxu0 %v4410_v0 }
  0xcb   :  { %3719 = vmatmul.mubr.msk.bf16.gmra.mrb[4].mxu1 %vm4737_vm8, %v4815_v18  ;;  %2253 = vmatprep.mubr.bf16.mxu0 %v4411_v1  ;;  %v4413_v18 = vld [vmem:[%s5979_s0 + $0x34] ss:$8 sps:$4 sm:$0xff]  }
  0xcc   :  { %3721 = vmatprep.mubr.msk.bf16.mxu1 %vm4737_vm8, %v4851_v32  ;;  %v612_v32 = vadd.s32 120, %v4545_v39 }
  0xd2   :  { %2254 = vmatmul.mubr.bf16.gmra.mrb[8].mxu0 %v4412_v16 }
  0xd3   :  { %3723 = vmatmul.mubr.msk.bf16.gmra.mrb[8].mxu1 %vm4737_vm8, %v4885_v49  ;;  %2263 = vmatprep.mubr.bf16.mxu0 %v4413_v18  ;;  %v738_v49 = vand.u32 127, %v612_v32 }
  0xd4   :  { %3725 = vmatprep.mubr.msk.bf16.mxu1 %vm4737_vm8, %v4918_v60  ;;  %v6019_v60 = vld [vmem:[#allocation9_spill] sm:$0xff] }
  0xd5   :  { %vm1284_vm13 = vcmp.eq.s32.totalorder %v738_v49, 127 }
  0xd6   :  { %vm1380_vm14 = vmpackc.low %vm1284_vm13, %vm1284_vm13 }
  0xda   :  { %2264 = vmatmul.mubr.bf16.gmra.mrb[12].mxu0 %v4791_v7  ;;  %v6016_v7 = vmov 0  }
  0xdb   :  { %3727 = vmatmul.mubr.msk.bf16.gmra.mrb[12].mxu1 %vm4737_vm8, %v4947_v13  ;;  %2273 = vmatprep.mubr.bf16.mxu0 %v4806_v15  ;;  %v1412_v15 = vsel %vm1380_vm14, 65537, %v6016_v7  ;;  %v6021_v13 = vld [vmem:[#allocation10_spill] sm:$0xff] }
  0xdc   :  { %3729 = vmatprep.mubr.msk.bf16.mxu1 %vm4737_vm8, %v4999_v43  ;;  %v6024_v43 = vld [vmem:[#allocation5_spill] sm:$0xff] }
  0xe2   :  { %2274 = vmatmul.mubr.bf16.gmra.mrb[16].mxu0 %v4845_v24  ;;  %v3415_v24 = vcombine.low %v4623_v3, %v1412_v15 }
  0xe3   :  { %3731 = vmatmul.mubr.msk.bf16.gmra.mrb[16].mxu1 %vm4737_vm8, %v5019_v53  ;;  %2283 = vmatprep.mubr.bf16.mxu0 %v4864_v37  ;;  %v6017_v37 = vld [vmem:[#allocation6_spill] sm:$0xff]  ;;  %v6025_v53 = vld [vmem:[#allocation13_spill] sm:$0xff] }
  0xe4   :  { %3733 = vmatprep.mubr.msk.bf16.mxu1 %vm4737_vm8, %v5057_v10  ;;  %vm3779_vm15 = vcmp.eq.s16.totalorder %v3415_v24, 0  ;;  %v6026_v10 = vld [vmem:[#allocation7_spill] sm:$0xff] }
  0xea   :  { %2284 = vmatmul.mubr.bf16.gmra.mrb[20].mxu0 %v4915_v59  ;;  %v6018_v59 = vld [vmem:[#allocation2_spill] sm:$0xff] }
  0xeb   :  { %3735 = vmatmul.mubr.msk.bf16.gmra.mrb[20].mxu1 %vm4737_vm8, %v5110_v44  ;;  %2293 = vmatprep.mubr.bf16.mxu0 %v4926_v2  ;;  %v6020_v2 = vld [vmem:[#allocation3_spill] sm:$0xff]  ;;  %v6027_v44 = vld [vmem:[#allocation14_spill] sm:$0xff] }
  0xec   :  { %3737 = vmatprep.mubr.msk.bf16.mxu1 %vm4737_vm8, %v5144_v61  ;;  %v6030_v61 = vshrl.u32 %v5385_v11, 16 }
  0xf2   :  { %2294 = vmatmul.mubr.bf16.gmra.mrb[24].mxu0 %v4983_v33  ;;  %v6022_v33 = vld [vmem:[#allocation4_spill] sm:$0xff] }
  0xf3   :  { %3739 = vmatmul.mubr.msk.bf16.gmra.mrb[24].mxu1 %vm4737_vm8, %v5175_v21  ;;  %2303 = vmatprep.mubr.bf16.mxu0 %v4990_v36  ;;  %v6023_v36 = vld [vmem:[#allocation12_spill] sm:$0xff]  ;;  %v559_v21 = vor.u32 %v5422_v20, %v6030_v61 }
  0xf4   :  { %3741 = vmatprep.mubr.msk.bf16.mxu1 %vm3779_vm15, %v5194_v38 }
  0xfa   :  { %2304 = vmatmul.mubr.bf16.gmra.mrb[28].mxu0 %v5045_v5  ;;  %v628_v5 = vadd.s32 248, %v4545_v39  ;;  %v6029_v39 = vld [vmem:[#allocation11_spill] sm:$0xff] }
  0xfb   :  { %3743 = vmatmul.mubr.msk.bf16.gmra.mrb[28].mxu1 %vm3779_vm15, %v5234_v8  ;;  %2313 = vmatprep.mubr.bf16.mxu0 %v5050_v6 }
  0xfc   :  { %3745 = vmatprep.mubr.msk.bf16.mxu1 %vm4737_vm8, %v5255_v29  ;;  %v850_v6 = vand.u32 127, %v628_v5 }
  0xfe   :  { %vm1300_vm0 = vcmp.eq.s32.totalorder %v850_v6, 127 }
  0xff   :  { %vm1396_vm1 = vmpackc.low %vm1300_vm0, %vm1300_vm0 }
 0x102   :  { %2314 = vmatmul.mubr.bf16.gmra.mrb[32].mxu0 %v5125_v40  ;;  %v6028_v40 = vld [vmem:[#allocation8_spill] sm:$0xff] }
 0x103   :  { %3747 = vmatmul.mubr.msk.bf16.gmra.mrb[32].mxu1 %vm4737_vm8, %v5273_v46  ;;  %2323 = vmatprep.mubr.bf16.mxu0 %v5138_v57  ;;  %v1428_v57 = vsel %vm1396_vm1, 65537, %v6016_v7 }
 0x104   :  { %3749 = vmatprep.mubr.msk.bf16.mxu1 %vm4737_vm8, %v5287_v47  ;;  %v3423_v38 = vcombine.low %v4623_v3, %v1428_v57 }
 0x106   :  { %vm3780_vm4 = vcmp.eq.s16.totalorder %v3423_v38, 0 }
 0x10a   :  { %2324 = vmatmul.mubr.bf16.gmra.mrb[36].mxu0 %v5210_v19  ;;  %v595_v19 = vsel %vm593_vm3, %v559_v21, 0 }
 0x10b   :  { %3751 = vmatmul.mubr.msk.bf16.gmra.mrb[36].mxu1 %vm4737_vm8, %v5304_v50  ;;  %2333 = vmatprep.mubr.bf16.mxu0 %v5219_v30  ;;  %v558_v30 = vor.u32 %v5432_v14, %v414_v35 }
 0x10c   :  { %3753 = vmatprep.mubr.msk.bf16.mxu1 %vm4737_vm8, %v6017_v37 }
 0x10d   :  { %v594_v8 = vsel %vm593_vm3, %v558_v30, 0 }
 0x112   :  { %2334 = vmatmul.mubr.bf16.gmra.mrb[40].mxu0 %v6018_v59 }
 0x113   :  { %3755 = vmatmul.mubr.msk.bf16.gmra.mrb[40].mxu1 %vm4737_vm8, %v6019_v60  ;;  %2343 = vmatprep.mubr.bf16.mxu0 %v6020_v2 }
 0x114   :  { %3757 = vmatprep.mubr.msk.bf16.mxu1 %vm4737_vm8, %v6021_v13 }
 0x11a   :  { %2344 = vmatmul.mubr.bf16.gmra.mrb[44].mxu0 %v6022_v33 }
 0x11b   :  { %3759 = vmatmul.mubr.msk.bf16.gmra.mrb[44].mxu1 %vm4737_vm8, %v6023_v36  ;;  %2353 = vmatprep.mubr.bf16.mxu0 %v6024_v43 }
 0x11c   :  { %3761 = vmatprep.mubr.msk.bf16.mxu1 %vm4737_vm8, %v6025_v53 }
 0x122   :  { %2354 = vmatmul.mubr.bf16.gmra.mrb[48].mxu0 %v6026_v10 }
 0x123   :  { %3763 = vmatmul.mubr.msk.bf16.gmra.mrb[48].mxu1 %vm4737_vm8, %v6027_v44  ;;  %2363 = vmatprep.mubr.bf16.mxu0 %v6028_v40 }
 0x124   :  { %3765 = vmatprep.mubr.msk.bf16.mxu1 %vm4737_vm8, %v5400_v27 }
 0x12a   :  { %2364 = vmatmul.mubr.bf16.gmra.mrb[52].mxu0 %v5350_v25 }
 0x12b   :  { %3767 = vmatmul.mubr.msk.bf16.gmra.mrb[52].mxu1 %vm4737_vm8, %v5413_v22  ;;  %2373 = vmatprep.mubr.bf16.mxu0 %v6029_v39 }
 0x12c   :  { %3769 = vmatprep.mubr.msk.bf16.mxu1 %vm4737_vm8, %v5427_v12 }
 0x132   :  { %2374 = vmatmul.mubr.bf16.gmra.mrb[56].mxu0 %v5378_v28 }
 0x133   :  { %3771 = vmatmul.mubr.msk.bf16.gmra.mrb[56].mxu1 %vm4737_vm8, %v5437_v31  ;;  %2383 = vmatprep.mubr.bf16.mxu0 %v5385_v11 }
 0x134   :  { %3773 = vmatprep.mubr.msk.bf16.mxu1 %vm3780_vm4, %v595_v19 }
 0x13a   :  { %2384 = vmatmul.mubr.bf16.gmra.mrb[60].mxu0 %v5406_v62 }
 0x13b   :  { %3775 = vmatmul.mubr.msk.bf16.gmra.mrb[60].mxu1 %vm3780_vm4, %v594_v8 }
 0x195   :  { %v2235_v3 = vpop.f32.mrb[0].mxu0 }
 0x196   :  { %v2941_v29 = vpop.f32.mrb[0].mxu1  ;;  %4151 = vtanh.f32 %v2235_v3  ;;  %v2237_v46 = vpop.f32.mrb[1].mxu0 }
 0x197   :  { %v2943_v47 = vpop.f32.mrb[1].mxu1  ;;  %4153 = vtanh.f32 %v2941_v29  ;;  %v2239_v50 = vpop.f32.mrb[2].mxu0 }
 0x198   :  { %v2945_v48 = vpop.f32.mrb[2].mxu1  ;;  %4155 = vtanh.f32 %v2237_v46  ;;  %v2241_v25 = vpop.f32.mrb[3].mxu0 }
 0x199   :  { %v2947_v28 = vpop.f32.mrb[3].mxu1  ;;  %4157 = vtanh.f32 %v2943_v47 }
 0x19a   :  { %4159 = vtanh.f32 %v2239_v50 }
 0x19b   :  { %4161 = vtanh.f32 %v2945_v48 }
 0x19c   :  { %4163 = vtanh.f32 %v2241_v25 }
 0x19d   :  { %4165 = vtanh.f32 %v2947_v28  ;;  %v2245_v14 = vpop.f32.mrb[4].mxu0 }
 0x19e   :  { %v2951_v11 = vpop.f32.mrb[4].mxu1  ;;  %4167 = vtanh.f32 %v2245_v14  ;;  %v2247_v27 = vpop.f32.mrb[5].mxu0 }
 0x19f   :  { %v2953_v54 = vpop.f32.mrb[5].mxu1  ;;  %4169 = vtanh.f32 %v2951_v11  ;;  %v2249_v63 = vpop.f32.mrb[6].mxu0 }
 0x1a0   :  { %v2955_v62 = vpop.f32.mrb[6].mxu1  ;;  %v4152_v56 = vpop.eup %4151  ;;  %4171 = vtanh.f32 %v2247_v27 }
 0x1a1   :  { %v2251_v9 = vpop.f32.mrb[7].mxu0  ;;  %v2957_v22 = vpop.f32.mrb[7].mxu1  ;;  %3164 = vst [vmem:[%s5980_s2] sm:$0xff] %v4152_v56  ;;  %4173 = vtanh.f32 %v2953_v54 }
 0x1a2   :  { %v4154_v58 = vpop.eup %4153  ;;  %4175 = vtanh.f32 %v2249_v63 }
 0x1a3   :  { %v4156_v35 = vpop.eup %4155  ;;  %3292 = vst [vmem:[%s5980_s2 + $0x10] sm:$0xff] %v4154_v58  ;;  %4177 = vtanh.f32 %v2955_v62 }
 0x1a4   :  { %v4158_v42 = vpop.eup %4157  ;;  %3165 = vst [vmem:[%s5980_s2 + $0x8] sm:$0xff] %v4156_v35  ;;  %4179 = vtanh.f32 %v2251_v9 }
 0x1a5   :  { %v4160_v20 = vpop.eup %4159  ;;  %3293 = vst [vmem:[%s5980_s2 + $0x18] sm:$0xff] %v4158_v42  ;;  %4181 = vtanh.f32 %v2957_v22  ;;  %v2255_v45 = vpop.f32.mrb[8].mxu0 }
 0x1a6   :  { %v4162_v4 = vpop.eup %4161  ;;  %3166 = vst [vmem:[%s5980_s2 + $0x20] sm:$0xff] %v4160_v20  ;;  %v2961_v12 = vpop.f32.mrb[8].mxu1  ;;  %4183 = vtanh.f32 %v2255_v45 }
 0x1a7   :  { %v4164_v17 = vpop.eup %4163  ;;  %3294 = vst [vmem:[%s5980_s2 + $0x30] sm:$0xff] %v4162_v4  ;;  %v2257_v23 = vpop.f32.mrb[9].mxu0  ;;  %4185 = vtanh.f32 %v2961_v12 }
 0x1a8   :  { %v2963_v34 = vpop.f32.mrb[9].mxu1  ;;  %v4166_v31 = vpop.eup %4165  ;;  %3167 = vst [vmem:[%s5980_s2 + $0x28] sm:$0xff] %v4164_v17  ;;  %4187 = vtanh.f32 %v2257_v23 }
 0x1a9   :  { %v2259_v26 = vpop.f32.mrb[10].mxu0  ;;  %v2965_v41 = vpop.f32.mrb[10].mxu1  ;;  %3295 = vst [vmem:[%s5980_s2 + $0x38] sm:$0xff] %v4166_v31  ;;  %4189 = vtanh.f32 %v2963_v34 }
 0x1aa   :  { %v4168_v55 = vpop.eup %4167  ;;  %v2261_v51 = vpop.f32.mrb[11].mxu0  ;;  %4191 = vtanh.f32 %v2259_v26 }
 0x1ab   :  { %v2967_v52 = vpop.f32.mrb[11].mxu1  ;;  %v4170_v0 = vpop.eup %4169  ;;  %3168 = vst [vmem:[%s5980_s2 + $0x40] sm:$0xff] %v4168_v55  ;;  %4193 = vtanh.f32 %v2965_v41 }
 0x1ac   :  { %v4172_v1 = vpop.eup %4171  ;;  %3296 = vst [vmem:[%s5980_s2 + $0x50] sm:$0xff] %v4170_v0  ;;  %4195 = vtanh.f32 %v2261_v51 }
 0x1ad   :  { %v4174_v16 = vpop.eup %4173  ;;  %3169 = vst [vmem:[%s5980_s2 + $0x48] sm:$0xff] %v4172_v1  ;;  %4197 = vtanh.f32 %v2967_v52  ;;  %v2265_v49 = vpop.f32.mrb[12].mxu0 }
 0x1ae   :  { %v4176_v18 = vpop.eup %4175  ;;  %3297 = vst [vmem:[%s5980_s2 + $0x58] sm:$0xff] %v4174_v16  ;;  %v2971_v7 = vpop.f32.mrb[12].mxu1  ;;  %4199 = vtanh.f32 %v2265_v49 }
 0x1af   :  { %v4178_v32 = vpop.eup %4177  ;;  %3170 = vst [vmem:[%s5980_s2 + $0x60] sm:$0xff] %v4176_v18  ;;  %v2267_v24 = vpop.f32.mrb[13].mxu0  ;;  %4201 = vtanh.f32 %v2971_v7 }
 0x1b0   :  { %v4180_v15 = vpop.eup %4179  ;;  %3298 = vst [vmem:[%s5980_s2 + $0x70] sm:$0xff] %v4178_v32  ;;  %v2973_v37 = vpop.f32.mrb[13].mxu1  ;;  %4203 = vtanh.f32 %v2267_v24 }
 0x1b1   :  { %v4182_v59 = vpop.eup %4181  ;;  %3171 = vst [vmem:[%s5980_s2 + $0x68] sm:$0xff] %v4180_v15  ;;  %v2269_v60 = vpop.f32.mrb[14].mxu0  ;;  %4205 = vtanh.f32 %v2973_v37 }
 0x1b2   :  { %v2975_v2 = vpop.f32.mrb[14].mxu1  ;;  %v4184_v13 = vpop.eup %4183  ;;  %3299 = vst [vmem:[%s5980_s2 + $0x78] sm:$0xff] %v4182_v59  ;;  %4207 = vtanh.f32 %v2269_v60 }
 0x1b3   :  { %v2271_v33 = vpop.f32.mrb[15].mxu0  ;;  %v2977_v36 = vpop.f32.mrb[15].mxu1  ;;  %3172 = vst [vmem:[%s5980_s2 + $0x80] sm:$0xff] %v4184_v13  ;;  %4209 = vtanh.f32 %v2975_v2 }
 0x1b4   :  { %v4186_v43 = vpop.eup %4185  ;;  %4211 = vtanh.f32 %v2271_v33 }
 0x1b5   :  { %v4188_v53 = vpop.eup %4187  ;;  %3300 = vst [vmem:[%s5980_s2 + $0x90] sm:$0xff] %v4186_v43  ;;  %4213 = vtanh.f32 %v2977_v36  ;;  %v2275_v44 = vpop.f32.mrb[16].mxu0 }
 0x1b6   :  { %v4190_v5 = vpop.eup %4189  ;;  %3173 = vst [vmem:[%s5980_s2 + $0x88] sm:$0xff] %v4188_v53  ;;  %v2981_v40 = vpop.f32.mrb[16].mxu1  ;;  %4215 = vtanh.f32 %v2275_v44 }
 0x1b7   :  { %v4192_v6 = vpop.eup %4191  ;;  %3301 = vst [vmem:[%s5980_s2 + $0x98] sm:$0xff] %v4190_v5  ;;  %v2277_v39 = vpop.f32.mrb[17].mxu0  ;;  %4217 = vtanh.f32 %v2981_v40 }
 0x1b8   :  { %v4194_v10 = vpop.eup %4193  ;;  %3174 = vst [vmem:[%s5980_s2 + $0xa0] sm:$0xff] %v4192_v6  ;;  %v2983_v61 = vpop.f32.mrb[17].mxu1  ;;  %4219 = vtanh.f32 %v2277_v39 }
 0x1b9   :  { %v4196_v57 = vpop.eup %4195  ;;  %3302 = vst [vmem:[%s5980_s2 + $0xb0] sm:$0xff] %v4194_v10  ;;  %v2279_v38 = vpop.f32.mrb[18].mxu0  ;;  %4221 = vtanh.f32 %v2983_v61 }
 0x1ba   :  { %v4198_v21 = vpop.eup %4197  ;;  %3175 = vst [vmem:[%s5980_s2 + $0xa8] sm:$0xff] %v4196_v57  ;;  %v2985_v19 = vpop.f32.mrb[18].mxu1  ;;  %4223 = vtanh.f32 %v2279_v38 }
 0x1bb   :  { %v4200_v30 = vpop.eup %4199  ;;  %3303 = vst [vmem:[%s5980_s2 + $0xb8] sm:$0xff] %v4198_v21  ;;  %v2281_v8 = vpop.f32.mrb[19].mxu0  ;;  %4225 = vtanh.f32 %v2985_v19 }
 0x1bc   :  { %v2987_v3 = vpop.f32.mrb[19].mxu1  ;;  %v4202_v29 = vpop.eup %4201  ;;  %3176 = vst [vmem:[%s5980_s2 + $0xc0] sm:$0xff] %v4200_v30  ;;  %4227 = vtanh.f32 %v2281_v8 }
 0x1bd   :  { %v4204_v46 = vpop.eup %4203  ;;  %3304 = vst [vmem:[%s5980_s2 + $0xd0] sm:$0xff] %v4202_v29  ;;  %4229 = vtanh.f32 %v2987_v3  ;;  %v2285_v25 = vpop.f32.mrb[20].mxu0 }
 0x1be   :  { %v4206_v47 = vpop.eup %4205  ;;  %3177 = vst [vmem:[%s5980_s2 + $0xc8] sm:$0xff] %v4204_v46  ;;  %v2991_v28 = vpop.f32.mrb[20].mxu1  ;;  %4231 = vtanh.f32 %v2285_v25 }
 0x1bf   :  { %v4208_v50 = vpop.eup %4207  ;;  %3305 = vst [vmem:[%s5980_s2 + $0xd8] sm:$0xff] %v4206_v47  ;;  %v2287_v11 = vpop.f32.mrb[21].mxu0  ;;  %4233 = vtanh.f32 %v2991_v28 }
 0x1c0   :  { %v4210_v48 = vpop.eup %4209  ;;  %3178 = vst [vmem:[%s5980_s2 + $0xe0] sm:$0xff] %v4208_v50  ;;  %v2993_v27 = vpop.f32.mrb[21].mxu1  ;;  %4235 = vtanh.f32 %v2287_v11 }
 0x1c1   :  { %v4212_v14 = vpop.eup %4211  ;;  %3306 = vst [vmem:[%s5980_s2 + $0xf0] sm:$0xff] %v4210_v48  ;;  %v2289_v63 = vpop.f32.mrb[22].mxu0  ;;  %4237 = vtanh.f32 %v2993_v27 }
 0x1c2   :  { %v4214_v54 = vpop.eup %4213  ;;  %3179 = vst [vmem:[%s5980_s2 + $0xe8] sm:$0xff] %v4212_v14  ;;  %v2995_v62 = vpop.f32.mrb[22].mxu1  ;;  %4239 = vtanh.f32 %v2289_v63 }
 0x1c3   :  { %v4216_v56 = vpop.eup %4215  ;;  %3307 = vst [vmem:[%s5980_s2 + $0xf8] sm:$0xff] %v4214_v54  ;;  %v2291_v9 = vpop.f32.mrb[23].mxu0  ;;  %4241 = vtanh.f32 %v2995_v62 }
 0x1c4   :  { %v2997_v22 = vpop.f32.mrb[23].mxu1  ;;  %v4218_v58 = vpop.eup %4217  ;;  %3180 = vst [vmem:[%s5980_s2 + $0x100] sm:$0xff] %v4216_v56  ;;  %4243 = vtanh.f32 %v2291_v9 }
 0x1c5   :  { %v4220_v35 = vpop.eup %4219  ;;  %3308 = vst [vmem:[%s5980_s2 + $0x110] sm:$0xff] %v4218_v58  ;;  %4245 = vtanh.f32 %v2997_v22  ;;  %v2295_v45 = vpop.f32.mrb[24].mxu0 }
 0x1c6   :  { %v4222_v42 = vpop.eup %4221  ;;  %3181 = vst [vmem:[%s5980_s2 + $0x108] sm:$0xff] %v4220_v35  ;;  %v3001_v12 = vpop.f32.mrb[24].mxu1  ;;  %4247 = vtanh.f32 %v2295_v45 }
 0x1c7   :  { %v4224_v20 = vpop.eup %4223  ;;  %3309 = vst [vmem:[%s5980_s2 + $0x118] sm:$0xff] %v4222_v42  ;;  %v2297_v23 = vpop.f32.mrb[25].mxu0  ;;  %4249 = vtanh.f32 %v3001_v12 }
 0x1c8   :  { %v4226_v4 = vpop.eup %4225  ;;  %3182 = vst [vmem:[%s5980_s2 + $0x120] sm:$0xff] %v4224_v20  ;;  %v3003_v34 = vpop.f32.mrb[25].mxu1  ;;  %4251 = vtanh.f32 %v2297_v23 }
 0x1c9   :  { %v4228_v17 = vpop.eup %4227  ;;  %3310 = vst [vmem:[%s5980_s2 + $0x130] sm:$0xff] %v4226_v4  ;;  %v2299_v26 = vpop.f32.mrb[26].mxu0  ;;  %4253 = vtanh.f32 %v3003_v34 }
 0x1ca   :  { %v4230_v31 = vpop.eup %4229  ;;  %3183 = vst [vmem:[%s5980_s2 + $0x128] sm:$0xff] %v4228_v17  ;;  %v3005_v41 = vpop.f32.mrb[26].mxu1  ;;  %4255 = vtanh.f32 %v2299_v26 }
 0x1cb   :  { %v4232_v55 = vpop.eup %4231  ;;  %3311 = vst [vmem:[%s5980_s2 + $0x138] sm:$0xff] %v4230_v31  ;;  %v2301_v51 = vpop.f32.mrb[27].mxu0  ;;  %4257 = vtanh.f32 %v3005_v41 }
 0x1cc   :  { %v3007_v52 = vpop.f32.mrb[27].mxu1  ;;  %v4234_v0 = vpop.eup %4233  ;;  %3184 = vst [vmem:[%s5980_s2 + $0x140] sm:$0xff] %v4232_v55  ;;  %4259 = vtanh.f32 %v2301_v51 }
 0x1cd   :  { %v4236_v1 = vpop.eup %4235  ;;  %3312 = vst [vmem:[%s5980_s2 + $0x150] sm:$0xff] %v4234_v0  ;;  %4261 = vtanh.f32 %v3007_v52  ;;  %v2305_v49 = vpop.f32.mrb[28].mxu0 }
 0x1ce   :  { %v4238_v16 = vpop.eup %4237  ;;  %3185 = vst [vmem:[%s5980_s2 + $0x148] sm:$0xff] %v4236_v1  ;;  %v3011_v7 = vpop.f32.mrb[28].mxu1  ;;  %4263 = vtanh.f32 %v2305_v49 }
 0x1cf   :  { %v4240_v18 = vpop.eup %4239  ;;  %3313 = vst [vmem:[%s5980_s2 + $0x158] sm:$0xff] %v4238_v16  ;;  %v2307_v24 = vpop.f32.mrb[29].mxu0  ;;  %4265 = vtanh.f32 %v3011_v7 }
 0x1d0   :  { %v4242_v32 = vpop.eup %4241  ;;  %3186 = vst [vmem:[%s5980_s2 + $0x160] sm:$0xff] %v4240_v18  ;;  %v3013_v37 = vpop.f32.mrb[29].mxu1  ;;  %4267 = vtanh.f32 %v2307_v24 }
 0x1d1   :  { %v4244_v15 = vpop.eup %4243  ;;  %3314 = vst [vmem:[%s5980_s2 + $0x170] sm:$0xff] %v4242_v32  ;;  %v2309_v60 = vpop.f32.mrb[30].mxu0  ;;  %4269 = vtanh.f32 %v3013_v37 }
 0x1d2   :  { %v4246_v59 = vpop.eup %4245  ;;  %3187 = vst [vmem:[%s5980_s2 + $0x168] sm:$0xff] %v4244_v15  ;;  %v3015_v2 = vpop.f32.mrb[30].mxu1  ;;  %4271 = vtanh.f32 %v2309_v60 }
 0x1d3   :  { %v4248_v13 = vpop.eup %4247  ;;  %3315 = vst [vmem:[%s5980_s2 + $0x178] sm:$0xff] %v4246_v59  ;;  %v2311_v33 = vpop.f32.mrb[31].mxu0  ;;  %4273 = vtanh.f32 %v3015_v2 }
 0x1d4   :  { %v3017_v36 = vpop.f32.mrb[31].mxu1  ;;  %v4250_v43 = vpop.eup %4249  ;;  %3188 = vst [vmem:[%s5980_s2 + $0x180] sm:$0xff] %v4248_v13  ;;  %4275 = vtanh.f32 %v2311_v33 }
 0x1d5   :  { %v4252_v53 = vpop.eup %4251  ;;  %3316 = vst [vmem:[%s5980_s2 + $0x190] sm:$0xff] %v4250_v43  ;;  %4277 = vtanh.f32 %v3017_v36  ;;  %v2315_v44 = vpop.f32.mrb[32].mxu0 }
 0x1d6   :  { %v4254_v5 = vpop.eup %4253  ;;  %3189 = vst [vmem:[%s5980_s2 + $0x188] sm:$0xff] %v4252_v53  ;;  %v3021_v40 = vpop.f32.mrb[32].mxu1  ;;  %4279 = vtanh.f32 %v2315_v44 }
 0x1d7   :  { %v4256_v6 = vpop.eup %4255  ;;  %3317 = vst [vmem:[%s5980_s2 + $0x198] sm:$0xff] %v4254_v5  ;;  %v2317_v39 = vpop.f32.mrb[33].mxu0  ;;  %4281 = vtanh.f32 %v3021_v40 }
 0x1d8   :  { %v4258_v10 = vpop.eup %4257  ;;  %3190 = vst [vmem:[%s5980_s2 + $0x1a0] sm:$0xff] %v4256_v6  ;;  %v3023_v61 = vpop.f32.mrb[33].mxu1  ;;  %4283 = vtanh.f32 %v2317_v39 }
 0x1d9   :  { %v4260_v57 = vpop.eup %4259  ;;  %3318 = vst [vmem:[%s5980_s2 + $0x1b0] sm:$0xff] %v4258_v10  ;;  %v2319_v38 = vpop.f32.mrb[34].mxu0  ;;  %4285 = vtanh.f32 %v3023_v61 }
 0x1da   :  { %v4262_v21 = vpop.eup %4261  ;;  %3191 = vst [vmem:[%s5980_s2 + $0x1a8] sm:$0xff] %v4260_v57  ;;  %v3025_v19 = vpop.f32.mrb[34].mxu1  ;;  %4287 = vtanh.f32 %v2319_v38 }
 0x1db   :  { %v4264_v30 = vpop.eup %4263  ;;  %3319 = vst [vmem:[%s5980_s2 + $0x1b8] sm:$0xff] %v4262_v21  ;;  %v2321_v8 = vpop.f32.mrb[35].mxu0  ;;  %4289 = vtanh.f32 %v3025_v19 }
 0x1dc   :  { %v3027_v3 = vpop.f32.mrb[35].mxu1  ;;  %v4266_v29 = vpop.eup %4265  ;;  %3192 = vst [vmem:[%s5980_s2 + $0x1c0] sm:$0xff] %v4264_v30  ;;  %4291 = vtanh.f32 %v2321_v8 }
 0x1dd   :  { %v4268_v46 = vpop.eup %4267  ;;  %3320 = vst [vmem:[%s5980_s2 + $0x1d0] sm:$0xff] %v4266_v29  ;;  %4293 = vtanh.f32 %v3027_v3  ;;  %v2325_v25 = vpop.f32.mrb[36].mxu0 }
 0x1de   :  { %v4270_v47 = vpop.eup %4269  ;;  %3193 = vst [vmem:[%s5980_s2 + $0x1c8] sm:$0xff] %v4268_v46  ;;  %v3031_v28 = vpop.f32.mrb[36].mxu1  ;;  %4295 = vtanh.f32 %v2325_v25 }
 0x1df   :  { %v4272_v50 = vpop.eup %4271  ;;  %3321 = vst [vmem:[%s5980_s2 + $0x1d8] sm:$0xff] %v4270_v47  ;;  %v2327_v11 = vpop.f32.mrb[37].mxu0  ;;  %4297 = vtanh.f32 %v3031_v28 }
 0x1e0   :  { %v4274_v48 = vpop.eup %4273  ;;  %3194 = vst [vmem:[%s5980_s2 + $0x1e0] sm:$0xff] %v4272_v50  ;;  %v3033_v27 = vpop.f32.mrb[37].mxu1  ;;  %4299 = vtanh.f32 %v2327_v11 }
 0x1e1   :  { %v4276_v14 = vpop.eup %4275  ;;  %3322 = vst [vmem:[%s5980_s2 + $0x1f0] sm:$0xff] %v4274_v48  ;;  %v2329_v63 = vpop.f32.mrb[38].mxu0  ;;  %4301 = vtanh.f32 %v3033_v27 }
 0x1e2   :  { %v4278_v54 = vpop.eup %4277  ;;  %3195 = vst [vmem:[%s5980_s2 + $0x1e8] sm:$0xff] %v4276_v14  ;;  %v3035_v62 = vpop.f32.mrb[38].mxu1  ;;  %4303 = vtanh.f32 %v2329_v63 }
 0x1e3   :  { %v4280_v56 = vpop.eup %4279  ;;  %3323 = vst [vmem:[%s5980_s2 + $0x1f8] sm:$0xff] %v4278_v54  ;;  %v2331_v9 = vpop.f32.mrb[39].mxu0  ;;  %4305 = vtanh.f32 %v3035_v62 }
 0x1e4   :  { %v3037_v22 = vpop.f32.mrb[39].mxu1  ;;  %v4282_v58 = vpop.eup %4281  ;;  %3196 = vst [vmem:[%s5980_s2 + $0x200] sm:$0xff] %v4280_v56  ;;  %4307 = vtanh.f32 %v2331_v9 }
 0x1e5   :  { %v4284_v35 = vpop.eup %4283  ;;  %3324 = vst [vmem:[%s5980_s2 + $0x210] sm:$0xff] %v4282_v58  ;;  %4309 = vtanh.f32 %v3037_v22  ;;  %v2335_v45 = vpop.f32.mrb[40].mxu0 }
 0x1e6   :  { %v4286_v42 = vpop.eup %4285  ;;  %3197 = vst [vmem:[%s5980_s2 + $0x208] sm:$0xff] %v4284_v35  ;;  %v3041_v12 = vpop.f32.mrb[40].mxu1  ;;  %4311 = vtanh.f32 %v2335_v45 }
 0x1e7   :  { %v4288_v20 = vpop.eup %4287  ;;  %3325 = vst [vmem:[%s5980_s2 + $0x218] sm:$0xff] %v4286_v42  ;;  %v2337_v23 = vpop.f32.mrb[41].mxu0  ;;  %4313 = vtanh.f32 %v3041_v12 }
 0x1e8   :  { %v4290_v4 = vpop.eup %4289  ;;  %3198 = vst [vmem:[%s5980_s2 + $0x220] sm:$0xff] %v4288_v20  ;;  %v3043_v34 = vpop.f32.mrb[41].mxu1  ;;  %4315 = vtanh.f32 %v2337_v23 }
 0x1e9   :  { %v4292_v17 = vpop.eup %4291  ;;  %3326 = vst [vmem:[%s5980_s2 + $0x230] sm:$0xff] %v4290_v4  ;;  %v2339_v26 = vpop.f32.mrb[42].mxu0  ;;  %4317 = vtanh.f32 %v3043_v34 }
 0x1ea   :  { %v4294_v31 = vpop.eup %4293  ;;  %3199 = vst [vmem:[%s5980_s2 + $0x228] sm:$0xff] %v4292_v17  ;;  %v3045_v41 = vpop.f32.mrb[42].mxu1  ;;  %4319 = vtanh.f32 %v2339_v26 }
 0x1eb   :  { %v4296_v55 = vpop.eup %4295  ;;  %3327 = vst [vmem:[%s5980_s2 + $0x238] sm:$0xff] %v4294_v31  ;;  %v2341_v51 = vpop.f32.mrb[43].mxu0  ;;  %4321 = vtanh.f32 %v3045_v41 }
 0x1ec   :  { %v3047_v52 = vpop.f32.mrb[43].mxu1  ;;  %v4298_v0 = vpop.eup %4297  ;;  %3200 = vst [vmem:[%s5980_s2 + $0x240] sm:$0xff] %v4296_v55  ;;  %4323 = vtanh.f32 %v2341_v51 }
 0x1ed   :  { %v4300_v1 = vpop.eup %4299  ;;  %3328 = vst [vmem:[%s5980_s2 + $0x250] sm:$0xff] %v4298_v0  ;;  %4325 = vtanh.f32 %v3047_v52  ;;  %v2345_v49 = vpop.f32.mrb[44].mxu0 }
 0x1ee   :  { %v4302_v16 = vpop.eup %4301  ;;  %3201 = vst [vmem:[%s5980_s2 + $0x248] sm:$0xff] %v4300_v1  ;;  %v3051_v7 = vpop.f32.mrb[44].mxu1  ;;  %4327 = vtanh.f32 %v2345_v49 }
 0x1ef   :  { %v4304_v18 = vpop.eup %4303  ;;  %3329 = vst [vmem:[%s5980_s2 + $0x258] sm:$0xff] %v4302_v16  ;;  %v2347_v24 = vpop.f32.mrb[45].mxu0  ;;  %4329 = vtanh.f32 %v3051_v7 }
 0x1f0   :  { %v4306_v32 = vpop.eup %4305  ;;  %3202 = vst [vmem:[%s5980_s2 + $0x260] sm:$0xff] %v4304_v18  ;;  %v3053_v37 = vpop.f32.mrb[45].mxu1  ;;  %4331 = vtanh.f32 %v2347_v24 }
 0x1f1   :  { %v4308_v15 = vpop.eup %4307  ;;  %3330 = vst [vmem:[%s5980_s2 + $0x270] sm:$0xff] %v4306_v32  ;;  %v2349_v60 = vpop.f32.mrb[46].mxu0  ;;  %4333 = vtanh.f32 %v3053_v37 }
 0x1f2   :  { %v4310_v59 = vpop.eup %4309  ;;  %3203 = vst [vmem:[%s5980_s2 + $0x268] sm:$0xff] %v4308_v15  ;;  %v3055_v2 = vpop.f32.mrb[46].mxu1  ;;  %4335 = vtanh.f32 %v2349_v60 }
 0x1f3   :  { %v4312_v13 = vpop.eup %4311  ;;  %3331 = vst [vmem:[%s5980_s2 + $0x278] sm:$0xff] %v4310_v59  ;;  %v2351_v33 = vpop.f32.mrb[47].mxu0  ;;  %4337 = vtanh.f32 %v3055_v2 }
 0x1f4   :  { %v3057_v36 = vpop.f32.mrb[47].mxu1  ;;  %v4314_v43 = vpop.eup %4313  ;;  %3204 = vst [vmem:[%s5980_s2 + $0x280] sm:$0xff] %v4312_v13  ;;  %4339 = vtanh.f32 %v2351_v33 }
 0x1f5   :  { %v4316_v53 = vpop.eup %4315  ;;  %3332 = vst [vmem:[%s5980_s2 + $0x290] sm:$0xff] %v4314_v43  ;;  %4341 = vtanh.f32 %v3057_v36  ;;  %v2355_v44 = vpop.f32.mrb[48].mxu0 }
 0x1f6   :  { %v4318_v5 = vpop.eup %4317  ;;  %3205 = vst [vmem:[%s5980_s2 + $0x288] sm:$0xff] %v4316_v53  ;;  %v3061_v40 = vpop.f32.mrb[48].mxu1  ;;  %4343 = vtanh.f32 %v2355_v44 }
 0x1f7   :  { %v4320_v6 = vpop.eup %4319  ;;  %3333 = vst [vmem:[%s5980_s2 + $0x298] sm:$0xff] %v4318_v5  ;;  %v2357_v39 = vpop.f32.mrb[49].mxu0  ;;  %4345 = vtanh.f32 %v3061_v40 }
 0x1f8   :  { %v4322_v10 = vpop.eup %4321  ;;  %3206 = vst [vmem:[%s5980_s2 + $0x2a0] sm:$0xff] %v4320_v6  ;;  %v3063_v61 = vpop.f32.mrb[49].mxu1  ;;  %4347 = vtanh.f32 %v2357_v39 }
 0x1f9   :  { %v4324_v57 = vpop.eup %4323  ;;  %3334 = vst [vmem:[%s5980_s2 + $0x2b0] sm:$0xff] %v4322_v10  ;;  %v2359_v38 = vpop.f32.mrb[50].mxu0  ;;  %4349 = vtanh.f32 %v3063_v61 }
 0x1fa   :  { %v4326_v21 = vpop.eup %4325  ;;  %3207 = vst [vmem:[%s5980_s2 + $0x2a8] sm:$0xff] %v4324_v57  ;;  %v3065_v19 = vpop.f32.mrb[50].mxu1  ;;  %4351 = vtanh.f32 %v2359_v38 }
 0x1fb   :  { %v4328_v30 = vpop.eup %4327  ;;  %3335 = vst [vmem:[%s5980_s2 + $0x2b8] sm:$0xff] %v4326_v21  ;;  %v2361_v8 = vpop.f32.mrb[51].mxu0  ;;  %4353 = vtanh.f32 %v3065_v19 }
 0x1fc   :  { %v3067_v3 = vpop.f32.mrb[51].mxu1  ;;  %v4330_v29 = vpop.eup %4329  ;;  %3208 = vst [vmem:[%s5980_s2 + $0x2c0] sm:$0xff] %v4328_v30  ;;  %4355 = vtanh.f32 %v2361_v8 }
 0x1fd   :  { %v4332_v46 = vpop.eup %4331  ;;  %3336 = vst [vmem:[%s5980_s2 + $0x2d0] sm:$0xff] %v4330_v29  ;;  %4357 = vtanh.f32 %v3067_v3  ;;  %v2365_v25 = vpop.f32.mrb[52].mxu0 }
 0x1fe   :  { %v4334_v47 = vpop.eup %4333  ;;  %3209 = vst [vmem:[%s5980_s2 + $0x2c8] sm:$0xff] %v4332_v46  ;;  %v3071_v28 = vpop.f32.mrb[52].mxu1  ;;  %4359 = vtanh.f32 %v2365_v25 }
 0x1ff   :  { %v4336_v50 = vpop.eup %4335  ;;  %3337 = vst [vmem:[%s5980_s2 + $0x2d8] sm:$0xff] %v4334_v47  ;;  %v2367_v11 = vpop.f32.mrb[53].mxu0  ;;  %4361 = vtanh.f32 %v3071_v28 }
 0x200   :  { %v4338_v48 = vpop.eup %4337  ;;  %3210 = vst [vmem:[%s5980_s2 + $0x2e0] sm:$0xff] %v4336_v50  ;;  %v3073_v27 = vpop.f32.mrb[53].mxu1  ;;  %4363 = vtanh.f32 %v2367_v11 }
 0x201   :  { %v4340_v14 = vpop.eup %4339  ;;  %3338 = vst [vmem:[%s5980_s2 + $0x2f0] sm:$0xff] %v4338_v48  ;;  %v2369_v63 = vpop.f32.mrb[54].mxu0  ;;  %4365 = vtanh.f32 %v3073_v27 }
 0x202   :  { %v4342_v54 = vpop.eup %4341  ;;  %3211 = vst [vmem:[%s5980_s2 + $0x2e8] sm:$0xff] %v4340_v14  ;;  %v3075_v62 = vpop.f32.mrb[54].mxu1  ;;  %4367 = vtanh.f32 %v2369_v63 }
 0x203   :  { %v4344_v56 = vpop.eup %4343  ;;  %3339 = vst [vmem:[%s5980_s2 + $0x2f8] sm:$0xff] %v4342_v54  ;;  %v2371_v9 = vpop.f32.mrb[55].mxu0  ;;  %4369 = vtanh.f32 %v3075_v62 }
 0x204   :  { %v3077_v22 = vpop.f32.mrb[55].mxu1  ;;  %v4346_v58 = vpop.eup %4345  ;;  %3212 = vst [vmem:[%s5980_s2 + $0x300] sm:$0xff] %v4344_v56  ;;  %4371 = vtanh.f32 %v2371_v9 }
 0x205   :  { %v4348_v35 = vpop.eup %4347  ;;  %3340 = vst [vmem:[%s5980_s2 + $0x310] sm:$0xff] %v4346_v58  ;;  %4373 = vtanh.f32 %v3077_v22  ;;  %v2375_v45 = vpop.f32.mrb[56].mxu0 }
 0x206   :  { %v4350_v42 = vpop.eup %4349  ;;  %3213 = vst [vmem:[%s5980_s2 + $0x308] sm:$0xff] %v4348_v35  ;;  %v3081_v12 = vpop.f32.mrb[56].mxu1  ;;  %4375 = vtanh.f32 %v2375_v45 }
 0x207   :  { %v4352_v20 = vpop.eup %4351  ;;  %3341 = vst [vmem:[%s5980_s2 + $0x318] sm:$0xff] %v4350_v42  ;;  %v2377_v23 = vpop.f32.mrb[57].mxu0  ;;  %4377 = vtanh.f32 %v3081_v12 }
 0x208   :  { %v4354_v4 = vpop.eup %4353  ;;  %3214 = vst [vmem:[%s5980_s2 + $0x320] sm:$0xff] %v4352_v20  ;;  %v3083_v34 = vpop.f32.mrb[57].mxu1  ;;  %4379 = vtanh.f32 %v2377_v23 }
 0x209   :  { %v4356_v17 = vpop.eup %4355  ;;  %3342 = vst [vmem:[%s5980_s2 + $0x330] sm:$0xff] %v4354_v4  ;;  %v2379_v26 = vpop.f32.mrb[58].mxu0  ;;  %4381 = vtanh.f32 %v3083_v34 }
 0x20a   :  { %v4358_v31 = vpop.eup %4357  ;;  %3215 = vst [vmem:[%s5980_s2 + $0x328] sm:$0xff] %v4356_v17  ;;  %v3085_v41 = vpop.f32.mrb[58].mxu1  ;;  %4383 = vtanh.f32 %v2379_v26 }
 0x20b   :  { %v4360_v55 = vpop.eup %4359  ;;  %3343 = vst [vmem:[%s5980_s2 + $0x338] sm:$0xff] %v4358_v31  ;;  %v2381_v51 = vpop.f32.mrb[59].mxu0  ;;  %4385 = vtanh.f32 %v3085_v41 }
 0x20c   :  { %v3087_v52 = vpop.f32.mrb[59].mxu1  ;;  %v4362_v0 = vpop.eup %4361  ;;  %3216 = vst [vmem:[%s5980_s2 + $0x340] sm:$0xff] %v4360_v55  ;;  %4387 = vtanh.f32 %v2381_v51 }
 0x20d   :  { %v4364_v1 = vpop.eup %4363  ;;  %3344 = vst [vmem:[%s5980_s2 + $0x350] sm:$0xff] %v4362_v0  ;;  %4389 = vtanh.f32 %v3087_v52  ;;  %v2385_v49 = vpop.f32.mrb[60].mxu0 }
 0x20e   :  { %v4366_v16 = vpop.eup %4365  ;;  %3217 = vst [vmem:[%s5980_s2 + $0x348] sm:$0xff] %v4364_v1  ;;  %v3091_v7 = vpop.f32.mrb[60].mxu1  ;;  %4391 = vtanh.f32 %v2385_v49 }
 0x20f   :  { %v4368_v18 = vpop.eup %4367  ;;  %3345 = vst [vmem:[%s5980_s2 + $0x358] sm:$0xff] %v4366_v16  ;;  %v2387_v24 = vpop.f32.mrb[61].mxu0  ;;  %4393 = vtanh.f32 %v3091_v7 }
 0x210   :  { %v4370_v32 = vpop.eup %4369  ;;  %3218 = vst [vmem:[%s5980_s2 + $0x360] sm:$0xff] %v4368_v18  ;;  %v3093_v37 = vpop.f32.mrb[61].mxu1  ;;  %4395 = vtanh.f32 %v2387_v24 }
 0x211   :  { %v4372_v15 = vpop.eup %4371  ;;  %3346 = vst [vmem:[%s5980_s2 + $0x370] sm:$0xff] %v4370_v32  ;;  %v2389_v60 = vpop.f32.mrb[62].mxu0  ;;  %4397 = vtanh.f32 %v3093_v37 }
 0x212   :  { %v4374_v59 = vpop.eup %4373  ;;  %3219 = vst [vmem:[%s5980_s2 + $0x368] sm:$0xff] %v4372_v15  ;;  %v3095_v2 = vpop.f32.mrb[62].mxu1  ;;  %4399 = vtanh.f32 %v2389_v60 }
 0x213   :  { %v4376_v13 = vpop.eup %4375  ;;  %3347 = vst [vmem:[%s5980_s2 + $0x378] sm:$0xff] %v4374_v59  ;;  %v2391_v33 = vpop.f32.mrb[63].mxu0  ;;  %4401 = vtanh.f32 %v3095_v2 }
 0x214   :  { %v3097_v36 = vpop.f32.mrb[63].mxu1  ;;  %v4378_v43 = vpop.eup %4377  ;;  %3220 = vst [vmem:[%s5980_s2 + $0x380] sm:$0xff] %v4376_v13  ;;  %4403 = vtanh.f32 %v2391_v33 }
 0x215   :  { %v4380_v53 = vpop.eup %4379  ;;  %3348 = vst [vmem:[%s5980_s2 + $0x390] sm:$0xff] %v4378_v43  ;;  %4405 = vtanh.f32 %v3097_v36 }
 0x216   :  { %v4382_v5 = vpop.eup %4381  ;;  %3221 = vst [vmem:[%s5980_s2 + $0x388] sm:$0xff] %v4380_v53 }
 0x217   :  { %v4384_v6 = vpop.eup %4383  ;;  %3349 = vst [vmem:[%s5980_s2 + $0x398] sm:$0xff] %v4382_v5 }
 0x218   :  { %v4386_v10 = vpop.eup %4385  ;;  %3222 = vst [vmem:[%s5980_s2 + $0x3a0] sm:$0xff] %v4384_v6 }
 0x219   :  { %v4388_v44 = vpop.eup %4387  ;;  %3350 = vst [vmem:[%s5980_s2 + $0x3b0] sm:$0xff] %v4386_v10 }
 0x21a   :  { %v4390_v40 = vpop.eup %4389  ;;  %3223 = vst [vmem:[%s5980_s2 + $0x3a8] sm:$0xff] %v4388_v44 }
 0x21b   :  { %v4392_v57 = vpop.eup %4391  ;;  %3351 = vst [vmem:[%s5980_s2 + $0x3b8] sm:$0xff] %v4390_v40 }
 0x21c   :  { %v4394_v39 = vpop.eup %4393  ;;  %3224 = vst [vmem:[%s5980_s2 + $0x3c0] sm:$0xff] %v4392_v57 }
 0x21d   :  { %v4396_v61 = vpop.eup %4395  ;;  %3352 = vst [vmem:[%s5980_s2 + $0x3d0] sm:$0xff] %v4394_v39 }
 0x21e   :  { %v4398_v21 = vpop.eup %4397  ;;  %3225 = vst [vmem:[%s5980_s2 + $0x3c8] sm:$0xff] %v4396_v61 }
 0x21f   :  { %v4400_v38 = vpop.eup %4399  ;;  %3353 = vst [vmem:[%s5980_s2 + $0x3d8] sm:$0xff] %v4398_v21 }
 0x220   :  { %v4402_v19 = vpop.eup %4401  ;;  %3226 = vst [vmem:[%s5980_s2 + $0x3e0] sm:$0xff] %v4400_v38 }
 0x221   :  { %v4404_v30 = vpop.eup %4403  ;;  %3354 = vst [vmem:[%s5980_s2 + $0x3f0] sm:$0xff] %v4402_v19 }
 0x222   :  { %v4406_v8 = vpop.eup %4405  ;;  %3227 = vst [vmem:[%s5980_s2 + $0x3e8] sm:$0xff] %v4404_v30 }
 0x223   :  { %3355 = vst [vmem:[%s5980_s2 + $0x3f8] sm:$0xff] %v4406_v8 }

</bundles_post_ra>
